<compile_context>
chip_gen: v7x
topology: tpu7x:2x2x1
jax: 0.10.0
libtpu: 0.0.40
codegen_flags: <defaults>
</compile_context>

<pallas_src>
import functools

import jax
import jax.numpy as jnp
from jax import lax
from jax.experimental import pallas as pl
from jax.experimental.pallas import tpu as pltpu

LANE = 128      # TPU lane width
SUBLANE = 8     # TPU sublane width

MATMUL_DTYPE = jnp.bfloat16   # MXU operand dtype (accumulation stays f32)
SEQ_DTYPE = jnp.bfloat16      # inter-layer hidden-sequence dtype (HBM traffic)


def _round_up(x, m):
    return (x + m - 1) // m * m


# ----------------------------------------------------------------------------
# Hardware / tiling helpers
# ----------------------------------------------------------------------------
def _vmem_capacity_bytes():
    """Per-core VMEM capacity; conservative 64 MiB (v7x) if the query fails."""
    try:
        info = pltpu.get_tpu_info()
        cap = getattr(info, "vmem_capacity_bytes", None)
        if cap:
            return int(cap)
    except Exception:
        pass
    return 64 << 20


def _tile_footprint_bytes(Bt, Tt, Dp, Hp, O, in_bytes, out_bytes, weight_buffers):
    """Rough per-core VMEM footprint of one layer's tiles + weights + scratch."""
    wb = jnp.dtype(MATMUL_DTYPE).itemsize
    f32 = 4
    weights = weight_buffers * (
        (Dp * 4 * Hp + Hp * 4 * Hp + Hp * max(O, 1)) * wb + (4 * Hp + max(O, 1)) * f32)
    io = (2 * Tt * Bt * Dp * in_bytes
          + 2 * max(Tt * Bt * Hp * out_bytes, Bt * max(O, 1) * f32))
    scratch = 2 * Bt * Hp * f32 + Tt * Bt * 4 * Hp * f32
    return weights + io + scratch


def _vmem_limit_bytes(footprint_bytes):
    """Scoped-VMEM budget: footprint * headroom, clamped to ~85% of physical."""
    cap = int(0.85 * _vmem_capacity_bytes())
    want = int(1.5 * footprint_bytes) + (4 << 20)
    return int(min(max(want, 8 << 20), cap))


def _pick_tiles(B, T, Dp, Hp, O):
    """Batch block (up to 128), padded batch, and the largest time tile that
    divides T and fits the VMEM budget. Time is the leading block dim, so Tt
    has no (8,128) constraint — any divisor of T is legal (worst case Tt=1)."""
    Bt = min(128, _round_up(B, SUBLANE))
    Bp = _round_up(B, Bt)
    budget = int(0.6 * _vmem_capacity_bytes())
    in_b = jnp.dtype(MATMUL_DTYPE).itemsize
    out_b = jnp.dtype(SEQ_DTYPE).itemsize
    divisors = sorted((d for d in range(1, min(T, 128) + 1) if T % d == 0),
                      reverse=True)
    Tt = divisors[-1]  # smallest divisor (=1) as a guaranteed-correct fallback
    for d in divisors:
        if _tile_footprint_bytes(Bt, d, Dp, Hp, O, in_b, out_b, 1) <= budget:
            Tt = d
            break
    return Bt, Bp, Tt


# ----------------------------------------------------------------------------
# Kernels (time-major tiles)
# ----------------------------------------------------------------------------
def _hoist_input_projection(x_ref, w_ih_ref, b_ref, gx_scr):
    """gx_scr[t, b, :] = x[t, b, :] @ W_ih + bias, written in row chunks so the
    full (Tt*Bt, 4Hp) intermediate never has to live in vregs at once."""
    Tt, Bt, Dp = x_ref.shape
    Hp4 = gx_scr.shape[-1]
    tc = max(1, min(Tt, max(1, 512 // Bt)))         # ~512 matmul rows per chunk
    for t0 in range(0, Tt, tc):
        ts = min(tc, Tt - t0)
        xc = x_ref[pl.ds(t0, ts)].reshape(ts * Bt, Dp).astype(w_ih_ref.dtype)
        gc = jnp.dot(xc, w_ih_ref[...],
                     preferred_element_type=jnp.float32) + b_ref[...]
        gx_scr[pl.ds(t0, ts)] = gc.reshape(ts, Bt, Hp4)


def _lstm_recurrence(gx_scr, w_hh_ref, h0, c0, Tt, out_ref=None):
    """Serial recurrence over the time tile. Only h @ W_hh is done per step
    (the input projection is hoisted); W_hh is streamed from its VMEM ref.
    Gate slices are lane-aligned (Hp % 128 == 0)."""
    Hp = h0.shape[-1]

    def body(t, carry):
        h, c = carry
        gates = gx_scr[t] + jnp.dot(h.astype(w_hh_ref.dtype), w_hh_ref[...],
                                    preferred_element_type=jnp.float32)
        i_g = jax.nn.sigmoid(gates[:, 0 * Hp:1 * Hp])
        f_g = jax.nn.sigmoid(gates[:, 1 * Hp:2 * Hp])
        g_g = jnp.tanh(gates[:, 2 * Hp:3 * Hp])
        o_g = jax.nn.sigmoid(gates[:, 3 * Hp:4 * Hp])
        c_new = f_g * c + i_g * g_g
        h_new = o_g * jnp.tanh(c_new)
        if out_ref is not None:
            out_ref[t] = h_new.astype(out_ref.dtype)
        return h_new, c_new

    unroll = max(1, min(Tt, 8))
    return lax.fori_loop(0, Tt, body, (h0, c0), unroll=unroll)


def lstm_seq_kernel(x_ref, w_ih_ref, w_hh_ref, b_ref, out_ref, h_scr, c_scr, gx_scr):
    """One LSTM layer over a (batch-block, time-tile); emits the hidden sequence.

    x_ref   : (Tt, Bt, Dp)   time-major input tile
    w_ih_ref: (Dp, 4Hp)      input->gates weights (bf16, gate-padded)
    w_hh_ref: (Hp, 4Hp)      hidden->gates weights (bf16)
    b_ref   : (1, 4Hp)       combined bias (f32)
    out_ref : (Tt, Bt, Hp)   hidden-state sequence tile (SEQ_DTYPE)
    h/c_scr : (Bt, Hp)       recurrent state, persists across the time grid axis
    gx_scr  : (Tt, Bt, 4Hp)  hoisted input projection (f32)
    """
    ti = pl.program_id(1)
    Tt = x_ref.shape[0]

    @pl.when(ti == 0)
    def _():                                    # fresh (h0, c0) per batch block
        h_scr[...] = jnp.zeros_like(h_scr)
        c_scr[...] = jnp.zeros_like(c_scr)

    _hoist_input_projection(x_ref, w_ih_ref, b_ref, gx_scr)
    h, c = _lstm_recurrence(gx_scr, w_hh_ref, h_scr[...], c_scr[...], Tt,
                            out_ref=out_ref)
    h_scr[...] = h
    c_scr[...] = c


def lstm_last_fc_kernel(x_ref, w_ih_ref, w_hh_ref, b_ref, fc_w_ref, fc_b_ref,
                        out_ref, h_scr, c_scr, gx_scr):
    """Last LSTM layer fused with the final Linear. The (T, B, H) sequence is
    never written back; only fc(h_T) is emitted at the last time tile.
    out_ref: (Bt, O)
    """
    ti = pl.program_id(1)
    Tt = x_ref.shape[0]

    @pl.when(ti == 0)
    def _():
        h_scr[...] = jnp.zeros_like(h_scr)
        c_scr[...] = jnp.zeros_like(c_scr)

    _hoist_input_projection(x_ref, w_ih_ref, b_ref, gx_scr)
    h, c = _lstm_recurrence(gx_scr, w_hh_ref, h_scr[...], c_scr[...], Tt,
                            out_ref=None)
    h_scr[...] = h
    c_scr[...] = c

    @pl.when(ti == pl.num_programs(1) - 1)      # fc(out[:, -1, :]) fused in
    def _():
        out_ref[...] = (
            jnp.dot(h.astype(fc_w_ref.dtype), fc_w_ref[...],
                    preferred_element_type=jnp.float32)
            + fc_b_ref[...]
        ).astype(out_ref.dtype)


# ----------------------------------------------------------------------------
# pallas_call wrappers
# ----------------------------------------------------------------------------
def _lstm_layer_seq(x, layer, Bt, Tt, weight_spec_kwargs):
    T, Bp, Dp = x.shape
    Hp = layer["w_hh_t"].shape[0]
    grid = (Bp // Bt, T // Tt)
    in_b = jnp.dtype(x.dtype).itemsize
    out_b = jnp.dtype(SEQ_DTYPE).itemsize
    wbuf = 1 if weight_spec_kwargs else 2
    foot = _tile_footprint_bytes(Bt, Tt, Dp, Hp, 0, in_b, out_b, wbuf)
    w_bytes = jnp.dtype(MATMUL_DTYPE).itemsize
    flops = 2 * Bp * T * (Dp * 4 * Hp + Hp * 4 * Hp)
    trans = 5 * Bp * T * Hp
    bytes_acc = (x.size * in_b + Bp * T * Hp * out_b
                 + (Dp + Hp) * 4 * Hp * w_bytes)

    return pl.pallas_call(
        lstm_seq_kernel,
        out_shape=jax.ShapeDtypeStruct((T, Bp, Hp), SEQ_DTYPE),
        grid_spec=pltpu.PrefetchScalarGridSpec(
            num_scalar_prefetch=0,
            grid=grid,
            in_specs=[
                pl.BlockSpec((Tt, Bt, Dp), lambda b, t: (t, b, 0)),
                pl.BlockSpec((Dp, 4 * Hp), lambda b, t: (0, 0), **weight_spec_kwargs),
                pl.BlockSpec((Hp, 4 * Hp), lambda b, t: (0, 0), **weight_spec_kwargs),
                pl.BlockSpec((1, 4 * Hp), lambda b, t: (0, 0), **weight_spec_kwargs),
            ],
            out_specs=pl.BlockSpec((Tt, Bt, Hp), lambda b, t: (t, b, 0)),
            scratch_shapes=[
                pltpu.VMEM((Bt, Hp), jnp.float32),           # h state
                pltpu.VMEM((Bt, Hp), jnp.float32),           # c state
                pltpu.VMEM((Tt, Bt, 4 * Hp), jnp.float32),   # hoisted x-projection
            ],
        ),
        compiler_params=pltpu.CompilerParams(
            dimension_semantics=("parallel", "arbitrary"),   # batch ||, time sequential
            vmem_limit_bytes=_vmem_limit_bytes(foot),
        ),
        cost_estimate=pl.CostEstimate(flops=flops, transcendentals=trans,
                                      bytes_accessed=bytes_acc),
    )(x, layer["w_ih_t"], layer["w_hh_t"], layer["b"])


def _lstm_layer_last_fc(x, layer, fc_w_t, fc_b, Bt, Tt, weight_spec_kwargs):
    T, Bp, Dp = x.shape
    Hp = layer["w_hh_t"].shape[0]
    O = fc_w_t.shape[1]
    grid = (Bp // Bt, T // Tt)
    in_b = jnp.dtype(x.dtype).itemsize
    wbuf = 1 if weight_spec_kwargs else 2
    foot = _tile_footprint_bytes(Bt, Tt, Dp, Hp, O, in_b, 4, wbuf)
    w_bytes = jnp.dtype(MATMUL_DTYPE).itemsize
    flops = 2 * Bp * T * (Dp * 4 * Hp + Hp * 4 * Hp) + 2 * Bp * Hp * O
    trans = 5 * Bp * T * Hp
    bytes_acc = (x.size * in_b + Bp * O * 4
                 + ((Dp + Hp) * 4 * Hp + Hp * O) * w_bytes)

    return pl.pallas_call(
        lstm_last_fc_kernel,
        out_shape=jax.ShapeDtypeStruct((Bp, O), jnp.float32),
        grid_spec=pltpu.PrefetchScalarGridSpec(
            num_scalar_prefetch=0,
            grid=grid,
            in_specs=[
                pl.BlockSpec((Tt, Bt, Dp), lambda b, t: (t, b, 0)),
                pl.BlockSpec((Dp, 4 * Hp), lambda b, t: (0, 0), **weight_spec_kwargs),
                pl.BlockSpec((Hp, 4 * Hp), lambda b, t: (0, 0), **weight_spec_kwargs),
                pl.BlockSpec((1, 4 * Hp), lambda b, t: (0, 0), **weight_spec_kwargs),
                pl.BlockSpec((Hp, O), lambda b, t: (0, 0), **weight_spec_kwargs),
                pl.BlockSpec((1, O), lambda b, t: (0, 0), **weight_spec_kwargs),
            ],
            out_specs=pl.BlockSpec((Bt, O), lambda b, t: (b, 0)),   # written once
            scratch_shapes=[
                pltpu.VMEM((Bt, Hp), jnp.float32),
                pltpu.VMEM((Bt, Hp), jnp.float32),
                pltpu.VMEM((Tt, Bt, 4 * Hp), jnp.float32),
            ],
        ),
        compiler_params=pltpu.CompilerParams(
            dimension_semantics=("parallel", "arbitrary"),
            vmem_limit_bytes=_vmem_limit_bytes(foot),
        ),
        cost_estimate=pl.CostEstimate(flops=flops, transcendentals=trans,
                                      bytes_accessed=bytes_acc),
    )(x, layer["w_ih_t"], layer["w_hh_t"], layer["b"], fc_w_t, fc_b)


def _forward_impl(x, kparams, *, single_buffer_weights):
    """Equivalent of LSTMModel.forward (eval mode)."""
    weight_spec_kwargs = (
        {"pipeline_mode": pl.Buffered(1)} if single_buffer_weights else {})
    B, T, D = x.shape
    Dp0 = kparams["lstm"][0]["w_ih_t"].shape[0]
    Hp = kparams["lstm"][0]["w_hh_t"].shape[0]
    O = kparams["fc_w_t"].shape[1]
    Bt, Bp, Tt = _pick_tiles(B, T, max(Dp0, Hp), Hp, O)

    # Pad batch + features, cast to bf16 (matmul operand dtype anyway), and go
    # time-major so per-step tile accesses are leading-axis accesses.
    xp = jnp.pad(x.astype(MATMUL_DTYPE), ((0, Bp - B), (0, 0), (0, Dp0 - D)))
    out = jnp.transpose(xp, (1, 0, 2))                     # (T, Bp, Dp0)

    for layer in kparams["lstm"][:-1]:          # intermediate layers: full sequence out
        out = _lstm_layer_seq(out, layer, Bt, Tt, weight_spec_kwargs)
    y = _lstm_layer_last_fc(out, kparams["lstm"][-1],
                            kparams["fc_w_t"], kparams["fc_b"],
                            Bt, Tt, weight_spec_kwargs)
    return y[:B]


@functools.lru_cache(maxsize=None)
def _jitted_forward(single_buffer_weights):
    return jax.jit(functools.partial(_forward_impl,
                                     single_buffer_weights=single_buffer_weights))


def lstm_model_forward(x, kparams):
    """Public entry: try single-buffered weight specs (pl.Buffered(1)); if this
    JAX build rejects pipeline_mode there, fall back to default buffering."""
    try:
        y = _jitted_forward(True)(x, kparams)
        jax.block_until_ready(y)
        return y
    except Exception:
        y = _jitted_forward(False)(x, kparams)
        jax.block_until_ready(y)
        return y


# ----------------------------------------------------------------------------
# Parameters: PyTorch-layout init + packing into padded kernel layout
# ----------------------------------------------------------------------------
def init_params(key, input_size, hidden_size, num_layers, output_size):
    """PyTorch-style U(-1/sqrt(H), 1/sqrt(H)) init, in PyTorch weight layout."""
    k = 1.0 / float(hidden_size) ** 0.5
    layers = []
    for l in range(num_layers):
        d_in = input_size if l == 0 else hidden_size
        key, k1, k2, k3, k4 = jax.random.split(key, 5)
        layers.append({
            "w_ih": jax.random.uniform(k1, (4 * hidden_size, d_in), jnp.float32, -k, k),
            "w_hh": jax.random.uniform(k2, (4 * hidden_size, hidden_size), jnp.float32, -k, k),
            "b_ih": jax.random.uniform(k3, (4 * hidden_size,), jnp.float32, -k, k),
            "b_hh": jax.random.uniform(k4, (4 * hidden_size,), jnp.float32, -k, k),
        })
    key, k5, k6 = jax.random.split(key, 3)
    fc_w = jax.random.uniform(k5, (output_size, hidden_size), jnp.float32, -k, k)
    fc_b = jax.random.uniform(k6, (output_size,), jnp.float32, -k, k)
    return {"lstm": layers, "fc_w": fc_w, "fc_b": fc_b}


def pack_params(params, hidden_size):
    """Pad the hidden dim to a lane-dense multiple of 128 (per gate) and the
    layer-0 input dim to a multiple of 128, transpose for (rows, D) @ (D, 4Hp)
    MXU matmuls, cast weights to bf16, and fold b_ih + b_hh (kept in f32).
    Zero padding keeps all padded hidden lanes at exactly h = c = 0."""
    H = hidden_size
    Hp = _round_up(H, LANE)

    def pad_gate_w(W, d_in, d_in_p):
        W4 = W.reshape(4, H, d_in)
        W4 = jnp.pad(W4, ((0, 0), (0, Hp - H), (0, d_in_p - d_in)))
        return W4.reshape(4 * Hp, d_in_p).T.astype(MATMUL_DTYPE)      # (d_in_p, 4Hp)

    def pad_gate_b(b):
        b4 = jnp.pad(b.reshape(4, H), ((0, 0), (0, Hp - H)))
        return b4.reshape(1, 4 * Hp).astype(jnp.float32)

    layers = []
    for l, lay in enumerate(params["lstm"]):
        d_in = lay["w_ih"].shape[1]
        d_in_p = _round_up(d_in, LANE) if l == 0 else Hp   # layers > 0 consume padded h
        layers.append({
            "w_ih_t": pad_gate_w(lay["w_ih"], d_in, d_in_p),
            "w_hh_t": pad_gate_w(lay["w_hh"], H, Hp),
            "b": pad_gate_b(lay["b_ih"] + lay["b_hh"]),
        })
    O = params["fc_w"].shape[0]
    fc_w_t = jnp.pad(params["fc_w"], ((0, 0), (0, Hp - H))).T.astype(MATMUL_DTYPE)  # (Hp, O)
    fc_b = params["fc_b"].reshape(1, O).astype(jnp.float32)
    return {"lstm": layers, "fc_w_t": fc_w_t, "fc_b": fc_b}


# ----------------------------------------------------------------------------
# Pure-JAX f32 reference (unpadded, PyTorch layout) for a sanity check
# ----------------------------------------------------------------------------
def reference_forward(x, params):
    out = x
    for lay in params["lstm"]:
        H = lay["w_hh"].shape[1]
        B = out.shape[0]
        w_ih, w_hh = lay["w_ih"], lay["w_hh"]
        bias = lay["b_ih"] + lay["b_hh"]

        def step(carry, x_t, w_ih=w_ih, w_hh=w_hh, bias=bias, H=H):
            h, c = carry
            gates = x_t @ w_ih.T + h @ w_hh.T + bias
            i = jax.nn.sigmoid(gates[:, 0 * H:1 * H])
            f = jax.nn.sigmoid(gates[:, 1 * H:2 * H])
            g = jnp.tanh(gates[:, 2 * H:3 * H])
            o = jax.nn.sigmoid(gates[:, 3 * H:4 * H])
            c = f * c + i * g
            h = o * jnp.tanh(c)
            return (h, c), h

        init = (jnp.zeros((B, H), jnp.float32), jnp.zeros((B, H), jnp.float32))
        _, hs = jax.lax.scan(step, init, jnp.swapaxes(out, 0, 1))
        out = jnp.swapaxes(hs, 0, 1)
    return out[:, -1, :] @ params["fc_w"].T + params["fc_b"]


# ----------------------------------------------------------------------------
if __name__ == "__main__":
    B, T = 2, 8
    INPUT_SIZE, HIDDEN_SIZE, NUM_LAYERS, OUTPUT_SIZE = 16, 32, 2, 2

    key = jax.random.PRNGKey(0)
    key, xkey = jax.random.split(key)
    x = jax.random.normal(xkey, (B, T, INPUT_SIZE), jnp.float32)

    params = init_params(key, INPUT_SIZE, HIDDEN_SIZE, NUM_LAYERS, OUTPUT_SIZE)
    kparams = pack_params(params, HIDDEN_SIZE)

    y = lstm_model_forward(x, kparams)
    jax.block_until_ready(y)

    y_ref = reference_forward(x, params)
    assert y.shape == (B, OUTPUT_SIZE), y.shape
    # bf16 matmul operands -> looser tolerance than the pure-f32 variant.
    max_err = float(jnp.max(jnp.abs(y - y_ref)))
    assert jnp.allclose(y, y_ref, atol=5e-2, rtol=5e-2), (y, y_ref, max_err)

    print("KERNEL_OK")
</pallas_src>

<mosaic_0001>
module attributes {stable_mosaic.version = 11 : i64} {
  func.func @lstm_seq_kernel(%arg0: i32, %arg1: i32, %arg2: memref<8x8x128xbf16, #tpu.memory_space<vmem>>, %arg3: memref<128x512xbf16, #tpu.memory_space<vmem>>, %arg4: memref<128x512xbf16, #tpu.memory_space<vmem>>, %arg5: memref<1x512xf32, #tpu.memory_space<vmem>>, %arg6: memref<8x8x128xbf16, #tpu.memory_space<vmem>>, %arg7: memref<8x128xf32, #tpu.memory_space<vmem>>, %arg8: memref<8x128xf32, #tpu.memory_space<vmem>>, %arg9: memref<8x8x512xf32, #tpu.memory_space<vmem>>) attributes {dimension_semantics = [#tpu.dimension_semantics<parallel>, #tpu.dimension_semantics<arbitrary>], iteration_bounds = array<i64: 1, 1>, scalar_prefetch = 0 : i64, scratch_operands = 3 : i64, tpu.core_type = #tpu.core_type<tc>, window_params = [{transform_indices = @transform_0, window_bounds = array<i64: 8, 8, 128>}, {pipeline_mode = #tpu.pipeline_mode<synchronous>, transform_indices = @transform_1, window_bounds = array<i64: 128, 512>}, {pipeline_mode = #tpu.pipeline_mode<synchronous>, transform_indices = @transform_2, window_bounds = array<i64: 128, 512>}, {pipeline_mode = #tpu.pipeline_mode<synchronous>, transform_indices = @transform_3, window_bounds = array<i64: 1, 512>}, {transform_indices = @transform_4, window_bounds = array<i64: 8, 8, 128>}]} {
    %c0_i32 = arith.constant 0 : i32
    %0 = arith.cmpi eq, %arg1, %c0_i32 : i32
    %1 = arith.extui %0 : i1 to i32
    %c0_i32_0 = arith.constant 0 : i32
    %2 = arith.cmpi ne, %1, %c0_i32_0 : i32
    scf.if %2 {
      %cst_99 = arith.constant 0.000000e+00 : f32
      %312 = vector.broadcast %cst_99 : f32 to vector<8x128xf32>
      %c0_100 = arith.constant 0 : index
      %c0_101 = arith.constant 0 : index
      %313 = vector.load %arg7[%c0_100, %c0_101] : memref<8x128xf32, #tpu.memory_space<vmem>>, vector<8x128xf32>
      tpu.vector_store %arg7[%c0_100, %c0_101], %312 {strides = array<i32>} : memref<8x128xf32, #tpu.memory_space<vmem>>, vector<8x128xf32>,
      %cst_102 = arith.constant 0.000000e+00 : f32
      %314 = vector.broadcast %cst_102 : f32 to vector<8x128xf32>
      %c0_103 = arith.constant 0 : index
      %c0_104 = arith.constant 0 : index
      %315 = vector.load %arg8[%c0_103, %c0_104] : memref<8x128xf32, #tpu.memory_space<vmem>>, vector<8x128xf32>
      tpu.vector_store %arg8[%c0_103, %c0_104], %314 {strides = array<i32>} : memref<8x128xf32, #tpu.memory_space<vmem>>, vector<8x128xf32>,
    } else {
    }
    %c0 = arith.constant 0 : index
    %c0_1 = arith.constant 0 : index
    %c0_2 = arith.constant 0 : index
    %3 = vector.load %arg2[%c0, %c0_1, %c0_2] : memref<8x8x128xbf16, #tpu.memory_space<vmem>>, vector<8x8x128xbf16>
    %4 = vector.shape_cast %3 : vector<8x8x128xbf16> to vector<64x128xbf16>
    %c0_3 = arith.constant 0 : index
    %c0_4 = arith.constant 0 : index
    %5 = vector.load %arg3[%c0_3, %c0_4] : memref<128x512xbf16, #tpu.memory_space<vmem>>, vector<128x512xbf16>
    %cst = arith.constant dense<0.000000e+00> : vector<64x512xf32>
    %6 = tpu.matmul %4, %5, %cst {dimension_numbers = #tpu.dot_dimension_numbers<[1], [0], [0], [1], [0, 0, 1, 1], [], []>} : vector<64x128xbf16>, vector<128x512xbf16>, vector<64x512xf32> -> vector<64x512xf32>
    %c0_5 = arith.constant 0 : index
    %c0_6 = arith.constant 0 : index
    %7 = vector.load %arg5[%c0_5, %c0_6] : memref<1x512xf32, #tpu.memory_space<vmem>>, vector<1x512xf32>
    %8 = vector.broadcast %7 : vector<1x512xf32> to vector<64x512xf32>
    %9 = arith.addf %6, %8 : vector<64x512xf32>
    %10 = vector.shape_cast %9 : vector<64x512xf32> to vector<8x8x512xf32>
    %c0_7 = arith.constant 0 : index
    %c0_8 = arith.constant 0 : index
    %c0_9 = arith.constant 0 : index
    %11 = vector.load %arg9[%c0_7, %c0_8, %c0_9] : memref<8x8x512xf32, #tpu.memory_space<vmem>>, vector<8x8x512xf32>
    tpu.vector_store %arg9[%c0_7, %c0_8, %c0_9], %10 {strides = array<i32>} : memref<8x8x512xf32, #tpu.memory_space<vmem>>, vector<8x8x512xf32>,
    %c0_10 = arith.constant 0 : index
    %c0_11 = arith.constant 0 : index
    %12 = vector.load %arg7[%c0_10, %c0_11] : memref<8x128xf32, #tpu.memory_space<vmem>>, vector<8x128xf32>
    %c0_12 = arith.constant 0 : index
    %c0_13 = arith.constant 0 : index
    %13 = vector.load %arg8[%c0_12, %c0_13] : memref<8x128xf32, #tpu.memory_space<vmem>>, vector<8x128xf32>
    %c0_i32_14 = arith.constant 0 : i32
    %14 = arith.index_cast %c0_i32_14 : i32 to index
    %c0_15 = arith.constant 0 : index
    %c0_16 = arith.constant 0 : index
    %15 = vector.load %arg9[%14, %c0_15, %c0_16] : memref<8x8x512xf32, #tpu.memory_space<vmem>>, vector<1x8x512xf32>
    %16 = vector.shape_cast %15 : vector<1x8x512xf32> to vector<8x512xf32>
    %17 = arith.truncf %12 : vector<8x128xf32> to vector<8x128xbf16>
    %c0_17 = arith.constant 0 : index
    %c0_18 = arith.constant 0 : index
    %18 = vector.load %arg4[%c0_17, %c0_18] : memref<128x512xbf16, #tpu.memory_space<vmem>>, vector<128x512xbf16>
    %cst_19 = arith.constant dense<0.000000e+00> : vector<8x512xf32>
    %19 = tpu.matmul %17, %18, %cst_19 {dimension_numbers = #tpu.dot_dimension_numbers<[1], [0], [0], [1], [0, 0, 1, 1], [], []>} : vector<8x128xbf16>, vector<128x512xbf16>, vector<8x512xf32> -> vector<8x512xf32>
    %20 = arith.addf %16, %19 : vector<8x512xf32>
    %21 = vector.extract_strided_slice %20 {offsets = [0, 0], sizes = [8, 128], strides = [1, 1]} : vector<8x512xf32> to vector<8x128xf32>
    %22 = arith.negf %21 : vector<8x128xf32>
    %23 = math.exp %22 : vector<8x128xf32>
    %cst_20 = arith.constant 1.000000e+00 : f32
    %24 = vector.broadcast %cst_20 : f32 to vector<8x128xf32>
    %25 = arith.addf %24, %23 : vector<8x128xf32>
    %26 = arith.divf %24, %25 : vector<8x128xf32>
    %27 = vector.extract_strided_slice %20 {offsets = [0, 128], sizes = [8, 128], strides = [1, 1]} : vector<8x512xf32> to vector<8x128xf32>
    %28 = arith.negf %27 : vector<8x128xf32>
    %29 = math.exp %28 : vector<8x128xf32>
    %cst_21 = arith.constant 1.000000e+00 : f32
    %30 = vector.broadcast %cst_21 : f32 to vector<8x128xf32>
    %31 = arith.addf %30, %29 : vector<8x128xf32>
    %32 = arith.divf %30, %31 : vector<8x128xf32>
    %33 = vector.extract_strided_slice %20 {offsets = [0, 256], sizes = [8, 128], strides = [1, 1]} : vector<8x512xf32> to vector<8x128xf32>
    %34 = math.tanh %33 : vector<8x128xf32>
    %35 = vector.extract_strided_slice %20 {offsets = [0, 384], sizes = [8, 128], strides = [1, 1]} : vector<8x512xf32> to vector<8x128xf32>
    %36 = arith.negf %35 : vector<8x128xf32>
    %37 = math.exp %36 : vector<8x128xf32>
    %cst_22 = arith.constant 1.000000e+00 : f32
    %38 = vector.broadcast %cst_22 : f32 to vector<8x128xf32>
    %39 = arith.addf %38, %37 : vector<8x128xf32>
    %40 = arith.divf %38, %39 : vector<8x128xf32>
    %41 = arith.mulf %32, %13 : vector<8x128xf32>
    %42 = arith.mulf %26, %34 : vector<8x128xf32>
    %43 = arith.addf %41, %42 : vector<8x128xf32>
    %44 = math.tanh %43 : vector<8x128xf32>
    %45 = arith.mulf %40, %44 : vector<8x128xf32>
    %46 = arith.truncf %45 : vector<8x128xf32> to vector<8x128xbf16>
    %47 = arith.index_cast %c0_i32_14 : i32 to index
    %c0_23 = arith.constant 0 : index
    %c0_24 = arith.constant 0 : index
    %48 = vector.load %arg6[%47, %c0_23, %c0_24] : memref<8x8x128xbf16, #tpu.memory_space<vmem>>, vector<1x8x128xbf16>
    %49 = vector.shape_cast %48 : vector<1x8x128xbf16> to vector<8x128xbf16>
    %50 = vector.shape_cast %46 : vector<8x128xbf16> to vector<1x8x128xbf16>
    tpu.vector_store %arg6[%47, %c0_23, %c0_24], %50 {strides = array<i32>} : memref<8x8x128xbf16, #tpu.memory_space<vmem>>, vector<1x8x128xbf16>,
    %c1_i32 = arith.constant 1 : i32
    %51 = arith.index_cast %c1_i32 : i32 to index
    %c0_25 = arith.constant 0 : index
    %c0_26 = arith.constant 0 : index
    %52 = vector.load %arg9[%51, %c0_25, %c0_26] : memref<8x8x512xf32, #tpu.memory_space<vmem>>, vector<1x8x512xf32>
    %53 = vector.shape_cast %52 : vector<1x8x512xf32> to vector<8x512xf32>
    %54 = arith.truncf %45 : vector<8x128xf32> to vector<8x128xbf16>
    %c0_27 = arith.constant 0 : index
    %c0_28 = arith.constant 0 : index
    %55 = vector.load %arg4[%c0_27, %c0_28] : memref<128x512xbf16, #tpu.memory_space<vmem>>, vector<128x512xbf16>
    %cst_29 = arith.constant dense<0.000000e+00> : vector<8x512xf32>
    %56 = tpu.matmul %54, %55, %cst_29 {dimension_numbers = #tpu.dot_dimension_numbers<[1], [0], [0], [1], [0, 0, 1, 1], [], []>} : vector<8x128xbf16>, vector<128x512xbf16>, vector<8x512xf32> -> vector<8x512xf32>
    %57 = arith.addf %53, %56 : vector<8x512xf32>
    %58 = vector.extract_strided_slice %57 {offsets = [0, 0], sizes = [8, 128], strides = [1, 1]} : vector<8x512xf32> to vector<8x128xf32>
    %59 = arith.negf %58 : vector<8x128xf32>
    %60 = math.exp %59 : vector<8x128xf32>
    %cst_30 = arith.constant 1.000000e+00 : f32
    %61 = vector.broadcast %cst_30 : f32 to vector<8x128xf32>
    %62 = arith.addf %61, %60 : vector<8x128xf32>
    %63 = arith.divf %61, %62 : vector<8x128xf32>
    %64 = vector.extract_strided_slice %57 {offsets = [0, 128], sizes = [8, 128], strides = [1, 1]} : vector<8x512xf32> to vector<8x128xf32>
    %65 = arith.negf %64 : vector<8x128xf32>
    %66 = math.exp %65 : vector<8x128xf32>
    %cst_31 = arith.constant 1.000000e+00 : f32
    %67 = vector.broadcast %cst_31 : f32 to vector<8x128xf32>
    %68 = arith.addf %67, %66 : vector<8x128xf32>
    %69 = arith.divf %67, %68 : vector<8x128xf32>
    %70 = vector.extract_strided_slice %57 {offsets = [0, 256], sizes = [8, 128], strides = [1, 1]} : vector<8x512xf32> to vector<8x128xf32>
    %71 = math.tanh %70 : vector<8x128xf32>
    %72 = vector.extract_strided_slice %57 {offsets = [0, 384], sizes = [8, 128], strides = [1, 1]} : vector<8x512xf32> to vector<8x128xf32>
    %73 = arith.negf %72 : vector<8x128xf32>
    %74 = math.exp %73 : vector<8x128xf32>
    %cst_32 = arith.constant 1.000000e+00 : f32
    %75 = vector.broadcast %cst_32 : f32 to vector<8x128xf32>
    %76 = arith.addf %75, %74 : vector<8x128xf32>
    %77 = arith.divf %75, %76 : vector<8x128xf32>
    %78 = arith.mulf %69, %43 : vector<8x128xf32>
    %79 = arith.mulf %63, %71 : vector<8x128xf32>
    %80 = arith.addf %78, %79 : vector<8x128xf32>
    %81 = math.tanh %80 : vector<8x128xf32>
    %82 = arith.mulf %77, %81 : vector<8x128xf32>
    %83 = arith.truncf %82 : vector<8x128xf32> to vector<8x128xbf16>
    %84 = arith.index_cast %c1_i32 : i32 to index
    %c0_33 = arith.constant 0 : index
    %c0_34 = arith.constant 0 : index
    %85 = vector.load %arg6[%84, %c0_33, %c0_34] : memref<8x8x128xbf16, #tpu.memory_space<vmem>>, vector<1x8x128xbf16>
    %86 = vector.shape_cast %85 : vector<1x8x128xbf16> to vector<8x128xbf16>
    %87 = vector.shape_cast %83 : vector<8x128xbf16> to vector<1x8x128xbf16>
    tpu.vector_store %arg6[%84, %c0_33, %c0_34], %87 {strides = array<i32>} : memref<8x8x128xbf16, #tpu.memory_space<vmem>>, vector<1x8x128xbf16>,
    %c2_i32 = arith.constant 2 : i32
    %88 = arith.index_cast %c2_i32 : i32 to index
    %c0_35 = arith.constant 0 : index
    %c0_36 = arith.constant 0 : index
    %89 = vector.load %arg9[%88, %c0_35, %c0_36] : memref<8x8x512xf32, #tpu.memory_space<vmem>>, vector<1x8x512xf32>
    %90 = vector.shape_cast %89 : vector<1x8x512xf32> to vector<8x512xf32>
    %91 = arith.truncf %82 : vector<8x128xf32> to vector<8x128xbf16>
    %c0_37 = arith.constant 0 : index
    %c0_38 = arith.constant 0 : index
    %92 = vector.load %arg4[%c0_37, %c0_38] : memref<128x512xbf16, #tpu.memory_space<vmem>>, vector<128x512xbf16>
    %cst_39 = arith.constant dense<0.000000e+00> : vector<8x512xf32>
    %93 = tpu.matmul %91, %92, %cst_39 {dimension_numbers = #tpu.dot_dimension_numbers<[1], [0], [0], [1], [0, 0, 1, 1], [], []>} : vector<8x128xbf16>, vector<128x512xbf16>, vector<8x512xf32> -> vector<8x512xf32>
    %94 = arith.addf %90, %93 : vector<8x512xf32>
    %95 = vector.extract_strided_slice %94 {offsets = [0, 0], sizes = [8, 128], strides = [1, 1]} : vector<8x512xf32> to vector<8x128xf32>
    %96 = arith.negf %95 : vector<8x128xf32>
    %97 = math.exp %96 : vector<8x128xf32>
    %cst_40 = arith.constant 1.000000e+00 : f32
    %98 = vector.broadcast %cst_40 : f32 to vector<8x128xf32>
    %99 = arith.addf %98, %97 : vector<8x128xf32>
    %100 = arith.divf %98, %99 : vector<8x128xf32>
    %101 = vector.extract_strided_slice %94 {offsets = [0, 128], sizes = [8, 128], strides = [1, 1]} : vector<8x512xf32> to vector<8x128xf32>
    %102 = arith.negf %101 : vector<8x128xf32>
    %103 = math.exp %102 : vector<8x128xf32>
    %cst_41 = arith.constant 1.000000e+00 : f32
    %104 = vector.broadcast %cst_41 : f32 to vector<8x128xf32>
    %105 = arith.addf %104, %103 : vector<8x128xf32>
    %106 = arith.divf %104, %105 : vector<8x128xf32>
    %107 = vector.extract_strided_slice %94 {offsets = [0, 256], sizes = [8, 128], strides = [1, 1]} : vector<8x512xf32> to vector<8x128xf32>
    %108 = math.tanh %107 : vector<8x128xf32>
    %109 = vector.extract_strided_slice %94 {offsets = [0, 384], sizes = [8, 128], strides = [1, 1]} : vector<8x512xf32> to vector<8x128xf32>
    %110 = arith.negf %109 : vector<8x128xf32>
    %111 = math.exp %110 : vector<8x128xf32>
    %cst_42 = arith.constant 1.000000e+00 : f32
    %112 = vector.broadcast %cst_42 : f32 to vector<8x128xf32>
    %113 = arith.addf %112, %111 : vector<8x128xf32>
    %114 = arith.divf %112, %113 : vector<8x128xf32>
    %115 = arith.mulf %106, %80 : vector<8x128xf32>
    %116 = arith.mulf %100, %108 : vector<8x128xf32>
    %117 = arith.addf %115, %116 : vector<8x128xf32>
    %118 = math.tanh %117 : vector<8x128xf32>
    %119 = arith.mulf %114, %118 : vector<8x128xf32>
    %120 = arith.truncf %119 : vector<8x128xf32> to vector<8x128xbf16>
    %121 = arith.index_cast %c2_i32 : i32 to index
    %c0_43 = arith.constant 0 : index
    %c0_44 = arith.constant 0 : index
    %122 = vector.load %arg6[%121, %c0_43, %c0_44] : memref<8x8x128xbf16, #tpu.memory_space<vmem>>, vector<1x8x128xbf16>
    %123 = vector.shape_cast %122 : vector<1x8x128xbf16> to vector<8x128xbf16>
    %124 = vector.shape_cast %120 : vector<8x128xbf16> to vector<1x8x128xbf16>
    tpu.vector_store %arg6[%121, %c0_43, %c0_44], %124 {strides = array<i32>} : memref<8x8x128xbf16, #tpu.memory_space<vmem>>, vector<1x8x128xbf16>,
    %c3_i32 = arith.constant 3 : i32
    %125 = arith.index_cast %c3_i32 : i32 to index
    %c0_45 = arith.constant 0 : index
    %c0_46 = arith.constant 0 : index
    %126 = vector.load %arg9[%125, %c0_45, %c0_46] : memref<8x8x512xf32, #tpu.memory_space<vmem>>, vector<1x8x512xf32>
    %127 = vector.shape_cast %126 : vector<1x8x512xf32> to vector<8x512xf32>
    %128 = arith.truncf %119 : vector<8x128xf32> to vector<8x128xbf16>
    %c0_47 = arith.constant 0 : index
    %c0_48 = arith.constant 0 : index
    %129 = vector.load %arg4[%c0_47, %c0_48] : memref<128x512xbf16, #tpu.memory_space<vmem>>, vector<128x512xbf16>
    %cst_49 = arith.constant dense<0.000000e+00> : vector<8x512xf32>
    %130 = tpu.matmul %128, %129, %cst_49 {dimension_numbers = #tpu.dot_dimension_numbers<[1], [0], [0], [1], [0, 0, 1, 1], [], []>} : vector<8x128xbf16>, vector<128x512xbf16>, vector<8x512xf32> -> vector<8x512xf32>
    %131 = arith.addf %127, %130 : vector<8x512xf32>
    %132 = vector.extract_strided_slice %131 {offsets = [0, 0], sizes = [8, 128], strides = [1, 1]} : vector<8x512xf32> to vector<8x128xf32>
    %133 = arith.negf %132 : vector<8x128xf32>
    %134 = math.exp %133 : vector<8x128xf32>
    %cst_50 = arith.constant 1.000000e+00 : f32
    %135 = vector.broadcast %cst_50 : f32 to vector<8x128xf32>
    %136 = arith.addf %135, %134 : vector<8x128xf32>
    %137 = arith.divf %135, %136 : vector<8x128xf32>
    %138 = vector.extract_strided_slice %131 {offsets = [0, 128], sizes = [8, 128], strides = [1, 1]} : vector<8x512xf32> to vector<8x128xf32>
    %139 = arith.negf %138 : vector<8x128xf32>
    %140 = math.exp %139 : vector<8x128xf32>
    %cst_51 = arith.constant 1.000000e+00 : f32
    %141 = vector.broadcast %cst_51 : f32 to vector<8x128xf32>
    %142 = arith.addf %141, %140 : vector<8x128xf32>
    %143 = arith.divf %141, %142 : vector<8x128xf32>
    %144 = vector.extract_strided_slice %131 {offsets = [0, 256], sizes = [8, 128], strides = [1, 1]} : vector<8x512xf32> to vector<8x128xf32>
    %145 = math.tanh %144 : vector<8x128xf32>
    %146 = vector.extract_strided_slice %131 {offsets = [0, 384], sizes = [8, 128], strides = [1, 1]} : vector<8x512xf32> to vector<8x128xf32>
    %147 = arith.negf %146 : vector<8x128xf32>
    %148 = math.exp %147 : vector<8x128xf32>
    %cst_52 = arith.constant 1.000000e+00 : f32
    %149 = vector.broadcast %cst_52 : f32 to vector<8x128xf32>
    %150 = arith.addf %149, %148 : vector<8x128xf32>
    %151 = arith.divf %149, %150 : vector<8x128xf32>
    %152 = arith.mulf %143, %117 : vector<8x128xf32>
    %153 = arith.mulf %137, %145 : vector<8x128xf32>
    %154 = arith.addf %152, %153 : vector<8x128xf32>
    %155 = math.tanh %154 : vector<8x128xf32>
    %156 = arith.mulf %151, %155 : vector<8x128xf32>
    %157 = arith.truncf %156 : vector<8x128xf32> to vector<8x128xbf16>
    %158 = arith.index_cast %c3_i32 : i32 to index
    %c0_53 = arith.constant 0 : index
    %c0_54 = arith.constant 0 : index
    %159 = vector.load %arg6[%158, %c0_53, %c0_54] : memref<8x8x128xbf16, #tpu.memory_space<vmem>>, vector<1x8x128xbf16>
    %160 = vector.shape_cast %159 : vector<1x8x128xbf16> to vector<8x128xbf16>
    %161 = vector.shape_cast %157 : vector<8x128xbf16> to vector<1x8x128xbf16>
    tpu.vector_store %arg6[%158, %c0_53, %c0_54], %161 {strides = array<i32>} : memref<8x8x128xbf16, #tpu.memory_space<vmem>>, vector<1x8x128xbf16>,
    %c4_i32 = arith.constant 4 : i32
    %162 = arith.index_cast %c4_i32 : i32 to index
    %c0_55 = arith.constant 0 : index
    %c0_56 = arith.constant 0 : index
    %163 = vector.load %arg9[%162, %c0_55, %c0_56] : memref<8x8x512xf32, #tpu.memory_space<vmem>>, vector<1x8x512xf32>
    %164 = vector.shape_cast %163 : vector<1x8x512xf32> to vector<8x512xf32>
    %165 = arith.truncf %156 : vector<8x128xf32> to vector<8x128xbf16>
    %c0_57 = arith.constant 0 : index
    %c0_58 = arith.constant 0 : index
    %166 = vector.load %arg4[%c0_57, %c0_58] : memref<128x512xbf16, #tpu.memory_space<vmem>>, vector<128x512xbf16>
    %cst_59 = arith.constant dense<0.000000e+00> : vector<8x512xf32>
    %167 = tpu.matmul %165, %166, %cst_59 {dimension_numbers = #tpu.dot_dimension_numbers<[1], [0], [0], [1], [0, 0, 1, 1], [], []>} : vector<8x128xbf16>, vector<128x512xbf16>, vector<8x512xf32> -> vector<8x512xf32>
    %168 = arith.addf %164, %167 : vector<8x512xf32>
    %169 = vector.extract_strided_slice %168 {offsets = [0, 0], sizes = [8, 128], strides = [1, 1]} : vector<8x512xf32> to vector<8x128xf32>
    %170 = arith.negf %169 : vector<8x128xf32>
    %171 = math.exp %170 : vector<8x128xf32>
    %cst_60 = arith.constant 1.000000e+00 : f32
    %172 = vector.broadcast %cst_60 : f32 to vector<8x128xf32>
    %173 = arith.addf %172, %171 : vector<8x128xf32>
    %174 = arith.divf %172, %173 : vector<8x128xf32>
    %175 = vector.extract_strided_slice %168 {offsets = [0, 128], sizes = [8, 128], strides = [1, 1]} : vector<8x512xf32> to vector<8x128xf32>
    %176 = arith.negf %175 : vector<8x128xf32>
    %177 = math.exp %176 : vector<8x128xf32>
    %cst_61 = arith.constant 1.000000e+00 : f32
    %178 = vector.broadcast %cst_61 : f32 to vector<8x128xf32>
    %179 = arith.addf %178, %177 : vector<8x128xf32>
    %180 = arith.divf %178, %179 : vector<8x128xf32>
    %181 = vector.extract_strided_slice %168 {offsets = [0, 256], sizes = [8, 128], strides = [1, 1]} : vector<8x512xf32> to vector<8x128xf32>
    %182 = math.tanh %181 : vector<8x128xf32>
    %183 = vector.extract_strided_slice %168 {offsets = [0, 384], sizes = [8, 128], strides = [1, 1]} : vector<8x512xf32> to vector<8x128xf32>
    %184 = arith.negf %183 : vector<8x128xf32>
    %185 = math.exp %184 : vector<8x128xf32>
    %cst_62 = arith.constant 1.000000e+00 : f32
    %186 = vector.broadcast %cst_62 : f32 to vector<8x128xf32>
    %187 = arith.addf %186, %185 : vector<8x128xf32>
    %188 = arith.divf %186, %187 : vector<8x128xf32>
    %189 = arith.mulf %180, %154 : vector<8x128xf32>
    %190 = arith.mulf %174, %182 : vector<8x128xf32>
    %191 = arith.addf %189, %190 : vector<8x128xf32>
    %192 = math.tanh %191 : vector<8x128xf32>
    %193 = arith.mulf %188, %192 : vector<8x128xf32>
    %194 = arith.truncf %193 : vector<8x128xf32> to vector<8x128xbf16>
    %195 = arith.index_cast %c4_i32 : i32 to index
    %c0_63 = arith.constant 0 : index
    %c0_64 = arith.constant 0 : index
    %196 = vector.load %arg6[%195, %c0_63, %c0_64] : memref<8x8x128xbf16, #tpu.memory_space<vmem>>, vector<1x8x128xbf16>
    %197 = vector.shape_cast %196 : vector<1x8x128xbf16> to vector<8x128xbf16>
    %198 = vector.shape_cast %194 : vector<8x128xbf16> to vector<1x8x128xbf16>
    tpu.vector_store %arg6[%195, %c0_63, %c0_64], %198 {strides = array<i32>} : memref<8x8x128xbf16, #tpu.memory_space<vmem>>, vector<1x8x128xbf16>,
    %c5_i32 = arith.constant 5 : i32
    %199 = arith.index_cast %c5_i32 : i32 to index
    %c0_65 = arith.constant 0 : index
    %c0_66 = arith.constant 0 : index
    %200 = vector.load %arg9[%199, %c0_65, %c0_66] : memref<8x8x512xf32, #tpu.memory_space<vmem>>, vector<1x8x512xf32>
    %201 = vector.shape_cast %200 : vector<1x8x512xf32> to vector<8x512xf32>
    %202 = arith.truncf %193 : vector<8x128xf32> to vector<8x128xbf16>
    %c0_67 = arith.constant 0 : index
    %c0_68 = arith.constant 0 : index
    %203 = vector.load %arg4[%c0_67, %c0_68] : memref<128x512xbf16, #tpu.memory_space<vmem>>, vector<128x512xbf16>
    %cst_69 = arith.constant dense<0.000000e+00> : vector<8x512xf32>
    %204 = tpu.matmul %202, %203, %cst_69 {dimension_numbers = #tpu.dot_dimension_numbers<[1], [0], [0], [1], [0, 0, 1, 1], [], []>} : vector<8x128xbf16>, vector<128x512xbf16>, vector<8x512xf32> -> vector<8x512xf32>
    %205 = arith.addf %201, %204 : vector<8x512xf32>
    %206 = vector.extract_strided_slice %205 {offsets = [0, 0], sizes = [8, 128], strides = [1, 1]} : vector<8x512xf32> to vector<8x128xf32>
    %207 = arith.negf %206 : vector<8x128xf32>
    %208 = math.exp %207 : vector<8x128xf32>
    %cst_70 = arith.constant 1.000000e+00 : f32
    %209 = vector.broadcast %cst_70 : f32 to vector<8x128xf32>
    %210 = arith.addf %209, %208 : vector<8x128xf32>
    %211 = arith.divf %209, %210 : vector<8x128xf32>
    %212 = vector.extract_strided_slice %205 {offsets = [0, 128], sizes = [8, 128], strides = [1, 1]} : vector<8x512xf32> to vector<8x128xf32>
    %213 = arith.negf %212 : vector<8x128xf32>
    %214 = math.exp %213 : vector<8x128xf32>
    %cst_71 = arith.constant 1.000000e+00 : f32
    %215 = vector.broadcast %cst_71 : f32 to vector<8x128xf32>
    %216 = arith.addf %215, %214 : vector<8x128xf32>
    %217 = arith.divf %215, %216 : vector<8x128xf32>
    %218 = vector.extract_strided_slice %205 {offsets = [0, 256], sizes = [8, 128], strides = [1, 1]} : vector<8x512xf32> to vector<8x128xf32>
    %219 = math.tanh %218 : vector<8x128xf32>
    %220 = vector.extract_strided_slice %205 {offsets = [0, 384], sizes = [8, 128], strides = [1, 1]} : vector<8x512xf32> to vector<8x128xf32>
    %221 = arith.negf %220 : vector<8x128xf32>
    %222 = math.exp %221 : vector<8x128xf32>
    %cst_72 = arith.constant 1.000000e+00 : f32
    %223 = vector.broadcast %cst_72 : f32 to vector<8x128xf32>
    %224 = arith.addf %223, %222 : vector<8x128xf32>
    %225 = arith.divf %223, %224 : vector<8x128xf32>
    %226 = arith.mulf %217, %191 : vector<8x128xf32>
    %227 = arith.mulf %211, %219 : vector<8x128xf32>
    %228 = arith.addf %226, %227 : vector<8x128xf32>
    %229 = math.tanh %228 : vector<8x128xf32>
    %230 = arith.mulf %225, %229 : vector<8x128xf32>
    %231 = arith.truncf %230 : vector<8x128xf32> to vector<8x128xbf16>
    %232 = arith.index_cast %c5_i32 : i32 to index
    %c0_73 = arith.constant 0 : index
    %c0_74 = arith.constant 0 : index
    %233 = vector.load %arg6[%232, %c0_73, %c0_74] : memref<8x8x128xbf16, #tpu.memory_space<vmem>>, vector<1x8x128xbf16>
    %234 = vector.shape_cast %233 : vector<1x8x128xbf16> to vector<8x128xbf16>
    %235 = vector.shape_cast %231 : vector<8x128xbf16> to vector<1x8x128xbf16>
    tpu.vector_store %arg6[%232, %c0_73, %c0_74], %235 {strides = array<i32>} : memref<8x8x128xbf16, #tpu.memory_space<vmem>>, vector<1x8x128xbf16>,
    %c6_i32 = arith.constant 6 : i32
    %236 = arith.index_cast %c6_i32 : i32 to index
    %c0_75 = arith.constant 0 : index
    %c0_76 = arith.constant 0 : index
    %237 = vector.load %arg9[%236, %c0_75, %c0_76] : memref<8x8x512xf32, #tpu.memory_space<vmem>>, vector<1x8x512xf32>
    %238 = vector.shape_cast %237 : vector<1x8x512xf32> to vector<8x512xf32>
    %239 = arith.truncf %230 : vector<8x128xf32> to vector<8x128xbf16>
    %c0_77 = arith.constant 0 : index
    %c0_78 = arith.constant 0 : index
    %240 = vector.load %arg4[%c0_77, %c0_78] : memref<128x512xbf16, #tpu.memory_space<vmem>>, vector<128x512xbf16>
    %cst_79 = arith.constant dense<0.000000e+00> : vector<8x512xf32>
    %241 = tpu.matmul %239, %240, %cst_79 {dimension_numbers = #tpu.dot_dimension_numbers<[1], [0], [0], [1], [0, 0, 1, 1], [], []>} : vector<8x128xbf16>, vector<128x512xbf16>, vector<8x512xf32> -> vector<8x512xf32>
    %242 = arith.addf %238, %241 : vector<8x512xf32>
    %243 = vector.extract_strided_slice %242 {offsets = [0, 0], sizes = [8, 128], strides = [1, 1]} : vector<8x512xf32> to vector<8x128xf32>
    %244 = arith.negf %243 : vector<8x128xf32>
    %245 = math.exp %244 : vector<8x128xf32>
    %cst_80 = arith.constant 1.000000e+00 : f32
    %246 = vector.broadcast %cst_80 : f32 to vector<8x128xf32>
    %247 = arith.addf %246, %245 : vector<8x128xf32>
    %248 = arith.divf %246, %247 : vector<8x128xf32>
    %249 = vector.extract_strided_slice %242 {offsets = [0, 128], sizes = [8, 128], strides = [1, 1]} : vector<8x512xf32> to vector<8x128xf32>
    %250 = arith.negf %249 : vector<8x128xf32>
    %251 = math.exp %250 : vector<8x128xf32>
    %cst_81 = arith.constant 1.000000e+00 : f32
    %252 = vector.broadcast %cst_81 : f32 to vector<8x128xf32>
    %253 = arith.addf %252, %251 : vector<8x128xf32>
    %254 = arith.divf %252, %253 : vector<8x128xf32>
    %255 = vector.extract_strided_slice %242 {offsets = [0, 256], sizes = [8, 128], strides = [1, 1]} : vector<8x512xf32> to vector<8x128xf32>
    %256 = math.tanh %255 : vector<8x128xf32>
    %257 = vector.extract_strided_slice %242 {offsets = [0, 384], sizes = [8, 128], strides = [1, 1]} : vector<8x512xf32> to vector<8x128xf32>
    %258 = arith.negf %257 : vector<8x128xf32>
    %259 = math.exp %258 : vector<8x128xf32>
    %cst_82 = arith.constant 1.000000e+00 : f32
    %260 = vector.broadcast %cst_82 : f32 to vector<8x128xf32>
    %261 = arith.addf %260, %259 : vector<8x128xf32>
    %262 = arith.divf %260, %261 : vector<8x128xf32>
    %263 = arith.mulf %254, %228 : vector<8x128xf32>
    %264 = arith.mulf %248, %256 : vector<8x128xf32>
    %265 = arith.addf %263, %264 : vector<8x128xf32>
    %266 = math.tanh %265 : vector<8x128xf32>
    %267 = arith.mulf %262, %266 : vector<8x128xf32>
    %268 = arith.truncf %267 : vector<8x128xf32> to vector<8x128xbf16>
    %269 = arith.index_cast %c6_i32 : i32 to index
    %c0_83 = arith.constant 0 : index
    %c0_84 = arith.constant 0 : index
    %270 = vector.load %arg6[%269, %c0_83, %c0_84] : memref<8x8x128xbf16, #tpu.memory_space<vmem>>, vector<1x8x128xbf16>
    %271 = vector.shape_cast %270 : vector<1x8x128xbf16> to vector<8x128xbf16>
    %272 = vector.shape_cast %268 : vector<8x128xbf16> to vector<1x8x128xbf16>
    tpu.vector_store %arg6[%269, %c0_83, %c0_84], %272 {strides = array<i32>} : memref<8x8x128xbf16, #tpu.memory_space<vmem>>, vector<1x8x128xbf16>,
    %c7_i32 = arith.constant 7 : i32
    %273 = arith.index_cast %c7_i32 : i32 to index
    %c0_85 = arith.constant 0 : index
    %c0_86 = arith.constant 0 : index
    %274 = vector.load %arg9[%273, %c0_85, %c0_86] : memref<8x8x512xf32, #tpu.memory_space<vmem>>, vector<1x8x512xf32>
    %275 = vector.shape_cast %274 : vector<1x8x512xf32> to vector<8x512xf32>
    %276 = arith.truncf %267 : vector<8x128xf32> to vector<8x128xbf16>
    %c0_87 = arith.constant 0 : index
    %c0_88 = arith.constant 0 : index
    %277 = vector.load %arg4[%c0_87, %c0_88] : memref<128x512xbf16, #tpu.memory_space<vmem>>, vector<128x512xbf16>
    %cst_89 = arith.constant dense<0.000000e+00> : vector<8x512xf32>
    %278 = tpu.matmul %276, %277, %cst_89 {dimension_numbers = #tpu.dot_dimension_numbers<[1], [0], [0], [1], [0, 0, 1, 1], [], []>} : vector<8x128xbf16>, vector<128x512xbf16>, vector<8x512xf32> -> vector<8x512xf32>
    %279 = arith.addf %275, %278 : vector<8x512xf32>
    %280 = vector.extract_strided_slice %279 {offsets = [0, 0], sizes = [8, 128], strides = [1, 1]} : vector<8x512xf32> to vector<8x128xf32>
    %281 = arith.negf %280 : vector<8x128xf32>
    %282 = math.exp %281 : vector<8x128xf32>
    %cst_90 = arith.constant 1.000000e+00 : f32
    %283 = vector.broadcast %cst_90 : f32 to vector<8x128xf32>
    %284 = arith.addf %283, %282 : vector<8x128xf32>
    %285 = arith.divf %283, %284 : vector<8x128xf32>
    %286 = vector.extract_strided_slice %279 {offsets = [0, 128], sizes = [8, 128], strides = [1, 1]} : vector<8x512xf32> to vector<8x128xf32>
    %287 = arith.negf %286 : vector<8x128xf32>
    %288 = math.exp %287 : vector<8x128xf32>
    %cst_91 = arith.constant 1.000000e+00 : f32
    %289 = vector.broadcast %cst_91 : f32 to vector<8x128xf32>
    %290 = arith.addf %289, %288 : vector<8x128xf32>
    %291 = arith.divf %289, %290 : vector<8x128xf32>
    %292 = vector.extract_strided_slice %279 {offsets = [0, 256], sizes = [8, 128], strides = [1, 1]} : vector<8x512xf32> to vector<8x128xf32>
    %293 = math.tanh %292 : vector<8x128xf32>
    %294 = vector.extract_strided_slice %279 {offsets = [0, 384], sizes = [8, 128], strides = [1, 1]} : vector<8x512xf32> to vector<8x128xf32>
    %295 = arith.negf %294 : vector<8x128xf32>
    %296 = math.exp %295 : vector<8x128xf32>
    %cst_92 = arith.constant 1.000000e+00 : f32
    %297 = vector.broadcast %cst_92 : f32 to vector<8x128xf32>
    %298 = arith.addf %297, %296 : vector<8x128xf32>
    %299 = arith.divf %297, %298 : vector<8x128xf32>
    %300 = arith.mulf %291, %265 : vector<8x128xf32>
    %301 = arith.mulf %285, %293 : vector<8x128xf32>
    %302 = arith.addf %300, %301 : vector<8x128xf32>
    %303 = math.tanh %302 : vector<8x128xf32>
    %304 = arith.mulf %299, %303 : vector<8x128xf32>
    %305 = arith.truncf %304 : vector<8x128xf32> to vector<8x128xbf16>
    %306 = arith.index_cast %c7_i32 : i32 to index
    %c0_93 = arith.constant 0 : index
    %c0_94 = arith.constant 0 : index
    %307 = vector.load %arg6[%306, %c0_93, %c0_94] : memref<8x8x128xbf16, #tpu.memory_space<vmem>>, vector<1x8x128xbf16>
    %308 = vector.shape_cast %307 : vector<1x8x128xbf16> to vector<8x128xbf16>
    %309 = vector.shape_cast %305 : vector<8x128xbf16> to vector<1x8x128xbf16>
    tpu.vector_store %arg6[%306, %c0_93, %c0_94], %309 {strides = array<i32>} : memref<8x8x128xbf16, #tpu.memory_space<vmem>>, vector<1x8x128xbf16>,
    %c8_i32 = arith.constant 8 : i32
    %c0_95 = arith.constant 0 : index
    %c0_96 = arith.constant 0 : index
    %310 = vector.load %arg7[%c0_95, %c0_96] : memref<8x128xf32, #tpu.memory_space<vmem>>, vector<8x128xf32>
    tpu.vector_store %arg7[%c0_95, %c0_96], %304 {strides = array<i32>} : memref<8x128xf32, #tpu.memory_space<vmem>>, vector<8x128xf32>,
    %c0_97 = arith.constant 0 : index
    %c0_98 = arith.constant 0 : index
    %311 = vector.load %arg8[%c0_97, %c0_98] : memref<8x128xf32, #tpu.memory_space<vmem>>, vector<8x128xf32>
    tpu.vector_store %arg8[%c0_97, %c0_98], %302 {strides = array<i32>} : memref<8x128xf32, #tpu.memory_space<vmem>>, vector<8x128xf32>,
    return
  }
  func.func @transform_0(%arg0: i32, %arg1: i32) -> (i32, i32, i32) {
    %c0_i32 = arith.constant 0 : i32
    %c0_i32_0 = arith.constant 0 : i32
    return %arg1, %arg0, %c0_i32 : i32, i32, i32
  }
  func.func @transform_1(%arg0: i32, %arg1: i32) -> (i32, i32) {
    %c0_i32 = arith.constant 0 : i32
    %c0_i32_0 = arith.constant 0 : i32
    %c0_i32_1 = arith.constant 0 : i32
    return %c0_i32, %c0_i32_0 : i32, i32
  }
  func.func @transform_2(%arg0: i32, %arg1: i32) -> (i32, i32) {
    %c0_i32 = arith.constant 0 : i32
    %c0_i32_0 = arith.constant 0 : i32
    %c0_i32_1 = arith.constant 0 : i32
    return %c0_i32, %c0_i32_0 : i32, i32
  }
  func.func @transform_3(%arg0: i32, %arg1: i32) -> (i32, i32) {
    %c0_i32 = arith.constant 0 : i32
    %c0_i32_0 = arith.constant 0 : i32
    %c0_i32_1 = arith.constant 0 : i32
    return %c0_i32, %c0_i32_0 : i32, i32
  }
  func.func @transform_4(%arg0: i32, %arg1: i32) -> (i32, i32, i32) {
    %c0_i32 = arith.constant 0 : i32
    %c0_i32_0 = arith.constant 0 : i32
    return %arg1, %arg0, %c0_i32 : i32, i32, i32
  }
}

module attributes {stable_mosaic.version = 11 : i64} {
  func.func @lstm_last_fc_kernel(%arg0: i32, %arg1: i32, %arg2: memref<8x8x128xbf16, #tpu.memory_space<vmem>>, %arg3: memref<128x512xbf16, #tpu.memory_space<vmem>>, %arg4: memref<128x512xbf16, #tpu.memory_space<vmem>>, %arg5: memref<1x512xf32, #tpu.memory_space<vmem>>, %arg6: memref<128x2xbf16, #tpu.memory_space<vmem>>, %arg7: memref<1x2xf32, #tpu.memory_space<vmem>>, %arg8: memref<8x2xf32, #tpu.memory_space<vmem>>, %arg9: memref<8x128xf32, #tpu.memory_space<vmem>>, %arg10: memref<8x128xf32, #tpu.memory_space<vmem>>, %arg11: memref<8x8x512xf32, #tpu.memory_space<vmem>>) attributes {dimension_semantics = [#tpu.dimension_semantics<parallel>, #tpu.dimension_semantics<arbitrary>], iteration_bounds = array<i64: 1, 1>, scalar_prefetch = 0 : i64, scratch_operands = 3 : i64, tpu.core_type = #tpu.core_type<tc>, window_params = [{transform_indices = @transform_0, window_bounds = array<i64: 8, 8, 128>}, {pipeline_mode = #tpu.pipeline_mode<synchronous>, transform_indices = @transform_1, window_bounds = array<i64: 128, 512>}, {pipeline_mode = #tpu.pipeline_mode<synchronous>, transform_indices = @transform_2, window_bounds = array<i64: 128, 512>}, {pipeline_mode = #tpu.pipeline_mode<synchronous>, transform_indices = @transform_3, window_bounds = array<i64: 1, 512>}, {pipeline_mode = #tpu.pipeline_mode<synchronous>, transform_indices = @transform_4, window_bounds = array<i64: 128, 2>}, {pipeline_mode = #tpu.pipeline_mode<synchronous>, transform_indices = @transform_5, window_bounds = array<i64: 1, 2>}, {transform_indices = @transform_6, window_bounds = array<i64: 8, 2>}]} {
    %c0_i32 = arith.constant 0 : i32
    %0 = arith.cmpi eq, %arg1, %c0_i32 : i32
    %1 = arith.extui %0 : i1 to i32
    %c0_i32_0 = arith.constant 0 : i32
    %2 = arith.cmpi ne, %1, %c0_i32_0 : i32
    scf.if %2 {
      %cst_85 = arith.constant 0.000000e+00 : f32
      %275 = vector.broadcast %cst_85 : f32 to vector<8x128xf32>
      %c0_86 = arith.constant 0 : index
      %c0_87 = arith.constant 0 : index
      %276 = vector.load %arg9[%c0_86, %c0_87] : memref<8x128xf32, #tpu.memory_space<vmem>>, vector<8x128xf32>
      tpu.vector_store %arg9[%c0_86, %c0_87], %275 {strides = array<i32>} : memref<8x128xf32, #tpu.memory_space<vmem>>, vector<8x128xf32>,
      %cst_88 = arith.constant 0.000000e+00 : f32
      %277 = vector.broadcast %cst_88 : f32 to vector<8x128xf32>
      %c0_89 = arith.constant 0 : index
      %c0_90 = arith.constant 0 : index
      %278 = vector.load %arg10[%c0_89, %c0_90] : memref<8x128xf32, #tpu.memory_space<vmem>>, vector<8x128xf32>
      tpu.vector_store %arg10[%c0_89, %c0_90], %277 {strides = array<i32>} : memref<8x128xf32, #tpu.memory_space<vmem>>, vector<8x128xf32>,
    } else {
    }
    %c0 = arith.constant 0 : index
    %c0_1 = arith.constant 0 : index
    %c0_2 = arith.constant 0 : index
    %3 = vector.load %arg2[%c0, %c0_1, %c0_2] : memref<8x8x128xbf16, #tpu.memory_space<vmem>>, vector<8x8x128xbf16>
    %4 = vector.shape_cast %3 : vector<8x8x128xbf16> to vector<64x128xbf16>
    %c0_3 = arith.constant 0 : index
    %c0_4 = arith.constant 0 : index
    %5 = vector.load %arg3[%c0_3, %c0_4] : memref<128x512xbf16, #tpu.memory_space<vmem>>, vector<128x512xbf16>
    %cst = arith.constant dense<0.000000e+00> : vector<64x512xf32>
    %6 = tpu.matmul %4, %5, %cst {dimension_numbers = #tpu.dot_dimension_numbers<[1], [0], [0], [1], [0, 0, 1, 1], [], []>} : vector<64x128xbf16>, vector<128x512xbf16>, vector<64x512xf32> -> vector<64x512xf32>
    %c0_5 = arith.constant 0 : index
    %c0_6 = arith.constant 0 : index
    %7 = vector.load %arg5[%c0_5, %c0_6] : memref<1x512xf32, #tpu.memory_space<vmem>>, vector<1x512xf32>
    %8 = vector.broadcast %7 : vector<1x512xf32> to vector<64x512xf32>
    %9 = arith.addf %6, %8 : vector<64x512xf32>
    %10 = vector.shape_cast %9 : vector<64x512xf32> to vector<8x8x512xf32>
    %c0_7 = arith.constant 0 : index
    %c0_8 = arith.constant 0 : index
    %c0_9 = arith.constant 0 : index
    %11 = vector.load %arg11[%c0_7, %c0_8, %c0_9] : memref<8x8x512xf32, #tpu.memory_space<vmem>>, vector<8x8x512xf32>
    tpu.vector_store %arg11[%c0_7, %c0_8, %c0_9], %10 {strides = array<i32>} : memref<8x8x512xf32, #tpu.memory_space<vmem>>, vector<8x8x512xf32>,
    %c0_10 = arith.constant 0 : index
    %c0_11 = arith.constant 0 : index
    %12 = vector.load %arg9[%c0_10, %c0_11] : memref<8x128xf32, #tpu.memory_space<vmem>>, vector<8x128xf32>
    %c0_12 = arith.constant 0 : index
    %c0_13 = arith.constant 0 : index
    %13 = vector.load %arg10[%c0_12, %c0_13] : memref<8x128xf32, #tpu.memory_space<vmem>>, vector<8x128xf32>
    %c0_i32_14 = arith.constant 0 : i32
    %14 = arith.index_cast %c0_i32_14 : i32 to index
    %c0_15 = arith.constant 0 : index
    %c0_16 = arith.constant 0 : index
    %15 = vector.load %arg11[%14, %c0_15, %c0_16] : memref<8x8x512xf32, #tpu.memory_space<vmem>>, vector<1x8x512xf32>
    %16 = vector.shape_cast %15 : vector<1x8x512xf32> to vector<8x512xf32>
    %17 = arith.truncf %12 : vector<8x128xf32> to vector<8x128xbf16>
    %c0_17 = arith.constant 0 : index
    %c0_18 = arith.constant 0 : index
    %18 = vector.load %arg4[%c0_17, %c0_18] : memref<128x512xbf16, #tpu.memory_space<vmem>>, vector<128x512xbf16>
    %cst_19 = arith.constant dense<0.000000e+00> : vector<8x512xf32>
    %19 = tpu.matmul %17, %18, %cst_19 {dimension_numbers = #tpu.dot_dimension_numbers<[1], [0], [0], [1], [0, 0, 1, 1], [], []>} : vector<8x128xbf16>, vector<128x512xbf16>, vector<8x512xf32> -> vector<8x512xf32>
    %20 = arith.addf %16, %19 : vector<8x512xf32>
    %21 = vector.extract_strided_slice %20 {offsets = [0, 0], sizes = [8, 128], strides = [1, 1]} : vector<8x512xf32> to vector<8x128xf32>
    %22 = arith.negf %21 : vector<8x128xf32>
    %23 = math.exp %22 : vector<8x128xf32>
    %cst_20 = arith.constant 1.000000e+00 : f32
    %24 = vector.broadcast %cst_20 : f32 to vector<8x128xf32>
    %25 = arith.addf %24, %23 : vector<8x128xf32>
    %26 = arith.divf %24, %25 : vector<8x128xf32>
    %27 = vector.extract_strided_slice %20 {offsets = [0, 128], sizes = [8, 128], strides = [1, 1]} : vector<8x512xf32> to vector<8x128xf32>
    %28 = arith.negf %27 : vector<8x128xf32>
    %29 = math.exp %28 : vector<8x128xf32>
    %cst_21 = arith.constant 1.000000e+00 : f32
    %30 = vector.broadcast %cst_21 : f32 to vector<8x128xf32>
    %31 = arith.addf %30, %29 : vector<8x128xf32>
    %32 = arith.divf %30, %31 : vector<8x128xf32>
    %33 = vector.extract_strided_slice %20 {offsets = [0, 256], sizes = [8, 128], strides = [1, 1]} : vector<8x512xf32> to vector<8x128xf32>
    %34 = math.tanh %33 : vector<8x128xf32>
    %35 = vector.extract_strided_slice %20 {offsets = [0, 384], sizes = [8, 128], strides = [1, 1]} : vector<8x512xf32> to vector<8x128xf32>
    %36 = arith.negf %35 : vector<8x128xf32>
    %37 = math.exp %36 : vector<8x128xf32>
    %cst_22 = arith.constant 1.000000e+00 : f32
    %38 = vector.broadcast %cst_22 : f32 to vector<8x128xf32>
    %39 = arith.addf %38, %37 : vector<8x128xf32>
    %40 = arith.divf %38, %39 : vector<8x128xf32>
    %41 = arith.mulf %32, %13 : vector<8x128xf32>
    %42 = arith.mulf %26, %34 : vector<8x128xf32>
    %43 = arith.addf %41, %42 : vector<8x128xf32>
    %44 = math.tanh %43 : vector<8x128xf32>
    %45 = arith.mulf %40, %44 : vector<8x128xf32>
    %c1_i32 = arith.constant 1 : i32
    %46 = arith.index_cast %c1_i32 : i32 to index
    %c0_23 = arith.constant 0 : index
    %c0_24 = arith.constant 0 : index
    %47 = vector.load %arg11[%46, %c0_23, %c0_24] : memref<8x8x512xf32, #tpu.memory_space<vmem>>, vector<1x8x512xf32>
    %48 = vector.shape_cast %47 : vector<1x8x512xf32> to vector<8x512xf32>
    %49 = arith.truncf %45 : vector<8x128xf32> to vector<8x128xbf16>
    %c0_25 = arith.constant 0 : index
    %c0_26 = arith.constant 0 : index
    %50 = vector.load %arg4[%c0_25, %c0_26] : memref<128x512xbf16, #tpu.memory_space<vmem>>, vector<128x512xbf16>
    %cst_27 = arith.constant dense<0.000000e+00> : vector<8x512xf32>
    %51 = tpu.matmul %49, %50, %cst_27 {dimension_numbers = #tpu.dot_dimension_numbers<[1], [0], [0], [1], [0, 0, 1, 1], [], []>} : vector<8x128xbf16>, vector<128x512xbf16>, vector<8x512xf32> -> vector<8x512xf32>
    %52 = arith.addf %48, %51 : vector<8x512xf32>
    %53 = vector.extract_strided_slice %52 {offsets = [0, 0], sizes = [8, 128], strides = [1, 1]} : vector<8x512xf32> to vector<8x128xf32>
    %54 = arith.negf %53 : vector<8x128xf32>
    %55 = math.exp %54 : vector<8x128xf32>
    %cst_28 = arith.constant 1.000000e+00 : f32
    %56 = vector.broadcast %cst_28 : f32 to vector<8x128xf32>
    %57 = arith.addf %56, %55 : vector<8x128xf32>
    %58 = arith.divf %56, %57 : vector<8x128xf32>
    %59 = vector.extract_strided_slice %52 {offsets = [0, 128], sizes = [8, 128], strides = [1, 1]} : vector<8x512xf32> to vector<8x128xf32>
    %60 = arith.negf %59 : vector<8x128xf32>
    %61 = math.exp %60 : vector<8x128xf32>
    %cst_29 = arith.constant 1.000000e+00 : f32
    %62 = vector.broadcast %cst_29 : f32 to vector<8x128xf32>
    %63 = arith.addf %62, %61 : vector<8x128xf32>
    %64 = arith.divf %62, %63 : vector<8x128xf32>
    %65 = vector.extract_strided_slice %52 {offsets = [0, 256], sizes = [8, 128], strides = [1, 1]} : vector<8x512xf32> to vector<8x128xf32>
    %66 = math.tanh %65 : vector<8x128xf32>
    %67 = vector.extract_strided_slice %52 {offsets = [0, 384], sizes = [8, 128], strides = [1, 1]} : vector<8x512xf32> to vector<8x128xf32>
    %68 = arith.negf %67 : vector<8x128xf32>
    %69 = math.exp %68 : vector<8x128xf32>
    %cst_30 = arith.constant 1.000000e+00 : f32
    %70 = vector.broadcast %cst_30 : f32 to vector<8x128xf32>
    %71 = arith.addf %70, %69 : vector<8x128xf32>
    %72 = arith.divf %70, %71 : vector<8x128xf32>
    %73 = arith.mulf %64, %43 : vector<8x128xf32>
    %74 = arith.mulf %58, %66 : vector<8x128xf32>
    %75 = arith.addf %73, %74 : vector<8x128xf32>
    %76 = math.tanh %75 : vector<8x128xf32>
    %77 = arith.mulf %72, %76 : vector<8x128xf32>
    %c2_i32 = arith.constant 2 : i32
    %78 = arith.index_cast %c2_i32 : i32 to index
    %c0_31 = arith.constant 0 : index
    %c0_32 = arith.constant 0 : index
    %79 = vector.load %arg11[%78, %c0_31, %c0_32] : memref<8x8x512xf32, #tpu.memory_space<vmem>>, vector<1x8x512xf32>
    %80 = vector.shape_cast %79 : vector<1x8x512xf32> to vector<8x512xf32>
    %81 = arith.truncf %77 : vector<8x128xf32> to vector<8x128xbf16>
    %c0_33 = arith.constant 0 : index
    %c0_34 = arith.constant 0 : index
    %82 = vector.load %arg4[%c0_33, %c0_34] : memref<128x512xbf16, #tpu.memory_space<vmem>>, vector<128x512xbf16>
    %cst_35 = arith.constant dense<0.000000e+00> : vector<8x512xf32>
    %83 = tpu.matmul %81, %82, %cst_35 {dimension_numbers = #tpu.dot_dimension_numbers<[1], [0], [0], [1], [0, 0, 1, 1], [], []>} : vector<8x128xbf16>, vector<128x512xbf16>, vector<8x512xf32> -> vector<8x512xf32>
    %84 = arith.addf %80, %83 : vector<8x512xf32>
    %85 = vector.extract_strided_slice %84 {offsets = [0, 0], sizes = [8, 128], strides = [1, 1]} : vector<8x512xf32> to vector<8x128xf32>
    %86 = arith.negf %85 : vector<8x128xf32>
    %87 = math.exp %86 : vector<8x128xf32>
    %cst_36 = arith.constant 1.000000e+00 : f32
    %88 = vector.broadcast %cst_36 : f32 to vector<8x128xf32>
    %89 = arith.addf %88, %87 : vector<8x128xf32>
    %90 = arith.divf %88, %89 : vector<8x128xf32>
    %91 = vector.extract_strided_slice %84 {offsets = [0, 128], sizes = [8, 128], strides = [1, 1]} : vector<8x512xf32> to vector<8x128xf32>
    %92 = arith.negf %91 : vector<8x128xf32>
    %93 = math.exp %92 : vector<8x128xf32>
    %cst_37 = arith.constant 1.000000e+00 : f32
    %94 = vector.broadcast %cst_37 : f32 to vector<8x128xf32>
    %95 = arith.addf %94, %93 : vector<8x128xf32>
    %96 = arith.divf %94, %95 : vector<8x128xf32>
    %97 = vector.extract_strided_slice %84 {offsets = [0, 256], sizes = [8, 128], strides = [1, 1]} : vector<8x512xf32> to vector<8x128xf32>
    %98 = math.tanh %97 : vector<8x128xf32>
    %99 = vector.extract_strided_slice %84 {offsets = [0, 384], sizes = [8, 128], strides = [1, 1]} : vector<8x512xf32> to vector<8x128xf32>
    %100 = arith.negf %99 : vector<8x128xf32>
    %101 = math.exp %100 : vector<8x128xf32>
    %cst_38 = arith.constant 1.000000e+00 : f32
    %102 = vector.broadcast %cst_38 : f32 to vector<8x128xf32>
    %103 = arith.addf %102, %101 : vector<8x128xf32>
    %104 = arith.divf %102, %103 : vector<8x128xf32>
    %105 = arith.mulf %96, %75 : vector<8x128xf32>
    %106 = arith.mulf %90, %98 : vector<8x128xf32>
    %107 = arith.addf %105, %106 : vector<8x128xf32>
    %108 = math.tanh %107 : vector<8x128xf32>
    %109 = arith.mulf %104, %108 : vector<8x128xf32>
    %c3_i32 = arith.constant 3 : i32
    %110 = arith.index_cast %c3_i32 : i32 to index
    %c0_39 = arith.constant 0 : index
    %c0_40 = arith.constant 0 : index
    %111 = vector.load %arg11[%110, %c0_39, %c0_40] : memref<8x8x512xf32, #tpu.memory_space<vmem>>, vector<1x8x512xf32>
    %112 = vector.shape_cast %111 : vector<1x8x512xf32> to vector<8x512xf32>
    %113 = arith.truncf %109 : vector<8x128xf32> to vector<8x128xbf16>
    %c0_41 = arith.constant 0 : index
    %c0_42 = arith.constant 0 : index
    %114 = vector.load %arg4[%c0_41, %c0_42] : memref<128x512xbf16, #tpu.memory_space<vmem>>, vector<128x512xbf16>
    %cst_43 = arith.constant dense<0.000000e+00> : vector<8x512xf32>
    %115 = tpu.matmul %113, %114, %cst_43 {dimension_numbers = #tpu.dot_dimension_numbers<[1], [0], [0], [1], [0, 0, 1, 1], [], []>} : vector<8x128xbf16>, vector<128x512xbf16>, vector<8x512xf32> -> vector<8x512xf32>
    %116 = arith.addf %112, %115 : vector<8x512xf32>
    %117 = vector.extract_strided_slice %116 {offsets = [0, 0], sizes = [8, 128], strides = [1, 1]} : vector<8x512xf32> to vector<8x128xf32>
    %118 = arith.negf %117 : vector<8x128xf32>
    %119 = math.exp %118 : vector<8x128xf32>
    %cst_44 = arith.constant 1.000000e+00 : f32
    %120 = vector.broadcast %cst_44 : f32 to vector<8x128xf32>
    %121 = arith.addf %120, %119 : vector<8x128xf32>
    %122 = arith.divf %120, %121 : vector<8x128xf32>
    %123 = vector.extract_strided_slice %116 {offsets = [0, 128], sizes = [8, 128], strides = [1, 1]} : vector<8x512xf32> to vector<8x128xf32>
    %124 = arith.negf %123 : vector<8x128xf32>
    %125 = math.exp %124 : vector<8x128xf32>
    %cst_45 = arith.constant 1.000000e+00 : f32
    %126 = vector.broadcast %cst_45 : f32 to vector<8x128xf32>
    %127 = arith.addf %126, %125 : vector<8x128xf32>
    %128 = arith.divf %126, %127 : vector<8x128xf32>
    %129 = vector.extract_strided_slice %116 {offsets = [0, 256], sizes = [8, 128], strides = [1, 1]} : vector<8x512xf32> to vector<8x128xf32>
    %130 = math.tanh %129 : vector<8x128xf32>
    %131 = vector.extract_strided_slice %116 {offsets = [0, 384], sizes = [8, 128], strides = [1, 1]} : vector<8x512xf32> to vector<8x128xf32>
    %132 = arith.negf %131 : vector<8x128xf32>
    %133 = math.exp %132 : vector<8x128xf32>
    %cst_46 = arith.constant 1.000000e+00 : f32
    %134 = vector.broadcast %cst_46 : f32 to vector<8x128xf32>
    %135 = arith.addf %134, %133 : vector<8x128xf32>
    %136 = arith.divf %134, %135 : vector<8x128xf32>
    %137 = arith.mulf %128, %107 : vector<8x128xf32>
    %138 = arith.mulf %122, %130 : vector<8x128xf32>
    %139 = arith.addf %137, %138 : vector<8x128xf32>
    %140 = math.tanh %139 : vector<8x128xf32>
    %141 = arith.mulf %136, %140 : vector<8x128xf32>
    %c4_i32 = arith.constant 4 : i32
    %142 = arith.index_cast %c4_i32 : i32 to index
    %c0_47 = arith.constant 0 : index
    %c0_48 = arith.constant 0 : index
    %143 = vector.load %arg11[%142, %c0_47, %c0_48] : memref<8x8x512xf32, #tpu.memory_space<vmem>>, vector<1x8x512xf32>
    %144 = vector.shape_cast %143 : vector<1x8x512xf32> to vector<8x512xf32>
    %145 = arith.truncf %141 : vector<8x128xf32> to vector<8x128xbf16>
    %c0_49 = arith.constant 0 : index
    %c0_50 = arith.constant 0 : index
    %146 = vector.load %arg4[%c0_49, %c0_50] : memref<128x512xbf16, #tpu.memory_space<vmem>>, vector<128x512xbf16>
    %cst_51 = arith.constant dense<0.000000e+00> : vector<8x512xf32>
    %147 = tpu.matmul %145, %146, %cst_51 {dimension_numbers = #tpu.dot_dimension_numbers<[1], [0], [0], [1], [0, 0, 1, 1], [], []>} : vector<8x128xbf16>, vector<128x512xbf16>, vector<8x512xf32> -> vector<8x512xf32>
    %148 = arith.addf %144, %147 : vector<8x512xf32>
    %149 = vector.extract_strided_slice %148 {offsets = [0, 0], sizes = [8, 128], strides = [1, 1]} : vector<8x512xf32> to vector<8x128xf32>
    %150 = arith.negf %149 : vector<8x128xf32>
    %151 = math.exp %150 : vector<8x128xf32>
    %cst_52 = arith.constant 1.000000e+00 : f32
    %152 = vector.broadcast %cst_52 : f32 to vector<8x128xf32>
    %153 = arith.addf %152, %151 : vector<8x128xf32>
    %154 = arith.divf %152, %153 : vector<8x128xf32>
    %155 = vector.extract_strided_slice %148 {offsets = [0, 128], sizes = [8, 128], strides = [1, 1]} : vector<8x512xf32> to vector<8x128xf32>
    %156 = arith.negf %155 : vector<8x128xf32>
    %157 = math.exp %156 : vector<8x128xf32>
    %cst_53 = arith.constant 1.000000e+00 : f32
    %158 = vector.broadcast %cst_53 : f32 to vector<8x128xf32>
    %159 = arith.addf %158, %157 : vector<8x128xf32>
    %160 = arith.divf %158, %159 : vector<8x128xf32>
    %161 = vector.extract_strided_slice %148 {offsets = [0, 256], sizes = [8, 128], strides = [1, 1]} : vector<8x512xf32> to vector<8x128xf32>
    %162 = math.tanh %161 : vector<8x128xf32>
    %163 = vector.extract_strided_slice %148 {offsets = [0, 384], sizes = [8, 128], strides = [1, 1]} : vector<8x512xf32> to vector<8x128xf32>
    %164 = arith.negf %163 : vector<8x128xf32>
    %165 = math.exp %164 : vector<8x128xf32>
    %cst_54 = arith.constant 1.000000e+00 : f32
    %166 = vector.broadcast %cst_54 : f32 to vector<8x128xf32>
    %167 = arith.addf %166, %165 : vector<8x128xf32>
    %168 = arith.divf %166, %167 : vector<8x128xf32>
    %169 = arith.mulf %160, %139 : vector<8x128xf32>
    %170 = arith.mulf %154, %162 : vector<8x128xf32>
    %171 = arith.addf %169, %170 : vector<8x128xf32>
    %172 = math.tanh %171 : vector<8x128xf32>
    %173 = arith.mulf %168, %172 : vector<8x128xf32>
    %c5_i32 = arith.constant 5 : i32
    %174 = arith.index_cast %c5_i32 : i32 to index
    %c0_55 = arith.constant 0 : index
    %c0_56 = arith.constant 0 : index
    %175 = vector.load %arg11[%174, %c0_55, %c0_56] : memref<8x8x512xf32, #tpu.memory_space<vmem>>, vector<1x8x512xf32>
    %176 = vector.shape_cast %175 : vector<1x8x512xf32> to vector<8x512xf32>
    %177 = arith.truncf %173 : vector<8x128xf32> to vector<8x128xbf16>
    %c0_57 = arith.constant 0 : index
    %c0_58 = arith.constant 0 : index
    %178 = vector.load %arg4[%c0_57, %c0_58] : memref<128x512xbf16, #tpu.memory_space<vmem>>, vector<128x512xbf16>
    %cst_59 = arith.constant dense<0.000000e+00> : vector<8x512xf32>
    %179 = tpu.matmul %177, %178, %cst_59 {dimension_numbers = #tpu.dot_dimension_numbers<[1], [0], [0], [1], [0, 0, 1, 1], [], []>} : vector<8x128xbf16>, vector<128x512xbf16>, vector<8x512xf32> -> vector<8x512xf32>
    %180 = arith.addf %176, %179 : vector<8x512xf32>
    %181 = vector.extract_strided_slice %180 {offsets = [0, 0], sizes = [8, 128], strides = [1, 1]} : vector<8x512xf32> to vector<8x128xf32>
    %182 = arith.negf %181 : vector<8x128xf32>
    %183 = math.exp %182 : vector<8x128xf32>
    %cst_60 = arith.constant 1.000000e+00 : f32
    %184 = vector.broadcast %cst_60 : f32 to vector<8x128xf32>
    %185 = arith.addf %184, %183 : vector<8x128xf32>
    %186 = arith.divf %184, %185 : vector<8x128xf32>
    %187 = vector.extract_strided_slice %180 {offsets = [0, 128], sizes = [8, 128], strides = [1, 1]} : vector<8x512xf32> to vector<8x128xf32>
    %188 = arith.negf %187 : vector<8x128xf32>
    %189 = math.exp %188 : vector<8x128xf32>
    %cst_61 = arith.constant 1.000000e+00 : f32
    %190 = vector.broadcast %cst_61 : f32 to vector<8x128xf32>
    %191 = arith.addf %190, %189 : vector<8x128xf32>
    %192 = arith.divf %190, %191 : vector<8x128xf32>
    %193 = vector.extract_strided_slice %180 {offsets = [0, 256], sizes = [8, 128], strides = [1, 1]} : vector<8x512xf32> to vector<8x128xf32>
    %194 = math.tanh %193 : vector<8x128xf32>
    %195 = vector.extract_strided_slice %180 {offsets = [0, 384], sizes = [8, 128], strides = [1, 1]} : vector<8x512xf32> to vector<8x128xf32>
    %196 = arith.negf %195 : vector<8x128xf32>
    %197 = math.exp %196 : vector<8x128xf32>
    %cst_62 = arith.constant 1.000000e+00 : f32
    %198 = vector.broadcast %cst_62 : f32 to vector<8x128xf32>
    %199 = arith.addf %198, %197 : vector<8x128xf32>
    %200 = arith.divf %198, %199 : vector<8x128xf32>
    %201 = arith.mulf %192, %171 : vector<8x128xf32>
    %202 = arith.mulf %186, %194 : vector<8x128xf32>
    %203 = arith.addf %201, %202 : vector<8x128xf32>
    %204 = math.tanh %203 : vector<8x128xf32>
    %205 = arith.mulf %200, %204 : vector<8x128xf32>
    %c6_i32 = arith.constant 6 : i32
    %206 = arith.index_cast %c6_i32 : i32 to index
    %c0_63 = arith.constant 0 : index
    %c0_64 = arith.constant 0 : index
    %207 = vector.load %arg11[%206, %c0_63, %c0_64] : memref<8x8x512xf32, #tpu.memory_space<vmem>>, vector<1x8x512xf32>
    %208 = vector.shape_cast %207 : vector<1x8x512xf32> to vector<8x512xf32>
    %209 = arith.truncf %205 : vector<8x128xf32> to vector<8x128xbf16>
    %c0_65 = arith.constant 0 : index
    %c0_66 = arith.constant 0 : index
    %210 = vector.load %arg4[%c0_65, %c0_66] : memref<128x512xbf16, #tpu.memory_space<vmem>>, vector<128x512xbf16>
    %cst_67 = arith.constant dense<0.000000e+00> : vector<8x512xf32>
    %211 = tpu.matmul %209, %210, %cst_67 {dimension_numbers = #tpu.dot_dimension_numbers<[1], [0], [0], [1], [0, 0, 1, 1], [], []>} : vector<8x128xbf16>, vector<128x512xbf16>, vector<8x512xf32> -> vector<8x512xf32>
    %212 = arith.addf %208, %211 : vector<8x512xf32>
    %213 = vector.extract_strided_slice %212 {offsets = [0, 0], sizes = [8, 128], strides = [1, 1]} : vector<8x512xf32> to vector<8x128xf32>
    %214 = arith.negf %213 : vector<8x128xf32>
    %215 = math.exp %214 : vector<8x128xf32>
    %cst_68 = arith.constant 1.000000e+00 : f32
    %216 = vector.broadcast %cst_68 : f32 to vector<8x128xf32>
    %217 = arith.addf %216, %215 : vector<8x128xf32>
    %218 = arith.divf %216, %217 : vector<8x128xf32>
    %219 = vector.extract_strided_slice %212 {offsets = [0, 128], sizes = [8, 128], strides = [1, 1]} : vector<8x512xf32> to vector<8x128xf32>
    %220 = arith.negf %219 : vector<8x128xf32>
    %221 = math.exp %220 : vector<8x128xf32>
    %cst_69 = arith.constant 1.000000e+00 : f32
    %222 = vector.broadcast %cst_69 : f32 to vector<8x128xf32>
    %223 = arith.addf %222, %221 : vector<8x128xf32>
    %224 = arith.divf %222, %223 : vector<8x128xf32>
    %225 = vector.extract_strided_slice %212 {offsets = [0, 256], sizes = [8, 128], strides = [1, 1]} : vector<8x512xf32> to vector<8x128xf32>
    %226 = math.tanh %225 : vector<8x128xf32>
    %227 = vector.extract_strided_slice %212 {offsets = [0, 384], sizes = [8, 128], strides = [1, 1]} : vector<8x512xf32> to vector<8x128xf32>
    %228 = arith.negf %227 : vector<8x128xf32>
    %229 = math.exp %228 : vector<8x128xf32>
    %cst_70 = arith.constant 1.000000e+00 : f32
    %230 = vector.broadcast %cst_70 : f32 to vector<8x128xf32>
    %231 = arith.addf %230, %229 : vector<8x128xf32>
    %232 = arith.divf %230, %231 : vector<8x128xf32>
    %233 = arith.mulf %224, %203 : vector<8x128xf32>
    %234 = arith.mulf %218, %226 : vector<8x128xf32>
    %235 = arith.addf %233, %234 : vector<8x128xf32>
    %236 = math.tanh %235 : vector<8x128xf32>
    %237 = arith.mulf %232, %236 : vector<8x128xf32>
    %c7_i32 = arith.constant 7 : i32
    %238 = arith.index_cast %c7_i32 : i32 to index
    %c0_71 = arith.constant 0 : index
    %c0_72 = arith.constant 0 : index
    %239 = vector.load %arg11[%238, %c0_71, %c0_72] : memref<8x8x512xf32, #tpu.memory_space<vmem>>, vector<1x8x512xf32>
    %240 = vector.shape_cast %239 : vector<1x8x512xf32> to vector<8x512xf32>
    %241 = arith.truncf %237 : vector<8x128xf32> to vector<8x128xbf16>
    %c0_73 = arith.constant 0 : index
    %c0_74 = arith.constant 0 : index
    %242 = vector.load %arg4[%c0_73, %c0_74] : memref<128x512xbf16, #tpu.memory_space<vmem>>, vector<128x512xbf16>
    %cst_75 = arith.constant dense<0.000000e+00> : vector<8x512xf32>
    %243 = tpu.matmul %241, %242, %cst_75 {dimension_numbers = #tpu.dot_dimension_numbers<[1], [0], [0], [1], [0, 0, 1, 1], [], []>} : vector<8x128xbf16>, vector<128x512xbf16>, vector<8x512xf32> -> vector<8x512xf32>
    %244 = arith.addf %240, %243 : vector<8x512xf32>
    %245 = vector.extract_strided_slice %244 {offsets = [0, 0], sizes = [8, 128], strides = [1, 1]} : vector<8x512xf32> to vector<8x128xf32>
    %246 = arith.negf %245 : vector<8x128xf32>
    %247 = math.exp %246 : vector<8x128xf32>
    %cst_76 = arith.constant 1.000000e+00 : f32
    %248 = vector.broadcast %cst_76 : f32 to vector<8x128xf32>
    %249 = arith.addf %248, %247 : vector<8x128xf32>
    %250 = arith.divf %248, %249 : vector<8x128xf32>
    %251 = vector.extract_strided_slice %244 {offsets = [0, 128], sizes = [8, 128], strides = [1, 1]} : vector<8x512xf32> to vector<8x128xf32>
    %252 = arith.negf %251 : vector<8x128xf32>
    %253 = math.exp %252 : vector<8x128xf32>
    %cst_77 = arith.constant 1.000000e+00 : f32
    %254 = vector.broadcast %cst_77 : f32 to vector<8x128xf32>
    %255 = arith.addf %254, %253 : vector<8x128xf32>
    %256 = arith.divf %254, %255 : vector<8x128xf32>
    %257 = vector.extract_strided_slice %244 {offsets = [0, 256], sizes = [8, 128], strides = [1, 1]} : vector<8x512xf32> to vector<8x128xf32>
    %258 = math.tanh %257 : vector<8x128xf32>
    %259 = vector.extract_strided_slice %244 {offsets = [0, 384], sizes = [8, 128], strides = [1, 1]} : vector<8x512xf32> to vector<8x128xf32>
    %260 = arith.negf %259 : vector<8x128xf32>
    %261 = math.exp %260 : vector<8x128xf32>
    %cst_78 = arith.constant 1.000000e+00 : f32
    %262 = vector.broadcast %cst_78 : f32 to vector<8x128xf32>
    %263 = arith.addf %262, %261 : vector<8x128xf32>
    %264 = arith.divf %262, %263 : vector<8x128xf32>
    %265 = arith.mulf %256, %235 : vector<8x128xf32>
    %266 = arith.mulf %250, %258 : vector<8x128xf32>
    %267 = arith.addf %265, %266 : vector<8x128xf32>
    %268 = math.tanh %267 : vector<8x128xf32>
    %269 = arith.mulf %264, %268 : vector<8x128xf32>
    %c8_i32 = arith.constant 8 : i32
    %c0_79 = arith.constant 0 : index
    %c0_80 = arith.constant 0 : index
    %270 = vector.load %arg9[%c0_79, %c0_80] : memref<8x128xf32, #tpu.memory_space<vmem>>, vector<8x128xf32>
    tpu.vector_store %arg9[%c0_79, %c0_80], %269 {strides = array<i32>} : memref<8x128xf32, #tpu.memory_space<vmem>>, vector<8x128xf32>,
    %c0_81 = arith.constant 0 : index
    %c0_82 = arith.constant 0 : index
    %271 = vector.load %arg10[%c0_81, %c0_82] : memref<8x128xf32, #tpu.memory_space<vmem>>, vector<8x128xf32>
    tpu.vector_store %arg10[%c0_81, %c0_82], %267 {strides = array<i32>} : memref<8x128xf32, #tpu.memory_space<vmem>>, vector<8x128xf32>,
    %c0_i32_83 = arith.constant 0 : i32
    %272 = arith.cmpi eq, %arg1, %c0_i32_83 : i32
    %273 = arith.extui %272 : i1 to i32
    %c0_i32_84 = arith.constant 0 : i32
    %274 = arith.cmpi ne, %273, %c0_i32_84 : i32
    scf.if %274 {
      %275 = arith.truncf %269 : vector<8x128xf32> to vector<8x128xbf16>
      %c0_85 = arith.constant 0 : index
      %c0_86 = arith.constant 0 : index
      %276 = vector.load %arg6[%c0_85, %c0_86] : memref<128x2xbf16, #tpu.memory_space<vmem>>, vector<128x2xbf16>
      %cst_87 = arith.constant dense<0.000000e+00> : vector<8x2xf32>
      %277 = tpu.matmul %275, %276, %cst_87 {dimension_numbers = #tpu.dot_dimension_numbers<[1], [0], [0], [1], [0, 0, 1, 1], [], []>} : vector<8x128xbf16>, vector<128x2xbf16>, vector<8x2xf32> -> vector<8x2xf32>
      %c0_88 = arith.constant 0 : index
      %c0_89 = arith.constant 0 : index
      %278 = vector.load %arg7[%c0_88, %c0_89] : memref<1x2xf32, #tpu.memory_space<vmem>>, vector<1x2xf32>
      %279 = vector.broadcast %278 : vector<1x2xf32> to vector<8x2xf32>
      %280 = arith.addf %277, %279 : vector<8x2xf32>
      %c0_90 = arith.constant 0 : index
      %c0_91 = arith.constant 0 : index
      %281 = vector.load %arg8[%c0_90, %c0_91] : memref<8x2xf32, #tpu.memory_space<vmem>>, vector<8x2xf32>
      tpu.vector_store %arg8[%c0_90, %c0_91], %280 {strides = array<i32>} : memref<8x2xf32, #tpu.memory_space<vmem>>, vector<8x2xf32>,
    } else {
    }
    return
  }
  func.func @transform_0(%arg0: i32, %arg1: i32) -> (i32, i32, i32) {
    %c0_i32 = arith.constant 0 : i32
    %c0_i32_0 = arith.constant 0 : i32
    return %arg1, %arg0, %c0_i32 : i32, i32, i32
  }
  func.func @transform_1(%arg0: i32, %arg1: i32) -> (i32, i32) {
    %c0_i32 = arith.constant 0 : i32
    %c0_i32_0 = arith.constant 0 : i32
    %c0_i32_1 = arith.constant 0 : i32
    return %c0_i32, %c0_i32_0 : i32, i32
  }
  func.func @transform_2(%arg0: i32, %arg1: i32) -> (i32, i32) {
    %c0_i32 = arith.constant 0 : i32
    %c0_i32_0 = arith.constant 0 : i32
    %c0_i32_1 = arith.constant 0 : i32
    return %c0_i32, %c0_i32_0 : i32, i32
  }
  func.func @transform_3(%arg0: i32, %arg1: i32) -> (i32, i32) {
    %c0_i32 = arith.constant 0 : i32
    %c0_i32_0 = arith.constant 0 : i32
    %c0_i32_1 = arith.constant 0 : i32
    return %c0_i32, %c0_i32_0 : i32, i32
  }
  func.func @transform_4(%arg0: i32, %arg1: i32) -> (i32, i32) {
    %c0_i32 = arith.constant 0 : i32
    %c0_i32_0 = arith.constant 0 : i32
    %c0_i32_1 = arith.constant 0 : i32
    return %c0_i32, %c0_i32_0 : i32, i32
  }
  func.func @transform_5(%arg0: i32, %arg1: i32) -> (i32, i32) {
    %c0_i32 = arith.constant 0 : i32
    %c0_i32_0 = arith.constant 0 : i32
    %c0_i32_1 = arith.constant 0 : i32
    return %c0_i32, %c0_i32_0 : i32, i32
  }
  func.func @transform_6(%arg0: i32, %arg1: i32) -> (i32, i32) {
    %c0_i32 = arith.constant 0 : i32
    %c0_i32_0 = arith.constant 0 : i32
    return %arg0, %c0_i32 : i32, i32
  }
}

module attributes {stable_mosaic.version = 11 : i64} {
  func.func @lstm_seq_kernel(%arg0: i32, %arg1: i32, %arg2: memref<8x8x128xbf16, #tpu.memory_space<vmem>>, %arg3: memref<128x512xbf16, #tpu.memory_space<vmem>>, %arg4: memref<128x512xbf16, #tpu.memory_space<vmem>>, %arg5: memref<1x512xf32, #tpu.memory_space<vmem>>, %arg6: memref<8x8x128xbf16, #tpu.memory_space<vmem>>, %arg7: memref<8x128xf32, #tpu.memory_space<vmem>>, %arg8: memref<8x128xf32, #tpu.memory_space<vmem>>, %arg9: memref<8x8x512xf32, #tpu.memory_space<vmem>>) attributes {dimension_semantics = [#tpu.dimension_semantics<parallel>, #tpu.dimension_semantics<arbitrary>], iteration_bounds = array<i64: 1, 1>, scalar_prefetch = 0 : i64, scratch_operands = 3 : i64, tpu.core_type = #tpu.core_type<tc>, window_params = [{transform_indices = @transform_0, window_bounds = array<i64: 8, 8, 128>}, {pipeline_mode = #tpu.pipeline_mode<synchronous>, transform_indices = @transform_1, window_bounds = array<i64: 128, 512>}, {pipeline_mode = #tpu.pipeline_mode<synchronous>, transform_indices = @transform_2, window_bounds = array<i64: 128, 512>}, {pipeline_mode = #tpu.pipeline_mode<synchronous>, transform_indices = @transform_3, window_bounds = array<i64: 1, 512>}, {transform_indices = @transform_4, window_bounds = array<i64: 8, 8, 128>}]} {
    %c0_i32 = arith.constant 0 : i32
    %0 = arith.cmpi eq, %arg1, %c0_i32 : i32
    %1 = arith.extui %0 : i1 to i32
    %c0_i32_0 = arith.constant 0 : i32
    %2 = arith.cmpi ne, %1, %c0_i32_0 : i32
    scf.if %2 {
      %cst_99 = arith.constant 0.000000e+00 : f32
      %312 = vector.broadcast %cst_99 : f32 to vector<8x128xf32>
      %c0_100 = arith.constant 0 : index
      %c0_101 = arith.constant 0 : index
      %313 = vector.load %arg7[%c0_100, %c0_101] : memref<8x128xf32, #tpu.memory_space<vmem>>, vector<8x128xf32>
      tpu.vector_store %arg7[%c0_100, %c0_101], %312 {strides = array<i32>} : memref<8x128xf32, #tpu.memory_space<vmem>>, vector<8x128xf32>,
      %cst_102 = arith.constant 0.000000e+00 : f32
      %314 = vector.broadcast %cst_102 : f32 to vector<8x128xf32>
      %c0_103 = arith.constant 0 : index
      %c0_104 = arith.constant 0 : index
      %315 = vector.load %arg8[%c0_103, %c0_104] : memref<8x128xf32, #tpu.memory_space<vmem>>, vector<8x128xf32>
      tpu.vector_store %arg8[%c0_103, %c0_104], %314 {strides = array<i32>} : memref<8x128xf32, #tpu.memory_space<vmem>>, vector<8x128xf32>,
    } else {
    }
    %c0 = arith.constant 0 : index
    %c0_1 = arith.constant 0 : index
    %c0_2 = arith.constant 0 : index
    %3 = vector.load %arg2[%c0, %c0_1, %c0_2] : memref<8x8x128xbf16, #tpu.memory_space<vmem>>, vector<8x8x128xbf16>
    %4 = vector.shape_cast %3 : vector<8x8x128xbf16> to vector<64x128xbf16>
    %c0_3 = arith.constant 0 : index
    %c0_4 = arith.constant 0 : index
    %5 = vector.load %arg3[%c0_3, %c0_4] : memref<128x512xbf16, #tpu.memory_space<vmem>>, vector<128x512xbf16>
    %cst = arith.constant dense<0.000000e+00> : vector<64x512xf32>
    %6 = tpu.matmul %4, %5, %cst {dimension_numbers = #tpu.dot_dimension_numbers<[1], [0], [0], [1], [0, 0, 1, 1], [], []>} : vector<64x128xbf16>, vector<128x512xbf16>, vector<64x512xf32> -> vector<64x512xf32>
    %c0_5 = arith.constant 0 : index
    %c0_6 = arith.constant 0 : index
    %7 = vector.load %arg5[%c0_5, %c0_6] : memref<1x512xf32, #tpu.memory_space<vmem>>, vector<1x512xf32>
    %8 = vector.broadcast %7 : vector<1x512xf32> to vector<64x512xf32>
    %9 = arith.addf %6, %8 : vector<64x512xf32>
    %10 = vector.shape_cast %9 : vector<64x512xf32> to vector<8x8x512xf32>
    %c0_7 = arith.constant 0 : index
    %c0_8 = arith.constant 0 : index
    %c0_9 = arith.constant 0 : index
    %11 = vector.load %arg9[%c0_7, %c0_8, %c0_9] : memref<8x8x512xf32, #tpu.memory_space<vmem>>, vector<8x8x512xf32>
    tpu.vector_store %arg9[%c0_7, %c0_8, %c0_9], %10 {strides = array<i32>} : memref<8x8x512xf32, #tpu.memory_space<vmem>>, vector<8x8x512xf32>,
    %c0_10 = arith.constant 0 : index
    %c0_11 = arith.constant 0 : index
    %12 = vector.load %arg7[%c0_10, %c0_11] : memref<8x128xf32, #tpu.memory_space<vmem>>, vector<8x128xf32>
    %c0_12 = arith.constant 0 : index
    %c0_13 = arith.constant 0 : index
    %13 = vector.load %arg8[%c0_12, %c0_13] : memref<8x128xf32, #tpu.memory_space<vmem>>, vector<8x128xf32>
    %c0_i32_14 = arith.constant 0 : i32
    %14 = arith.index_cast %c0_i32_14 : i32 to index
    %c0_15 = arith.constant 0 : index
    %c0_16 = arith.constant 0 : index
    %15 = vector.load %arg9[%14, %c0_15, %c0_16] : memref<8x8x512xf32, #tpu.memory_space<vmem>>, vector<1x8x512xf32>
    %16 = vector.shape_cast %15 : vector<1x8x512xf32> to vector<8x512xf32>
    %17 = arith.truncf %12 : vector<8x128xf32> to vector<8x128xbf16>
    %c0_17 = arith.constant 0 : index
    %c0_18 = arith.constant 0 : index
    %18 = vector.load %arg4[%c0_17, %c0_18] : memref<128x512xbf16, #tpu.memory_space<vmem>>, vector<128x512xbf16>
    %cst_19 = arith.constant dense<0.000000e+00> : vector<8x512xf32>
    %19 = tpu.matmul %17, %18, %cst_19 {dimension_numbers = #tpu.dot_dimension_numbers<[1], [0], [0], [1], [0, 0, 1, 1], [], []>} : vector<8x128xbf16>, vector<128x512xbf16>, vector<8x512xf32> -> vector<8x512xf32>
    %20 = arith.addf %16, %19 : vector<8x512xf32>
    %21 = vector.extract_strided_slice %20 {offsets = [0, 0], sizes = [8, 128], strides = [1, 1]} : vector<8x512xf32> to vector<8x128xf32>
    %22 = arith.negf %21 : vector<8x128xf32>
    %23 = math.exp %22 : vector<8x128xf32>
    %cst_20 = arith.constant 1.000000e+00 : f32
    %24 = vector.broadcast %cst_20 : f32 to vector<8x128xf32>
    %25 = arith.addf %24, %23 : vector<8x128xf32>
    %26 = arith.divf %24, %25 : vector<8x128xf32>
    %27 = vector.extract_strided_slice %20 {offsets = [0, 128], sizes = [8, 128], strides = [1, 1]} : vector<8x512xf32> to vector<8x128xf32>
    %28 = arith.negf %27 : vector<8x128xf32>
    %29 = math.exp %28 : vector<8x128xf32>
    %cst_21 = arith.constant 1.000000e+00 : f32
    %30 = vector.broadcast %cst_21 : f32 to vector<8x128xf32>
    %31 = arith.addf %30, %29 : vector<8x128xf32>
    %32 = arith.divf %30, %31 : vector<8x128xf32>
    %33 = vector.extract_strided_slice %20 {offsets = [0, 256], sizes = [8, 128], strides = [1, 1]} : vector<8x512xf32> to vector<8x128xf32>
    %34 = math.tanh %33 : vector<8x128xf32>
    %35 = vector.extract_strided_slice %20 {offsets = [0, 384], sizes = [8, 128], strides = [1, 1]} : vector<8x512xf32> to vector<8x128xf32>
    %36 = arith.negf %35 : vector<8x128xf32>
    %37 = math.exp %36 : vector<8x128xf32>
    %cst_22 = arith.constant 1.000000e+00 : f32
    %38 = vector.broadcast %cst_22 : f32 to vector<8x128xf32>
    %39 = arith.addf %38, %37 : vector<8x128xf32>
    %40 = arith.divf %38, %39 : vector<8x128xf32>
    %41 = arith.mulf %32, %13 : vector<8x128xf32>
    %42 = arith.mulf %26, %34 : vector<8x128xf32>
    %43 = arith.addf %41, %42 : vector<8x128xf32>
    %44 = math.tanh %43 : vector<8x128xf32>
    %45 = arith.mulf %40, %44 : vector<8x128xf32>
    %46 = arith.truncf %45 : vector<8x128xf32> to vector<8x128xbf16>
    %47 = arith.index_cast %c0_i32_14 : i32 to index
    %c0_23 = arith.constant 0 : index
    %c0_24 = arith.constant 0 : index
    %48 = vector.load %arg6[%47, %c0_23, %c0_24] : memref<8x8x128xbf16, #tpu.memory_space<vmem>>, vector<1x8x128xbf16>
    %49 = vector.shape_cast %48 : vector<1x8x128xbf16> to vector<8x128xbf16>
    %50 = vector.shape_cast %46 : vector<8x128xbf16> to vector<1x8x128xbf16>
    tpu.vector_store %arg6[%47, %c0_23, %c0_24], %50 {strides = array<i32>} : memref<8x8x128xbf16, #tpu.memory_space<vmem>>, vector<1x8x128xbf16>,
    %c1_i32 = arith.constant 1 : i32
    %51 = arith.index_cast %c1_i32 : i32 to index
    %c0_25 = arith.constant 0 : index
    %c0_26 = arith.constant 0 : index
    %52 = vector.load %arg9[%51, %c0_25, %c0_26] : memref<8x8x512xf32, #tpu.memory_space<vmem>>, vector<1x8x512xf32>
    %53 = vector.shape_cast %52 : vector<1x8x512xf32> to vector<8x512xf32>
    %54 = arith.truncf %45 : vector<8x128xf32> to vector<8x128xbf16>
    %c0_27 = arith.constant 0 : index
    %c0_28 = arith.constant 0 : index
    %55 = vector.load %arg4[%c0_27, %c0_28] : memref<128x512xbf16, #tpu.memory_space<vmem>>, vector<128x512xbf16>
    %cst_29 = arith.constant dense<0.000000e+00> : vector<8x512xf32>
    %56 = tpu.matmul %54, %55, %cst_29 {dimension_numbers = #tpu.dot_dimension_numbers<[1], [0], [0], [1], [0, 0, 1, 1], [], []>} : vector<8x128xbf16>, vector<128x512xbf16>, vector<8x512xf32> -> vector<8x512xf32>
    %57 = arith.addf %53, %56 : vector<8x512xf32>
    %58 = vector.extract_strided_slice %57 {offsets = [0, 0], sizes = [8, 128], strides = [1, 1]} : vector<8x512xf32> to vector<8x128xf32>
    %59 = arith.negf %58 : vector<8x128xf32>
    %60 = math.exp %59 : vector<8x128xf32>
    %cst_30 = arith.constant 1.000000e+00 : f32
    %61 = vector.broadcast %cst_30 : f32 to vector<8x128xf32>
    %62 = arith.addf %61, %60 : vector<8x128xf32>
    %63 = arith.divf %61, %62 : vector<8x128xf32>
    %64 = vector.extract_strided_slice %57 {offsets = [0, 128], sizes = [8, 128], strides = [1, 1]} : vector<8x512xf32> to vector<8x128xf32>
    %65 = arith.negf %64 : vector<8x128xf32>
    %66 = math.exp %65 : vector<8x128xf32>
    %cst_31 = arith.constant 1.000000e+00 : f32
    %67 = vector.broadcast %cst_31 : f32 to vector<8x128xf32>
    %68 = arith.addf %67, %66 : vector<8x128xf32>
    %69 = arith.divf %67, %68 : vector<8x128xf32>
    %70 = vector.extract_strided_slice %57 {offsets = [0, 256], sizes = [8, 128], strides = [1, 1]} : vector<8x512xf32> to vector<8x128xf32>
    %71 = math.tanh %70 : vector<8x128xf32>
    %72 = vector.extract_strided_slice %57 {offsets = [0, 384], sizes = [8, 128], strides = [1, 1]} : vector<8x512xf32> to vector<8x128xf32>
    %73 = arith.negf %72 : vector<8x128xf32>
    %74 = math.exp %73 : vector<8x128xf32>
    %cst_32 = arith.constant 1.000000e+00 : f32
    %75 = vector.broadcast %cst_32 : f32 to vector<8x128xf32>
    %76 = arith.addf %75, %74 : vector<8x128xf32>
    %77 = arith.divf %75, %76 : vector<8x128xf32>
    %78 = arith.mulf %69, %43 : vector<8x128xf32>
    %79 = arith.mulf %63, %71 : vector<8x128xf32>
    %80 = arith.addf %78, %79 : vector<8x128xf32>
    %81 = math.tanh %80 : vector<8x128xf32>
    %82 = arith.mulf %77, %81 : vector<8x128xf32>
    %83 = arith.truncf %82 : vector<8x128xf32> to vector<8x128xbf16>
    %84 = arith.index_cast %c1_i32 : i32 to index
    %c0_33 = arith.constant 0 : index
    %c0_34 = arith.constant 0 : index
    %85 = vector.load %arg6[%84, %c0_33, %c0_34] : memref<8x8x128xbf16, #tpu.memory_space<vmem>>, vector<1x8x128xbf16>
    %86 = vector.shape_cast %85 : vector<1x8x128xbf16> to vector<8x128xbf16>
    %87 = vector.shape_cast %83 : vector<8x128xbf16> to vector<1x8x128xbf16>
    tpu.vector_store %arg6[%84, %c0_33, %c0_34], %87 {strides = array<i32>} : memref<8x8x128xbf16, #tpu.memory_space<vmem>>, vector<1x8x128xbf16>,
    %c2_i32 = arith.constant 2 : i32
    %88 = arith.index_cast %c2_i32 : i32 to index
    %c0_35 = arith.constant 0 : index
    %c0_36 = arith.constant 0 : index
    %89 = vector.load %arg9[%88, %c0_35, %c0_36] : memref<8x8x512xf32, #tpu.memory_space<vmem>>, vector<1x8x512xf32>
    %90 = vector.shape_cast %89 : vector<1x8x512xf32> to vector<8x512xf32>
    %91 = arith.truncf %82 : vector<8x128xf32> to vector<8x128xbf16>
    %c0_37 = arith.constant 0 : index
    %c0_38 = arith.constant 0 : index
    %92 = vector.load %arg4[%c0_37, %c0_38] : memref<128x512xbf16, #tpu.memory_space<vmem>>, vector<128x512xbf16>
    %cst_39 = arith.constant dense<0.000000e+00> : vector<8x512xf32>
    %93 = tpu.matmul %91, %92, %cst_39 {dimension_numbers = #tpu.dot_dimension_numbers<[1], [0], [0], [1], [0, 0, 1, 1], [], []>} : vector<8x128xbf16>, vector<128x512xbf16>, vector<8x512xf32> -> vector<8x512xf32>
    %94 = arith.addf %90, %93 : vector<8x512xf32>
    %95 = vector.extract_strided_slice %94 {offsets = [0, 0], sizes = [8, 128], strides = [1, 1]} : vector<8x512xf32> to vector<8x128xf32>
    %96 = arith.negf %95 : vector<8x128xf32>
    %97 = math.exp %96 : vector<8x128xf32>
    %cst_40 = arith.constant 1.000000e+00 : f32
    %98 = vector.broadcast %cst_40 : f32 to vector<8x128xf32>
    %99 = arith.addf %98, %97 : vector<8x128xf32>
    %100 = arith.divf %98, %99 : vector<8x128xf32>
    %101 = vector.extract_strided_slice %94 {offsets = [0, 128], sizes = [8, 128], strides = [1, 1]} : vector<8x512xf32> to vector<8x128xf32>
    %102 = arith.negf %101 : vector<8x128xf32>
    %103 = math.exp %102 : vector<8x128xf32>
    %cst_41 = arith.constant 1.000000e+00 : f32
    %104 = vector.broadcast %cst_41 : f32 to vector<8x128xf32>
    %105 = arith.addf %104, %103 : vector<8x128xf32>
    %106 = arith.divf %104, %105 : vector<8x128xf32>
    %107 = vector.extract_strided_slice %94 {offsets = [0, 256], sizes = [8, 128], strides = [1, 1]} : vector<8x512xf32> to vector<8x128xf32>
    %108 = math.tanh %107 : vector<8x128xf32>
    %109 = vector.extract_strided_slice %94 {offsets = [0, 384], sizes = [8, 128], strides = [1, 1]} : vector<8x512xf32> to vector<8x128xf32>
    %110 = arith.negf %109 : vector<8x128xf32>
    %111 = math.exp %110 : vector<8x128xf32>
    %cst_42 = arith.constant 1.000000e+00 : f32
    %112 = vector.broadcast %cst_42 : f32 to vector<8x128xf32>
    %113 = arith.addf %112, %111 : vector<8x128xf32>
    %114 = arith.divf %112, %113 : vector<8x128xf32>
    %115 = arith.mulf %106, %80 : vector<8x128xf32>
    %116 = arith.mulf %100, %108 : vector<8x128xf32>
    %117 = arith.addf %115, %116 : vector<8x128xf32>
    %118 = math.tanh %117 : vector<8x128xf32>
    %119 = arith.mulf %114, %118 : vector<8x128xf32>
    %120 = arith.truncf %119 : vector<8x128xf32> to vector<8x128xbf16>
    %121 = arith.index_cast %c2_i32 : i32 to index
    %c0_43 = arith.constant 0 : index
    %c0_44 = arith.constant 0 : index
    %122 = vector.load %arg6[%121, %c0_43, %c0_44] : memref<8x8x128xbf16, #tpu.memory_space<vmem>>, vector<1x8x128xbf16>
    %123 = vector.shape_cast %122 : vector<1x8x128xbf16> to vector<8x128xbf16>
    %124 = vector.shape_cast %120 : vector<8x128xbf16> to vector<1x8x128xbf16>
    tpu.vector_store %arg6[%121, %c0_43, %c0_44], %124 {strides = array<i32>} : memref<8x8x128xbf16, #tpu.memory_space<vmem>>, vector<1x8x128xbf16>,
    %c3_i32 = arith.constant 3 : i32
    %125 = arith.index_cast %c3_i32 : i32 to index
    %c0_45 = arith.constant 0 : index
    %c0_46 = arith.constant 0 : index
    %126 = vector.load %arg9[%125, %c0_45, %c0_46] : memref<8x8x512xf32, #tpu.memory_space<vmem>>, vector<1x8x512xf32>
    %127 = vector.shape_cast %126 : vector<1x8x512xf32> to vector<8x512xf32>
    %128 = arith.truncf %119 : vector<8x128xf32> to vector<8x128xbf16>
    %c0_47 = arith.constant 0 : index
    %c0_48 = arith.constant 0 : index
    %129 = vector.load %arg4[%c0_47, %c0_48] : memref<128x512xbf16, #tpu.memory_space<vmem>>, vector<128x512xbf16>
    %cst_49 = arith.constant dense<0.000000e+00> : vector<8x512xf32>
    %130 = tpu.matmul %128, %129, %cst_49 {dimension_numbers = #tpu.dot_dimension_numbers<[1], [0], [0], [1], [0, 0, 1, 1], [], []>} : vector<8x128xbf16>, vector<128x512xbf16>, vector<8x512xf32> -> vector<8x512xf32>
    %131 = arith.addf %127, %130 : vector<8x512xf32>
    %132 = vector.extract_strided_slice %131 {offsets = [0, 0], sizes = [8, 128], strides = [1, 1]} : vector<8x512xf32> to vector<8x128xf32>
    %133 = arith.negf %132 : vector<8x128xf32>
    %134 = math.exp %133 : vector<8x128xf32>
    %cst_50 = arith.constant 1.000000e+00 : f32
    %135 = vector.broadcast %cst_50 : f32 to vector<8x128xf32>
    %136 = arith.addf %135, %134 : vector<8x128xf32>
    %137 = arith.divf %135, %136 : vector<8x128xf32>
    %138 = vector.extract_strided_slice %131 {offsets = [0, 128], sizes = [8, 128], strides = [1, 1]} : vector<8x512xf32> to vector<8x128xf32>
    %139 = arith.negf %138 : vector<8x128xf32>
    %140 = math.exp %139 : vector<8x128xf32>
    %cst_51 = arith.constant 1.000000e+00 : f32
    %141 = vector.broadcast %cst_51 : f32 to vector<8x128xf32>
    %142 = arith.addf %141, %140 : vector<8x128xf32>
    %143 = arith.divf %141, %142 : vector<8x128xf32>
    %144 = vector.extract_strided_slice %131 {offsets = [0, 256], sizes = [8, 128], strides = [1, 1]} : vector<8x512xf32> to vector<8x128xf32>
    %145 = math.tanh %144 : vector<8x128xf32>
    %146 = vector.extract_strided_slice %131 {offsets = [0, 384], sizes = [8, 128], strides = [1, 1]} : vector<8x512xf32> to vector<8x128xf32>
    %147 = arith.negf %146 : vector<8x128xf32>
    %148 = math.exp %147 : vector<8x128xf32>
    %cst_52 = arith.constant 1.000000e+00 : f32
    %149 = vector.broadcast %cst_52 : f32 to vector<8x128xf32>
    %150 = arith.addf %149, %148 : vector<8x128xf32>
    %151 = arith.divf %149, %150 : vector<8x128xf32>
    %152 = arith.mulf %143, %117 : vector<8x128xf32>
    %153 = arith.mulf %137, %145 : vector<8x128xf32>
    %154 = arith.addf %152, %153 : vector<8x128xf32>
    %155 = math.tanh %154 : vector<8x128xf32>
    %156 = arith.mulf %151, %155 : vector<8x128xf32>
    %157 = arith.truncf %156 : vector<8x128xf32> to vector<8x128xbf16>
    %158 = arith.index_cast %c3_i32 : i32 to index
    %c0_53 = arith.constant 0 : index
    %c0_54 = arith.constant 0 : index
    %159 = vector.load %arg6[%158, %c0_53, %c0_54] : memref<8x8x128xbf16, #tpu.memory_space<vmem>>, vector<1x8x128xbf16>
    %160 = vector.shape_cast %159 : vector<1x8x128xbf16> to vector<8x128xbf16>
    %161 = vector.shape_cast %157 : vector<8x128xbf16> to vector<1x8x128xbf16>
    tpu.vector_store %arg6[%158, %c0_53, %c0_54], %161 {strides = array<i32>} : memref<8x8x128xbf16, #tpu.memory_space<vmem>>, vector<1x8x128xbf16>,
    %c4_i32 = arith.constant 4 : i32
    %162 = arith.index_cast %c4_i32 : i32 to index
    %c0_55 = arith.constant 0 : index
    %c0_56 = arith.constant 0 : index
    %163 = vector.load %arg9[%162, %c0_55, %c0_56] : memref<8x8x512xf32, #tpu.memory_space<vmem>>, vector<1x8x512xf32>
    %164 = vector.shape_cast %163 : vector<1x8x512xf32> to vector<8x512xf32>
    %165 = arith.truncf %156 : vector<8x128xf32> to vector<8x128xbf16>
    %c0_57 = arith.constant 0 : index
    %c0_58 = arith.constant 0 : index
    %166 = vector.load %arg4[%c0_57, %c0_58] : memref<128x512xbf16, #tpu.memory_space<vmem>>, vector<128x512xbf16>
    %cst_59 = arith.constant dense<0.000000e+00> : vector<8x512xf32>
    %167 = tpu.matmul %165, %166, %cst_59 {dimension_numbers = #tpu.dot_dimension_numbers<[1], [0], [0], [1], [0, 0, 1, 1], [], []>} : vector<8x128xbf16>, vector<128x512xbf16>, vector<8x512xf32> -> vector<8x512xf32>
    %168 = arith.addf %164, %167 : vector<8x512xf32>
    %169 = vector.extract_strided_slice %168 {offsets = [0, 0], sizes = [8, 128], strides = [1, 1]} : vector<8x512xf32> to vector<8x128xf32>
    %170 = arith.negf %169 : vector<8x128xf32>
    %171 = math.exp %170 : vector<8x128xf32>
    %cst_60 = arith.constant 1.000000e+00 : f32
    %172 = vector.broadcast %cst_60 : f32 to vector<8x128xf32>
    %173 = arith.addf %172, %171 : vector<8x128xf32>
    %174 = arith.divf %172, %173 : vector<8x128xf32>
    %175 = vector.extract_strided_slice %168 {offsets = [0, 128], sizes = [8, 128], strides = [1, 1]} : vector<8x512xf32> to vector<8x128xf32>
    %176 = arith.negf %175 : vector<8x128xf32>
    %177 = math.exp %176 : vector<8x128xf32>
    %cst_61 = arith.constant 1.000000e+00 : f32
    %178 = vector.broadcast %cst_61 : f32 to vector<8x128xf32>
    %179 = arith.addf %178, %177 : vector<8x128xf32>
    %180 = arith.divf %178, %179 : vector<8x128xf32>
    %181 = vector.extract_strided_slice %168 {offsets = [0, 256], sizes = [8, 128], strides = [1, 1]} : vector<8x512xf32> to vector<8x128xf32>
    %182 = math.tanh %181 : vector<8x128xf32>
    %183 = vector.extract_strided_slice %168 {offsets = [0, 384], sizes = [8, 128], strides = [1, 1]} : vector<8x512xf32> to vector<8x128xf32>
    %184 = arith.negf %183 : vector<8x128xf32>
    %185 = math.exp %184 : vector<8x128xf32>
    %cst_62 = arith.constant 1.000000e+00 : f32
    %186 = vector.broadcast %cst_62 : f32 to vector<8x128xf32>
    %187 = arith.addf %186, %185 : vector<8x128xf32>
    %188 = arith.divf %186, %187 : vector<8x128xf32>
    %189 = arith.mulf %180, %154 : vector<8x128xf32>
    %190 = arith.mulf %174, %182 : vector<8x128xf32>
    %191 = arith.addf %189, %190 : vector<8x128xf32>
    %192 = math.tanh %191 : vector<8x128xf32>
    %193 = arith.mulf %188, %192 : vector<8x128xf32>
    %194 = arith.truncf %193 : vector<8x128xf32> to vector<8x128xbf16>
    %195 = arith.index_cast %c4_i32 : i32 to index
    %c0_63 = arith.constant 0 : index
    %c0_64 = arith.constant 0 : index
    %196 = vector.load %arg6[%195, %c0_63, %c0_64] : memref<8x8x128xbf16, #tpu.memory_space<vmem>>, vector<1x8x128xbf16>
    %197 = vector.shape_cast %196 : vector<1x8x128xbf16> to vector<8x128xbf16>
    %198 = vector.shape_cast %194 : vector<8x128xbf16> to vector<1x8x128xbf16>
    tpu.vector_store %arg6[%195, %c0_63, %c0_64], %198 {strides = array<i32>} : memref<8x8x128xbf16, #tpu.memory_space<vmem>>, vector<1x8x128xbf16>,
    %c5_i32 = arith.constant 5 : i32
    %199 = arith.index_cast %c5_i32 : i32 to index
    %c0_65 = arith.constant 0 : index
    %c0_66 = arith.constant 0 : index
    %200 = vector.load %arg9[%199, %c0_65, %c0_66] : memref<8x8x512xf32, #tpu.memory_space<vmem>>, vector<1x8x512xf32>
    %201 = vector.shape_cast %200 : vector<1x8x512xf32> to vector<8x512xf32>
    %202 = arith.truncf %193 : vector<8x128xf32> to vector<8x128xbf16>
    %c0_67 = arith.constant 0 : index
    %c0_68 = arith.constant 0 : index
    %203 = vector.load %arg4[%c0_67, %c0_68] : memref<128x512xbf16, #tpu.memory_space<vmem>>, vector<128x512xbf16>
    %cst_69 = arith.constant dense<0.000000e+00> : vector<8x512xf32>
    %204 = tpu.matmul %202, %203, %cst_69 {dimension_numbers = #tpu.dot_dimension_numbers<[1], [0], [0], [1], [0, 0, 1, 1], [], []>} : vector<8x128xbf16>, vector<128x512xbf16>, vector<8x512xf32> -> vector<8x512xf32>
    %205 = arith.addf %201, %204 : vector<8x512xf32>
    %206 = vector.extract_strided_slice %205 {offsets = [0, 0], sizes = [8, 128], strides = [1, 1]} : vector<8x512xf32> to vector<8x128xf32>
    %207 = arith.negf %206 : vector<8x128xf32>
    %208 = math.exp %207 : vector<8x128xf32>
    %cst_70 = arith.constant 1.000000e+00 : f32
    %209 = vector.broadcast %cst_70 : f32 to vector<8x128xf32>
    %210 = arith.addf %209, %208 : vector<8x128xf32>
    %211 = arith.divf %209, %210 : vector<8x128xf32>
    %212 = vector.extract_strided_slice %205 {offsets = [0, 128], sizes = [8, 128], strides = [1, 1]} : vector<8x512xf32> to vector<8x128xf32>
    %213 = arith.negf %212 : vector<8x128xf32>
    %214 = math.exp %213 : vector<8x128xf32>
    %cst_71 = arith.constant 1.000000e+00 : f32
    %215 = vector.broadcast %cst_71 : f32 to vector<8x128xf32>
    %216 = arith.addf %215, %214 : vector<8x128xf32>
    %217 = arith.divf %215, %216 : vector<8x128xf32>
    %218 = vector.extract_strided_slice %205 {offsets = [0, 256], sizes = [8, 128], strides = [1, 1]} : vector<8x512xf32> to vector<8x128xf32>
    %219 = math.tanh %218 : vector<8x128xf32>
    %220 = vector.extract_strided_slice %205 {offsets = [0, 384], sizes = [8, 128], strides = [1, 1]} : vector<8x512xf32> to vector<8x128xf32>
    %221 = arith.negf %220 : vector<8x128xf32>
    %222 = math.exp %221 : vector<8x128xf32>
    %cst_72 = arith.constant 1.000000e+00 : f32
    %223 = vector.broadcast %cst_72 : f32 to vector<8x128xf32>
    %224 = arith.addf %223, %222 : vector<8x128xf32>
    %225 = arith.divf %223, %224 : vector<8x128xf32>
    %226 = arith.mulf %217, %191 : vector<8x128xf32>
    %227 = arith.mulf %211, %219 : vector<8x128xf32>
    %228 = arith.addf %226, %227 : vector<8x128xf32>
    %229 = math.tanh %228 : vector<8x128xf32>
    %230 = arith.mulf %225, %229 : vector<8x128xf32>
    %231 = arith.truncf %230 : vector<8x128xf32> to vector<8x128xbf16>
    %232 = arith.index_cast %c5_i32 : i32 to index
    %c0_73 = arith.constant 0 : index
    %c0_74 = arith.constant 0 : index
    %233 = vector.load %arg6[%232, %c0_73, %c0_74] : memref<8x8x128xbf16, #tpu.memory_space<vmem>>, vector<1x8x128xbf16>
    %234 = vector.shape_cast %233 : vector<1x8x128xbf16> to vector<8x128xbf16>
    %235 = vector.shape_cast %231 : vector<8x128xbf16> to vector<1x8x128xbf16>
    tpu.vector_store %arg6[%232, %c0_73, %c0_74], %235 {strides = array<i32>} : memref<8x8x128xbf16, #tpu.memory_space<vmem>>, vector<1x8x128xbf16>,
    %c6_i32 = arith.constant 6 : i32
    %236 = arith.index_cast %c6_i32 : i32 to index
    %c0_75 = arith.constant 0 : index
    %c0_76 = arith.constant 0 : index
    %237 = vector.load %arg9[%236, %c0_75, %c0_76] : memref<8x8x512xf32, #tpu.memory_space<vmem>>, vector<1x8x512xf32>
    %238 = vector.shape_cast %237 : vector<1x8x512xf32> to vector<8x512xf32>
    %239 = arith.truncf %230 : vector<8x128xf32> to vector<8x128xbf16>
    %c0_77 = arith.constant 0 : index
    %c0_78 = arith.constant 0 : index
    %240 = vector.load %arg4[%c0_77, %c0_78] : memref<128x512xbf16, #tpu.memory_space<vmem>>, vector<128x512xbf16>
    %cst_79 = arith.constant dense<0.000000e+00> : vector<8x512xf32>
    %241 = tpu.matmul %239, %240, %cst_79 {dimension_numbers = #tpu.dot_dimension_numbers<[1], [0], [0], [1], [0, 0, 1, 1], [], []>} : vector<8x128xbf16>, vector<128x512xbf16>, vector<8x512xf32> -> vector<8x512xf32>
    %242 = arith.addf %238, %241 : vector<8x512xf32>
    %243 = vector.extract_strided_slice %242 {offsets = [0, 0], sizes = [8, 128], strides = [1, 1]} : vector<8x512xf32> to vector<8x128xf32>
    %244 = arith.negf %243 : vector<8x128xf32>
    %245 = math.exp %244 : vector<8x128xf32>
    %cst_80 = arith.constant 1.000000e+00 : f32
    %246 = vector.broadcast %cst_80 : f32 to vector<8x128xf32>
    %247 = arith.addf %246, %245 : vector<8x128xf32>
    %248 = arith.divf %246, %247 : vector<8x128xf32>
    %249 = vector.extract_strided_slice %242 {offsets = [0, 128], sizes = [8, 128], strides = [1, 1]} : vector<8x512xf32> to vector<8x128xf32>
    %250 = arith.negf %249 : vector<8x128xf32>
    %251 = math.exp %250 : vector<8x128xf32>
    %cst_81 = arith.constant 1.000000e+00 : f32
    %252 = vector.broadcast %cst_81 : f32 to vector<8x128xf32>
    %253 = arith.addf %252, %251 : vector<8x128xf32>
    %254 = arith.divf %252, %253 : vector<8x128xf32>
    %255 = vector.extract_strided_slice %242 {offsets = [0, 256], sizes = [8, 128], strides = [1, 1]} : vector<8x512xf32> to vector<8x128xf32>
    %256 = math.tanh %255 : vector<8x128xf32>
    %257 = vector.extract_strided_slice %242 {offsets = [0, 384], sizes = [8, 128], strides = [1, 1]} : vector<8x512xf32> to vector<8x128xf32>
    %258 = arith.negf %257 : vector<8x128xf32>
    %259 = math.exp %258 : vector<8x128xf32>
    %cst_82 = arith.constant 1.000000e+00 : f32
    %260 = vector.broadcast %cst_82 : f32 to vector<8x128xf32>
    %261 = arith.addf %260, %259 : vector<8x128xf32>
    %262 = arith.divf %260, %261 : vector<8x128xf32>
    %263 = arith.mulf %254, %228 : vector<8x128xf32>
    %264 = arith.mulf %248, %256 : vector<8x128xf32>
    %265 = arith.addf %263, %264 : vector<8x128xf32>
    %266 = math.tanh %265 : vector<8x128xf32>
    %267 = arith.mulf %262, %266 : vector<8x128xf32>
    %268 = arith.truncf %267 : vector<8x128xf32> to vector<8x128xbf16>
    %269 = arith.index_cast %c6_i32 : i32 to index
    %c0_83 = arith.constant 0 : index
    %c0_84 = arith.constant 0 : index
    %270 = vector.load %arg6[%269, %c0_83, %c0_84] : memref<8x8x128xbf16, #tpu.memory_space<vmem>>, vector<1x8x128xbf16>
    %271 = vector.shape_cast %270 : vector<1x8x128xbf16> to vector<8x128xbf16>
    %272 = vector.shape_cast %268 : vector<8x128xbf16> to vector<1x8x128xbf16>
    tpu.vector_store %arg6[%269, %c0_83, %c0_84], %272 {strides = array<i32>} : memref<8x8x128xbf16, #tpu.memory_space<vmem>>, vector<1x8x128xbf16>,
    %c7_i32 = arith.constant 7 : i32
    %273 = arith.index_cast %c7_i32 : i32 to index
    %c0_85 = arith.constant 0 : index
    %c0_86 = arith.constant 0 : index
    %274 = vector.load %arg9[%273, %c0_85, %c0_86] : memref<8x8x512xf32, #tpu.memory_space<vmem>>, vector<1x8x512xf32>
    %275 = vector.shape_cast %274 : vector<1x8x512xf32> to vector<8x512xf32>
    %276 = arith.truncf %267 : vector<8x128xf32> to vector<8x128xbf16>
    %c0_87 = arith.constant 0 : index
    %c0_88 = arith.constant 0 : index
    %277 = vector.load %arg4[%c0_87, %c0_88] : memref<128x512xbf16, #tpu.memory_space<vmem>>, vector<128x512xbf16>
    %cst_89 = arith.constant dense<0.000000e+00> : vector<8x512xf32>
    %278 = tpu.matmul %276, %277, %cst_89 {dimension_numbers = #tpu.dot_dimension_numbers<[1], [0], [0], [1], [0, 0, 1, 1], [], []>} : vector<8x128xbf16>, vector<128x512xbf16>, vector<8x512xf32> -> vector<8x512xf32>
    %279 = arith.addf %275, %278 : vector<8x512xf32>
    %280 = vector.extract_strided_slice %279 {offsets = [0, 0], sizes = [8, 128], strides = [1, 1]} : vector<8x512xf32> to vector<8x128xf32>
    %281 = arith.negf %280 : vector<8x128xf32>
    %282 = math.exp %281 : vector<8x128xf32>
    %cst_90 = arith.constant 1.000000e+00 : f32
    %283 = vector.broadcast %cst_90 : f32 to vector<8x128xf32>
    %284 = arith.addf %283, %282 : vector<8x128xf32>
    %285 = arith.divf %283, %284 : vector<8x128xf32>
    %286 = vector.extract_strided_slice %279 {offsets = [0, 128], sizes = [8, 128], strides = [1, 1]} : vector<8x512xf32> to vector<8x128xf32>
    %287 = arith.negf %286 : vector<8x128xf32>
    %288 = math.exp %287 : vector<8x128xf32>
    %cst_91 = arith.constant 1.000000e+00 : f32
    %289 = vector.broadcast %cst_91 : f32 to vector<8x128xf32>
    %290 = arith.addf %289, %288 : vector<8x128xf32>
    %291 = arith.divf %289, %290 : vector<8x128xf32>
    %292 = vector.extract_strided_slice %279 {offsets = [0, 256], sizes = [8, 128], strides = [1, 1]} : vector<8x512xf32> to vector<8x128xf32>
    %293 = math.tanh %292 : vector<8x128xf32>
    %294 = vector.extract_strided_slice %279 {offsets = [0, 384], sizes = [8, 128], strides = [1, 1]} : vector<8x512xf32> to vector<8x128xf32>
    %295 = arith.negf %294 : vector<8x128xf32>
    %296 = math.exp %295 : vector<8x128xf32>
    %cst_92 = arith.constant 1.000000e+00 : f32
    %297 = vector.broadcast %cst_92 : f32 to vector<8x128xf32>
    %298 = arith.addf %297, %296 : vector<8x128xf32>
    %299 = arith.divf %297, %298 : vector<8x128xf32>
    %300 = arith.mulf %291, %265 : vector<8x128xf32>
    %301 = arith.mulf %285, %293 : vector<8x128xf32>
    %302 = arith.addf %300, %301 : vector<8x128xf32>
    %303 = math.tanh %302 : vector<8x128xf32>
    %304 = arith.mulf %299, %303 : vector<8x128xf32>
    %305 = arith.truncf %304 : vector<8x128xf32> to vector<8x128xbf16>
    %306 = arith.index_cast %c7_i32 : i32 to index
    %c0_93 = arith.constant 0 : index
    %c0_94 = arith.constant 0 : index
    %307 = vector.load %arg6[%306, %c0_93, %c0_94] : memref<8x8x128xbf16, #tpu.memory_space<vmem>>, vector<1x8x128xbf16>
    %308 = vector.shape_cast %307 : vector<1x8x128xbf16> to vector<8x128xbf16>
    %309 = vector.shape_cast %305 : vector<8x128xbf16> to vector<1x8x128xbf16>
    tpu.vector_store %arg6[%306, %c0_93, %c0_94], %309 {strides = array<i32>} : memref<8x8x128xbf16, #tpu.memory_space<vmem>>, vector<1x8x128xbf16>,
    %c8_i32 = arith.constant 8 : i32
    %c0_95 = arith.constant 0 : index
    %c0_96 = arith.constant 0 : index
    %310 = vector.load %arg7[%c0_95, %c0_96] : memref<8x128xf32, #tpu.memory_space<vmem>>, vector<8x128xf32>
    tpu.vector_store %arg7[%c0_95, %c0_96], %304 {strides = array<i32>} : memref<8x128xf32, #tpu.memory_space<vmem>>, vector<8x128xf32>,
    %c0_97 = arith.constant 0 : index
    %c0_98 = arith.constant 0 : index
    %311 = vector.load %arg8[%c0_97, %c0_98] : memref<8x128xf32, #tpu.memory_space<vmem>>, vector<8x128xf32>
    tpu.vector_store %arg8[%c0_97, %c0_98], %302 {strides = array<i32>} : memref<8x128xf32, #tpu.memory_space<vmem>>, vector<8x128xf32>,
    return
  }
  func.func @transform_0(%arg0: i32, %arg1: i32) -> (i32, i32, i32) {
    %c0_i32 = arith.constant 0 : i32
    %c0_i32_0 = arith.constant 0 : i32
    return %arg1, %arg0, %c0_i32 : i32, i32, i32
  }
  func.func @transform_1(%arg0: i32, %arg1: i32) -> (i32, i32) {
    %c0_i32 = arith.constant 0 : i32
    %c0_i32_0 = arith.constant 0 : i32
    %c0_i32_1 = arith.constant 0 : i32
    return %c0_i32, %c0_i32_0 : i32, i32
  }
  func.func @transform_2(%arg0: i32, %arg1: i32) -> (i32, i32) {
    %c0_i32 = arith.constant 0 : i32
    %c0_i32_0 = arith.constant 0 : i32
    %c0_i32_1 = arith.constant 0 : i32
    return %c0_i32, %c0_i32_0 : i32, i32
  }
  func.func @transform_3(%arg0: i32, %arg1: i32) -> (i32, i32) {
    %c0_i32 = arith.constant 0 : i32
    %c0_i32_0 = arith.constant 0 : i32
    %c0_i32_1 = arith.constant 0 : i32
    return %c0_i32, %c0_i32_0 : i32, i32
  }
  func.func @transform_4(%arg0: i32, %arg1: i32) -> (i32, i32, i32) {
    %c0_i32 = arith.constant 0 : i32
    %c0_i32_0 = arith.constant 0 : i32
    return %arg1, %arg0, %c0_i32 : i32, i32, i32
  }
}

module attributes {stable_mosaic.version = 11 : i64} {
  func.func @lstm_last_fc_kernel(%arg0: i32, %arg1: i32, %arg2: memref<8x8x128xbf16, #tpu.memory_space<vmem>>, %arg3: memref<128x512xbf16, #tpu.memory_space<vmem>>, %arg4: memref<128x512xbf16, #tpu.memory_space<vmem>>, %arg5: memref<1x512xf32, #tpu.memory_space<vmem>>, %arg6: memref<128x2xbf16, #tpu.memory_space<vmem>>, %arg7: memref<1x2xf32, #tpu.memory_space<vmem>>, %arg8: memref<8x2xf32, #tpu.memory_space<vmem>>, %arg9: memref<8x128xf32, #tpu.memory_space<vmem>>, %arg10: memref<8x128xf32, #tpu.memory_space<vmem>>, %arg11: memref<8x8x512xf32, #tpu.memory_space<vmem>>) attributes {dimension_semantics = [#tpu.dimension_semantics<parallel>, #tpu.dimension_semantics<arbitrary>], iteration_bounds = array<i64: 1, 1>, scalar_prefetch = 0 : i64, scratch_operands = 3 : i64, tpu.core_type = #tpu.core_type<tc>, window_params = [{transform_indices = @transform_0, window_bounds = array<i64: 8, 8, 128>}, {pipeline_mode = #tpu.pipeline_mode<synchronous>, transform_indices = @transform_1, window_bounds = array<i64: 128, 512>}, {pipeline_mode = #tpu.pipeline_mode<synchronous>, transform_indices = @transform_2, window_bounds = array<i64: 128, 512>}, {pipeline_mode = #tpu.pipeline_mode<synchronous>, transform_indices = @transform_3, window_bounds = array<i64: 1, 512>}, {pipeline_mode = #tpu.pipeline_mode<synchronous>, transform_indices = @transform_4, window_bounds = array<i64: 128, 2>}, {pipeline_mode = #tpu.pipeline_mode<synchronous>, transform_indices = @transform_5, window_bounds = array<i64: 1, 2>}, {transform_indices = @transform_6, window_bounds = array<i64: 8, 2>}]} {
    %c0_i32 = arith.constant 0 : i32
    %0 = arith.cmpi eq, %arg1, %c0_i32 : i32
    %1 = arith.extui %0 : i1 to i32
    %c0_i32_0 = arith.constant 0 : i32
    %2 = arith.cmpi ne, %1, %c0_i32_0 : i32
    scf.if %2 {
      %cst_85 = arith.constant 0.000000e+00 : f32
      %275 = vector.broadcast %cst_85 : f32 to vector<8x128xf32>
      %c0_86 = arith.constant 0 : index
      %c0_87 = arith.constant 0 : index
      %276 = vector.load %arg9[%c0_86, %c0_87] : memref<8x128xf32, #tpu.memory_space<vmem>>, vector<8x128xf32>
      tpu.vector_store %arg9[%c0_86, %c0_87], %275 {strides = array<i32>} : memref<8x128xf32, #tpu.memory_space<vmem>>, vector<8x128xf32>,
      %cst_88 = arith.constant 0.000000e+00 : f32
      %277 = vector.broadcast %cst_88 : f32 to vector<8x128xf32>
      %c0_89 = arith.constant 0 : index
      %c0_90 = arith.constant 0 : index
      %278 = vector.load %arg10[%c0_89, %c0_90] : memref<8x128xf32, #tpu.memory_space<vmem>>, vector<8x128xf32>
      tpu.vector_store %arg10[%c0_89, %c0_90], %277 {strides = array<i32>} : memref<8x128xf32, #tpu.memory_space<vmem>>, vector<8x128xf32>,
    } else {
    }
    %c0 = arith.constant 0 : index
    %c0_1 = arith.constant 0 : index
    %c0_2 = arith.constant 0 : index
    %3 = vector.load %arg2[%c0, %c0_1, %c0_2] : memref<8x8x128xbf16, #tpu.memory_space<vmem>>, vector<8x8x128xbf16>
    %4 = vector.shape_cast %3 : vector<8x8x128xbf16> to vector<64x128xbf16>
    %c0_3 = arith.constant 0 : index
    %c0_4 = arith.constant 0 : index
    %5 = vector.load %arg3[%c0_3, %c0_4] : memref<128x512xbf16, #tpu.memory_space<vmem>>, vector<128x512xbf16>
    %cst = arith.constant dense<0.000000e+00> : vector<64x512xf32>
    %6 = tpu.matmul %4, %5, %cst {dimension_numbers = #tpu.dot_dimension_numbers<[1], [0], [0], [1], [0, 0, 1, 1], [], []>} : vector<64x128xbf16>, vector<128x512xbf16>, vector<64x512xf32> -> vector<64x512xf32>
    %c0_5 = arith.constant 0 : index
    %c0_6 = arith.constant 0 : index
    %7 = vector.load %arg5[%c0_5, %c0_6] : memref<1x512xf32, #tpu.memory_space<vmem>>, vector<1x512xf32>
    %8 = vector.broadcast %7 : vector<1x512xf32> to vector<64x512xf32>
    %9 = arith.addf %6, %8 : vector<64x512xf32>
    %10 = vector.shape_cast %9 : vector<64x512xf32> to vector<8x8x512xf32>
    %c0_7 = arith.constant 0 : index
    %c0_8 = arith.constant 0 : index
    %c0_9 = arith.constant 0 : index
    %11 = vector.load %arg11[%c0_7, %c0_8, %c0_9] : memref<8x8x512xf32, #tpu.memory_space<vmem>>, vector<8x8x512xf32>
    tpu.vector_store %arg11[%c0_7, %c0_8, %c0_9], %10 {strides = array<i32>} : memref<8x8x512xf32, #tpu.memory_space<vmem>>, vector<8x8x512xf32>,
    %c0_10 = arith.constant 0 : index
    %c0_11 = arith.constant 0 : index
    %12 = vector.load %arg9[%c0_10, %c0_11] : memref<8x128xf32, #tpu.memory_space<vmem>>, vector<8x128xf32>
    %c0_12 = arith.constant 0 : index
    %c0_13 = arith.constant 0 : index
    %13 = vector.load %arg10[%c0_12, %c0_13] : memref<8x128xf32, #tpu.memory_space<vmem>>, vector<8x128xf32>
    %c0_i32_14 = arith.constant 0 : i32
    %14 = arith.index_cast %c0_i32_14 : i32 to index
    %c0_15 = arith.constant 0 : index
    %c0_16 = arith.constant 0 : index
    %15 = vector.load %arg11[%14, %c0_15, %c0_16] : memref<8x8x512xf32, #tpu.memory_space<vmem>>, vector<1x8x512xf32>
    %16 = vector.shape_cast %15 : vector<1x8x512xf32> to vector<8x512xf32>
    %17 = arith.truncf %12 : vector<8x128xf32> to vector<8x128xbf16>
    %c0_17 = arith.constant 0 : index
    %c0_18 = arith.constant 0 : index
    %18 = vector.load %arg4[%c0_17, %c0_18] : memref<128x512xbf16, #tpu.memory_space<vmem>>, vector<128x512xbf16>
    %cst_19 = arith.constant dense<0.000000e+00> : vector<8x512xf32>
    %19 = tpu.matmul %17, %18, %cst_19 {dimension_numbers = #tpu.dot_dimension_numbers<[1], [0], [0], [1], [0, 0, 1, 1], [], []>} : vector<8x128xbf16>, vector<128x512xbf16>, vector<8x512xf32> -> vector<8x512xf32>
    %20 = arith.addf %16, %19 : vector<8x512xf32>
    %21 = vector.extract_strided_slice %20 {offsets = [0, 0], sizes = [8, 128], strides = [1, 1]} : vector<8x512xf32> to vector<8x128xf32>
    %22 = arith.negf %21 : vector<8x128xf32>
    %23 = math.exp %22 : vector<8x128xf32>
    %cst_20 = arith.constant 1.000000e+00 : f32
    %24 = vector.broadcast %cst_20 : f32 to vector<8x128xf32>
    %25 = arith.addf %24, %23 : vector<8x128xf32>
    %26 = arith.divf %24, %25 : vector<8x128xf32>
    %27 = vector.extract_strided_slice %20 {offsets = [0, 128], sizes = [8, 128], strides = [1, 1]} : vector<8x512xf32> to vector<8x128xf32>
    %28 = arith.negf %27 : vector<8x128xf32>
    %29 = math.exp %28 : vector<8x128xf32>
    %cst_21 = arith.constant 1.000000e+00 : f32
    %30 = vector.broadcast %cst_21 : f32 to vector<8x128xf32>
    %31 = arith.addf %30, %29 : vector<8x128xf32>
    %32 = arith.divf %30, %31 : vector<8x128xf32>
    %33 = vector.extract_strided_slice %20 {offsets = [0, 256], sizes = [8, 128], strides = [1, 1]} : vector<8x512xf32> to vector<8x128xf32>
    %34 = math.tanh %33 : vector<8x128xf32>
    %35 = vector.extract_strided_slice %20 {offsets = [0, 384], sizes = [8, 128], strides = [1, 1]} : vector<8x512xf32> to vector<8x128xf32>
    %36 = arith.negf %35 : vector<8x128xf32>
    %37 = math.exp %36 : vector<8x128xf32>
    %cst_22 = arith.constant 1.000000e+00 : f32
    %38 = vector.broadcast %cst_22 : f32 to vector<8x128xf32>
    %39 = arith.addf %38, %37 : vector<8x128xf32>
    %40 = arith.divf %38, %39 : vector<8x128xf32>
    %41 = arith.mulf %32, %13 : vector<8x128xf32>
    %42 = arith.mulf %26, %34 : vector<8x128xf32>
    %43 = arith.addf %41, %42 : vector<8x128xf32>
    %44 = math.tanh %43 : vector<8x128xf32>
    %45 = arith.mulf %40, %44 : vector<8x128xf32>
    %c1_i32 = arith.constant 1 : i32
    %46 = arith.index_cast %c1_i32 : i32 to index
    %c0_23 = arith.constant 0 : index
    %c0_24 = arith.constant 0 : index
    %47 = vector.load %arg11[%46, %c0_23, %c0_24] : memref<8x8x512xf32, #tpu.memory_space<vmem>>, vector<1x8x512xf32>
    %48 = vector.shape_cast %47 : vector<1x8x512xf32> to vector<8x512xf32>
    %49 = arith.truncf %45 : vector<8x128xf32> to vector<8x128xbf16>
    %c0_25 = arith.constant 0 : index
    %c0_26 = arith.constant 0 : index
    %50 = vector.load %arg4[%c0_25, %c0_26] : memref<128x512xbf16, #tpu.memory_space<vmem>>, vector<128x512xbf16>
    %cst_27 = arith.constant dense<0.000000e+00> : vector<8x512xf32>
    %51 = tpu.matmul %49, %50, %cst_27 {dimension_numbers = #tpu.dot_dimension_numbers<[1], [0], [0], [1], [0, 0, 1, 1], [], []>} : vector<8x128xbf16>, vector<128x512xbf16>, vector<8x512xf32> -> vector<8x512xf32>
    %52 = arith.addf %48, %51 : vector<8x512xf32>
    %53 = vector.extract_strided_slice %52 {offsets = [0, 0], sizes = [8, 128], strides = [1, 1]} : vector<8x512xf32> to vector<8x128xf32>
    %54 = arith.negf %53 : vector<8x128xf32>
    %55 = math.exp %54 : vector<8x128xf32>
    %cst_28 = arith.constant 1.000000e+00 : f32
    %56 = vector.broadcast %cst_28 : f32 to vector<8x128xf32>
    %57 = arith.addf %56, %55 : vector<8x128xf32>
    %58 = arith.divf %56, %57 : vector<8x128xf32>
    %59 = vector.extract_strided_slice %52 {offsets = [0, 128], sizes = [8, 128], strides = [1, 1]} : vector<8x512xf32> to vector<8x128xf32>
    %60 = arith.negf %59 : vector<8x128xf32>
    %61 = math.exp %60 : vector<8x128xf32>
    %cst_29 = arith.constant 1.000000e+00 : f32
    %62 = vector.broadcast %cst_29 : f32 to vector<8x128xf32>
    %63 = arith.addf %62, %61 : vector<8x128xf32>
    %64 = arith.divf %62, %63 : vector<8x128xf32>
    %65 = vector.extract_strided_slice %52 {offsets = [0, 256], sizes = [8, 128], strides = [1, 1]} : vector<8x512xf32> to vector<8x128xf32>
    %66 = math.tanh %65 : vector<8x128xf32>
    %67 = vector.extract_strided_slice %52 {offsets = [0, 384], sizes = [8, 128], strides = [1, 1]} : vector<8x512xf32> to vector<8x128xf32>
    %68 = arith.negf %67 : vector<8x128xf32>
    %69 = math.exp %68 : vector<8x128xf32>
    %cst_30 = arith.constant 1.000000e+00 : f32
    %70 = vector.broadcast %cst_30 : f32 to vector<8x128xf32>
    %71 = arith.addf %70, %69 : vector<8x128xf32>
    %72 = arith.divf %70, %71 : vector<8x128xf32>
    %73 = arith.mulf %64, %43 : vector<8x128xf32>
    %74 = arith.mulf %58, %66 : vector<8x128xf32>
    %75 = arith.addf %73, %74 : vector<8x128xf32>
    %76 = math.tanh %75 : vector<8x128xf32>
    %77 = arith.mulf %72, %76 : vector<8x128xf32>
    %c2_i32 = arith.constant 2 : i32
    %78 = arith.index_cast %c2_i32 : i32 to index
    %c0_31 = arith.constant 0 : index
    %c0_32 = arith.constant 0 : index
    %79 = vector.load %arg11[%78, %c0_31, %c0_32] : memref<8x8x512xf32, #tpu.memory_space<vmem>>, vector<1x8x512xf32>
    %80 = vector.shape_cast %79 : vector<1x8x512xf32> to vector<8x512xf32>
    %81 = arith.truncf %77 : vector<8x128xf32> to vector<8x128xbf16>
    %c0_33 = arith.constant 0 : index
    %c0_34 = arith.constant 0 : index
    %82 = vector.load %arg4[%c0_33, %c0_34] : memref<128x512xbf16, #tpu.memory_space<vmem>>, vector<128x512xbf16>
    %cst_35 = arith.constant dense<0.000000e+00> : vector<8x512xf32>
    %83 = tpu.matmul %81, %82, %cst_35 {dimension_numbers = #tpu.dot_dimension_numbers<[1], [0], [0], [1], [0, 0, 1, 1], [], []>} : vector<8x128xbf16>, vector<128x512xbf16>, vector<8x512xf32> -> vector<8x512xf32>
    %84 = arith.addf %80, %83 : vector<8x512xf32>
    %85 = vector.extract_strided_slice %84 {offsets = [0, 0], sizes = [8, 128], strides = [1, 1]} : vector<8x512xf32> to vector<8x128xf32>
    %86 = arith.negf %85 : vector<8x128xf32>
    %87 = math.exp %86 : vector<8x128xf32>
    %cst_36 = arith.constant 1.000000e+00 : f32
    %88 = vector.broadcast %cst_36 : f32 to vector<8x128xf32>
    %89 = arith.addf %88, %87 : vector<8x128xf32>
    %90 = arith.divf %88, %89 : vector<8x128xf32>
    %91 = vector.extract_strided_slice %84 {offsets = [0, 128], sizes = [8, 128], strides = [1, 1]} : vector<8x512xf32> to vector<8x128xf32>
    %92 = arith.negf %91 : vector<8x128xf32>
    %93 = math.exp %92 : vector<8x128xf32>
    %cst_37 = arith.constant 1.000000e+00 : f32
    %94 = vector.broadcast %cst_37 : f32 to vector<8x128xf32>
    %95 = arith.addf %94, %93 : vector<8x128xf32>
    %96 = arith.divf %94, %95 : vector<8x128xf32>
    %97 = vector.extract_strided_slice %84 {offsets = [0, 256], sizes = [8, 128], strides = [1, 1]} : vector<8x512xf32> to vector<8x128xf32>
    %98 = math.tanh %97 : vector<8x128xf32>
    %99 = vector.extract_strided_slice %84 {offsets = [0, 384], sizes = [8, 128], strides = [1, 1]} : vector<8x512xf32> to vector<8x128xf32>
    %100 = arith.negf %99 : vector<8x128xf32>
    %101 = math.exp %100 : vector<8x128xf32>
    %cst_38 = arith.constant 1.000000e+00 : f32
    %102 = vector.broadcast %cst_38 : f32 to vector<8x128xf32>
    %103 = arith.addf %102, %101 : vector<8x128xf32>
    %104 = arith.divf %102, %103 : vector<8x128xf32>
    %105 = arith.mulf %96, %75 : vector<8x128xf32>
    %106 = arith.mulf %90, %98 : vector<8x128xf32>
    %107 = arith.addf %105, %106 : vector<8x128xf32>
    %108 = math.tanh %107 : vector<8x128xf32>
    %109 = arith.mulf %104, %108 : vector<8x128xf32>
    %c3_i32 = arith.constant 3 : i32
    %110 = arith.index_cast %c3_i32 : i32 to index
    %c0_39 = arith.constant 0 : index
    %c0_40 = arith.constant 0 : index
    %111 = vector.load %arg11[%110, %c0_39, %c0_40] : memref<8x8x512xf32, #tpu.memory_space<vmem>>, vector<1x8x512xf32>
    %112 = vector.shape_cast %111 : vector<1x8x512xf32> to vector<8x512xf32>
    %113 = arith.truncf %109 : vector<8x128xf32> to vector<8x128xbf16>
    %c0_41 = arith.constant 0 : index
    %c0_42 = arith.constant 0 : index
    %114 = vector.load %arg4[%c0_41, %c0_42] : memref<128x512xbf16, #tpu.memory_space<vmem>>, vector<128x512xbf16>
    %cst_43 = arith.constant dense<0.000000e+00> : vector<8x512xf32>
    %115 = tpu.matmul %113, %114, %cst_43 {dimension_numbers = #tpu.dot_dimension_numbers<[1], [0], [0], [1], [0, 0, 1, 1], [], []>} : vector<8x128xbf16>, vector<128x512xbf16>, vector<8x512xf32> -> vector<8x512xf32>
    %116 = arith.addf %112, %115 : vector<8x512xf32>
    %117 = vector.extract_strided_slice %116 {offsets = [0, 0], sizes = [8, 128], strides = [1, 1]} : vector<8x512xf32> to vector<8x128xf32>
    %118 = arith.negf %117 : vector<8x128xf32>
    %119 = math.exp %118 : vector<8x128xf32>
    %cst_44 = arith.constant 1.000000e+00 : f32
    %120 = vector.broadcast %cst_44 : f32 to vector<8x128xf32>
    %121 = arith.addf %120, %119 : vector<8x128xf32>
    %122 = arith.divf %120, %121 : vector<8x128xf32>
    %123 = vector.extract_strided_slice %116 {offsets = [0, 128], sizes = [8, 128], strides = [1, 1]} : vector<8x512xf32> to vector<8x128xf32>
    %124 = arith.negf %123 : vector<8x128xf32>
    %125 = math.exp %124 : vector<8x128xf32>
    %cst_45 = arith.constant 1.000000e+00 : f32
    %126 = vector.broadcast %cst_45 : f32 to vector<8x128xf32>
    %127 = arith.addf %126, %125 : vector<8x128xf32>
    %128 = arith.divf %126, %127 : vector<8x128xf32>
    %129 = vector.extract_strided_slice %116 {offsets = [0, 256], sizes = [8, 128], strides = [1, 1]} : vector<8x512xf32> to vector<8x128xf32>
    %130 = math.tanh %129 : vector<8x128xf32>
    %131 = vector.extract_strided_slice %116 {offsets = [0, 384], sizes = [8, 128], strides = [1, 1]} : vector<8x512xf32> to vector<8x128xf32>
    %132 = arith.negf %131 : vector<8x128xf32>
    %133 = math.exp %132 : vector<8x128xf32>
    %cst_46 = arith.constant 1.000000e+00 : f32
    %134 = vector.broadcast %cst_46 : f32 to vector<8x128xf32>
    %135 = arith.addf %134, %133 : vector<8x128xf32>
    %136 = arith.divf %134, %135 : vector<8x128xf32>
    %137 = arith.mulf %128, %107 : vector<8x128xf32>
    %138 = arith.mulf %122, %130 : vector<8x128xf32>
    %139 = arith.addf %137, %138 : vector<8x128xf32>
    %140 = math.tanh %139 : vector<8x128xf32>
    %141 = arith.mulf %136, %140 : vector<8x128xf32>
    %c4_i32 = arith.constant 4 : i32
    %142 = arith.index_cast %c4_i32 : i32 to index
    %c0_47 = arith.constant 0 : index
    %c0_48 = arith.constant 0 : index
    %143 = vector.load %arg11[%142, %c0_47, %c0_48] : memref<8x8x512xf32, #tpu.memory_space<vmem>>, vector<1x8x512xf32>
    %144 = vector.shape_cast %143 : vector<1x8x512xf32> to vector<8x512xf32>
    %145 = arith.truncf %141 : vector<8x128xf32> to vector<8x128xbf16>
    %c0_49 = arith.constant 0 : index
    %c0_50 = arith.constant 0 : index
    %146 = vector.load %arg4[%c0_49, %c0_50] : memref<128x512xbf16, #tpu.memory_space<vmem>>, vector<128x512xbf16>
    %cst_51 = arith.constant dense<0.000000e+00> : vector<8x512xf32>
    %147 = tpu.matmul %145, %146, %cst_51 {dimension_numbers = #tpu.dot_dimension_numbers<[1], [0], [0], [1], [0, 0, 1, 1], [], []>} : vector<8x128xbf16>, vector<128x512xbf16>, vector<8x512xf32> -> vector<8x512xf32>
    %148 = arith.addf %144, %147 : vector<8x512xf32>
    %149 = vector.extract_strided_slice %148 {offsets = [0, 0], sizes = [8, 128], strides = [1, 1]} : vector<8x512xf32> to vector<8x128xf32>
    %150 = arith.negf %149 : vector<8x128xf32>
    %151 = math.exp %150 : vector<8x128xf32>
    %cst_52 = arith.constant 1.000000e+00 : f32
    %152 = vector.broadcast %cst_52 : f32 to vector<8x128xf32>
    %153 = arith.addf %152, %151 : vector<8x128xf32>
    %154 = arith.divf %152, %153 : vector<8x128xf32>
    %155 = vector.extract_strided_slice %148 {offsets = [0, 128], sizes = [8, 128], strides = [1, 1]} : vector<8x512xf32> to vector<8x128xf32>
    %156 = arith.negf %155 : vector<8x128xf32>
    %157 = math.exp %156 : vector<8x128xf32>
    %cst_53 = arith.constant 1.000000e+00 : f32
    %158 = vector.broadcast %cst_53 : f32 to vector<8x128xf32>
    %159 = arith.addf %158, %157 : vector<8x128xf32>
    %160 = arith.divf %158, %159 : vector<8x128xf32>
    %161 = vector.extract_strided_slice %148 {offsets = [0, 256], sizes = [8, 128], strides = [1, 1]} : vector<8x512xf32> to vector<8x128xf32>
    %162 = math.tanh %161 : vector<8x128xf32>
    %163 = vector.extract_strided_slice %148 {offsets = [0, 384], sizes = [8, 128], strides = [1, 1]} : vector<8x512xf32> to vector<8x128xf32>
    %164 = arith.negf %163 : vector<8x128xf32>
    %165 = math.exp %164 : vector<8x128xf32>
    %cst_54 = arith.constant 1.000000e+00 : f32
    %166 = vector.broadcast %cst_54 : f32 to vector<8x128xf32>
    %167 = arith.addf %166, %165 : vector<8x128xf32>
    %168 = arith.divf %166, %167 : vector<8x128xf32>
    %169 = arith.mulf %160, %139 : vector<8x128xf32>
    %170 = arith.mulf %154, %162 : vector<8x128xf32>
    %171 = arith.addf %169, %170 : vector<8x128xf32>
    %172 = math.tanh %171 : vector<8x128xf32>
    %173 = arith.mulf %168, %172 : vector<8x128xf32>
    %c5_i32 = arith.constant 5 : i32
    %174 = arith.index_cast %c5_i32 : i32 to index
    %c0_55 = arith.constant 0 : index
    %c0_56 = arith.constant 0 : index
    %175 = vector.load %arg11[%174, %c0_55, %c0_56] : memref<8x8x512xf32, #tpu.memory_space<vmem>>, vector<1x8x512xf32>
    %176 = vector.shape_cast %175 : vector<1x8x512xf32> to vector<8x512xf32>
    %177 = arith.truncf %173 : vector<8x128xf32> to vector<8x128xbf16>
    %c0_57 = arith.constant 0 : index
    %c0_58 = arith.constant 0 : index
    %178 = vector.load %arg4[%c0_57, %c0_58] : memref<128x512xbf16, #tpu.memory_space<vmem>>, vector<128x512xbf16>
    %cst_59 = arith.constant dense<0.000000e+00> : vector<8x512xf32>
    %179 = tpu.matmul %177, %178, %cst_59 {dimension_numbers = #tpu.dot_dimension_numbers<[1], [0], [0], [1], [0, 0, 1, 1], [], []>} : vector<8x128xbf16>, vector<128x512xbf16>, vector<8x512xf32> -> vector<8x512xf32>
    %180 = arith.addf %176, %179 : vector<8x512xf32>
    %181 = vector.extract_strided_slice %180 {offsets = [0, 0], sizes = [8, 128], strides = [1, 1]} : vector<8x512xf32> to vector<8x128xf32>
    %182 = arith.negf %181 : vector<8x128xf32>
    %183 = math.exp %182 : vector<8x128xf32>
    %cst_60 = arith.constant 1.000000e+00 : f32
    %184 = vector.broadcast %cst_60 : f32 to vector<8x128xf32>
    %185 = arith.addf %184, %183 : vector<8x128xf32>
    %186 = arith.divf %184, %185 : vector<8x128xf32>
    %187 = vector.extract_strided_slice %180 {offsets = [0, 128], sizes = [8, 128], strides = [1, 1]} : vector<8x512xf32> to vector<8x128xf32>
    %188 = arith.negf %187 : vector<8x128xf32>
    %189 = math.exp %188 : vector<8x128xf32>
    %cst_61 = arith.constant 1.000000e+00 : f32
    %190 = vector.broadcast %cst_61 : f32 to vector<8x128xf32>
    %191 = arith.addf %190, %189 : vector<8x128xf32>
    %192 = arith.divf %190, %191 : vector<8x128xf32>
    %193 = vector.extract_strided_slice %180 {offsets = [0, 256], sizes = [8, 128], strides = [1, 1]} : vector<8x512xf32> to vector<8x128xf32>
    %194 = math.tanh %193 : vector<8x128xf32>
    %195 = vector.extract_strided_slice %180 {offsets = [0, 384], sizes = [8, 128], strides = [1, 1]} : vector<8x512xf32> to vector<8x128xf32>
    %196 = arith.negf %195 : vector<8x128xf32>
    %197 = math.exp %196 : vector<8x128xf32>
    %cst_62 = arith.constant 1.000000e+00 : f32
    %198 = vector.broadcast %cst_62 : f32 to vector<8x128xf32>
    %199 = arith.addf %198, %197 : vector<8x128xf32>
    %200 = arith.divf %198, %199 : vector<8x128xf32>
    %201 = arith.mulf %192, %171 : vector<8x128xf32>
    %202 = arith.mulf %186, %194 : vector<8x128xf32>
    %203 = arith.addf %201, %202 : vector<8x128xf32>
    %204 = math.tanh %203 : vector<8x128xf32>
    %205 = arith.mulf %200, %204 : vector<8x128xf32>
    %c6_i32 = arith.constant 6 : i32
    %206 = arith.index_cast %c6_i32 : i32 to index
    %c0_63 = arith.constant 0 : index
    %c0_64 = arith.constant 0 : index
    %207 = vector.load %arg11[%206, %c0_63, %c0_64] : memref<8x8x512xf32, #tpu.memory_space<vmem>>, vector<1x8x512xf32>
    %208 = vector.shape_cast %207 : vector<1x8x512xf32> to vector<8x512xf32>
    %209 = arith.truncf %205 : vector<8x128xf32> to vector<8x128xbf16>
    %c0_65 = arith.constant 0 : index
    %c0_66 = arith.constant 0 : index
    %210 = vector.load %arg4[%c0_65, %c0_66] : memref<128x512xbf16, #tpu.memory_space<vmem>>, vector<128x512xbf16>
    %cst_67 = arith.constant dense<0.000000e+00> : vector<8x512xf32>
    %211 = tpu.matmul %209, %210, %cst_67 {dimension_numbers = #tpu.dot_dimension_numbers<[1], [0], [0], [1], [0, 0, 1, 1], [], []>} : vector<8x128xbf16>, vector<128x512xbf16>, vector<8x512xf32> -> vector<8x512xf32>
    %212 = arith.addf %208, %211 : vector<8x512xf32>
    %213 = vector.extract_strided_slice %212 {offsets = [0, 0], sizes = [8, 128], strides = [1, 1]} : vector<8x512xf32> to vector<8x128xf32>
    %214 = arith.negf %213 : vector<8x128xf32>
    %215 = math.exp %214 : vector<8x128xf32>
    %cst_68 = arith.constant 1.000000e+00 : f32
    %216 = vector.broadcast %cst_68 : f32 to vector<8x128xf32>
    %217 = arith.addf %216, %215 : vector<8x128xf32>
    %218 = arith.divf %216, %217 : vector<8x128xf32>
    %219 = vector.extract_strided_slice %212 {offsets = [0, 128], sizes = [8, 128], strides = [1, 1]} : vector<8x512xf32> to vector<8x128xf32>
    %220 = arith.negf %219 : vector<8x128xf32>
    %221 = math.exp %220 : vector<8x128xf32>
    %cst_69 = arith.constant 1.000000e+00 : f32
    %222 = vector.broadcast %cst_69 : f32 to vector<8x128xf32>
    %223 = arith.addf %222, %221 : vector<8x128xf32>
    %224 = arith.divf %222, %223 : vector<8x128xf32>
    %225 = vector.extract_strided_slice %212 {offsets = [0, 256], sizes = [8, 128], strides = [1, 1]} : vector<8x512xf32> to vector<8x128xf32>
    %226 = math.tanh %225 : vector<8x128xf32>
    %227 = vector.extract_strided_slice %212 {offsets = [0, 384], sizes = [8, 128], strides = [1, 1]} : vector<8x512xf32> to vector<8x128xf32>
    %228 = arith.negf %227 : vector<8x128xf32>
    %229 = math.exp %228 : vector<8x128xf32>
    %cst_70 = arith.constant 1.000000e+00 : f32
    %230 = vector.broadcast %cst_70 : f32 to vector<8x128xf32>
    %231 = arith.addf %230, %229 : vector<8x128xf32>
    %232 = arith.divf %230, %231 : vector<8x128xf32>
    %233 = arith.mulf %224, %203 : vector<8x128xf32>
    %234 = arith.mulf %218, %226 : vector<8x128xf32>
    %235 = arith.addf %233, %234 : vector<8x128xf32>
    %236 = math.tanh %235 : vector<8x128xf32>
    %237 = arith.mulf %232, %236 : vector<8x128xf32>
    %c7_i32 = arith.constant 7 : i32
    %238 = arith.index_cast %c7_i32 : i32 to index
    %c0_71 = arith.constant 0 : index
    %c0_72 = arith.constant 0 : index
    %239 = vector.load %arg11[%238, %c0_71, %c0_72] : memref<8x8x512xf32, #tpu.memory_space<vmem>>, vector<1x8x512xf32>
    %240 = vector.shape_cast %239 : vector<1x8x512xf32> to vector<8x512xf32>
    %241 = arith.truncf %237 : vector<8x128xf32> to vector<8x128xbf16>
    %c0_73 = arith.constant 0 : index
    %c0_74 = arith.constant 0 : index
    %242 = vector.load %arg4[%c0_73, %c0_74] : memref<128x512xbf16, #tpu.memory_space<vmem>>, vector<128x512xbf16>
    %cst_75 = arith.constant dense<0.000000e+00> : vector<8x512xf32>
    %243 = tpu.matmul %241, %242, %cst_75 {dimension_numbers = #tpu.dot_dimension_numbers<[1], [0], [0], [1], [0, 0, 1, 1], [], []>} : vector<8x128xbf16>, vector<128x512xbf16>, vector<8x512xf32> -> vector<8x512xf32>
    %244 = arith.addf %240, %243 : vector<8x512xf32>
    %245 = vector.extract_strided_slice %244 {offsets = [0, 0], sizes = [8, 128], strides = [1, 1]} : vector<8x512xf32> to vector<8x128xf32>
    %246 = arith.negf %245 : vector<8x128xf32>
    %247 = math.exp %246 : vector<8x128xf32>
    %cst_76 = arith.constant 1.000000e+00 : f32
    %248 = vector.broadcast %cst_76 : f32 to vector<8x128xf32>
    %249 = arith.addf %248, %247 : vector<8x128xf32>
    %250 = arith.divf %248, %249 : vector<8x128xf32>
    %251 = vector.extract_strided_slice %244 {offsets = [0, 128], sizes = [8, 128], strides = [1, 1]} : vector<8x512xf32> to vector<8x128xf32>
    %252 = arith.negf %251 : vector<8x128xf32>
    %253 = math.exp %252 : vector<8x128xf32>
    %cst_77 = arith.constant 1.000000e+00 : f32
    %254 = vector.broadcast %cst_77 : f32 to vector<8x128xf32>
    %255 = arith.addf %254, %253 : vector<8x128xf32>
    %256 = arith.divf %254, %255 : vector<8x128xf32>
    %257 = vector.extract_strided_slice %244 {offsets = [0, 256], sizes = [8, 128], strides = [1, 1]} : vector<8x512xf32> to vector<8x128xf32>
    %258 = math.tanh %257 : vector<8x128xf32>
    %259 = vector.extract_strided_slice %244 {offsets = [0, 384], sizes = [8, 128], strides = [1, 1]} : vector<8x512xf32> to vector<8x128xf32>
    %260 = arith.negf %259 : vector<8x128xf32>
    %261 = math.exp %260 : vector<8x128xf32>
    %cst_78 = arith.constant 1.000000e+00 : f32
    %262 = vector.broadcast %cst_78 : f32 to vector<8x128xf32>
    %263 = arith.addf %262, %261 : vector<8x128xf32>
    %264 = arith.divf %262, %263 : vector<8x128xf32>
    %265 = arith.mulf %256, %235 : vector<8x128xf32>
    %266 = arith.mulf %250, %258 : vector<8x128xf32>
    %267 = arith.addf %265, %266 : vector<8x128xf32>
    %268 = math.tanh %267 : vector<8x128xf32>
    %269 = arith.mulf %264, %268 : vector<8x128xf32>
    %c8_i32 = arith.constant 8 : i32
    %c0_79 = arith.constant 0 : index
    %c0_80 = arith.constant 0 : index
    %270 = vector.load %arg9[%c0_79, %c0_80] : memref<8x128xf32, #tpu.memory_space<vmem>>, vector<8x128xf32>
    tpu.vector_store %arg9[%c0_79, %c0_80], %269 {strides = array<i32>} : memref<8x128xf32, #tpu.memory_space<vmem>>, vector<8x128xf32>,
    %c0_81 = arith.constant 0 : index
    %c0_82 = arith.constant 0 : index
    %271 = vector.load %arg10[%c0_81, %c0_82] : memref<8x128xf32, #tpu.memory_space<vmem>>, vector<8x128xf32>
    tpu.vector_store %arg10[%c0_81, %c0_82], %267 {strides = array<i32>} : memref<8x128xf32, #tpu.memory_space<vmem>>, vector<8x128xf32>,
    %c0_i32_83 = arith.constant 0 : i32
    %272 = arith.cmpi eq, %arg1, %c0_i32_83 : i32
    %273 = arith.extui %272 : i1 to i32
    %c0_i32_84 = arith.constant 0 : i32
    %274 = arith.cmpi ne, %273, %c0_i32_84 : i32
    scf.if %274 {
      %275 = arith.truncf %269 : vector<8x128xf32> to vector<8x128xbf16>
      %c0_85 = arith.constant 0 : index
      %c0_86 = arith.constant 0 : index
      %276 = vector.load %arg6[%c0_85, %c0_86] : memref<128x2xbf16, #tpu.memory_space<vmem>>, vector<128x2xbf16>
      %cst_87 = arith.constant dense<0.000000e+00> : vector<8x2xf32>
      %277 = tpu.matmul %275, %276, %cst_87 {dimension_numbers = #tpu.dot_dimension_numbers<[1], [0], [0], [1], [0, 0, 1, 1], [], []>} : vector<8x128xbf16>, vector<128x2xbf16>, vector<8x2xf32> -> vector<8x2xf32>
      %c0_88 = arith.constant 0 : index
      %c0_89 = arith.constant 0 : index
      %278 = vector.load %arg7[%c0_88, %c0_89] : memref<1x2xf32, #tpu.memory_space<vmem>>, vector<1x2xf32>
      %279 = vector.broadcast %278 : vector<1x2xf32> to vector<8x2xf32>
      %280 = arith.addf %277, %279 : vector<8x2xf32>
      %c0_90 = arith.constant 0 : index
      %c0_91 = arith.constant 0 : index
      %281 = vector.load %arg8[%c0_90, %c0_91] : memref<8x2xf32, #tpu.memory_space<vmem>>, vector<8x2xf32>
      tpu.vector_store %arg8[%c0_90, %c0_91], %280 {strides = array<i32>} : memref<8x2xf32, #tpu.memory_space<vmem>>, vector<8x2xf32>,
    } else {
    }
    return
  }
  func.func @transform_0(%arg0: i32, %arg1: i32) -> (i32, i32, i32) {
    %c0_i32 = arith.constant 0 : i32
    %c0_i32_0 = arith.constant 0 : i32
    return %arg1, %arg0, %c0_i32 : i32, i32, i32
  }
  func.func @transform_1(%arg0: i32, %arg1: i32) -> (i32, i32) {
    %c0_i32 = arith.constant 0 : i32
    %c0_i32_0 = arith.constant 0 : i32
    %c0_i32_1 = arith.constant 0 : i32
    return %c0_i32, %c0_i32_0 : i32, i32
  }
  func.func @transform_2(%arg0: i32, %arg1: i32) -> (i32, i32) {
    %c0_i32 = arith.constant 0 : i32
    %c0_i32_0 = arith.constant 0 : i32
    %c0_i32_1 = arith.constant 0 : i32
    return %c0_i32, %c0_i32_0 : i32, i32
  }
  func.func @transform_3(%arg0: i32, %arg1: i32) -> (i32, i32) {
    %c0_i32 = arith.constant 0 : i32
    %c0_i32_0 = arith.constant 0 : i32
    %c0_i32_1 = arith.constant 0 : i32
    return %c0_i32, %c0_i32_0 : i32, i32
  }
  func.func @transform_4(%arg0: i32, %arg1: i32) -> (i32, i32) {
    %c0_i32 = arith.constant 0 : i32
    %c0_i32_0 = arith.constant 0 : i32
    %c0_i32_1 = arith.constant 0 : i32
    return %c0_i32, %c0_i32_0 : i32, i32
  }
  func.func @transform_5(%arg0: i32, %arg1: i32) -> (i32, i32) {
    %c0_i32 = arith.constant 0 : i32
    %c0_i32_0 = arith.constant 0 : i32
    %c0_i32_1 = arith.constant 0 : i32
    return %c0_i32, %c0_i32_0 : i32, i32
  }
  func.func @transform_6(%arg0: i32, %arg1: i32) -> (i32, i32) {
    %c0_i32 = arith.constant 0 : i32
    %c0_i32_0 = arith.constant 0 : i32
    return %arg0, %c0_i32 : i32, i32
  }
}

</mosaic_0001>

<bundles_post_ra>
// kernel: _forward_impl.3
= control target key start
LH: loop header
LB: loop body
LE: loop exit
PB: predicated region body
PF: predicated region fallthrough
CT: control target
= control target key end

     0   :  { %v2989_v1 = vmov 0   ;;  %vm2103_vm0 = vmmov 0   ;;  %vm1692_vm1 = vcmask 15360   ;;  %s2982_s1 = inlined_call_operand.vmem [shape: bf16[128,512], index: 1, kind: input, shape index: {}]   ;;  %s2983_s0 = inlined_call_operand.vmem [shape: bf16[8,8,128], index: 0, kind: input, shape index: {}]   ;;  %s2984_s2 = inlined_call_operand.vmem [shape: bf16[128,512], index: 2, kind: input, shape index: {}]   ;;  %s2985_s3 = inlined_call_operand.vmem [shape: f32[1,512], index: 3, kind: input, shape index: {}]   ;;  %s2986_s4 = inlined_call_operand.vmem [shape: bf16[128,2], index: 4, kind: input, shape index: {}]   ;;  %s2987_s5 = inlined_call_operand.vmem [shape: f32[1,2], index: 5, kind: input, shape index: {}]   ;;  %s2988_s6 = inlined_call_operand.vmem [shape: f32[8,2], index: 6, kind: output, shape index: {}]  }
   0x1   :  { %v1832_v0 = vld [vmem:[%s2982_s1 + $0x4] ss:$16 sps:$4 sm:$0xff]   ;;  %308 = vmatprep.mubr.bf16.mxu0 %v2989_v1  ;;  %381 = vmatprep.mubr.bf16.mxu1 %v2989_v1  ;;  %v1834_v2 = vld [vmem:[%s2982_s1 + $0xc] ss:$16 sps:$4 sm:$0xff]   ;;  %v1836_v3 = vld [vmem:[%s2982_s1] ss:$16 sps:$4 sm:$0xff]  }
   0x2   :  { %276 = vmatprep.subr.bf16.mxu0 %v1832_v0  ;;  %v1837_v4 = vld [vmem:[%s2982_s1 + $0x8] ss:$16 sps:$4 sm:$0xff]   ;;  %349 = vmatprep.subr.bf16.mxu1 %v1834_v2  ;;  %v1838_v5 = vld [vmem:[%s2982_s1 + $0x24] ss:$16 sps:$4 sm:$0xff]   ;;  %v1840_v6 = vld [vmem:[%s2982_s1 + $0x2c] ss:$16 sps:$4 sm:$0xff]  }
   0x3   :  { %277 = vmatpush1.bf16.msra.mxu0 %v1836_v3  ;;  %350 = vmatpush1.bf16.msra.mxu1 %v1837_v4  ;;  %v1842_v7 = vld [vmem:[%s2982_s1 + $0x20] ss:$16 sps:$4 sm:$0xff]   ;;  %v1843_v8 = vld [vmem:[%s2982_s1 + $0x28] ss:$16 sps:$4 sm:$0xff]   ;;  %v1844_v9 = vld [vmem:[%s2982_s1 + $0x44] ss:$16 sps:$4 sm:$0xff]  }
   0x4   :  { %278 = vmatprep.subr.bf16.mxu0 %v1838_v5  ;;  %351 = vmatprep.subr.bf16.mxu1 %v1840_v6  ;;  %v1846_v10 = vld [vmem:[%s2982_s1 + $0x4c] ss:$16 sps:$4 sm:$0xff]   ;;  %v1848_v11 = vld [vmem:[%s2982_s1 + $0x40] ss:$16 sps:$4 sm:$0xff]   ;;  %v1849_v12 = vld [vmem:[%s2982_s1 + $0x48] ss:$16 sps:$4 sm:$0xff]  }
   0x5   :  { %v1850_v13 = vld [vmem:[%s2982_s1 + $0x64] ss:$16 sps:$4 sm:$0xff]   ;;  %v1852_v14 = vld [vmem:[%s2982_s1 + $0x6c] ss:$16 sps:$4 sm:$0xff]   ;;  %v1854_v15 = vld [vmem:[%s2982_s1 + $0x60] ss:$16 sps:$4 sm:$0xff]  }
   0x6   :  { %v1855_v16 = vld [vmem:[%s2982_s1 + $0x68] ss:$16 sps:$4 sm:$0xff]   ;;  %v1856_v17 = vld [vmem:[%s2982_s1 + $0x84] ss:$16 sps:$4 sm:$0xff]   ;;  %v1858_v18 = vld [vmem:[%s2982_s1 + $0x8c] ss:$16 sps:$4 sm:$0xff]  }
   0x7   :  { %279 = vmatpush1.bf16.msra.mxu0 %v1842_v7  ;;  %352 = vmatpush1.bf16.msra.mxu1 %v1843_v8  ;;  %v1860_v19 = vld [vmem:[%s2982_s1 + $0x80] ss:$16 sps:$4 sm:$0xff]   ;;  %v1861_v20 = vld [vmem:[%s2982_s1 + $0x88] ss:$16 sps:$4 sm:$0xff]   ;;  %v1862_v21 = vld [vmem:[%s2982_s1 + $0xa4] ss:$16 sps:$4 sm:$0xff]   ;;  %v72_v7 = vlaneseq }
   0x8   :  { %280 = vmatprep.subr.bf16.mxu0 %v1844_v9  ;;  %353 = vmatprep.subr.bf16.mxu1 %v1846_v10  ;;  %v1864_v22 = vld [vmem:[%s2982_s1 + $0xac] ss:$16 sps:$4 sm:$0xff]   ;;  %v1866_v23 = vld [vmem:[%s2982_s1 + $0xa0] ss:$16 sps:$4 sm:$0xff]   ;;  %v1867_v24 = vld [vmem:[%s2982_s1 + $0xa8] ss:$16 sps:$4 sm:$0xff]  }
   0x9   :  { %v1868_v25 = vld [vmem:[%s2982_s1 + $0xc4] ss:$16 sps:$4 sm:$0xff]   ;;  %v1870_v26 = vld [vmem:[%s2982_s1 + $0xcc] ss:$16 sps:$4 sm:$0xff]   ;;  %v1872_v27 = vld [vmem:[%s2982_s1 + $0xc0] ss:$16 sps:$4 sm:$0xff]  }
   0xa   :  { %v1873_v28 = vld [vmem:[%s2982_s1 + $0xc8] ss:$16 sps:$4 sm:$0xff]   ;;  %v1874_v29 = vld [vmem:[%s2982_s1 + $0xe4] ss:$16 sps:$4 sm:$0xff]   ;;  %v1876_v30 = vld [vmem:[%s2982_s1 + $0xec] ss:$16 sps:$4 sm:$0xff]  }
   0xb   :  { %281 = vmatpush1.bf16.msra.mxu0 %v1848_v11  ;;  %354 = vmatpush1.bf16.msra.mxu1 %v1849_v12  ;;  %v1878_v31 = vld [vmem:[%s2982_s1 + $0xe0] ss:$16 sps:$4 sm:$0xff]   ;;  %v1879_v32 = vld [vmem:[%s2982_s1 + $0xe8] ss:$16 sps:$4 sm:$0xff]   ;;  %v2240_v33 = vld [vmem:[%s2984_s2 + $0x4] ss:$16 sps:$4 sm:$0xff]  }
   0xc   :  { %282 = vmatprep.subr.bf16.mxu0 %v1850_v13  ;;  %355 = vmatprep.subr.bf16.mxu1 %v1852_v14  ;;  %v2245_v34 = vld [vmem:[%s2984_s2 + $0xc] ss:$16 sps:$4 sm:$0xff]   ;;  %v1880_v35 = vld [vmem:[%s2983_s0] sm:$0xff]   ;;  %v2258_v37 = vld [vmem:[%s2984_s2 + $0x8] ss:$16 sps:$4 sm:$0xff]   ;;  %v2101_v6 = vmov 0.0|0.0  }
   0xd   :  { %v2253_v36 = vld [vmem:[%s2984_s2] ss:$16 sps:$4 sm:$0xff]   ;;  %v2265_v38 = vld [vmem:[%s2984_s2 + $0x24] ss:$16 sps:$4 sm:$0xff]   ;;  %v2270_v39 = vld [vmem:[%s2984_s2 + $0x2c] ss:$16 sps:$4 sm:$0xff]  }
   0xe   :  { %v2275_v40 = vld [vmem:[%s2984_s2 + $0x20] ss:$16 sps:$4 sm:$0xff]   ;;  %v2282_v41 = vld [vmem:[%s2984_s2 + $0x28] ss:$16 sps:$4 sm:$0xff]   ;;  %v2289_v42 = vld [vmem:[%s2984_s2 + $0x44] ss:$16 sps:$4 sm:$0xff]  }
   0xf   :  { %283 = vmatpush1.bf16.msra.mxu0 %v1854_v15  ;;  %356 = vmatpush1.bf16.msra.mxu1 %v1855_v16  ;;  %v2294_v43 = vld [vmem:[%s2984_s2 + $0x4c] ss:$16 sps:$4 sm:$0xff]   ;;  %v2304_v45 = vld [vmem:[%s2984_s2 + $0x40] ss:$16 sps:$4 sm:$0xff]   ;;  %v2309_v46 = vld [vmem:[%s2984_s2 + $0x48] ss:$16 sps:$4 sm:$0xff]  }
  0x10   :  { %284 = vmatprep.subr.bf16.mxu0 %v1856_v17  ;;  %357 = vmatprep.subr.bf16.mxu1 %v1858_v18  ;;  %v1893_v44 = vld [vmem:[%s2983_s0 + $0x8] sm:$0xff]   ;;  %v2316_v47 = vld [vmem:[%s2984_s2 + $0x64] ss:$16 sps:$4 sm:$0xff]   ;;  %v2328_v49 = vld [vmem:[%s2984_s2 + $0x60] ss:$16 sps:$4 sm:$0xff]   ;;  %v73_v8 = vshrl.u32 %v72_v7, 7 }
  0x11   :  { %v2323_v48 = vld [vmem:[%s2984_s2 + $0x6c] ss:$16 sps:$4 sm:$0xff]   ;;  %v2333_v50 = vld [vmem:[%s2984_s2 + $0x68] ss:$16 sps:$4 sm:$0xff]   ;;  %v2340_v51 = vld [vmem:[%s2984_s2 + $0x84] ss:$16 sps:$4 sm:$0xff]  }
  0x12   :  { %v2347_v52 = vld [vmem:[%s2984_s2 + $0x8c] ss:$16 sps:$4 sm:$0xff]   ;;  %v1906_v53 = vld [vmem:[%s2983_s0 + $0x10] sm:$0xff]   ;;  %v2364_v55 = vld [vmem:[%s2984_s2 + $0x88] ss:$16 sps:$4 sm:$0xff]   ;;  %v82_v9 = vsub.s32 2, %v73_v8 }
  0x13   :  { %285 = vmatpush1.bf16.msra.mxu0 %v1860_v19  ;;  %358 = vmatpush1.bf16.msra.mxu1 %v1861_v20  ;;  %v2359_v54 = vld [vmem:[%s2984_s2 + $0x80] ss:$16 sps:$4 sm:$0xff]   ;;  %v2371_v56 = vld [vmem:[%s2984_s2 + $0xa4] ss:$16 sps:$4 sm:$0xff]   ;;  %v2376_v57 = vld [vmem:[%s2984_s2 + $0xac] ss:$16 sps:$4 sm:$0xff]  }
  0x14   :  { %286 = vmatprep.subr.bf16.mxu0 %v1862_v21  ;;  %359 = vmatprep.subr.bf16.mxu1 %v1864_v22  ;;  %v2383_v58 = vld [vmem:[%s2984_s2 + $0xa0] ss:$16 sps:$4 sm:$0xff]   ;;  %v2388_v59 = vld [vmem:[%s2984_s2 + $0xa8] ss:$16 sps:$4 sm:$0xff]   ;;  %v2395_v60 = vld [vmem:[%s2984_s2 + $0xc4] ss:$16 sps:$4 sm:$0xff]  }
  0x15   :  { %v2400_v61 = vld [vmem:[%s2984_s2 + $0xcc] ss:$16 sps:$4 sm:$0xff]   ;;  %v2412_v63 = vld [vmem:[%s2984_s2 + $0xc0] ss:$16 sps:$4 sm:$0xff]   ;;  %v2417_v0 = vld [vmem:[%s2984_s2 + $0xc8] ss:$16 sps:$4 sm:$0xff]  }
  0x16   :  { %v1919_v62 = vld [vmem:[%s2983_s0 + $0x18] sm:$0xff]   ;;  %v2424_v2 = vld [vmem:[%s2984_s2 + $0xe4] ss:$16 sps:$4 sm:$0xff]   ;;  %v2436_v4 = vld [vmem:[%s2984_s2 + $0xe0] ss:$16 sps:$4 sm:$0xff]   ;;  %v86_v10 = vsub.s32 3, %v73_v8 }
  0x17   :  { %287 = vmatpush1.bf16.msra.mxu0 %v1866_v23  ;;  %360 = vmatpush1.bf16.msra.mxu1 %v1867_v24  ;;  %v2429_v3 = vld [vmem:[%s2984_s2 + $0xec] ss:$16 sps:$4 sm:$0xff]   ;;  %v2441_v5 = vld [vmem:[%s2984_s2 + $0xe8] ss:$16 sps:$4 sm:$0xff]   ;;  %v74_v11 = vsub.s32 0, %v73_v8  ;;  %v78_v13 = vsub.s32 1, %v73_v8 }
  0x18   :  { %288 = vmatprep.subr.bf16.mxu0 %v1868_v25  ;;  %361 = vmatprep.subr.bf16.mxu1 %v1870_v26  ;;  %v70_v12 = vld [vmem:[%s2985_s3] sm:$0xf] }
  0x19   :  { %v2488_v14 = vrot.slane %v70_v12, %v82_v9  ;;  %v2494_v17 = vrot.slane %v70_v12, %v86_v10  ;;  %v75_v18 = vrot.slane %v70_v12, %v74_v11  ;;  %v79_v21 = vrot.slane %v70_v12, %v78_v13 }
  0x1b   :  { %289 = vmatpush1.bf16.msra.mxu0 %v1872_v27  ;;  %362 = vmatpush1.bf16.msra.mxu1 %v1873_v28 }
  0x1c   :  { %290 = vmatprep.subr.bf16.mxu0 %v1874_v29  ;;  %363 = vmatprep.subr.bf16.mxu1 %v1876_v30 }
  0x1f   :  { %291 = vmatpush1.bf16.msra.mxu0 %v1878_v31  ;;  %364 = vmatpush1.bf16.msra.mxu1 %v1879_v32 }
  0x20   :  { %653 = vmatprep.subr.bf16.mxu0 %v2240_v33  ;;  %694 = vmatprep.subr.bf16.mxu1 %v2245_v34 }
  0x22   :  { %309 = vmatmul.mubr.bf16.vlgmr.msra.gmra.mrb[0].mxu0 %v1880_v35  ;;  %382 = vmatmul.mubr.bf16.vlgmr.msra.gmra.mrb[0].mxu1 %v1880_v35 }
  0x23   :  { %654 = vmatpush1.bf16.msra.mxu0 %v2253_v36  ;;  %695 = vmatpush1.bf16.msra.mxu1 %v2258_v37 }
  0x24   :  { %655 = vmatprep.subr.bf16.mxu0 %v2265_v38  ;;  %696 = vmatprep.subr.bf16.mxu1 %v2270_v39 }
  0x25   :  { %318 = vmatprep.mubr.bf16.mxu0 %v2989_v1  ;;  %391 = vmatprep.mubr.bf16.mxu1 %v2989_v1 }
  0x27   :  { %656 = vmatpush1.bf16.msra.mxu0 %v2275_v40  ;;  %697 = vmatpush1.bf16.msra.mxu1 %v2282_v41 }
  0x28   :  { %657 = vmatprep.subr.bf16.mxu0 %v2289_v42  ;;  %698 = vmatprep.subr.bf16.mxu1 %v2294_v43 }
  0x2a   :  { %319 = vmatmul.mubr.bf16.gmra.mrb[4].mxu0 %v1893_v44  ;;  %392 = vmatmul.mubr.bf16.gmra.mrb[4].mxu1 %v1893_v44 }
  0x2b   :  { %658 = vmatpush1.bf16.msra.mxu0 %v2304_v45  ;;  %699 = vmatpush1.bf16.msra.mxu1 %v2309_v46 }
  0x2c   :  { %659 = vmatprep.subr.bf16.mxu0 %v2316_v47  ;;  %700 = vmatprep.subr.bf16.mxu1 %v2323_v48 }
  0x2d   :  { %328 = vmatprep.mubr.bf16.mxu0 %v2989_v1  ;;  %401 = vmatprep.mubr.bf16.mxu1 %v2989_v1 }
  0x2f   :  { %660 = vmatpush1.bf16.msra.mxu0 %v2328_v49  ;;  %701 = vmatpush1.bf16.msra.mxu1 %v2333_v50 }
  0x30   :  { %661 = vmatprep.subr.bf16.mxu0 %v2340_v51  ;;  %702 = vmatprep.subr.bf16.mxu1 %v2347_v52 }
  0x32   :  { %329 = vmatmul.mubr.bf16.gmra.mrb[8].mxu0 %v1906_v53  ;;  %402 = vmatmul.mubr.bf16.gmra.mrb[8].mxu1 %v1906_v53 }
  0x33   :  { %662 = vmatpush1.bf16.msra.mxu0 %v2359_v54  ;;  %703 = vmatpush1.bf16.msra.mxu1 %v2364_v55 }
  0x34   :  { %663 = vmatprep.subr.bf16.mxu0 %v2371_v56  ;;  %704 = vmatprep.subr.bf16.mxu1 %v2376_v57 }
  0x35   :  { %338 = vmatprep.mubr.bf16.mxu0 %v2989_v1  ;;  %411 = vmatprep.mubr.bf16.mxu1 %v2989_v1 }
  0x37   :  { %664 = vmatpush1.bf16.msra.mxu0 %v2383_v58  ;;  %705 = vmatpush1.bf16.msra.mxu1 %v2388_v59 }
  0x38   :  { %665 = vmatprep.subr.bf16.mxu0 %v2395_v60  ;;  %706 = vmatprep.subr.bf16.mxu1 %v2400_v61 }
  0x3a   :  { %339 = vmatmul.mubr.bf16.gmra.mrb[12].mxu0 %v1919_v62  ;;  %412 = vmatmul.mubr.bf16.gmra.mrb[12].mxu1 %v1919_v62 }
  0x3b   :  { %666 = vmatpush1.bf16.msra.mxu0 %v2412_v63  ;;  %707 = vmatpush1.bf16.msra.mxu1 %v2417_v0 }
  0x3c   :  { %667 = vmatprep.subr.bf16.mxu0 %v2424_v2  ;;  %708 = vmatprep.subr.bf16.mxu1 %v2429_v3 }
  0x3d   :  { %685 = vmatprep.mubr.bf16.mxu0 %v2989_v1  ;;  %726 = vmatprep.mubr.bf16.mxu1 %v2989_v1 }
  0x3f   :  { %668 = vmatpush1.bf16.msra.mxu0 %v2436_v4  ;;  %709 = vmatpush1.bf16.msra.mxu1 %v2441_v5 }
  0x40   :  { %769 = vmatprep.subr.bf16.mxu0 %v2240_v33  ;;  %810 = vmatprep.subr.bf16.mxu1 %v2245_v34 }
  0x42   :  { %686 = vmatmul.mubr.bf16.vlgmr.msra.gmra.mrb[16].mxu0 %v2101_v6  ;;  %727 = vmatmul.mubr.bf16.vlgmr.msra.gmra.mrb[16].mxu1 %v2101_v6 }
  0x43   :  { %770 = vmatpush1.bf16.msra.mxu0 %v2253_v36  ;;  %811 = vmatpush1.bf16.msra.mxu1 %v2258_v37 }
  0x44   :  { %771 = vmatprep.subr.bf16.mxu0 %v2265_v38  ;;  %812 = vmatprep.subr.bf16.mxu1 %v2270_v39 }
  0x45   :  { %801 = vmatprep.mubr.bf16.mxu0 %v2989_v1  ;;  %842 = vmatprep.mubr.bf16.mxu1 %v2989_v1 }
  0x47   :  { %772 = vmatpush1.bf16.msra.mxu0 %v2275_v40  ;;  %813 = vmatpush1.bf16.msra.mxu1 %v2282_v41 }
  0x48   :  { %773 = vmatprep.subr.bf16.mxu0 %v2289_v42  ;;  %814 = vmatprep.subr.bf16.mxu1 %v2294_v43 }
  0x4b   :  { %774 = vmatpush1.bf16.msra.mxu0 %v2304_v45  ;;  %815 = vmatpush1.bf16.msra.mxu1 %v2309_v46 }
  0x4c   :  { %775 = vmatprep.subr.bf16.mxu0 %v2316_v47  ;;  %816 = vmatprep.subr.bf16.mxu1 %v2323_v48 }
  0x4f   :  { %776 = vmatpush1.bf16.msra.mxu0 %v2328_v49  ;;  %817 = vmatpush1.bf16.msra.mxu1 %v2333_v50 }
  0x50   :  { %777 = vmatprep.subr.bf16.mxu0 %v2340_v51  ;;  %818 = vmatprep.subr.bf16.mxu1 %v2347_v52 }
  0x53   :  { %778 = vmatpush1.bf16.msra.mxu0 %v2359_v54  ;;  %819 = vmatpush1.bf16.msra.mxu1 %v2364_v55 }
  0x54   :  { %779 = vmatprep.subr.bf16.mxu0 %v2371_v56  ;;  %820 = vmatprep.subr.bf16.mxu1 %v2376_v57 }
  0x57   :  { %780 = vmatpush1.bf16.msra.mxu0 %v2383_v58  ;;  %821 = vmatpush1.bf16.msra.mxu1 %v2388_v59 }
  0x58   :  { %781 = vmatprep.subr.bf16.mxu0 %v2395_v60  ;;  %822 = vmatprep.subr.bf16.mxu1 %v2400_v61 }
  0x5b   :  { %782 = vmatpush1.bf16.msra.mxu0 %v2412_v63  ;;  %823 = vmatpush1.bf16.msra.mxu1 %v2417_v0 }
  0x5c   :  { %783 = vmatprep.subr.bf16.mxu0 %v2424_v2  ;;  %824 = vmatprep.subr.bf16.mxu1 %v2429_v3 }
  0x5f   :  { %784 = vmatpush1.bf16.msra.mxu0 %v2436_v4  ;;  %825 = vmatpush1.bf16.msra.mxu1 %v2441_v5 }
  0x60   :  { %885 = vmatprep.subr.bf16.mxu0 %v2240_v33  ;;  %926 = vmatprep.subr.bf16.mxu1 %v2245_v34 }
  0xf5   :  { %v2490_v15 = vpop.f32.mrb[0].mxu0  ;;  %v2492_v16 = vpop.f32.mrb[0].mxu1 }
  0xf6   :  { %v312_v19 = vpop.f32.mrb[1].mxu0  ;;  %v385_v20 = vpop.f32.mrb[1].mxu1 }
  0xf7   :  { %v314_v22 = vpop.f32.mrb[2].mxu0  ;;  %v387_v23 = vpop.f32.mrb[2].mxu1 }
  0xf8   :  { %v2496_v24 = vadd.f32 %v314_v22, %v75_v18  ;;  %v316_v25 = vpop.f32.mrb[3].mxu0  ;;  %v2499_v26 = vadd.f32 %v387_v23, %v2488_v14  ;;  %v389_v27 = vpop.f32.mrb[3].mxu1 }
  0xf9   :  { %v2501_v28 = vadd.f32 %v316_v25, %v79_v21  ;;  %v2504_v29 = vadd.f32 %v389_v27, %v2494_v17 }
  0xfd   :  { %v320_v30 = vpop.f32.mrb[4].mxu0  ;;  %v393_v31 = vpop.f32.mrb[4].mxu1 }
  0xfe   :  { %v2506_v32 = vadd.f32 %v320_v30, %v75_v18  ;;  %v322_v35 = vpop.f32.mrb[5].mxu0  ;;  %v2509_v44 = vadd.f32 %v393_v31, %v2488_v14  ;;  %v395_v53 = vpop.f32.mrb[5].mxu1 }
  0xff   :  { %v2511_v62 = vadd.f32 %v322_v35, %v79_v21  ;;  %v324_v6 = vpop.f32.mrb[6].mxu0  ;;  %v2514_v7 = vadd.f32 %v395_v53, %v2494_v17  ;;  %v397_v8 = vpop.f32.mrb[6].mxu1 }
 0x100   :  { %v2516_v9 = vadd.f32 %v324_v6, %v75_v18  ;;  %v326_v10 = vpop.f32.mrb[7].mxu0  ;;  %v2519_v11 = vadd.f32 %v397_v8, %v2488_v14  ;;  %v399_v12 = vpop.f32.mrb[7].mxu1 }
 0x101   :  { %2991 = vst [vmem:[#allocation5_spill] sm:$0xff] %v2514_v7  ;;  %v2521_v13 = vadd.f32 %v326_v10, %v79_v21  ;;  %v2524_v22 = vadd.f32 %v399_v12, %v2494_v17 }
 0x102   :  { %2992 = vst [vmem:[#allocation6_spill] sm:$0xff] %v2516_v9  ;;  %2993 = vst [vmem:[#allocation7_spill] sm:$0xff] %v2519_v11 }
 0x103   :  { %2994 = vst [vmem:[#allocation8_spill] sm:$0xff] %v2521_v13  ;;  %2995 = vst [vmem:[#allocation9_spill] sm:$0xff] %v2524_v22 }
 0x105   :  { %v330_v23 = vpop.f32.mrb[8].mxu0  ;;  %v403_v25 = vpop.f32.mrb[8].mxu1 }
 0x106   :  { %v2526_v27 = vadd.f32 %v330_v23, %v75_v18  ;;  %v332_v30 = vpop.f32.mrb[9].mxu0  ;;  %v2529_v31 = vadd.f32 %v403_v25, %v2488_v14  ;;  %v405_v35 = vpop.f32.mrb[9].mxu1 }
 0x107   :  { %v2531_v53 = vadd.f32 %v332_v30, %v79_v21  ;;  %v334_v6 = vpop.f32.mrb[10].mxu0  ;;  %v2534_v8 = vadd.f32 %v405_v35, %v2494_v17  ;;  %v407_v10 = vpop.f32.mrb[10].mxu1 }
 0x108   :  { %2996 = vst [vmem:[#allocation10_spill] sm:$0xff] %v2526_v27  ;;  %2997 = vst [vmem:[#allocation11_spill] sm:$0xff] %v2529_v31  ;;  %v2536_v1 = vadd.f32 %v334_v6, %v75_v18  ;;  %v336_v12 = vpop.f32.mrb[11].mxu0  ;;  %v2539_v22 = vadd.f32 %v407_v10, %v2488_v14  ;;  %v409_v23 = vpop.f32.mrb[11].mxu1 }
 0x109   :  { %2998 = vst [vmem:[#allocation12_spill] sm:$0xff] %v2531_v53  ;;  %2999 = vst [vmem:[#allocation13_spill] sm:$0xff] %v2534_v8  ;;  %v2541_v27 = vadd.f32 %v336_v12, %v79_v21  ;;  %v2544_v25 = vadd.f32 %v409_v23, %v2494_v17 }
 0x10a   :  { %3000 = vst [vmem:[#allocation14_spill] sm:$0xff] %v2536_v1  ;;  %3001 = vst [vmem:[#allocation15_spill] sm:$0xff] %v2539_v22 }
 0x10b   :  { %3002 = vst [vmem:[#allocation16_spill] sm:$0xff] %v2541_v27  ;;  %3003 = vst [vmem:[#allocation17_spill] sm:$0xff] %v2544_v25 }
 0x10d   :  { %v340_v31 = vpop.f32.mrb[12].mxu0  ;;  %v413_v30 = vpop.f32.mrb[12].mxu1 }
 0x10e   :  { %v2546_v53 = vadd.f32 %v340_v31, %v75_v18  ;;  %v342_v13 = vpop.f32.mrb[13].mxu0  ;;  %v2549_v35 = vadd.f32 %v413_v30, %v2488_v14  ;;  %v415_v6 = vpop.f32.mrb[13].mxu1 }
 0x10f   :  { %v2551_v1 = vadd.f32 %v342_v13, %v79_v21  ;;  %v344_v8 = vpop.f32.mrb[14].mxu0  ;;  %v2554_v10 = vadd.f32 %v415_v6, %v2494_v17  ;;  %v417_v12 = vpop.f32.mrb[14].mxu1  ;;  %v311_v13 = vadd.f32 %v2490_v15, %v75_v18  ;;  %v313_v6 = vadd.f32 %v312_v19, %v79_v21 }
 0x110   :  { %3004 = vst [vmem:[#allocation18_spill] sm:$0xff] %v2546_v53  ;;  %3005 = vst [vmem:[#allocation19_spill] sm:$0xff] %v2549_v35  ;;  %v2556_v27 = vadd.f32 %v344_v8, %v75_v18  ;;  %v346_v23 = vpop.f32.mrb[15].mxu0  ;;  %v2559_v25 = vadd.f32 %v417_v12, %v2488_v14  ;;  %v419_v31 = vpop.f32.mrb[15].mxu1 }
 0x111   :  { %3006 = vst [vmem:[#allocation20_spill] sm:$0xff] %v2551_v1  ;;  %3007 = vst [vmem:[#allocation21_spill] sm:$0xff] %v2554_v10  ;;  %v2561_v53 = vadd.f32 %v346_v23, %v79_v21  ;;  %v2564_v30 = vadd.f32 %v419_v31, %v2494_v17  ;;  %v384_v1 = vadd.f32 %v2492_v16, %v2488_v14 }
 0x112   :  { %3008 = vst [vmem:[#allocation22_spill] sm:$0xff] %v2556_v27  ;;  %3009 = vst [vmem:[#allocation23_spill] sm:$0xff] %v2559_v25  ;;  %v386_v10 = vadd.f32 %v385_v20, %v2494_v17 }
 0x113   :  { %3010 = vst [vmem:[#allocation24_spill] sm:$0xff] %v2561_v53  ;;  %3011 = vst [vmem:[#allocation25_spill] sm:$0xff] %v2564_v30 }
 0x115   :  { %v687_v8 = vpop.f32.mrb[16].mxu0  ;;  %v728_v27 = vpop.f32.mrb[16].mxu1 }
 0x116   :  { %v735_v35 = vadd.f32 %v687_v8, %v311_v13  ;;  %v737_v22 = vadd.f32 %v728_v27, %v384_v1  ;;  %v689_v12 = vpop.f32.mrb[17].mxu0  ;;  %v730_v25 = vpop.f32.mrb[17].mxu1 }
 0x117   :  { %v736_v11 = vadd.f32 %v689_v12, %v313_v6  ;;  %v738_v23 = vadd.f32 %v730_v25, %v386_v10  ;;  %v691_v53 = vpop.f32.mrb[18].mxu0  ;;  %v732_v9 = vpop.f32.mrb[18].mxu1 }
 0x118   :  { %v1766_v31 = vmul.f32 -1.442695, %v735_v35  ;;  %v692_v30 = vpop.f32.mrb[19].mxu0  ;;  %v733_v7 = vpop.f32.mrb[19].mxu1 }
 0x119   :  { %v1767_v15 = vmul.f32 -1.442695, %v736_v11  ;;  %v1768_v14 = vmul.f32 -1.442695, %v738_v23 }
 0x11a   :  { %1940 = vpow2.f32 %v1766_v31 }
 0x11b   :  { %1942 = vpow2.f32 %v1767_v15 }
 0x11c   :  { %1944 = vpow2.f32 %v1768_v14 }
 0x11d   :  { %1946 = vtanh.f32 %v737_v22  ;;  %v3012_v22 = vmov 0  }
 0x124   :  { %v1941_v16 = vpop.eup %1940 }
 0x125   :  { %v1943_v18 = vpop.eup %1942  ;;  %v742_v17 = vadd.f32 1.0, %v1941_v16 }
 0x126   :  { %v748_v19 = vadd.f32 1.0, %v1943_v18  ;;  %v1945_v1 = vpop.eup %1944 }
 0x127   :  { %1948 = vrcp.f32 %v742_v17  ;;  %v1947_v20 = vpop.eup %1946  ;;  %v755_v53 = vadd.f32 1.0, %v1945_v1 }
 0x128   :  { %1950 = vrcp.f32 %v748_v19 }
 0x129   :  { %1952 = vrcp.f32 %v755_v53 }
 0x131   :  { %v1949_v21 = vpop.eup %1948 }
 0x132   :  { %v1951_v27 = vpop.eup %1950  ;;  %v759_v9 = vmul.f32 %v1949_v21, %v1947_v20 }
 0x133   :  { %v758_v25 = vmul.f32 0.0, %v1951_v27  ;;  %v1953_v11 = vpop.eup %1952 }
 0x135   :  { %v2570_v7 = vadd.f32 %v759_v9, %v758_v25 }
 0x137   :  { %1954 = vtanh.f32 %v2570_v7 }
 0x141   :  { %v1955_v35 = vpop.eup %1954 }
 0x142   :  { %v762_v10 = vmul.f32 %v1955_v35, %v1953_v11 }
 0x144   :  { %v768_v30 = vpack.c.bf16 %v762_v10, %v762_v10 }
 0x146   :  { %802 = vmatmul.mubr.bf16.vlgmr.msra.gmra.mrb[20].mxu0 %v768_v30  ;;  %843 = vmatmul.mubr.bf16.vlgmr.msra.gmra.mrb[20].mxu1 %v768_v30 }
 0x147   :  { %886 = vmatpush1.bf16.msra.mxu0 %v2253_v36  ;;  %927 = vmatpush1.bf16.msra.mxu1 %v2258_v37 }
 0x148   :  { %887 = vmatprep.subr.bf16.mxu0 %v2265_v38  ;;  %928 = vmatprep.subr.bf16.mxu1 %v2270_v39 }
 0x149   :  { %917 = vmatprep.mubr.bf16.mxu0 %v3012_v22  ;;  %958 = vmatprep.mubr.bf16.mxu1 %v3012_v22 }
 0x14b   :  { %888 = vmatpush1.bf16.msra.mxu0 %v2275_v40  ;;  %929 = vmatpush1.bf16.msra.mxu1 %v2282_v41 }
 0x14c   :  { %889 = vmatprep.subr.bf16.mxu0 %v2289_v42  ;;  %930 = vmatprep.subr.bf16.mxu1 %v2294_v43 }
 0x14f   :  { %890 = vmatpush1.bf16.msra.mxu0 %v2304_v45  ;;  %931 = vmatpush1.bf16.msra.mxu1 %v2309_v46 }
 0x150   :  { %891 = vmatprep.subr.bf16.mxu0 %v2316_v47  ;;  %932 = vmatprep.subr.bf16.mxu1 %v2323_v48 }
 0x153   :  { %892 = vmatpush1.bf16.msra.mxu0 %v2328_v49  ;;  %933 = vmatpush1.bf16.msra.mxu1 %v2333_v50 }
 0x154   :  { %893 = vmatprep.subr.bf16.mxu0 %v2340_v51  ;;  %934 = vmatprep.subr.bf16.mxu1 %v2347_v52 }
 0x157   :  { %894 = vmatpush1.bf16.msra.mxu0 %v2359_v54  ;;  %935 = vmatpush1.bf16.msra.mxu1 %v2364_v55 }
 0x158   :  { %895 = vmatprep.subr.bf16.mxu0 %v2371_v56  ;;  %936 = vmatprep.subr.bf16.mxu1 %v2376_v57 }
 0x15b   :  { %896 = vmatpush1.bf16.msra.mxu0 %v2383_v58  ;;  %937 = vmatpush1.bf16.msra.mxu1 %v2388_v59 }
 0x15c   :  { %897 = vmatprep.subr.bf16.mxu0 %v2395_v60  ;;  %938 = vmatprep.subr.bf16.mxu1 %v2400_v61 }
 0x15f   :  { %898 = vmatpush1.bf16.msra.mxu0 %v2412_v63  ;;  %939 = vmatpush1.bf16.msra.mxu1 %v2417_v0 }
 0x160   :  { %899 = vmatprep.subr.bf16.mxu0 %v2424_v2  ;;  %940 = vmatprep.subr.bf16.mxu1 %v2429_v3 }
 0x163   :  { %900 = vmatpush1.bf16.msra.mxu0 %v2436_v4  ;;  %941 = vmatpush1.bf16.msra.mxu1 %v2441_v5 }
 0x164   :  { %1001 = vmatprep.subr.bf16.mxu0 %v2240_v33  ;;  %1042 = vmatprep.subr.bf16.mxu1 %v2245_v34 }
 0x219   :  { %v803_v13 = vpop.f32.mrb[20].mxu0  ;;  %v844_v6 = vpop.f32.mrb[20].mxu1 }
 0x21a   :  { %v851_v8 = vadd.f32 %v803_v13, %v2496_v24  ;;  %v853_v12 = vadd.f32 %v844_v6, %v2499_v26  ;;  %v805_v23 = vpop.f32.mrb[21].mxu0  ;;  %v846_v31 = vpop.f32.mrb[21].mxu1 }
 0x21b   :  { %v852_v15 = vadd.f32 %v805_v23, %v2501_v28  ;;  %v854_v14 = vadd.f32 %v846_v31, %v2504_v29  ;;  %v807_v16 = vpop.f32.mrb[22].mxu0  ;;  %v848_v18 = vpop.f32.mrb[22].mxu1 }
 0x21c   :  { %v1769_v17 = vmul.f32 -1.442695, %v851_v8  ;;  %v808_v19 = vpop.f32.mrb[23].mxu0  ;;  %v849_v1 = vpop.f32.mrb[23].mxu1 }
 0x21d   :  { %v1770_v20 = vmul.f32 -1.442695, %v852_v15  ;;  %v1771_v21 = vmul.f32 -1.442695, %v854_v14 }
 0x21e   :  { %1956 = vpow2.f32 %v1769_v17  ;;  %v3013_v17 = vld [vmem:[#allocation5_spill] sm:$0xff] }
 0x21f   :  { %1958 = vpow2.f32 %v1770_v20 }
 0x220   :  { %1960 = vpow2.f32 %v1771_v21 }
 0x221   :  { %1962 = vtanh.f32 %v853_v12 }
 0x228   :  { %v1957_v27 = vpop.eup %1956 }
 0x229   :  { %v1959_v9 = vpop.eup %1958  ;;  %v858_v24 = vadd.f32 1.0, %v1957_v27 }
 0x22a   :  { %v864_v26 = vadd.f32 1.0, %v1959_v9  ;;  %v1961_v28 = vpop.eup %1960 }
 0x22b   :  { %1964 = vrcp.f32 %v858_v24  ;;  %v1963_v53 = vpop.eup %1962  ;;  %v871_v35 = vadd.f32 1.0, %v1961_v28 }
 0x22c   :  { %1966 = vrcp.f32 %v864_v26 }
 0x22d   :  { %1968 = vrcp.f32 %v871_v35 }
 0x235   :  { %v1965_v29 = vpop.eup %1964 }
 0x236   :  { %v1967_v25 = vpop.eup %1966  ;;  %v875_v11 = vmul.f32 %v1965_v29, %v1963_v53 }
 0x237   :  { %v874_v10 = vmul.f32 %v1967_v25, %v2570_v7  ;;  %v1969_v13 = vpop.eup %1968 }
 0x239   :  { %v2612_v30 = vadd.f32 %v875_v11, %v874_v10 }
 0x23b   :  { %1970 = vtanh.f32 %v2612_v30 }
 0x245   :  { %v1971_v6 = vpop.eup %1970 }
 0x246   :  { %v878_v8 = vmul.f32 %v1971_v6, %v1969_v13 }
 0x248   :  { %v884_v12 = vpack.c.bf16 %v878_v8, %v878_v8 }
 0x24a   :  { %918 = vmatmul.mubr.bf16.vlgmr.msra.gmra.mrb[24].mxu0 %v884_v12  ;;  %959 = vmatmul.mubr.bf16.vlgmr.msra.gmra.mrb[24].mxu1 %v884_v12 }
 0x24b   :  { %1002 = vmatpush1.bf16.msra.mxu0 %v2253_v36  ;;  %1043 = vmatpush1.bf16.msra.mxu1 %v2258_v37 }
 0x24c   :  { %1003 = vmatprep.subr.bf16.mxu0 %v2265_v38  ;;  %1044 = vmatprep.subr.bf16.mxu1 %v2270_v39 }
 0x24d   :  { %1033 = vmatprep.mubr.bf16.mxu0 %v3012_v22  ;;  %1074 = vmatprep.mubr.bf16.mxu1 %v3012_v22 }
 0x24f   :  { %1004 = vmatpush1.bf16.msra.mxu0 %v2275_v40  ;;  %1045 = vmatpush1.bf16.msra.mxu1 %v2282_v41 }
 0x250   :  { %1005 = vmatprep.subr.bf16.mxu0 %v2289_v42  ;;  %1046 = vmatprep.subr.bf16.mxu1 %v2294_v43 }
 0x253   :  { %1006 = vmatpush1.bf16.msra.mxu0 %v2304_v45  ;;  %1047 = vmatpush1.bf16.msra.mxu1 %v2309_v46 }
 0x254   :  { %1007 = vmatprep.subr.bf16.mxu0 %v2316_v47  ;;  %1048 = vmatprep.subr.bf16.mxu1 %v2323_v48 }
 0x257   :  { %1008 = vmatpush1.bf16.msra.mxu0 %v2328_v49  ;;  %1049 = vmatpush1.bf16.msra.mxu1 %v2333_v50 }
 0x258   :  { %1009 = vmatprep.subr.bf16.mxu0 %v2340_v51  ;;  %1050 = vmatprep.subr.bf16.mxu1 %v2347_v52 }
 0x25b   :  { %1010 = vmatpush1.bf16.msra.mxu0 %v2359_v54  ;;  %1051 = vmatpush1.bf16.msra.mxu1 %v2364_v55 }
 0x25c   :  { %1011 = vmatprep.subr.bf16.mxu0 %v2371_v56  ;;  %1052 = vmatprep.subr.bf16.mxu1 %v2376_v57 }
 0x25f   :  { %1012 = vmatpush1.bf16.msra.mxu0 %v2383_v58  ;;  %1053 = vmatpush1.bf16.msra.mxu1 %v2388_v59 }
 0x260   :  { %1013 = vmatprep.subr.bf16.mxu0 %v2395_v60  ;;  %1054 = vmatprep.subr.bf16.mxu1 %v2400_v61 }
 0x263   :  { %1014 = vmatpush1.bf16.msra.mxu0 %v2412_v63  ;;  %1055 = vmatpush1.bf16.msra.mxu1 %v2417_v0 }
 0x264   :  { %1015 = vmatprep.subr.bf16.mxu0 %v2424_v2  ;;  %1056 = vmatprep.subr.bf16.mxu1 %v2429_v3 }
 0x267   :  { %1016 = vmatpush1.bf16.msra.mxu0 %v2436_v4  ;;  %1057 = vmatpush1.bf16.msra.mxu1 %v2441_v5 }
 0x268   :  { %1117 = vmatprep.subr.bf16.mxu0 %v2240_v33  ;;  %1158 = vmatprep.subr.bf16.mxu1 %v2245_v34 }
 0x31d   :  { %v919_v7 = vpop.f32.mrb[24].mxu0  ;;  %v960_v23 = vpop.f32.mrb[24].mxu1 }
 0x31e   :  { %v967_v31 = vadd.f32 %v919_v7, %v2506_v32  ;;  %v969_v15 = vadd.f32 %v960_v23, %v2509_v44  ;;  %v921_v14 = vpop.f32.mrb[25].mxu0  ;;  %v962_v16 = vpop.f32.mrb[25].mxu1 }
 0x31f   :  { %v968_v18 = vadd.f32 %v921_v14, %v2511_v62  ;;  %v970_v19 = vadd.f32 %v962_v16, %v3013_v17  ;;  %v923_v1 = vpop.f32.mrb[26].mxu0  ;;  %v964_v20 = vpop.f32.mrb[26].mxu1  ;;  %v3015_v16 = vld [vmem:[#allocation7_spill] sm:$0xff] }
 0x320   :  { %v1772_v21 = vmul.f32 -1.442695, %v967_v31  ;;  %v924_v27 = vpop.f32.mrb[27].mxu0  ;;  %v965_v9 = vpop.f32.mrb[27].mxu1  ;;  %v3016_v1 = vld [vmem:[#allocation8_spill] sm:$0xff] }
 0x321   :  { %v1773_v24 = vmul.f32 -1.442695, %v968_v18  ;;  %v1774_v26 = vmul.f32 -1.442695, %v970_v19 }
 0x322   :  { %1972 = vpow2.f32 %v1772_v21  ;;  %v3017_v21 = vld [vmem:[#allocation9_spill] sm:$0xff] }
 0x323   :  { %1974 = vpow2.f32 %v1773_v24 }
 0x324   :  { %1976 = vpow2.f32 %v1774_v26 }
 0x325   :  { %1978 = vtanh.f32 %v969_v15  ;;  %v3014_v15 = vld [vmem:[#allocation6_spill] sm:$0xff] }
 0x32c   :  { %v1973_v28 = vpop.eup %1972 }
 0x32d   :  { %v1975_v53 = vpop.eup %1974  ;;  %v974_v32 = vadd.f32 1.0, %v1973_v28 }
 0x32e   :  { %v980_v44 = vadd.f32 1.0, %v1975_v53  ;;  %v1977_v62 = vpop.eup %1976 }
 0x32f   :  { %1980 = vrcp.f32 %v974_v32  ;;  %v1979_v29 = vpop.eup %1978  ;;  %v987_v10 = vadd.f32 1.0, %v1977_v62 }
 0x330   :  { %1982 = vrcp.f32 %v980_v44 }
 0x331   :  { %1984 = vrcp.f32 %v987_v10 }
 0x339   :  { %v1981_v25 = vpop.eup %1980 }
 0x33a   :  { %v1983_v11 = vpop.eup %1982  ;;  %v991_v35 = vmul.f32 %v1981_v25, %v1979_v29 }
 0x33b   :  { %v990_v13 = vmul.f32 %v1983_v11, %v2612_v30  ;;  %v1985_v8 = vpop.eup %1984 }
 0x33d   :  { %v2654_v6 = vadd.f32 %v991_v35, %v990_v13 }
 0x33f   :  { %1986 = vtanh.f32 %v2654_v6 }
 0x349   :  { %v1987_v12 = vpop.eup %1986 }
 0x34a   :  { %v994_v7 = vmul.f32 %v1987_v12, %v1985_v8 }
 0x34c   :  { %v1000_v23 = vpack.c.bf16 %v994_v7, %v994_v7 }
 0x34e   :  { %1034 = vmatmul.mubr.bf16.vlgmr.msra.gmra.mrb[28].mxu0 %v1000_v23  ;;  %1075 = vmatmul.mubr.bf16.vlgmr.msra.gmra.mrb[28].mxu1 %v1000_v23 }
 0x34f   :  { %1118 = vmatpush1.bf16.msra.mxu0 %v2253_v36  ;;  %1159 = vmatpush1.bf16.msra.mxu1 %v2258_v37 }
 0x350   :  { %1119 = vmatprep.subr.bf16.mxu0 %v2265_v38  ;;  %1160 = vmatprep.subr.bf16.mxu1 %v2270_v39 }
 0x351   :  { %1149 = vmatprep.mubr.bf16.mxu0 %v3012_v22  ;;  %1190 = vmatprep.mubr.bf16.mxu1 %v3012_v22 }
 0x353   :  { %1120 = vmatpush1.bf16.msra.mxu0 %v2275_v40  ;;  %1161 = vmatpush1.bf16.msra.mxu1 %v2282_v41 }
 0x354   :  { %1121 = vmatprep.subr.bf16.mxu0 %v2289_v42  ;;  %1162 = vmatprep.subr.bf16.mxu1 %v2294_v43 }
 0x357   :  { %1122 = vmatpush1.bf16.msra.mxu0 %v2304_v45  ;;  %1163 = vmatpush1.bf16.msra.mxu1 %v2309_v46 }
 0x358   :  { %1123 = vmatprep.subr.bf16.mxu0 %v2316_v47  ;;  %1164 = vmatprep.subr.bf16.mxu1 %v2323_v48 }
 0x35b   :  { %1124 = vmatpush1.bf16.msra.mxu0 %v2328_v49  ;;  %1165 = vmatpush1.bf16.msra.mxu1 %v2333_v50 }
 0x35c   :  { %1125 = vmatprep.subr.bf16.mxu0 %v2340_v51  ;;  %1166 = vmatprep.subr.bf16.mxu1 %v2347_v52 }
 0x35f   :  { %1126 = vmatpush1.bf16.msra.mxu0 %v2359_v54  ;;  %1167 = vmatpush1.bf16.msra.mxu1 %v2364_v55 }
 0x360   :  { %1127 = vmatprep.subr.bf16.mxu0 %v2371_v56  ;;  %1168 = vmatprep.subr.bf16.mxu1 %v2376_v57 }
 0x363   :  { %1128 = vmatpush1.bf16.msra.mxu0 %v2383_v58  ;;  %1169 = vmatpush1.bf16.msra.mxu1 %v2388_v59 }
 0x364   :  { %1129 = vmatprep.subr.bf16.mxu0 %v2395_v60  ;;  %1170 = vmatprep.subr.bf16.mxu1 %v2400_v61 }
 0x367   :  { %1130 = vmatpush1.bf16.msra.mxu0 %v2412_v63  ;;  %1171 = vmatpush1.bf16.msra.mxu1 %v2417_v0 }
 0x368   :  { %1131 = vmatprep.subr.bf16.mxu0 %v2424_v2  ;;  %1172 = vmatprep.subr.bf16.mxu1 %v2429_v3 }
 0x36b   :  { %1132 = vmatpush1.bf16.msra.mxu0 %v2436_v4  ;;  %1173 = vmatpush1.bf16.msra.mxu1 %v2441_v5 }
 0x36c   :  { %1233 = vmatprep.subr.bf16.mxu0 %v2240_v33  ;;  %1274 = vmatprep.subr.bf16.mxu1 %v2245_v34 }
 0x421   :  { %v1035_v30 = vpop.f32.mrb[28].mxu0  ;;  %v1076_v31 = vpop.f32.mrb[28].mxu1 }
 0x422   :  { %v1083_v14 = vadd.f32 %v1035_v30, %v3014_v15  ;;  %v1085_v18 = vadd.f32 %v1076_v31, %v3015_v16  ;;  %v1037_v17 = vpop.f32.mrb[29].mxu0  ;;  %v1078_v19 = vpop.f32.mrb[29].mxu1 }
 0x423   :  { %v1084_v20 = vadd.f32 %v1037_v17, %v3016_v1  ;;  %v1086_v27 = vadd.f32 %v1078_v19, %v3017_v21  ;;  %v1039_v9 = vpop.f32.mrb[30].mxu0  ;;  %v1080_v24 = vpop.f32.mrb[30].mxu1 }
 0x424   :  { %v1775_v26 = vmul.f32 -1.442695, %v1083_v14  ;;  %v1040_v28 = vpop.f32.mrb[31].mxu0  ;;  %v1081_v53 = vpop.f32.mrb[31].mxu1 }
 0x425   :  { %v1776_v33 = vmul.f32 -1.442695, %v1084_v20  ;;  %v1777_v34 = vmul.f32 -1.442695, %v1086_v27 }
 0x426   :  { %1988 = vpow2.f32 %v1775_v26 }
 0x427   :  { %1990 = vpow2.f32 %v1776_v33 }
 0x428   :  { %1992 = vpow2.f32 %v1777_v34 }
 0x429   :  { %1994 = vtanh.f32 %v1085_v18 }
 0x430   :  { %v1989_v32 = vpop.eup %1988 }
 0x431   :  { %v1991_v44 = vpop.eup %1990  ;;  %v1090_v62 = vadd.f32 1.0, %v1989_v32 }
 0x432   :  { %v1096_v29 = vadd.f32 1.0, %v1991_v44  ;;  %v1993_v25 = vpop.eup %1992 }
 0x433   :  { %1996 = vrcp.f32 %v1090_v62  ;;  %v1995_v11 = vpop.eup %1994  ;;  %v1103_v8 = vadd.f32 1.0, %v1993_v25  ;;  %v2754_v62 = vld [vmem:[%s2984_s2] ss:$16 sps:$4 sm:$0xff]   ;;  %v2766_v25 = vld [vmem:[%s2984_s2 + $0x24] ss:$16 sps:$4 sm:$0xff]  }
 0x434   :  { %1998 = vrcp.f32 %v1096_v29  ;;  %v2760_v29 = vld [vmem:[%s2984_s2 + $0x8] ss:$16 sps:$4 sm:$0xff]  }
 0x435   :  { %2000 = vrcp.f32 %v1103_v8  ;;  %v2798_v8 = vld [vmem:[%s2984_s2 + $0x4c] ss:$16 sps:$4 sm:$0xff]  }
 0x43d   :  { %v1997_v35 = vpop.eup %1996 }
 0x43e   :  { %v1999_v10 = vpop.eup %1998  ;;  %v1107_v13 = vmul.f32 %v1997_v35, %v1995_v11  ;;  %v2772_v11 = vld [vmem:[%s2984_s2 + $0x2c] ss:$16 sps:$4 sm:$0xff]   ;;  %v2780_v35 = vld [vmem:[%s2984_s2 + $0x20] ss:$16 sps:$4 sm:$0xff]  }
 0x43f   :  { %v1106_v12 = vmul.f32 %v1999_v10, %v2654_v6  ;;  %v2001_v23 = vpop.eup %2000  ;;  %v2786_v10 = vld [vmem:[%s2984_s2 + $0x28] ss:$16 sps:$4 sm:$0xff]  }
 0x441   :  { %v2696_v7 = vadd.f32 %v1107_v13, %v1106_v12  ;;  %v2792_v13 = vld [vmem:[%s2984_s2 + $0x44] ss:$16 sps:$4 sm:$0xff]   ;;  %v2804_v12 = vld [vmem:[%s2984_s2 + $0x40] ss:$16 sps:$4 sm:$0xff]  }
 0x443   :  { %2002 = vtanh.f32 %v2696_v7 }
 0x44d   :  { %v2003_v30 = vpop.eup %2002 }
 0x44e   :  { %v1110_v31 = vmul.f32 %v2003_v30, %v2001_v23  ;;  %v2816_v23 = vld [vmem:[%s2984_s2 + $0x64] ss:$16 sps:$4 sm:$0xff]   ;;  %v2822_v30 = vld [vmem:[%s2984_s2 + $0x6c] ss:$16 sps:$4 sm:$0xff]  }
 0x450   :  { %v1116_v15 = vpack.c.bf16 %v1110_v31, %v1110_v31  ;;  %v2828_v31 = vld [vmem:[%s2984_s2 + $0x60] ss:$16 sps:$4 sm:$0xff]  }
 0x452   :  { %1150 = vmatmul.mubr.bf16.vlgmr.msra.gmra.mrb[32].mxu0 %v1116_v15  ;;  %1191 = vmatmul.mubr.bf16.vlgmr.msra.gmra.mrb[32].mxu1 %v1116_v15  ;;  %v2834_v15 = vld [vmem:[%s2984_s2 + $0x68] ss:$16 sps:$4 sm:$0xff]  }
 0x453   :  { %1234 = vmatpush1.bf16.msra.mxu0 %v2253_v36  ;;  %1275 = vmatpush1.bf16.msra.mxu1 %v2258_v37  ;;  %v2734_v36 = vld [vmem:[%s2984_s2 + $0x4] ss:$16 sps:$4 sm:$0xff]   ;;  %v2740_v37 = vld [vmem:[%s2984_s2 + $0xc] ss:$16 sps:$4 sm:$0xff]  }
 0x454   :  { %1235 = vmatprep.subr.bf16.mxu0 %v2265_v38  ;;  %1276 = vmatprep.subr.bf16.mxu1 %v2270_v39 }
 0x455   :  { %1265 = vmatprep.mubr.bf16.mxu0 %v3012_v22  ;;  %1306 = vmatprep.mubr.bf16.mxu1 %v3012_v22 }
 0x457   :  { %1236 = vmatpush1.bf16.msra.mxu0 %v2275_v40  ;;  %1277 = vmatpush1.bf16.msra.mxu1 %v2282_v41  ;;  %v3018_v40 = vld [vmem:[#allocation10_spill] sm:$0xff] }
 0x458   :  { %1237 = vmatprep.subr.bf16.mxu0 %v2289_v42  ;;  %1278 = vmatprep.subr.bf16.mxu1 %v2294_v43  ;;  %v3019_v42 = vld [vmem:[#allocation11_spill] sm:$0xff] }
 0x45b   :  { %1238 = vmatpush1.bf16.msra.mxu0 %v2304_v45  ;;  %1279 = vmatpush1.bf16.msra.mxu1 %v2309_v46 }
 0x45c   :  { %1239 = vmatprep.subr.bf16.mxu0 %v2316_v47  ;;  %1280 = vmatprep.subr.bf16.mxu1 %v2323_v48  ;;  %v3020_v47 = vld [vmem:[#allocation12_spill] sm:$0xff] }
 0x45f   :  { %1240 = vmatpush1.bf16.msra.mxu0 %v2328_v49  ;;  %1281 = vmatpush1.bf16.msra.mxu1 %v2333_v50  ;;  %v3021_v49 = vld [vmem:[#allocation13_spill] sm:$0xff] }
 0x460   :  { %1241 = vmatprep.subr.bf16.mxu0 %v2340_v51  ;;  %1282 = vmatprep.subr.bf16.mxu1 %v2347_v52 }
 0x463   :  { %1242 = vmatpush1.bf16.msra.mxu0 %v2359_v54  ;;  %1283 = vmatpush1.bf16.msra.mxu1 %v2364_v55 }
 0x464   :  { %1243 = vmatprep.subr.bf16.mxu0 %v2371_v56  ;;  %1284 = vmatprep.subr.bf16.mxu1 %v2376_v57 }
 0x467   :  { %1244 = vmatpush1.bf16.msra.mxu0 %v2383_v58  ;;  %1285 = vmatpush1.bf16.msra.mxu1 %v2388_v59 }
 0x468   :  { %1245 = vmatprep.subr.bf16.mxu0 %v2395_v60  ;;  %1286 = vmatprep.subr.bf16.mxu1 %v2400_v61 }
 0x46b   :  { %1246 = vmatpush1.bf16.msra.mxu0 %v2412_v63  ;;  %1287 = vmatpush1.bf16.msra.mxu1 %v2417_v0 }
 0x46c   :  { %1247 = vmatprep.subr.bf16.mxu0 %v2424_v2  ;;  %1288 = vmatprep.subr.bf16.mxu1 %v2429_v3 }
 0x46f   :  { %1248 = vmatpush1.bf16.msra.mxu0 %v2436_v4  ;;  %1289 = vmatpush1.bf16.msra.mxu1 %v2441_v5 }
 0x470   :  { %1349 = vmatprep.subr.bf16.mxu0 %v2734_v36  ;;  %1390 = vmatprep.subr.bf16.mxu1 %v2740_v37 }
 0x525   :  { %v1151_v38 = vpop.f32.mrb[32].mxu0  ;;  %v1192_v39 = vpop.f32.mrb[32].mxu1 }
 0x526   :  { %v1199_v41 = vadd.f32 %v1151_v38, %v3018_v40  ;;  %v1201_v43 = vadd.f32 %v1192_v39, %v3019_v42  ;;  %v1153_v45 = vpop.f32.mrb[33].mxu0  ;;  %v1194_v46 = vpop.f32.mrb[33].mxu1  ;;  %v2840_v38 = vld [vmem:[%s2984_s2 + $0x84] ss:$16 sps:$4 sm:$0xff]   ;;  %v2846_v39 = vld [vmem:[%s2984_s2 + $0x8c] ss:$16 sps:$4 sm:$0xff]  }
 0x527   :  { %v1200_v48 = vadd.f32 %v1153_v45, %v3020_v47  ;;  %v1202_v50 = vadd.f32 %v1194_v46, %v3021_v49  ;;  %v1155_v51 = vpop.f32.mrb[34].mxu0  ;;  %v1196_v52 = vpop.f32.mrb[34].mxu1  ;;  %v2852_v40 = vld [vmem:[%s2984_s2 + $0x80] ss:$16 sps:$4 sm:$0xff]   ;;  %v3024_v42 = vld [vmem:[#allocation16_spill] sm:$0xff] }
 0x528   :  { %v1778_v54 = vmul.f32 -1.442695, %v1199_v41  ;;  %v1156_v55 = vpop.f32.mrb[35].mxu0  ;;  %v1197_v6 = vpop.f32.mrb[35].mxu1  ;;  %v2858_v41 = vld [vmem:[%s2984_s2 + $0x88] ss:$16 sps:$4 sm:$0xff]  }
 0x529   :  { %v1779_v14 = vmul.f32 -1.442695, %v1200_v48  ;;  %v1780_v16 = vmul.f32 -1.442695, %v1202_v50 }
 0x52a   :  { %2004 = vpow2.f32 %v1778_v54 }
 0x52b   :  { %2006 = vpow2.f32 %v1779_v14 }
 0x52c   :  { %2008 = vpow2.f32 %v1780_v16 }
 0x52d   :  { %2010 = vtanh.f32 %v1201_v43  ;;  %v3025_v43 = vld [vmem:[#allocation17_spill] sm:$0xff] }
 0x534   :  { %v2005_v18 = vpop.eup %2004 }
 0x535   :  { %v2007_v17 = vpop.eup %2006  ;;  %v1206_v19 = vadd.f32 1.0, %v2005_v18 }
 0x536   :  { %v1212_v1 = vadd.f32 1.0, %v2007_v17  ;;  %v2009_v20 = vpop.eup %2008 }
 0x537   :  { %2012 = vrcp.f32 %v1206_v19  ;;  %v2011_v21 = vpop.eup %2010  ;;  %v1219_v26 = vadd.f32 1.0, %v2009_v20 }
 0x538   :  { %2014 = vrcp.f32 %v1212_v1 }
 0x539   :  { %2016 = vrcp.f32 %v1219_v26  ;;  %v2092_v26 = vld [vmem:[%s2984_s2 + $0xc4] ss:$16 sps:$4 sm:$0xff]  }
 0x541   :  { %v2013_v27 = vpop.eup %2012 }
 0x542   :  { %v2015_v9 = vpop.eup %2014  ;;  %v1223_v24 = vmul.f32 %v2013_v27, %v2011_v21  ;;  %v2089_v27 = vld [vmem:[%s2984_s2 + $0xac] ss:$16 sps:$4 sm:$0xff]  }
 0x543   :  { %v1222_v28 = vmul.f32 %v2015_v9, %v2696_v7  ;;  %v2017_v33 = vpop.eup %2016  ;;  %v2810_v7 = vld [vmem:[%s2984_s2 + $0x48] ss:$16 sps:$4 sm:$0xff]   ;;  %v2090_v9 = vld [vmem:[%s2984_s2 + $0xa0] ss:$16 sps:$4 sm:$0xff]  }
 0x545   :  { %v2748_v53 = vadd.f32 %v1223_v24, %v1222_v28  ;;  %v2091_v24 = vld [vmem:[%s2984_s2 + $0xa8] ss:$16 sps:$4 sm:$0xff]   ;;  %v2093_v28 = vld [vmem:[%s2984_s2 + $0xcc] ss:$16 sps:$4 sm:$0xff]  }
 0x547   :  { %2018 = vtanh.f32 %v2748_v53 }
 0x551   :  { %v2019_v34 = vpop.eup %2018 }
 0x552   :  { %v1226_v32 = vmul.f32 %v2019_v34, %v2017_v33  ;;  %v2095_v33 = vld [vmem:[%s2984_s2 + $0xc8] ss:$16 sps:$4 sm:$0xff]   ;;  %v2096_v34 = vld [vmem:[%s2984_s2 + $0xe4] ss:$16 sps:$4 sm:$0xff]  }
 0x554   :  { %v1232_v44 = vpack.c.bf16 %v1226_v32, %v1226_v32  ;;  %v2097_v32 = vld [vmem:[%s2984_s2 + $0xec] ss:$16 sps:$4 sm:$0xff]  }
 0x556   :  { %1266 = vmatmul.mubr.bf16.vlgmr.msra.gmra.mrb[36].mxu0 %v1232_v44  ;;  %1307 = vmatmul.mubr.bf16.vlgmr.msra.gmra.mrb[36].mxu1 %v1232_v44  ;;  %v2098_v44 = vld [vmem:[%s2984_s2 + $0xe0] ss:$16 sps:$4 sm:$0xff]  }
 0x557   :  { %1350 = vmatpush1.bf16.msra.mxu0 %v2754_v62  ;;  %1391 = vmatpush1.bf16.msra.mxu1 %v2760_v29 }
 0x558   :  { %1351 = vmatprep.subr.bf16.mxu0 %v2766_v25  ;;  %1392 = vmatprep.subr.bf16.mxu1 %v2772_v11 }
 0x559   :  { %1381 = vmatprep.mubr.bf16.mxu0 %v3012_v22  ;;  %1422 = vmatprep.mubr.bf16.mxu1 %v3012_v22 }
 0x55b   :  { %1352 = vmatpush1.bf16.msra.mxu0 %v2780_v35  ;;  %1393 = vmatpush1.bf16.msra.mxu1 %v2786_v10 }
 0x55c   :  { %1353 = vmatprep.subr.bf16.mxu0 %v2792_v13  ;;  %1394 = vmatprep.subr.bf16.mxu1 %v2798_v8 }
 0x55f   :  { %1354 = vmatpush1.bf16.msra.mxu0 %v2804_v12  ;;  %1395 = vmatpush1.bf16.msra.mxu1 %v2810_v7 }
 0x560   :  { %1355 = vmatprep.subr.bf16.mxu0 %v2816_v23  ;;  %1396 = vmatprep.subr.bf16.mxu1 %v2822_v30 }
 0x563   :  { %1356 = vmatpush1.bf16.msra.mxu0 %v2828_v31  ;;  %1397 = vmatpush1.bf16.msra.mxu1 %v2834_v15 }
 0x564   :  { %1357 = vmatprep.subr.bf16.mxu0 %v2840_v38  ;;  %1398 = vmatprep.subr.bf16.mxu1 %v2846_v39 }
 0x567   :  { %1358 = vmatpush1.bf16.msra.mxu0 %v2852_v40  ;;  %1399 = vmatpush1.bf16.msra.mxu1 %v2858_v41 }
 0x568   :  { %1359 = vmatprep.subr.bf16.mxu0 %v2371_v56  ;;  %1400 = vmatprep.subr.bf16.mxu1 %v2376_v57 }
 0x56b   :  { %1360 = vmatpush1.bf16.msra.mxu0 %v2383_v58  ;;  %1401 = vmatpush1.bf16.msra.mxu1 %v2388_v59  ;;  %v3022_v58 = vld [vmem:[#allocation14_spill] sm:$0xff] }
 0x56c   :  { %1361 = vmatprep.subr.bf16.mxu0 %v2395_v60  ;;  %1402 = vmatprep.subr.bf16.mxu1 %v2400_v61  ;;  %v3023_v60 = vld [vmem:[#allocation15_spill] sm:$0xff] }
 0x56f   :  { %1362 = vmatpush1.bf16.msra.mxu0 %v2412_v63  ;;  %1403 = vmatpush1.bf16.msra.mxu1 %v2417_v0 }
 0x570   :  { %1363 = vmatprep.subr.bf16.mxu0 %v2424_v2  ;;  %1404 = vmatprep.subr.bf16.mxu1 %v2429_v3 }
 0x573   :  { %1364 = vmatpush1.bf16.msra.mxu0 %v2436_v4  ;;  %1405 = vmatpush1.bf16.msra.mxu1 %v2441_v5 }
 0x574   :  { %1465 = vmatprep.subr.bf16.mxu0 %v2734_v36  ;;  %1506 = vmatprep.subr.bf16.mxu1 %v2740_v37 }
 0x629   :  { %v1267_v56 = vpop.f32.mrb[36].mxu0  ;;  %v1308_v57 = vpop.f32.mrb[36].mxu1 }
 0x62a   :  { %v1315_v59 = vadd.f32 %v1267_v56, %v3022_v58  ;;  %v1317_v61 = vadd.f32 %v1308_v57, %v3023_v60  ;;  %v1269_v63 = vpop.f32.mrb[37].mxu0  ;;  %v1310_v0 = vpop.f32.mrb[37].mxu1 }
 0x62b   :  { %v1316_v2 = vadd.f32 %v1269_v63, %v3024_v42  ;;  %v1318_v3 = vadd.f32 %v1310_v0, %v3025_v43  ;;  %v1271_v45 = vpop.f32.mrb[38].mxu0  ;;  %v1312_v4 = vpop.f32.mrb[38].mxu1 }
 0x62c   :  { %v1781_v46 = vmul.f32 -1.442695, %v1315_v59  ;;  %v1272_v5 = vpop.f32.mrb[39].mxu0  ;;  %v1313_v47 = vpop.f32.mrb[39].mxu1 }
 0x62d   :  { %v1782_v36 = vmul.f32 -1.442695, %v1316_v2  ;;  %v1783_v37 = vmul.f32 -1.442695, %v1318_v3 }
 0x62e   :  { %2020 = vpow2.f32 %v1781_v46 }
 0x62f   :  { %2022 = vpow2.f32 %v1782_v36 }
 0x630   :  { %2024 = vpow2.f32 %v1783_v37  ;;  %v1932_v37 = vld [vmem:[%s2986_s4] sm:$0xff]  }
 0x631   :  { %2026 = vtanh.f32 %v1317_v61 }
 0x638   :  { %v2021_v48 = vpop.eup %2020 }
 0x639   :  { %v2023_v49 = vpop.eup %2022  ;;  %v1322_v50 = vadd.f32 1.0, %v2021_v48  ;;  %v2102_v48 = vmov 0.0  }
 0x63a   :  { %v1328_v51 = vadd.f32 1.0, %v2023_v49  ;;  %v2025_v52 = vpop.eup %2024  ;;  %v1933_v49 = vld [vmem:[%s2986_s4 + $0x8] sm:$0xff]  }
 0x63b   :  { %2028 = vrcp.f32 %v1322_v50  ;;  %v2027_v54 = vpop.eup %2026  ;;  %v1335_v16 = vadd.f32 1.0, %v2025_v52  ;;  %v1934_v50 = vld [vmem:[%s2986_s4 + $0x10] sm:$0xff]   ;;  %v1936_v52 = vld [vmem:[%s2986_s4 + $0x20] sm:$0xff]  }
 0x63c   :  { %2030 = vrcp.f32 %v1328_v51  ;;  %v1935_v51 = vld [vmem:[%s2986_s4 + $0x18] sm:$0xff]  }
 0x63d   :  { %2032 = vrcp.f32 %v1335_v16 }
 0x645   :  { %v2029_v55 = vpop.eup %2028 }
 0x646   :  { %v2031_v6 = vpop.eup %2030  ;;  %v1339_v14 = vmul.f32 %v2029_v55, %v2027_v54  ;;  %v1937_v54 = vld [vmem:[%s2986_s4 + $0x28] sm:$0xff]   ;;  %v1938_v55 = vld [vmem:[%s2986_s4 + $0x30] sm:$0xff]  }
 0x647   :  { %v1338_v18 = vmul.f32 %v2031_v6, %v2748_v53  ;;  %v2033_v19 = vpop.eup %2032  ;;  %v2094_v53 = vld [vmem:[%s2984_s2 + $0xc0] ss:$16 sps:$4 sm:$0xff]   ;;  %v1939_v6 = vld [vmem:[%s2986_s4 + $0x38] sm:$0xff]  }
 0x649   :  { %v2880_v17 = vadd.f32 %v1339_v14, %v1338_v18  ;;  %v3030_v18 = vld [vmem:[#allocation22_spill] sm:$0xff] }
 0x64b   :  { %2034 = vtanh.f32 %v2880_v17 }
 0x655   :  { %v2035_v1 = vpop.eup %2034 }
 0x656   :  { %v1342_v20 = vmul.f32 %v2035_v1, %v2033_v19  ;;  %v3031_v19 = vld [vmem:[#allocation23_spill] sm:$0xff] }
 0x658   :  { %v1348_v21 = vpack.c.bf16 %v1342_v20, %v1342_v20 }
 0x65a   :  { %1382 = vmatmul.mubr.bf16.vlgmr.msra.gmra.mrb[40].mxu0 %v1348_v21  ;;  %1423 = vmatmul.mubr.bf16.vlgmr.msra.gmra.mrb[40].mxu1 %v1348_v21 }
 0x65b   :  { %1466 = vmatpush1.bf16.msra.mxu0 %v2754_v62  ;;  %1507 = vmatpush1.bf16.msra.mxu1 %v2760_v29  ;;  %v2099_v62 = vld [vmem:[%s2984_s2 + $0xe8] ss:$16 sps:$4 sm:$0xff]  }
 0x65c   :  { %1467 = vmatprep.subr.bf16.mxu0 %v2766_v25  ;;  %1508 = vmatprep.subr.bf16.mxu1 %v2772_v11  ;;  %v3026_v11 = vld [vmem:[#allocation18_spill] sm:$0xff] }
 0x65d   :  { %1497 = vmatprep.mubr.bf16.mxu0 %v3012_v22  ;;  %1538 = vmatprep.mubr.bf16.mxu1 %v3012_v22  ;;  %v2088_v22 = vld [vmem:[%s2984_s2 + $0xa4] ss:$16 sps:$4 sm:$0xff]  }
 0x65f   :  { %1468 = vmatpush1.bf16.msra.mxu0 %v2780_v35  ;;  %1509 = vmatpush1.bf16.msra.mxu1 %v2786_v10  ;;  %v3027_v10 = vld [vmem:[#allocation19_spill] sm:$0xff] }
 0x660   :  { %1469 = vmatprep.subr.bf16.mxu0 %v2792_v13  ;;  %1510 = vmatprep.subr.bf16.mxu1 %v2798_v8 }
 0x663   :  { %1470 = vmatpush1.bf16.msra.mxu0 %v2804_v12  ;;  %1511 = vmatpush1.bf16.msra.mxu1 %v2810_v7  ;;  %v3028_v7 = vld [vmem:[#allocation20_spill] sm:$0xff] }
 0x664   :  { %1471 = vmatprep.subr.bf16.mxu0 %v2816_v23  ;;  %1512 = vmatprep.subr.bf16.mxu1 %v2822_v30  ;;  %v3029_v30 = vld [vmem:[#allocation21_spill] sm:$0xff] }
 0x667   :  { %1472 = vmatpush1.bf16.msra.mxu0 %v2828_v31  ;;  %1513 = vmatpush1.bf16.msra.mxu1 %v2834_v15 }
 0x668   :  { %1473 = vmatprep.subr.bf16.mxu0 %v2840_v38  ;;  %1514 = vmatprep.subr.bf16.mxu1 %v2846_v39 }
 0x66b   :  { %1474 = vmatpush1.bf16.msra.mxu0 %v2852_v40  ;;  %1515 = vmatpush1.bf16.msra.mxu1 %v2858_v41 }
 0x66c   :  { %1475 = vmatprep.subr.bf16.mxu0 %v2088_v22  ;;  %1516 = vmatprep.subr.bf16.mxu1 %v2089_v27  ;;  %v3032_v22 = vld [vmem:[#allocation24_spill] sm:$0xff] }
 0x66f   :  { %1476 = vmatpush1.bf16.msra.mxu0 %v2090_v9  ;;  %1517 = vmatpush1.bf16.msra.mxu1 %v2091_v24  ;;  %v3033_v9 = vld [vmem:[#allocation25_spill] sm:$0xff] }
 0x670   :  { %1477 = vmatprep.subr.bf16.mxu0 %v2092_v26  ;;  %1518 = vmatprep.subr.bf16.mxu1 %v2093_v28 }
 0x673   :  { %1478 = vmatpush1.bf16.msra.mxu0 %v2094_v53  ;;  %1519 = vmatpush1.bf16.msra.mxu1 %v2095_v33 }
 0x674   :  { %1479 = vmatprep.subr.bf16.mxu0 %v2096_v34  ;;  %1520 = vmatprep.subr.bf16.mxu1 %v2097_v32 }
 0x677   :  { %1480 = vmatpush1.bf16.msra.mxu0 %v2098_v44  ;;  %1521 = vmatpush1.bf16.msra.mxu1 %v2099_v62 }
 0x678   :  { %1808 = vmatprep.subr.bf16.mxu0 %v2102_v48 }
 0x72d   :  { %v1383_v29 = vpop.f32.mrb[40].mxu0  ;;  %v1424_v25 = vpop.f32.mrb[40].mxu1 }
 0x72e   :  { %v1431_v35 = vadd.f32 %v1383_v29, %v3026_v11  ;;  %v1433_v13 = vadd.f32 %v1424_v25, %v3027_v10  ;;  %v1385_v8 = vpop.f32.mrb[41].mxu0  ;;  %v1426_v12 = vpop.f32.mrb[41].mxu1 }
 0x72f   :  { %v1432_v23 = vadd.f32 %v1385_v8, %v3028_v7  ;;  %v1434_v31 = vadd.f32 %v1426_v12, %v3029_v30  ;;  %v1387_v15 = vpop.f32.mrb[42].mxu0  ;;  %v1428_v38 = vpop.f32.mrb[42].mxu1 }
 0x730   :  { %v1784_v39 = vmul.f32 -1.442695, %v1431_v35  ;;  %v1388_v40 = vpop.f32.mrb[43].mxu0  ;;  %v1429_v41 = vpop.f32.mrb[43].mxu1 }
 0x731   :  { %v1785_v56 = vmul.f32 -1.442695, %v1432_v23  ;;  %v1786_v57 = vmul.f32 -1.442695, %v1434_v31  ;;  %v1790_v40 = vld [vmem:[%s2987_s5] ss:$0 sm:$0xff] }
 0x732   :  { %2036 = vpow2.f32 %v1784_v39 }
 0x733   :  { %2038 = vpow2.f32 %v1785_v56 }
 0x734   :  { %2040 = vpow2.f32 %v1786_v57 }
 0x735   :  { %2042 = vtanh.f32 %v1433_v13 }
 0x73c   :  { %v2037_v58 = vpop.eup %2036 }
 0x73d   :  { %v2039_v59 = vpop.eup %2038  ;;  %v1438_v60 = vadd.f32 1.0, %v2037_v58 }
 0x73e   :  { %v1444_v61 = vadd.f32 1.0, %v2039_v59  ;;  %v2041_v63 = vpop.eup %2040 }
 0x73f   :  { %2044 = vrcp.f32 %v1438_v60  ;;  %v2043_v0 = vpop.eup %2042  ;;  %v1451_v3 = vadd.f32 1.0, %v2041_v63 }
 0x740   :  { %2046 = vrcp.f32 %v1444_v61 }
 0x741   :  { %2048 = vrcp.f32 %v1451_v3 }
 0x749   :  { %v2045_v42 = vpop.eup %2044 }
 0x74a   :  { %v2047_v2 = vpop.eup %2046  ;;  %v1455_v43 = vmul.f32 %v2045_v42, %v2043_v0 }
 0x74b   :  { %v1454_v45 = vmul.f32 %v2047_v2, %v2880_v17  ;;  %v2049_v46 = vpop.eup %2048 }
 0x74d   :  { %v2944_v4 = vadd.f32 %v1455_v43, %v1454_v45 }
 0x74f   :  { %2050 = vtanh.f32 %v2944_v4 }
 0x759   :  { %v2051_v5 = vpop.eup %2050 }
 0x75a   :  { %v1458_v47 = vmul.f32 %v2051_v5, %v2049_v46 }
 0x75c   :  { %v1464_v36 = vpack.c.bf16 %v1458_v47, %v1458_v47 }
 0x75e   :  { %1498 = vmatmul.mubr.bf16.vlgmr.msra.gmra.mrb[44].mxu0 %v1464_v36  ;;  %1539 = vmatmul.mubr.bf16.vlgmr.msra.gmra.mrb[44].mxu1 %v1464_v36 }
 0x75f   :  { %1809 = vmatpush3.bf16.msra.mxu0 %v1932_v37  ;;  %1824 = vmatprep.mubr.msk.bf16.mxu0 %vm2103_vm0, %v2102_v48 }
 0x760   :  { %1810 = vmatprep.subr.bf16.mxu0 %v2102_v48 }
 0x763   :  { %1811 = vmatpush3.bf16.msra.mxu0 %v1933_v49 }
 0x764   :  { %1812 = vmatprep.subr.bf16.mxu0 %v2102_v48 }
 0x767   :  { %1813 = vmatpush3.bf16.msra.mxu0 %v1934_v50 }
 0x768   :  { %1814 = vmatprep.subr.bf16.mxu0 %v2102_v48 }
 0x76b   :  { %1815 = vmatpush3.bf16.msra.mxu0 %v1935_v51 }
 0x76c   :  { %1816 = vmatprep.subr.bf16.mxu0 %v2102_v48 }
 0x76f   :  { %1817 = vmatpush3.bf16.msra.mxu0 %v1936_v52 }
 0x770   :  { %1818 = vmatprep.subr.bf16.mxu0 %v2102_v48 }
 0x773   :  { %1819 = vmatpush3.bf16.msra.mxu0 %v1937_v54 }
 0x774   :  { %1820 = vmatprep.subr.bf16.mxu0 %v2102_v48 }
 0x777   :  { %1821 = vmatpush3.bf16.msra.mxu0 %v1938_v55 }
 0x778   :  { %1822 = vmatprep.subr.bf16.mxu0 %v2102_v48 }
 0x77b   :  { %1823 = vmatpush3.bf16.msra.mxu0 %v1939_v6 }
 0x831   :  { %v1499_v14 = vpop.f32.mrb[44].mxu0  ;;  %v1540_v16 = vpop.f32.mrb[44].mxu1 }
 0x832   :  { %v1547_v17 = vadd.f32 %v1499_v14, %v3030_v18  ;;  %v1549_v1 = vadd.f32 %v1540_v16, %v3031_v19  ;;  %v1501_v20 = vpop.f32.mrb[45].mxu0  ;;  %v1542_v21 = vpop.f32.mrb[45].mxu1 }
 0x833   :  { %v1548_v27 = vadd.f32 %v1501_v20, %v3032_v22  ;;  %v1550_v24 = vadd.f32 %v1542_v21, %v3033_v9  ;;  %v1503_v26 = vpop.f32.mrb[46].mxu0  ;;  %v1544_v28 = vpop.f32.mrb[46].mxu1 }
 0x834   :  { %v1787_v53 = vmul.f32 -1.442695, %v1547_v17  ;;  %v1504_v33 = vpop.f32.mrb[47].mxu0  ;;  %v1545_v34 = vpop.f32.mrb[47].mxu1 }
 0x835   :  { %v1788_v32 = vmul.f32 -1.442695, %v1548_v27  ;;  %v1789_v44 = vmul.f32 -1.442695, %v1550_v24 }
 0x836   :  { %2052 = vpow2.f32 %v1787_v53 }
 0x837   :  { %2054 = vpow2.f32 %v1788_v32 }
 0x838   :  { %2056 = vpow2.f32 %v1789_v44 }
 0x839   :  { %2058 = vtanh.f32 %v1549_v1 }
 0x840   :  { %v2053_v62 = vpop.eup %2052 }
 0x841   :  { %v2055_v29 = vpop.eup %2054  ;;  %v1554_v25 = vadd.f32 1.0, %v2053_v62 }
 0x842   :  { %v1560_v11 = vadd.f32 1.0, %v2055_v29  ;;  %v2057_v35 = vpop.eup %2056 }
 0x843   :  { %2060 = vrcp.f32 %v1554_v25  ;;  %v2059_v10 = vpop.eup %2058  ;;  %v1567_v7 = vadd.f32 1.0, %v2057_v35 }
 0x844   :  { %2062 = vrcp.f32 %v1560_v11 }
 0x845   :  { %2064 = vrcp.f32 %v1567_v7 }
 0x84d   :  { %v2061_v13 = vpop.eup %2060 }
 0x84e   :  { %v2063_v8 = vpop.eup %2062  ;;  %v1571_v12 = vmul.f32 %v2061_v13, %v2059_v10 }
 0x84f   :  { %v1570_v23 = vmul.f32 %v2063_v8, %v2944_v4  ;;  %v2065_v31 = vpop.eup %2064 }
 0x851   :  { %v1572_v30 = vadd.f32 %v1571_v12, %v1570_v23 }
 0x853   :  { %2066 = vtanh.f32 %v1572_v30 }
 0x85d   :  { %v2067_v15 = vpop.eup %2066 }
 0x85e   :  { %v1574_v38 = vmul.f32 %v2067_v15, %v2065_v31 }
 0x860   :  { %v1580_v39 = vpack.c.bf16 %v1574_v38, %v1574_v38 }
 0x862   :  { %1825 = vmatmul.mubr.bf16.vlgmr.msra.gmra.mrb[48].mxu0 %v1580_v39 }
 0x935   :  { %v1686_v41 = vpop.f32.mrb[48].mxu0 }
 0x936   :  { %v1687_v56 = vadd.f32 %v1790_v40, %v1686_v41  ;;  %v1826_v57 = vpop.f32.mrb[49].mxu0 }
 0x937   :  { %v1689_v58 = vpop.f32.mrb[50].mxu0 }
 0x938   :  { %1693 = vst.msk [vmem:[%s2988_s6] sm:$0xff] %vm1692_vm1, %v1687_v56  ;;  %v1827_v59 = vpop.f32.mrb[51].mxu0 }

// kernel: _forward_impl.2
= control target key start
LH: loop header
LB: loop body
LE: loop exit
PB: predicated region body
PF: predicated region fallthrough
CT: control target
= control target key end

     0   :  { %9 = vsyncpa [#allocation6], 0  ;;  %s4254_s0 = inlined_call_operand.vmem [shape: bf16[8,8,128], index: 0, kind: input, shape index: {}]   ;;  %s4255_s1 = inlined_call_operand.hbm [shape: bf16[128,512], index: 1, kind: input, shape index: {}]   ;;  %s4256_s2 = inlined_call_operand.hbm [shape: bf16[128,512], index: 2, kind: input, shape index: {}]   ;;  %s4257_s3 = inlined_call_operand.vmem [shape: f32[1,512], index: 3, kind: input, shape index: {}]   ;;  %s4258_s4 = inlined_call_operand.vmem [shape: bf16[8,8,128], index: 4, kind: output, shape index: {}]  }
   0x1   :  { %10 = vsyncpa [#allocation8], 0  ;;  %s3618_s15 = smov [#allocation5]   ;;  %s3570_s19 = scalar_lea.hbm %s4255_s1, 4096 }
   0x2   :  { %s18_s16 = sshll.u32 %s3618_s15, 4  ;;  %p3571_p0 = scmp.ne.s32.totalorder %s4255_s1, %s3570_s19  ;;  %s19_s16 = int_to_ptr.vmem [resolvable:$true] %s18_s16 }
   0x3   :  { %p3574_p1 = scmp.lt.u32.totalorder %s3570_s19, %s4255_s1 }
   0x5   :  { %p3576_p2 = pnand %p3574_p1, %p3571_p0 }
   0x7   :  { %3579 = shalt.err (!%p3576_p2)
}
   0x8   :  { %s3580_s24 = scalar_lea.vmem %s19_s16, 4096  ;;  %p3585_p4 = scmp.lt.s32.totalorder %s19_s16, %s19_s16 }
   0x9   :  { %p3581_p3 = scmp.ne.s32.totalorder %s19_s16, %s3580_s24  ;;  %p3586_p5 = scmp.lt.s32.totalorder %s3580_s24, %s3580_s24 }
   0xb   :  { %p3587_p6 = por %p3586_p5, %p3585_p4 }
   0xd   :  { %p3588_p7 = pnand %p3587_p6, %p3581_p3 }
   0xf   :  { %3591 = shalt.err (!%p3588_p7)
}
  0x10   :  { %s3619_s25 = smov 256   ;;  %s3620_s26 = smov 16  }
  0x11   :  { %24 = dma.hbm_to_vmem [thread:$0]  %s4255_s1, 4096, %s19_s16, [#allocation6], %s3619_s25, %s3619_s25, %s3620_s26  }
  0x12   :  { %s3621_s29 = smov [#allocation7]   ;;  %s3592_s7 = scalar_lea.hbm %s4256_s2, 4096 }
  0x13   :  { %s30_s30 = sshll.u32 %s3621_s29, 4  ;;  %p3593_p8 = scmp.ne.s32.totalorder %s4256_s2, %s3592_s7  ;;  %s31_s30 = int_to_ptr.vmem [resolvable:$true] %s30_s30 }
  0x14   :  { %p3596_p9 = scmp.lt.u32.totalorder %s3592_s7, %s4256_s2 }
  0x16   :  { %p3598_p10 = pnand %p3596_p9, %p3593_p8 }
  0x18   :  { %3601 = shalt.err (!%p3598_p10)
}
  0x19   :  { %s3602_s12 = scalar_lea.vmem %s31_s30, 4096  ;;  %p3607_p12 = scmp.lt.s32.totalorder %s31_s30, %s31_s30 }
  0x1a   :  { %p3603_p11 = scmp.ne.s32.totalorder %s31_s30, %s3602_s12  ;;  %p3608_p13 = scmp.lt.s32.totalorder %s3602_s12, %s3602_s12 }
  0x1c   :  { %p3609_p0 = por %p3608_p13, %p3607_p12 }
  0x1e   :  { %p3610_p1 = pnand %p3609_p0, %p3603_p11 }
  0x20   :  { %3613 = shalt.err (!%p3610_p1)
}
  0x21   :  { %36 = dma.hbm_to_vmem [thread:$0]  %s4256_s2, 4096, %s31_s30, [#allocation8], %s3619_s25, %s3619_s25, %s3620_s26  }
  0x22   :  { %3614 = dma.done.wait [#allocation6], 4096  }
  0x23   :  { %3615 = vsyncadd [#allocation6], 4294963200 }
  0x24   :  { %3616 = dma.done.wait [#allocation8], 4096  }
  0x25   :  { %3617 = vsyncadd [#allocation8], 4294963200  ;;  %v4259_v0 = vmov 0   ;;  %v3294_v1 = vld [vmem:[#allocation5 + $0x4] ss:$16 sps:$4 sm:$0xff]   ;;  %v3355_v44 = vld [vmem:[%s4254_s0 + $0x8] sm:$0xff]  }
  0x26   :  { %330 = vmatprep.mubr.bf16.mxu0 %v4259_v0  ;;  %403 = vmatprep.mubr.bf16.mxu1 %v4259_v0  ;;  %v3296_v2 = vld [vmem:[#allocation5 + $0xc] ss:$16 sps:$4 sm:$0xff]   ;;  %v3298_v3 = vld [vmem:[#allocation5] ss:$16 sps:$4 sm:$0xff]   ;;  %v3299_v4 = vld [vmem:[#allocation5 + $0x8] ss:$16 sps:$4 sm:$0xff]  }
  0x27   :  { %298 = vmatprep.subr.bf16.mxu0 %v3294_v1  ;;  %371 = vmatprep.subr.bf16.mxu1 %v3296_v2  ;;  %v3300_v5 = vld [vmem:[#allocation5 + $0x24] ss:$16 sps:$4 sm:$0xff]   ;;  %v3302_v6 = vld [vmem:[#allocation5 + $0x2c] ss:$16 sps:$4 sm:$0xff]   ;;  %v3304_v7 = vld [vmem:[#allocation5 + $0x20] ss:$16 sps:$4 sm:$0xff]  }
  0x28   :  { %299 = vmatpush1.bf16.msra.mxu0 %v3298_v3  ;;  %372 = vmatpush1.bf16.msra.mxu1 %v3299_v4  ;;  %v3305_v8 = vld [vmem:[#allocation5 + $0x28] ss:$16 sps:$4 sm:$0xff]   ;;  %v3306_v9 = vld [vmem:[#allocation5 + $0x44] ss:$16 sps:$4 sm:$0xff]   ;;  %v3308_v10 = vld [vmem:[#allocation5 + $0x4c] ss:$16 sps:$4 sm:$0xff]  }
  0x29   :  { %300 = vmatprep.subr.bf16.mxu0 %v3300_v5  ;;  %373 = vmatprep.subr.bf16.mxu1 %v3302_v6  ;;  %v3310_v11 = vld [vmem:[#allocation5 + $0x40] ss:$16 sps:$4 sm:$0xff]   ;;  %v3311_v12 = vld [vmem:[#allocation5 + $0x48] ss:$16 sps:$4 sm:$0xff]   ;;  %v3312_v13 = vld [vmem:[#allocation5 + $0x64] ss:$16 sps:$4 sm:$0xff]  }
  0x2a   :  { %v3314_v14 = vld [vmem:[#allocation5 + $0x6c] ss:$16 sps:$4 sm:$0xff]   ;;  %v3316_v15 = vld [vmem:[#allocation5 + $0x60] ss:$16 sps:$4 sm:$0xff]   ;;  %v3317_v16 = vld [vmem:[#allocation5 + $0x68] ss:$16 sps:$4 sm:$0xff]  }
  0x2b   :  { %v3318_v17 = vld [vmem:[#allocation5 + $0x84] ss:$16 sps:$4 sm:$0xff]   ;;  %v3320_v18 = vld [vmem:[#allocation5 + $0x8c] ss:$16 sps:$4 sm:$0xff]   ;;  %v3322_v19 = vld [vmem:[#allocation5 + $0x80] ss:$16 sps:$4 sm:$0xff]  }
  0x2c   :  { %301 = vmatpush1.bf16.msra.mxu0 %v3304_v7  ;;  %374 = vmatpush1.bf16.msra.mxu1 %v3305_v8  ;;  %v3323_v20 = vld [vmem:[#allocation5 + $0x88] ss:$16 sps:$4 sm:$0xff]   ;;  %v3324_v21 = vld [vmem:[#allocation5 + $0xa4] ss:$16 sps:$4 sm:$0xff]   ;;  %v3326_v22 = vld [vmem:[#allocation5 + $0xac] ss:$16 sps:$4 sm:$0xff]   ;;  %v94_v7 = vlaneseq }
  0x2d   :  { %302 = vmatprep.subr.bf16.mxu0 %v3306_v9  ;;  %375 = vmatprep.subr.bf16.mxu1 %v3308_v10  ;;  %v3328_v23 = vld [vmem:[#allocation5 + $0xa0] ss:$16 sps:$4 sm:$0xff]   ;;  %v3329_v24 = vld [vmem:[#allocation5 + $0xa8] ss:$16 sps:$4 sm:$0xff]   ;;  %v3330_v25 = vld [vmem:[#allocation5 + $0xc4] ss:$16 sps:$4 sm:$0xff]  }
  0x2e   :  { %v3332_v26 = vld [vmem:[#allocation5 + $0xcc] ss:$16 sps:$4 sm:$0xff]   ;;  %v3334_v27 = vld [vmem:[#allocation5 + $0xc0] ss:$16 sps:$4 sm:$0xff]   ;;  %v3335_v28 = vld [vmem:[#allocation5 + $0xc8] ss:$16 sps:$4 sm:$0xff]  }
  0x2f   :  { %v3336_v29 = vld [vmem:[#allocation5 + $0xe4] ss:$16 sps:$4 sm:$0xff]   ;;  %v3338_v30 = vld [vmem:[#allocation5 + $0xec] ss:$16 sps:$4 sm:$0xff]   ;;  %v3340_v31 = vld [vmem:[#allocation5 + $0xe0] ss:$16 sps:$4 sm:$0xff]  }
  0x30   :  { %303 = vmatpush1.bf16.msra.mxu0 %v3310_v11  ;;  %376 = vmatpush1.bf16.msra.mxu1 %v3311_v12  ;;  %v3341_v32 = vld [vmem:[#allocation5 + $0xe8] ss:$16 sps:$4 sm:$0xff]   ;;  %v3675_v33 = vld [vmem:[#allocation7 + $0x4] ss:$16 sps:$4 sm:$0xff]   ;;  %v3677_v34 = vld [vmem:[#allocation7 + $0xc] ss:$16 sps:$4 sm:$0xff]  }
  0x31   :  { %304 = vmatprep.subr.bf16.mxu0 %v3312_v13  ;;  %377 = vmatprep.subr.bf16.mxu1 %v3314_v14  ;;  %v3342_v35 = vld [vmem:[%s4254_s0] sm:$0xff]   ;;  %v3684_v37 = vld [vmem:[#allocation7 + $0x8] ss:$16 sps:$4 sm:$0xff]   ;;  %v3690_v39 = vld [vmem:[#allocation7 + $0x2c] ss:$16 sps:$4 sm:$0xff]   ;;  %v3623_v6 = vmov 0.0|0.0  }
  0x32   :  { %v3682_v36 = vld [vmem:[#allocation7] ss:$16 sps:$4 sm:$0xff]   ;;  %v3688_v38 = vld [vmem:[#allocation7 + $0x24] ss:$16 sps:$4 sm:$0xff]   ;;  %v3696_v41 = vld [vmem:[#allocation7 + $0x28] ss:$16 sps:$4 sm:$0xff]  }
  0x33   :  { %v3692_v40 = vld [vmem:[#allocation7 + $0x20] ss:$16 sps:$4 sm:$0xff]   ;;  %v3700_v42 = vld [vmem:[#allocation7 + $0x44] ss:$16 sps:$4 sm:$0xff]   ;;  %v3702_v43 = vld [vmem:[#allocation7 + $0x4c] ss:$16 sps:$4 sm:$0xff]  }
  0x34   :  { %305 = vmatpush1.bf16.msra.mxu0 %v3316_v15  ;;  %378 = vmatpush1.bf16.msra.mxu1 %v3317_v16  ;;  %v3709_v45 = vld [vmem:[#allocation7 + $0x40] ss:$16 sps:$4 sm:$0xff]   ;;  %v3711_v46 = vld [vmem:[#allocation7 + $0x48] ss:$16 sps:$4 sm:$0xff]   ;;  %v3715_v47 = vld [vmem:[#allocation7 + $0x64] ss:$16 sps:$4 sm:$0xff]  }
  0x35   :  { %306 = vmatprep.subr.bf16.mxu0 %v3318_v17  ;;  %379 = vmatprep.subr.bf16.mxu1 %v3320_v18  ;;  %v3719_v48 = vld [vmem:[#allocation7 + $0x6c] ss:$16 sps:$4 sm:$0xff]   ;;  %v3721_v49 = vld [vmem:[#allocation7 + $0x60] ss:$16 sps:$4 sm:$0xff]   ;;  %v3723_v50 = vld [vmem:[#allocation7 + $0x68] ss:$16 sps:$4 sm:$0xff]  }
  0x36   :  { %v3727_v51 = vld [vmem:[#allocation7 + $0x84] ss:$16 sps:$4 sm:$0xff]   ;;  %v3731_v52 = vld [vmem:[#allocation7 + $0x8c] ss:$16 sps:$4 sm:$0xff]   ;;  %v3738_v54 = vld [vmem:[#allocation7 + $0x80] ss:$16 sps:$4 sm:$0xff]  }
  0x37   :  { %v3368_v53 = vld [vmem:[%s4254_s0 + $0x10] sm:$0xff]   ;;  %v3740_v55 = vld [vmem:[#allocation7 + $0x88] ss:$16 sps:$4 sm:$0xff]   ;;  %v3744_v57 = vld [vmem:[#allocation7 + $0xac] ss:$16 sps:$4 sm:$0xff]   ;;  %v95_v8 = vshrl.u32 %v94_v7, 7 }
  0x38   :  { %307 = vmatpush1.bf16.msra.mxu0 %v3322_v19  ;;  %380 = vmatpush1.bf16.msra.mxu1 %v3323_v20  ;;  %v3742_v56 = vld [vmem:[#allocation7 + $0xa4] ss:$16 sps:$4 sm:$0xff]   ;;  %v3750_v58 = vld [vmem:[#allocation7 + $0xa0] ss:$16 sps:$4 sm:$0xff]   ;;  %v3752_v59 = vld [vmem:[#allocation7 + $0xa8] ss:$16 sps:$4 sm:$0xff]  }
  0x39   :  { %308 = vmatprep.subr.bf16.mxu0 %v3324_v21  ;;  %381 = vmatprep.subr.bf16.mxu1 %v3326_v22  ;;  %v3754_v60 = vld [vmem:[#allocation7 + $0xc4] ss:$16 sps:$4 sm:$0xff]   ;;  %v3756_v61 = vld [vmem:[#allocation7 + $0xcc] ss:$16 sps:$4 sm:$0xff]   ;;  %v3767_v63 = vld [vmem:[#allocation7 + $0xc0] ss:$16 sps:$4 sm:$0xff]  }
  0x3a   :  { %v3381_v62 = vld [vmem:[%s4254_s0 + $0x18] sm:$0xff]   ;;  %v3771_v2 = vld [vmem:[#allocation7 + $0xe4] ss:$16 sps:$4 sm:$0xff]   ;;  %v3781_v4 = vld [vmem:[#allocation7 + $0xe0] ss:$16 sps:$4 sm:$0xff]   ;;  %v104_v9 = vsub.s32 2, %v95_v8 }
  0x3b   :  { %v3769_v1 = vld [vmem:[#allocation7 + $0xc8] ss:$16 sps:$4 sm:$0xff]   ;;  %v3777_v3 = vld [vmem:[#allocation7 + $0xec] ss:$16 sps:$4 sm:$0xff]   ;;  %v108_v10 = vsub.s32 3, %v95_v8  ;;  %v96_v11 = vsub.s32 0, %v95_v8 }
  0x3c   :  { %309 = vmatpush1.bf16.msra.mxu0 %v3328_v23  ;;  %382 = vmatpush1.bf16.msra.mxu1 %v3329_v24  ;;  %v3783_v5 = vld [vmem:[#allocation7 + $0xe8] ss:$16 sps:$4 sm:$0xff]   ;;  %v92_v12 = vld [vmem:[%s4257_s3] sm:$0xf]  ;;  %v100_v13 = vsub.s32 1, %v95_v8 }
  0x3d   :  { %310 = vmatprep.subr.bf16.mxu0 %v3330_v25  ;;  %383 = vmatprep.subr.bf16.mxu1 %v3332_v26  ;;  %v3830_v14 = vrot.slane %v92_v12, %v104_v9  ;;  %v3836_v17 = vrot.slane %v92_v12, %v108_v10  ;;  %v97_v18 = vrot.slane %v92_v12, %v96_v11 }
  0x3e   :  { %v101_v21 = vrot.slane %v92_v12, %v100_v13 }
  0x40   :  { %311 = vmatpush1.bf16.msra.mxu0 %v3334_v27  ;;  %384 = vmatpush1.bf16.msra.mxu1 %v3335_v28 }
  0x41   :  { %312 = vmatprep.subr.bf16.mxu0 %v3336_v29  ;;  %385 = vmatprep.subr.bf16.mxu1 %v3338_v30 }
  0x44   :  { %313 = vmatpush1.bf16.msra.mxu0 %v3340_v31  ;;  %386 = vmatpush1.bf16.msra.mxu1 %v3341_v32 }
  0x45   :  { %675 = vmatprep.subr.bf16.mxu0 %v3675_v33  ;;  %716 = vmatprep.subr.bf16.mxu1 %v3677_v34 }
  0x47   :  { %331 = vmatmul.mubr.bf16.vlgmr.msra.gmra.mrb[0].mxu0 %v3342_v35  ;;  %404 = vmatmul.mubr.bf16.vlgmr.msra.gmra.mrb[0].mxu1 %v3342_v35 }
  0x48   :  { %676 = vmatpush1.bf16.msra.mxu0 %v3682_v36  ;;  %717 = vmatpush1.bf16.msra.mxu1 %v3684_v37 }
  0x49   :  { %677 = vmatprep.subr.bf16.mxu0 %v3688_v38  ;;  %718 = vmatprep.subr.bf16.mxu1 %v3690_v39 }
  0x4a   :  { %340 = vmatprep.mubr.bf16.mxu0 %v4259_v0  ;;  %413 = vmatprep.mubr.bf16.mxu1 %v4259_v0 }
  0x4c   :  { %678 = vmatpush1.bf16.msra.mxu0 %v3692_v40  ;;  %719 = vmatpush1.bf16.msra.mxu1 %v3696_v41 }
  0x4d   :  { %679 = vmatprep.subr.bf16.mxu0 %v3700_v42  ;;  %720 = vmatprep.subr.bf16.mxu1 %v3702_v43 }
  0x4f   :  { %341 = vmatmul.mubr.bf16.gmra.mrb[4].mxu0 %v3355_v44  ;;  %414 = vmatmul.mubr.bf16.gmra.mrb[4].mxu1 %v3355_v44 }
  0x50   :  { %680 = vmatpush1.bf16.msra.mxu0 %v3709_v45  ;;  %721 = vmatpush1.bf16.msra.mxu1 %v3711_v46 }
  0x51   :  { %681 = vmatprep.subr.bf16.mxu0 %v3715_v47  ;;  %722 = vmatprep.subr.bf16.mxu1 %v3719_v48 }
  0x52   :  { %350 = vmatprep.mubr.bf16.mxu0 %v4259_v0  ;;  %423 = vmatprep.mubr.bf16.mxu1 %v4259_v0 }
  0x54   :  { %682 = vmatpush1.bf16.msra.mxu0 %v3721_v49  ;;  %723 = vmatpush1.bf16.msra.mxu1 %v3723_v50 }
  0x55   :  { %683 = vmatprep.subr.bf16.mxu0 %v3727_v51  ;;  %724 = vmatprep.subr.bf16.mxu1 %v3731_v52 }
  0x57   :  { %351 = vmatmul.mubr.bf16.gmra.mrb[8].mxu0 %v3368_v53  ;;  %424 = vmatmul.mubr.bf16.gmra.mrb[8].mxu1 %v3368_v53 }
  0x58   :  { %684 = vmatpush1.bf16.msra.mxu0 %v3738_v54  ;;  %725 = vmatpush1.bf16.msra.mxu1 %v3740_v55 }
  0x59   :  { %685 = vmatprep.subr.bf16.mxu0 %v3742_v56  ;;  %726 = vmatprep.subr.bf16.mxu1 %v3744_v57 }
  0x5a   :  { %360 = vmatprep.mubr.bf16.mxu0 %v4259_v0  ;;  %433 = vmatprep.mubr.bf16.mxu1 %v4259_v0 }
  0x5c   :  { %686 = vmatpush1.bf16.msra.mxu0 %v3750_v58  ;;  %727 = vmatpush1.bf16.msra.mxu1 %v3752_v59 }
  0x5d   :  { %687 = vmatprep.subr.bf16.mxu0 %v3754_v60  ;;  %728 = vmatprep.subr.bf16.mxu1 %v3756_v61 }
  0x5f   :  { %361 = vmatmul.mubr.bf16.gmra.mrb[12].mxu0 %v3381_v62  ;;  %434 = vmatmul.mubr.bf16.gmra.mrb[12].mxu1 %v3381_v62 }
  0x60   :  { %688 = vmatpush1.bf16.msra.mxu0 %v3767_v63  ;;  %729 = vmatpush1.bf16.msra.mxu1 %v3769_v1 }
  0x61   :  { %689 = vmatprep.subr.bf16.mxu0 %v3771_v2  ;;  %730 = vmatprep.subr.bf16.mxu1 %v3777_v3 }
  0x62   :  { %707 = vmatprep.mubr.bf16.mxu0 %v4259_v0  ;;  %748 = vmatprep.mubr.bf16.mxu1 %v4259_v0 }
  0x64   :  { %690 = vmatpush1.bf16.msra.mxu0 %v3781_v4  ;;  %731 = vmatpush1.bf16.msra.mxu1 %v3783_v5 }
  0x65   :  { %984 = vmatprep.subr.bf16.mxu0 %v3675_v33  ;;  %1025 = vmatprep.subr.bf16.mxu1 %v3677_v34 }
  0x67   :  { %708 = vmatmul.mubr.bf16.vlgmr.msra.gmra.mrb[16].mxu0 %v3623_v6  ;;  %749 = vmatmul.mubr.bf16.vlgmr.msra.gmra.mrb[16].mxu1 %v3623_v6 }
  0x68   :  { %985 = vmatpush1.bf16.msra.mxu0 %v3682_v36  ;;  %1026 = vmatpush1.bf16.msra.mxu1 %v3684_v37 }
  0x69   :  { %986 = vmatprep.subr.bf16.mxu0 %v3688_v38  ;;  %1027 = vmatprep.subr.bf16.mxu1 %v3690_v39 }
  0x6a   :  { %1016 = vmatprep.mubr.bf16.mxu0 %v4259_v0  ;;  %1057 = vmatprep.mubr.bf16.mxu1 %v4259_v0 }
  0x6c   :  { %987 = vmatpush1.bf16.msra.mxu0 %v3692_v40  ;;  %1028 = vmatpush1.bf16.msra.mxu1 %v3696_v41 }
  0x6d   :  { %988 = vmatprep.subr.bf16.mxu0 %v3700_v42  ;;  %1029 = vmatprep.subr.bf16.mxu1 %v3702_v43 }
  0x70   :  { %989 = vmatpush1.bf16.msra.mxu0 %v3709_v45  ;;  %1030 = vmatpush1.bf16.msra.mxu1 %v3711_v46 }
  0x71   :  { %990 = vmatprep.subr.bf16.mxu0 %v3715_v47  ;;  %1031 = vmatprep.subr.bf16.mxu1 %v3719_v48 }
  0x74   :  { %991 = vmatpush1.bf16.msra.mxu0 %v3721_v49  ;;  %1032 = vmatpush1.bf16.msra.mxu1 %v3723_v50 }
  0x75   :  { %992 = vmatprep.subr.bf16.mxu0 %v3727_v51  ;;  %1033 = vmatprep.subr.bf16.mxu1 %v3731_v52 }
  0x78   :  { %993 = vmatpush1.bf16.msra.mxu0 %v3738_v54  ;;  %1034 = vmatpush1.bf16.msra.mxu1 %v3740_v55 }
  0x79   :  { %994 = vmatprep.subr.bf16.mxu0 %v3742_v56  ;;  %1035 = vmatprep.subr.bf16.mxu1 %v3744_v57 }
  0x7c   :  { %995 = vmatpush1.bf16.msra.mxu0 %v3750_v58  ;;  %1036 = vmatpush1.bf16.msra.mxu1 %v3752_v59 }
  0x7d   :  { %996 = vmatprep.subr.bf16.mxu0 %v3754_v60  ;;  %1037 = vmatprep.subr.bf16.mxu1 %v3756_v61 }
  0x80   :  { %997 = vmatpush1.bf16.msra.mxu0 %v3767_v63  ;;  %1038 = vmatpush1.bf16.msra.mxu1 %v3769_v1 }
  0x81   :  { %998 = vmatprep.subr.bf16.mxu0 %v3771_v2  ;;  %1039 = vmatprep.subr.bf16.mxu1 %v3777_v3 }
  0x84   :  { %999 = vmatpush1.bf16.msra.mxu0 %v3781_v4  ;;  %1040 = vmatpush1.bf16.msra.mxu1 %v3783_v5 }
  0x85   :  { %1294 = vmatprep.subr.bf16.mxu0 %v3675_v33  ;;  %1335 = vmatprep.subr.bf16.mxu1 %v3677_v34 }
 0x11a   :  { %v3832_v15 = vpop.f32.mrb[0].mxu0  ;;  %v3834_v16 = vpop.f32.mrb[0].mxu1 }
 0x11b   :  { %v334_v19 = vpop.f32.mrb[1].mxu0  ;;  %v407_v20 = vpop.f32.mrb[1].mxu1 }
 0x11c   :  { %v336_v22 = vpop.f32.mrb[2].mxu0  ;;  %v409_v23 = vpop.f32.mrb[2].mxu1 }
 0x11d   :  { %v3838_v24 = vadd.f32 %v336_v22, %v97_v18  ;;  %v338_v25 = vpop.f32.mrb[3].mxu0  ;;  %v3841_v26 = vadd.f32 %v409_v23, %v3830_v14  ;;  %v411_v27 = vpop.f32.mrb[3].mxu1 }
 0x11e   :  { %v3843_v28 = vadd.f32 %v338_v25, %v101_v21  ;;  %v3846_v29 = vadd.f32 %v411_v27, %v3836_v17 }
 0x122   :  { %v342_v30 = vpop.f32.mrb[4].mxu0  ;;  %v415_v31 = vpop.f32.mrb[4].mxu1 }
 0x123   :  { %v3848_v32 = vadd.f32 %v342_v30, %v97_v18  ;;  %v344_v35 = vpop.f32.mrb[5].mxu0  ;;  %v3851_v44 = vadd.f32 %v415_v31, %v3830_v14  ;;  %v417_v53 = vpop.f32.mrb[5].mxu1 }
 0x124   :  { %v3853_v62 = vadd.f32 %v344_v35, %v101_v21  ;;  %v346_v6 = vpop.f32.mrb[6].mxu0  ;;  %v3856_v7 = vadd.f32 %v417_v53, %v3836_v17  ;;  %v419_v8 = vpop.f32.mrb[6].mxu1 }
 0x125   :  { %v3858_v9 = vadd.f32 %v346_v6, %v97_v18  ;;  %v348_v10 = vpop.f32.mrb[7].mxu0  ;;  %v3861_v11 = vadd.f32 %v419_v8, %v3830_v14  ;;  %v421_v12 = vpop.f32.mrb[7].mxu1 }
 0x126   :  { %4261 = vst [vmem:[#allocation11_spill] sm:$0xff] %v3856_v7  ;;  %v3863_v13 = vadd.f32 %v348_v10, %v101_v21  ;;  %v3866_v22 = vadd.f32 %v421_v12, %v3836_v17 }
 0x127   :  { %4262 = vst [vmem:[#allocation12_spill] sm:$0xff] %v3858_v9  ;;  %4263 = vst [vmem:[#allocation13_spill] sm:$0xff] %v3861_v11 }
 0x128   :  { %4264 = vst [vmem:[#allocation14_spill] sm:$0xff] %v3863_v13  ;;  %4265 = vst [vmem:[#allocation15_spill] sm:$0xff] %v3866_v22 }
 0x12a   :  { %v352_v23 = vpop.f32.mrb[8].mxu0  ;;  %v425_v25 = vpop.f32.mrb[8].mxu1 }
 0x12b   :  { %v3868_v27 = vadd.f32 %v352_v23, %v97_v18  ;;  %v354_v30 = vpop.f32.mrb[9].mxu0  ;;  %v3871_v31 = vadd.f32 %v425_v25, %v3830_v14  ;;  %v427_v35 = vpop.f32.mrb[9].mxu1 }
 0x12c   :  { %v3873_v53 = vadd.f32 %v354_v30, %v101_v21  ;;  %v356_v6 = vpop.f32.mrb[10].mxu0  ;;  %v3876_v8 = vadd.f32 %v427_v35, %v3836_v17  ;;  %v429_v10 = vpop.f32.mrb[10].mxu1 }
 0x12d   :  { %4266 = vst [vmem:[#allocation16_spill] sm:$0xff] %v3868_v27  ;;  %4267 = vst [vmem:[#allocation17_spill] sm:$0xff] %v3871_v31  ;;  %v3878_v0 = vadd.f32 %v356_v6, %v97_v18  ;;  %v358_v12 = vpop.f32.mrb[11].mxu0  ;;  %v3881_v22 = vadd.f32 %v429_v10, %v3830_v14  ;;  %v431_v23 = vpop.f32.mrb[11].mxu1 }
 0x12e   :  { %4268 = vst [vmem:[#allocation18_spill] sm:$0xff] %v3873_v53  ;;  %4269 = vst [vmem:[#allocation19_spill] sm:$0xff] %v3876_v8  ;;  %v3883_v27 = vadd.f32 %v358_v12, %v101_v21  ;;  %v3886_v25 = vadd.f32 %v431_v23, %v3836_v17 }
 0x12f   :  { %4270 = vst [vmem:[#allocation20_spill] sm:$0xff] %v3878_v0  ;;  %4271 = vst [vmem:[#allocation21_spill] sm:$0xff] %v3881_v22 }
 0x130   :  { %4272 = vst [vmem:[#allocation22_spill] sm:$0xff] %v3883_v27  ;;  %4273 = vst [vmem:[#allocation23_spill] sm:$0xff] %v3886_v25 }
 0x132   :  { %v362_v31 = vpop.f32.mrb[12].mxu0  ;;  %v435_v30 = vpop.f32.mrb[12].mxu1 }
 0x133   :  { %v3888_v53 = vadd.f32 %v362_v31, %v97_v18  ;;  %v364_v13 = vpop.f32.mrb[13].mxu0  ;;  %v3891_v35 = vadd.f32 %v435_v30, %v3830_v14  ;;  %v437_v6 = vpop.f32.mrb[13].mxu1 }
 0x134   :  { %v3893_v0 = vadd.f32 %v364_v13, %v101_v21  ;;  %v366_v8 = vpop.f32.mrb[14].mxu0  ;;  %v3896_v10 = vadd.f32 %v437_v6, %v3836_v17  ;;  %v439_v12 = vpop.f32.mrb[14].mxu1  ;;  %v333_v13 = vadd.f32 %v3832_v15, %v97_v18  ;;  %v335_v6 = vadd.f32 %v334_v19, %v101_v21 }
 0x135   :  { %4274 = vst [vmem:[#allocation24_spill] sm:$0xff] %v3888_v53  ;;  %4275 = vst [vmem:[#allocation25_spill] sm:$0xff] %v3891_v35  ;;  %v3898_v27 = vadd.f32 %v366_v8, %v97_v18  ;;  %v368_v23 = vpop.f32.mrb[15].mxu0  ;;  %v3901_v25 = vadd.f32 %v439_v12, %v3830_v14  ;;  %v441_v31 = vpop.f32.mrb[15].mxu1 }
 0x136   :  { %4276 = vst [vmem:[#allocation26_spill] sm:$0xff] %v3893_v0  ;;  %4277 = vst [vmem:[#allocation27_spill] sm:$0xff] %v3896_v10  ;;  %v3903_v53 = vadd.f32 %v368_v23, %v101_v21  ;;  %v3906_v30 = vadd.f32 %v441_v31, %v3836_v17  ;;  %v406_v0 = vadd.f32 %v3834_v16, %v3830_v14 }
 0x137   :  { %4278 = vst [vmem:[#allocation28_spill] sm:$0xff] %v3898_v27  ;;  %4279 = vst [vmem:[#allocation29_spill] sm:$0xff] %v3901_v25  ;;  %v408_v10 = vadd.f32 %v407_v20, %v3836_v17 }
 0x138   :  { %4280 = vst [vmem:[#allocation30_spill] sm:$0xff] %v3903_v53  ;;  %4281 = vst [vmem:[#allocation31_spill] sm:$0xff] %v3906_v30 }
 0x13a   :  { %v709_v8 = vpop.f32.mrb[16].mxu0  ;;  %v750_v27 = vpop.f32.mrb[16].mxu1 }
 0x13b   :  { %v757_v35 = vadd.f32 %v709_v8, %v333_v13  ;;  %v759_v22 = vadd.f32 %v750_v27, %v406_v0  ;;  %v711_v12 = vpop.f32.mrb[17].mxu0  ;;  %v752_v25 = vpop.f32.mrb[17].mxu1 }
 0x13c   :  { %v758_v11 = vadd.f32 %v711_v12, %v335_v6  ;;  %v760_v23 = vadd.f32 %v752_v25, %v408_v10  ;;  %v713_v53 = vpop.f32.mrb[18].mxu0  ;;  %v754_v9 = vpop.f32.mrb[18].mxu1 }
 0x13d   :  { %v3033_v31 = vmul.f32 -1.442695, %v757_v35  ;;  %v714_v30 = vpop.f32.mrb[19].mxu0  ;;  %v755_v7 = vpop.f32.mrb[19].mxu1 }
 0x13e   :  { %v3034_v15 = vmul.f32 -1.442695, %v758_v11  ;;  %v3035_v14 = vmul.f32 -1.442695, %v760_v23 }
 0x13f   :  { %3442 = vpow2.f32 %v3033_v31 }
 0x140   :  { %3444 = vpow2.f32 %v3034_v15 }
 0x141   :  { %3446 = vpow2.f32 %v3035_v14 }
 0x142   :  { %3448 = vtanh.f32 %v759_v22  ;;  %v4282_v22 = vmov 0  }
 0x149   :  { %v3443_v16 = vpop.eup %3442 }
 0x14a   :  { %v3445_v18 = vpop.eup %3444  ;;  %v764_v17 = vadd.f32 1.0, %v3443_v16 }
 0x14b   :  { %v770_v19 = vadd.f32 1.0, %v3445_v18  ;;  %v3447_v0 = vpop.eup %3446 }
 0x14c   :  { %3450 = vrcp.f32 %v764_v17  ;;  %v3449_v20 = vpop.eup %3448  ;;  %v777_v53 = vadd.f32 1.0, %v3447_v0 }
 0x14d   :  { %3452 = vrcp.f32 %v770_v19 }
 0x14e   :  { %3454 = vrcp.f32 %v777_v53 }
 0x156   :  { %v3451_v21 = vpop.eup %3450 }
 0x157   :  { %v3453_v27 = vpop.eup %3452  ;;  %v781_v9 = vmul.f32 %v3451_v21, %v3449_v20 }
 0x158   :  { %v780_v25 = vmul.f32 0.0, %v3453_v27  ;;  %v3455_v11 = vpop.eup %3454 }
 0x15a   :  { %v3912_v7 = vadd.f32 %v781_v9, %v780_v25 }
 0x15c   :  { %3456 = vtanh.f32 %v3912_v7 }
 0x166   :  { %v3457_v35 = vpop.eup %3456 }
 0x167   :  { %v784_v10 = vmul.f32 %v3457_v35, %v3455_v11 }
 0x169   :  { %v785_v30 = vpack.c.bf16 %v784_v10, %v784_v10 }
 0x16b   :  { %786 = vst [vmem:[%s4258_s4] sm:$0xf] %v785_v30  ;;  %1017 = vmatmul.mubr.bf16.vlgmr.msra.gmra.mrb[20].mxu0 %v785_v30  ;;  %1058 = vmatmul.mubr.bf16.vlgmr.msra.gmra.mrb[20].mxu1 %v785_v30 }
 0x16c   :  { %1295 = vmatpush1.bf16.msra.mxu0 %v3682_v36  ;;  %1336 = vmatpush1.bf16.msra.mxu1 %v3684_v37 }
 0x16d   :  { %1296 = vmatprep.subr.bf16.mxu0 %v3688_v38  ;;  %1337 = vmatprep.subr.bf16.mxu1 %v3690_v39 }
 0x16e   :  { %1326 = vmatprep.mubr.bf16.mxu0 %v4282_v22  ;;  %1367 = vmatprep.mubr.bf16.mxu1 %v4282_v22 }
 0x170   :  { %1297 = vmatpush1.bf16.msra.mxu0 %v3692_v40  ;;  %1338 = vmatpush1.bf16.msra.mxu1 %v3696_v41 }
 0x171   :  { %1298 = vmatprep.subr.bf16.mxu0 %v3700_v42  ;;  %1339 = vmatprep.subr.bf16.mxu1 %v3702_v43 }
 0x174   :  { %1299 = vmatpush1.bf16.msra.mxu0 %v3709_v45  ;;  %1340 = vmatpush1.bf16.msra.mxu1 %v3711_v46 }
 0x175   :  { %1300 = vmatprep.subr.bf16.mxu0 %v3715_v47  ;;  %1341 = vmatprep.subr.bf16.mxu1 %v3719_v48 }
 0x178   :  { %1301 = vmatpush1.bf16.msra.mxu0 %v3721_v49  ;;  %1342 = vmatpush1.bf16.msra.mxu1 %v3723_v50 }
 0x179   :  { %1302 = vmatprep.subr.bf16.mxu0 %v3727_v51  ;;  %1343 = vmatprep.subr.bf16.mxu1 %v3731_v52 }
 0x17c   :  { %1303 = vmatpush1.bf16.msra.mxu0 %v3738_v54  ;;  %1344 = vmatpush1.bf16.msra.mxu1 %v3740_v55 }
 0x17d   :  { %1304 = vmatprep.subr.bf16.mxu0 %v3742_v56  ;;  %1345 = vmatprep.subr.bf16.mxu1 %v3744_v57 }
 0x180   :  { %1305 = vmatpush1.bf16.msra.mxu0 %v3750_v58  ;;  %1346 = vmatpush1.bf16.msra.mxu1 %v3752_v59 }
 0x181   :  { %1306 = vmatprep.subr.bf16.mxu0 %v3754_v60  ;;  %1347 = vmatprep.subr.bf16.mxu1 %v3756_v61 }
 0x184   :  { %1307 = vmatpush1.bf16.msra.mxu0 %v3767_v63  ;;  %1348 = vmatpush1.bf16.msra.mxu1 %v3769_v1 }
 0x185   :  { %1308 = vmatprep.subr.bf16.mxu0 %v3771_v2  ;;  %1349 = vmatprep.subr.bf16.mxu1 %v3777_v3 }
 0x188   :  { %1309 = vmatpush1.bf16.msra.mxu0 %v3781_v4  ;;  %1350 = vmatpush1.bf16.msra.mxu1 %v3783_v5 }
 0x189   :  { %1604 = vmatprep.subr.bf16.mxu0 %v3675_v33  ;;  %1645 = vmatprep.subr.bf16.mxu1 %v3677_v34 }
 0x23e   :  { %v1018_v13 = vpop.f32.mrb[20].mxu0  ;;  %v1059_v6 = vpop.f32.mrb[20].mxu1 }
 0x23f   :  { %v1066_v8 = vadd.f32 %v1018_v13, %v3838_v24  ;;  %v1068_v12 = vadd.f32 %v1059_v6, %v3841_v26  ;;  %v1020_v23 = vpop.f32.mrb[21].mxu0  ;;  %v1061_v31 = vpop.f32.mrb[21].mxu1 }
 0x240   :  { %v1067_v15 = vadd.f32 %v1020_v23, %v3843_v28  ;;  %v1069_v14 = vadd.f32 %v1061_v31, %v3846_v29  ;;  %v1022_v16 = vpop.f32.mrb[22].mxu0  ;;  %v1063_v18 = vpop.f32.mrb[22].mxu1  ;;  %v4020_v23 = vld [vmem:[#allocation7 + $0x24] ss:$16 sps:$4 sm:$0xff]   ;;  %v4022_v31 = vld [vmem:[#allocation7 + $0x2c] ss:$16 sps:$4 sm:$0xff]  }
 0x241   :  { %v3068_v17 = vmul.f32 -1.442695, %v1066_v8  ;;  %v1023_v19 = vpop.f32.mrb[23].mxu0  ;;  %v1064_v0 = vpop.f32.mrb[23].mxu1  ;;  %v4012_v8 = vld [vmem:[#allocation7] ss:$16 sps:$4 sm:$0xff]  }
 0x242   :  { %v3069_v33 = vmul.f32 -1.442695, %v1067_v15  ;;  %v3070_v34 = vmul.f32 -1.442695, %v1069_v14  ;;  %v4024_v15 = vld [vmem:[#allocation7 + $0x20] ss:$16 sps:$4 sm:$0xff]  }
 0x243   :  { %3458 = vpow2.f32 %v3068_v17  ;;  %v4026_v14 = vld [vmem:[#allocation7 + $0x28] ss:$16 sps:$4 sm:$0xff]   ;;  %v4032_v16 = vld [vmem:[#allocation7 + $0x44] ss:$16 sps:$4 sm:$0xff]   ;;  %v4034_v18 = vld [vmem:[#allocation7 + $0x4c] ss:$16 sps:$4 sm:$0xff]  }
 0x244   :  { %3460 = vpow2.f32 %v3069_v33  ;;  %v4036_v17 = vld [vmem:[#allocation7 + $0x40] ss:$16 sps:$4 sm:$0xff]   ;;  %v4038_v19 = vld [vmem:[#allocation7 + $0x48] ss:$16 sps:$4 sm:$0xff]   ;;  %v4044_v0 = vld [vmem:[#allocation7 + $0x64] ss:$16 sps:$4 sm:$0xff]  }
 0x245   :  { %3462 = vpow2.f32 %v3070_v34  ;;  %v4046_v33 = vld [vmem:[#allocation7 + $0x6c] ss:$16 sps:$4 sm:$0xff]   ;;  %v4048_v34 = vld [vmem:[#allocation7 + $0x60] ss:$16 sps:$4 sm:$0xff]  }
 0x246   :  { %3464 = vtanh.f32 %v1068_v12  ;;  %v4014_v12 = vld [vmem:[#allocation7 + $0x8] ss:$16 sps:$4 sm:$0xff]  }
 0x24d   :  { %v3459_v20 = vpop.eup %3458 }
 0x24e   :  { %v3461_v21 = vpop.eup %3460  ;;  %v1073_v24 = vadd.f32 1.0, %v3459_v20  ;;  %v4050_v20 = vld [vmem:[#allocation7 + $0x68] ss:$16 sps:$4 sm:$0xff]  }
 0x24f   :  { %v1079_v26 = vadd.f32 1.0, %v3461_v21  ;;  %v3463_v28 = vpop.eup %3462  ;;  %v4056_v21 = vld [vmem:[#allocation7 + $0x80] ss:$16 sps:$4 sm:$0xff]  }
 0x250   :  { %3466 = vrcp.f32 %v1073_v24  ;;  %v3465_v27 = vpop.eup %3464  ;;  %v1086_v25 = vadd.f32 1.0, %v3463_v28  ;;  %v4058_v24 = vld [vmem:[#allocation7 + $0x84] ss:$16 sps:$4 sm:$0xff]   ;;  %v4062_v28 = vld [vmem:[#allocation7 + $0x8c] ss:$16 sps:$4 sm:$0xff]  }
 0x251   :  { %3468 = vrcp.f32 %v1079_v26  ;;  %v4060_v26 = vld [vmem:[#allocation7 + $0x88] ss:$16 sps:$4 sm:$0xff]  }
 0x252   :  { %3470 = vrcp.f32 %v1086_v25  ;;  %v4077_v25 = vld [vmem:[#allocation7 + $0xc4] ss:$16 sps:$4 sm:$0xff]  }
 0x25a   :  { %v3467_v29 = vpop.eup %3466 }
 0x25b   :  { %v3469_v9 = vpop.eup %3468  ;;  %v1090_v53 = vmul.f32 %v3467_v29, %v3465_v27  ;;  %v4064_v27 = vld [vmem:[#allocation7 + $0xa4] ss:$16 sps:$4 sm:$0xff]   ;;  %v4067_v29 = vld [vmem:[#allocation7 + $0xac] ss:$16 sps:$4 sm:$0xff]  }
 0x25c   :  { %v1089_v11 = vmul.f32 %v3469_v9, %v3912_v7  ;;  %v3471_v10 = vpop.eup %3470  ;;  %v4010_v7 = vld [vmem:[#allocation7 + $0xc] ss:$16 sps:$4 sm:$0xff]   ;;  %v4071_v9 = vld [vmem:[#allocation7 + $0xa0] ss:$16 sps:$4 sm:$0xff]  }
 0x25e   :  { %v3957_v35 = vadd.f32 %v1090_v53, %v1089_v11  ;;  %v4075_v53 = vld [vmem:[#allocation7 + $0xa8] ss:$16 sps:$4 sm:$0xff]   ;;  %v4080_v11 = vld [vmem:[#allocation7 + $0xcc] ss:$16 sps:$4 sm:$0xff]  }
 0x260   :  { %3472 = vtanh.f32 %v3957_v35 }
 0x26a   :  { %v3473_v30 = vpop.eup %3472 }
 0x26b   :  { %v1093_v13 = vmul.f32 %v3473_v30, %v3471_v10  ;;  %v4087_v10 = vld [vmem:[#allocation7 + $0xc8] ss:$16 sps:$4 sm:$0xff]   ;;  %v4089_v30 = vld [vmem:[#allocation7 + $0xe4] ss:$16 sps:$4 sm:$0xff]  }
 0x26d   :  { %v1094_v6 = vpack.c.bf16 %v1093_v13, %v1093_v13  ;;  %v4092_v13 = vld [vmem:[#allocation7 + $0xec] ss:$16 sps:$4 sm:$0xff]  }
 0x26f   :  { %3071 = vst [vmem:[%s4258_s4 + $0x4] sm:$0xf] %v1094_v6  ;;  %1327 = vmatmul.mubr.bf16.vlgmr.msra.gmra.mrb[24].mxu0 %v1094_v6  ;;  %1368 = vmatmul.mubr.bf16.vlgmr.msra.gmra.mrb[24].mxu1 %v1094_v6  ;;  %v4095_v6 = vld [vmem:[#allocation7 + $0xe0] ss:$16 sps:$4 sm:$0xff]  }
 0x270   :  { %1605 = vmatpush1.bf16.msra.mxu0 %v3682_v36  ;;  %1646 = vmatpush1.bf16.msra.mxu1 %v3684_v37 }
 0x271   :  { %1606 = vmatprep.subr.bf16.mxu0 %v3688_v38  ;;  %1647 = vmatprep.subr.bf16.mxu1 %v3690_v39 }
 0x272   :  { %1636 = vmatprep.mubr.bf16.mxu0 %v4282_v22  ;;  %1677 = vmatprep.mubr.bf16.mxu1 %v4282_v22 }
 0x274   :  { %1607 = vmatpush1.bf16.msra.mxu0 %v3692_v40  ;;  %1648 = vmatpush1.bf16.msra.mxu1 %v3696_v41 }
 0x275   :  { %1608 = vmatprep.subr.bf16.mxu0 %v3700_v42  ;;  %1649 = vmatprep.subr.bf16.mxu1 %v3702_v43  ;;  %v4283_v43 = vld [vmem:[#allocation11_spill] sm:$0xff] }
 0x278   :  { %1609 = vmatpush1.bf16.msra.mxu0 %v3709_v45  ;;  %1650 = vmatpush1.bf16.msra.mxu1 %v3711_v46 }
 0x279   :  { %1610 = vmatprep.subr.bf16.mxu0 %v3715_v47  ;;  %1651 = vmatprep.subr.bf16.mxu1 %v3719_v48 }
 0x27c   :  { %1611 = vmatpush1.bf16.msra.mxu0 %v3721_v49  ;;  %1652 = vmatpush1.bf16.msra.mxu1 %v3723_v50 }
 0x27d   :  { %1612 = vmatprep.subr.bf16.mxu0 %v3727_v51  ;;  %1653 = vmatprep.subr.bf16.mxu1 %v3731_v52 }
 0x280   :  { %1613 = vmatpush1.bf16.msra.mxu0 %v3738_v54  ;;  %1654 = vmatpush1.bf16.msra.mxu1 %v3740_v55 }
 0x281   :  { %1614 = vmatprep.subr.bf16.mxu0 %v3742_v56  ;;  %1655 = vmatprep.subr.bf16.mxu1 %v3744_v57 }
 0x284   :  { %1615 = vmatpush1.bf16.msra.mxu0 %v3750_v58  ;;  %1656 = vmatpush1.bf16.msra.mxu1 %v3752_v59 }
 0x285   :  { %1616 = vmatprep.subr.bf16.mxu0 %v3754_v60  ;;  %1657 = vmatprep.subr.bf16.mxu1 %v3756_v61 }
 0x288   :  { %1617 = vmatpush1.bf16.msra.mxu0 %v3767_v63  ;;  %1658 = vmatpush1.bf16.msra.mxu1 %v3769_v1 }
 0x289   :  { %1618 = vmatprep.subr.bf16.mxu0 %v3771_v2  ;;  %1659 = vmatprep.subr.bf16.mxu1 %v3777_v3 }
 0x28c   :  { %1619 = vmatpush1.bf16.msra.mxu0 %v3781_v4  ;;  %1660 = vmatpush1.bf16.msra.mxu1 %v3783_v5 }
 0x28d   :  { %1955 = vmatprep.subr.bf16.mxu1 %v4010_v7 }
 0x342   :  { %v1328_v36 = vpop.f32.mrb[24].mxu0  ;;  %v1369_v37 = vpop.f32.mrb[24].mxu1 }
 0x343   :  { %v1376_v38 = vadd.f32 %v1328_v36, %v3848_v32  ;;  %v1378_v39 = vadd.f32 %v1369_v37, %v3851_v44  ;;  %v1330_v40 = vpop.f32.mrb[25].mxu0  ;;  %v1371_v41 = vpop.f32.mrb[25].mxu1  ;;  %v4099_v36 = vld [vmem:[#allocation7 + $0xe8] ss:$16 sps:$4 sm:$0xff]  }
 0x344   :  { %v1377_v42 = vadd.f32 %v1330_v40, %v3853_v62  ;;  %v1379_v45 = vadd.f32 %v1371_v41, %v4283_v43  ;;  %v1332_v46 = vpop.f32.mrb[26].mxu0  ;;  %v1373_v47 = vpop.f32.mrb[26].mxu1  ;;  %v4008_v62 = vld [vmem:[#allocation7 + $0x4] ss:$16 sps:$4 sm:$0xff]  }
 0x345   :  { %v3104_v48 = vmul.f32 -1.442695, %v1376_v38  ;;  %v1333_v49 = vpop.f32.mrb[27].mxu0  ;;  %v1374_v50 = vpop.f32.mrb[27].mxu1  ;;  %1914 = vmatprep.subr.bf16.mxu0 %v4008_v62  ;;  %v4285_v41 = vld [vmem:[#allocation13_spill] sm:$0xff]  ;;  %v4286_v46 = vld [vmem:[#allocation14_spill] sm:$0xff] }
 0x346   :  { %v3105_v51 = vmul.f32 -1.442695, %v1377_v42  ;;  %v3106_v52 = vmul.f32 -1.442695, %v1379_v45 }
 0x347   :  { %3474 = vpow2.f32 %v3104_v48  ;;  %v4287_v48 = vld [vmem:[#allocation15_spill] sm:$0xff] }
 0x348   :  { %3476 = vpow2.f32 %v3105_v51 }
 0x349   :  { %3478 = vpow2.f32 %v3106_v52 }
 0x34a   :  { %3480 = vtanh.f32 %v1378_v39  ;;  %v4284_v39 = vld [vmem:[#allocation12_spill] sm:$0xff] }
 0x351   :  { %v3475_v54 = vpop.eup %3474 }
 0x352   :  { %v3477_v55 = vpop.eup %3476  ;;  %v1383_v56 = vadd.f32 1.0, %v3475_v54 }
 0x353   :  { %v1389_v57 = vadd.f32 1.0, %v3477_v55  ;;  %v3479_v58 = vpop.eup %3478 }
 0x354   :  { %3482 = vrcp.f32 %v1383_v56  ;;  %v3481_v59 = vpop.eup %3480  ;;  %v1396_v1 = vadd.f32 1.0, %v3479_v58 }
 0x355   :  { %3484 = vrcp.f32 %v1389_v57 }
 0x356   :  { %3486 = vrcp.f32 %v1396_v1 }
 0x35e   :  { %v3483_v60 = vpop.eup %3482 }
 0x35f   :  { %v3485_v61 = vpop.eup %3484  ;;  %v1400_v63 = vmul.f32 %v3483_v60, %v3481_v59 }
 0x360   :  { %v1399_v2 = vmul.f32 %v3485_v61, %v3957_v35  ;;  %v3487_v4 = vpop.eup %3486  ;;  %v4083_v35 = vld [vmem:[#allocation7 + $0xc0] ss:$16 sps:$4 sm:$0xff]  }
 0x362   :  { %v4000_v3 = vadd.f32 %v1400_v63, %v1399_v2 }
 0x364   :  { %3488 = vtanh.f32 %v4000_v3 }
 0x36e   :  { %v3489_v5 = vpop.eup %3488 }
 0x36f   :  { %v1403_v32 = vmul.f32 %v3489_v5, %v3487_v4 }
 0x371   :  { %v1404_v44 = vpack.c.bf16 %v1403_v32, %v1403_v32 }
 0x373   :  { %3107 = vst [vmem:[%s4258_s4 + $0x8] sm:$0xf] %v1404_v44  ;;  %1637 = vmatmul.mubr.bf16.vlgmr.msra.gmra.mrb[28].mxu0 %v1404_v44  ;;  %1678 = vmatmul.mubr.bf16.vlgmr.msra.gmra.mrb[28].mxu1 %v1404_v44 }
 0x374   :  { %1946 = vmatprep.mubr.bf16.mxu0 %v4282_v22  ;;  %1987 = vmatprep.mubr.bf16.mxu1 %v4282_v22 }
 0x375   :  { %1915 = vmatpush1.bf16.msra.mxu0 %v4012_v8  ;;  %1956 = vmatpush1.bf16.msra.mxu1 %v4014_v12 }
 0x376   :  { %1916 = vmatprep.subr.bf16.mxu0 %v4020_v23  ;;  %1957 = vmatprep.subr.bf16.mxu1 %v4022_v31 }
 0x379   :  { %1917 = vmatpush1.bf16.msra.mxu0 %v4024_v15  ;;  %1958 = vmatpush1.bf16.msra.mxu1 %v4026_v14 }
 0x37a   :  { %1918 = vmatprep.subr.bf16.mxu0 %v4032_v16  ;;  %1959 = vmatprep.subr.bf16.mxu1 %v4034_v18 }
 0x37d   :  { %1919 = vmatpush1.bf16.msra.mxu0 %v4036_v17  ;;  %1960 = vmatpush1.bf16.msra.mxu1 %v4038_v19 }
 0x37e   :  { %1920 = vmatprep.subr.bf16.mxu0 %v4044_v0  ;;  %1961 = vmatprep.subr.bf16.mxu1 %v4046_v33 }
 0x381   :  { %1921 = vmatpush1.bf16.msra.mxu0 %v4048_v34  ;;  %1962 = vmatpush1.bf16.msra.mxu1 %v4050_v20 }
 0x382   :  { %1922 = vmatprep.subr.bf16.mxu0 %v4058_v24  ;;  %1963 = vmatprep.subr.bf16.mxu1 %v4062_v28 }
 0x385   :  { %1923 = vmatpush1.bf16.msra.mxu0 %v4056_v21  ;;  %1964 = vmatpush1.bf16.msra.mxu1 %v4060_v26 }
 0x386   :  { %1924 = vmatprep.subr.bf16.mxu0 %v4064_v27  ;;  %1965 = vmatprep.subr.bf16.mxu1 %v4067_v29 }
 0x389   :  { %1925 = vmatpush1.bf16.msra.mxu0 %v4071_v9  ;;  %1966 = vmatpush1.bf16.msra.mxu1 %v4075_v53 }
 0x38a   :  { %1926 = vmatprep.subr.bf16.mxu0 %v4077_v25  ;;  %1967 = vmatprep.subr.bf16.mxu1 %v4080_v11 }
 0x38d   :  { %1927 = vmatpush1.bf16.msra.mxu0 %v4083_v35  ;;  %1968 = vmatpush1.bf16.msra.mxu1 %v4087_v10 }
 0x38e   :  { %1928 = vmatprep.subr.bf16.mxu0 %v4089_v30  ;;  %1969 = vmatprep.subr.bf16.mxu1 %v4092_v13 }
 0x391   :  { %1929 = vmatpush1.bf16.msra.mxu0 %v4095_v6  ;;  %1970 = vmatpush1.bf16.msra.mxu1 %v4099_v36 }
 0x392   :  { %2224 = vmatprep.subr.bf16.mxu0 %v4008_v62  ;;  %2265 = vmatprep.subr.bf16.mxu1 %v4010_v7 }
 0x446   :  { %v1638_v37 = vpop.f32.mrb[28].mxu0  ;;  %v1679_v38 = vpop.f32.mrb[28].mxu1 }
 0x447   :  { %v1686_v40 = vadd.f32 %v1638_v37, %v4284_v39  ;;  %v1688_v42 = vadd.f32 %v1679_v38, %v4285_v41  ;;  %v1640_v43 = vpop.f32.mrb[29].mxu0  ;;  %v1681_v45 = vpop.f32.mrb[29].mxu1 }
 0x448   :  { %v1687_v47 = vadd.f32 %v1640_v43, %v4286_v46  ;;  %v1689_v49 = vadd.f32 %v1681_v45, %v4287_v48  ;;  %v1642_v50 = vpop.f32.mrb[30].mxu0  ;;  %v1683_v51 = vpop.f32.mrb[30].mxu1  ;;  %v4288_v43 = vld [vmem:[#allocation16_spill] sm:$0xff]  ;;  %v4289_v46 = vld [vmem:[#allocation17_spill] sm:$0xff] }
 0x449   :  { %v3140_v52 = vmul.f32 -1.442695, %v1686_v40  ;;  %v1643_v54 = vpop.f32.mrb[31].mxu0  ;;  %v1684_v55 = vpop.f32.mrb[31].mxu1  ;;  %v4290_v50 = vld [vmem:[#allocation18_spill] sm:$0xff] }
 0x44a   :  { %v3141_v56 = vmul.f32 -1.442695, %v1687_v47  ;;  %v3142_v57 = vmul.f32 -1.442695, %v1689_v49 }
 0x44b   :  { %3490 = vpow2.f32 %v3140_v52  ;;  %v4291_v52 = vld [vmem:[#allocation19_spill] sm:$0xff] }
 0x44c   :  { %3492 = vpow2.f32 %v3141_v56 }
 0x44d   :  { %3494 = vpow2.f32 %v3142_v57 }
 0x44e   :  { %3496 = vtanh.f32 %v1688_v42 }
 0x455   :  { %v3491_v58 = vpop.eup %3490 }
 0x456   :  { %v3493_v59 = vpop.eup %3492  ;;  %v1693_v60 = vadd.f32 1.0, %v3491_v58 }
 0x457   :  { %v1699_v61 = vadd.f32 1.0, %v3493_v59  ;;  %v3495_v63 = vpop.eup %3494 }
 0x458   :  { %3498 = vrcp.f32 %v1693_v60  ;;  %v3497_v1 = vpop.eup %3496  ;;  %v1706_v32 = vadd.f32 1.0, %v3495_v63 }
 0x459   :  { %3500 = vrcp.f32 %v1699_v61 }
 0x45a   :  { %3502 = vrcp.f32 %v1706_v32 }
 0x462   :  { %v3499_v2 = vpop.eup %3498 }
 0x463   :  { %v3501_v4 = vpop.eup %3500  ;;  %v1710_v5 = vmul.f32 %v3499_v2, %v3497_v1 }
 0x464   :  { %v1709_v44 = vmul.f32 %v3501_v4, %v4000_v3  ;;  %v3503_v38 = vpop.eup %3502 }
 0x466   :  { %v4111_v37 = vadd.f32 %v1710_v5, %v1709_v44 }
 0x468   :  { %3504 = vtanh.f32 %v4111_v37 }
 0x472   :  { %v3505_v39 = vpop.eup %3504 }
 0x473   :  { %v1713_v40 = vmul.f32 %v3505_v39, %v3503_v38 }
 0x475   :  { %v1714_v41 = vpack.c.bf16 %v1713_v40, %v1713_v40 }
 0x477   :  { %3143 = vst [vmem:[%s4258_s4 + $0xc] sm:$0xf] %v1714_v41  ;;  %1947 = vmatmul.mubr.bf16.vlgmr.msra.gmra.mrb[32].mxu0 %v1714_v41  ;;  %1988 = vmatmul.mubr.bf16.vlgmr.msra.gmra.mrb[32].mxu1 %v1714_v41 }
 0x478   :  { %2225 = vmatpush1.bf16.msra.mxu0 %v4012_v8  ;;  %2266 = vmatpush1.bf16.msra.mxu1 %v4014_v12 }
 0x479   :  { %2226 = vmatprep.subr.bf16.mxu0 %v4020_v23  ;;  %2267 = vmatprep.subr.bf16.mxu1 %v4022_v31 }
 0x47a   :  { %2256 = vmatprep.mubr.bf16.mxu0 %v4282_v22  ;;  %2297 = vmatprep.mubr.bf16.mxu1 %v4282_v22 }
 0x47c   :  { %2227 = vmatpush1.bf16.msra.mxu0 %v4024_v15  ;;  %2268 = vmatpush1.bf16.msra.mxu1 %v4026_v14 }
 0x47d   :  { %2228 = vmatprep.subr.bf16.mxu0 %v4032_v16  ;;  %2269 = vmatprep.subr.bf16.mxu1 %v4034_v18 }
 0x480   :  { %2229 = vmatpush1.bf16.msra.mxu0 %v4036_v17  ;;  %2270 = vmatpush1.bf16.msra.mxu1 %v4038_v19 }
 0x481   :  { %2230 = vmatprep.subr.bf16.mxu0 %v4044_v0  ;;  %2271 = vmatprep.subr.bf16.mxu1 %v4046_v33 }
 0x484   :  { %2231 = vmatpush1.bf16.msra.mxu0 %v4048_v34  ;;  %2272 = vmatpush1.bf16.msra.mxu1 %v4050_v20 }
 0x485   :  { %2232 = vmatprep.subr.bf16.mxu0 %v4058_v24  ;;  %2273 = vmatprep.subr.bf16.mxu1 %v4062_v28 }
 0x488   :  { %2233 = vmatpush1.bf16.msra.mxu0 %v4056_v21  ;;  %2274 = vmatpush1.bf16.msra.mxu1 %v4060_v26 }
 0x489   :  { %2234 = vmatprep.subr.bf16.mxu0 %v4064_v27  ;;  %2275 = vmatprep.subr.bf16.mxu1 %v4067_v29 }
 0x48c   :  { %2235 = vmatpush1.bf16.msra.mxu0 %v4071_v9  ;;  %2276 = vmatpush1.bf16.msra.mxu1 %v4075_v53 }
 0x48d   :  { %2236 = vmatprep.subr.bf16.mxu0 %v4077_v25  ;;  %2277 = vmatprep.subr.bf16.mxu1 %v4080_v11 }
 0x490   :  { %2237 = vmatpush1.bf16.msra.mxu0 %v4083_v35  ;;  %2278 = vmatpush1.bf16.msra.mxu1 %v4087_v10 }
 0x491   :  { %2238 = vmatprep.subr.bf16.mxu0 %v4089_v30  ;;  %2279 = vmatprep.subr.bf16.mxu1 %v4092_v13 }
 0x494   :  { %2239 = vmatpush1.bf16.msra.mxu0 %v4095_v6  ;;  %2280 = vmatpush1.bf16.msra.mxu1 %v4099_v36 }
 0x495   :  { %2534 = vmatprep.subr.bf16.mxu0 %v4008_v62  ;;  %2575 = vmatprep.subr.bf16.mxu1 %v4010_v7 }
 0x54a   :  { %v1948_v3 = vpop.f32.mrb[32].mxu0  ;;  %v1989_v42 = vpop.f32.mrb[32].mxu1 }
 0x54b   :  { %v1996_v45 = vadd.f32 %v1948_v3, %v4288_v43  ;;  %v1998_v47 = vadd.f32 %v1989_v42, %v4289_v46  ;;  %v1950_v48 = vpop.f32.mrb[33].mxu0  ;;  %v1991_v49 = vpop.f32.mrb[33].mxu1 }
 0x54c   :  { %v1997_v51 = vadd.f32 %v1950_v48, %v4290_v50  ;;  %v1999_v54 = vadd.f32 %v1991_v49, %v4291_v52  ;;  %v1952_v55 = vpop.f32.mrb[34].mxu0  ;;  %v1993_v56 = vpop.f32.mrb[34].mxu1  ;;  %v4292_v48 = vld [vmem:[#allocation20_spill] sm:$0xff]  ;;  %v4293_v50 = vld [vmem:[#allocation21_spill] sm:$0xff] }
 0x54d   :  { %v3176_v57 = vmul.f32 -1.442695, %v1996_v45  ;;  %v1953_v58 = vpop.f32.mrb[35].mxu0  ;;  %v1994_v59 = vpop.f32.mrb[35].mxu1  ;;  %v4294_v55 = vld [vmem:[#allocation22_spill] sm:$0xff] }
 0x54e   :  { %v3177_v60 = vmul.f32 -1.442695, %v1997_v51  ;;  %v3178_v61 = vmul.f32 -1.442695, %v1999_v54 }
 0x54f   :  { %3506 = vpow2.f32 %v3176_v57  ;;  %v4295_v57 = vld [vmem:[#allocation23_spill] sm:$0xff] }
 0x550   :  { %3508 = vpow2.f32 %v3177_v60 }
 0x551   :  { %3510 = vpow2.f32 %v3178_v61 }
 0x552   :  { %3512 = vtanh.f32 %v1998_v47 }
 0x559   :  { %v3507_v63 = vpop.eup %3506 }
 0x55a   :  { %v3509_v1 = vpop.eup %3508  ;;  %v2003_v2 = vadd.f32 1.0, %v3507_v63 }
 0x55b   :  { %v2009_v4 = vadd.f32 1.0, %v3509_v1  ;;  %v3511_v5 = vpop.eup %3510 }
 0x55c   :  { %3514 = vrcp.f32 %v2003_v2  ;;  %v3513_v32 = vpop.eup %3512  ;;  %v2016_v40 = vadd.f32 1.0, %v3511_v5 }
 0x55d   :  { %3516 = vrcp.f32 %v2009_v4 }
 0x55e   :  { %3518 = vrcp.f32 %v2016_v40 }
 0x566   :  { %v3515_v44 = vpop.eup %3514 }
 0x567   :  { %v3517_v38 = vpop.eup %3516  ;;  %v2020_v39 = vmul.f32 %v3515_v44, %v3513_v32 }
 0x568   :  { %v2019_v41 = vmul.f32 %v3517_v38, %v4111_v37  ;;  %v3519_v42 = vpop.eup %3518 }
 0x56a   :  { %v4156_v3 = vadd.f32 %v2020_v39, %v2019_v41 }
 0x56c   :  { %3520 = vtanh.f32 %v4156_v3 }
 0x576   :  { %v3521_v43 = vpop.eup %3520 }
 0x577   :  { %v2023_v45 = vmul.f32 %v3521_v43, %v3519_v42 }
 0x579   :  { %v2024_v46 = vpack.c.bf16 %v2023_v45, %v2023_v45 }
 0x57b   :  { %3179 = vst [vmem:[%s4258_s4 + $0x10] sm:$0xf] %v2024_v46  ;;  %2257 = vmatmul.mubr.bf16.vlgmr.msra.gmra.mrb[36].mxu0 %v2024_v46  ;;  %2298 = vmatmul.mubr.bf16.vlgmr.msra.gmra.mrb[36].mxu1 %v2024_v46 }
 0x57c   :  { %2535 = vmatpush1.bf16.msra.mxu0 %v4012_v8  ;;  %2576 = vmatpush1.bf16.msra.mxu1 %v4014_v12 }
 0x57d   :  { %2536 = vmatprep.subr.bf16.mxu0 %v4020_v23  ;;  %2577 = vmatprep.subr.bf16.mxu1 %v4022_v31 }
 0x57e   :  { %2566 = vmatprep.mubr.bf16.mxu0 %v4282_v22  ;;  %2607 = vmatprep.mubr.bf16.mxu1 %v4282_v22 }
 0x580   :  { %2537 = vmatpush1.bf16.msra.mxu0 %v4024_v15  ;;  %2578 = vmatpush1.bf16.msra.mxu1 %v4026_v14 }
 0x581   :  { %2538 = vmatprep.subr.bf16.mxu0 %v4032_v16  ;;  %2579 = vmatprep.subr.bf16.mxu1 %v4034_v18 }
 0x584   :  { %2539 = vmatpush1.bf16.msra.mxu0 %v4036_v17  ;;  %2580 = vmatpush1.bf16.msra.mxu1 %v4038_v19 }
 0x585   :  { %2540 = vmatprep.subr.bf16.mxu0 %v4044_v0  ;;  %2581 = vmatprep.subr.bf16.mxu1 %v4046_v33 }
 0x588   :  { %2541 = vmatpush1.bf16.msra.mxu0 %v4048_v34  ;;  %2582 = vmatpush1.bf16.msra.mxu1 %v4050_v20 }
 0x589   :  { %2542 = vmatprep.subr.bf16.mxu0 %v4058_v24  ;;  %2583 = vmatprep.subr.bf16.mxu1 %v4062_v28 }
 0x58c   :  { %2543 = vmatpush1.bf16.msra.mxu0 %v4056_v21  ;;  %2584 = vmatpush1.bf16.msra.mxu1 %v4060_v26 }
 0x58d   :  { %2544 = vmatprep.subr.bf16.mxu0 %v4064_v27  ;;  %2585 = vmatprep.subr.bf16.mxu1 %v4067_v29 }
 0x590   :  { %2545 = vmatpush1.bf16.msra.mxu0 %v4071_v9  ;;  %2586 = vmatpush1.bf16.msra.mxu1 %v4075_v53 }
 0x591   :  { %2546 = vmatprep.subr.bf16.mxu0 %v4077_v25  ;;  %2587 = vmatprep.subr.bf16.mxu1 %v4080_v11 }
 0x594   :  { %2547 = vmatpush1.bf16.msra.mxu0 %v4083_v35  ;;  %2588 = vmatpush1.bf16.msra.mxu1 %v4087_v10 }
 0x595   :  { %2548 = vmatprep.subr.bf16.mxu0 %v4089_v30  ;;  %2589 = vmatprep.subr.bf16.mxu1 %v4092_v13 }
 0x598   :  { %2549 = vmatpush1.bf16.msra.mxu0 %v4095_v6  ;;  %2590 = vmatpush1.bf16.msra.mxu1 %v4099_v36 }
 0x599   :  { %2844 = vmatprep.subr.bf16.mxu0 %v4008_v62  ;;  %2885 = vmatprep.subr.bf16.mxu1 %v4010_v7 }
 0x64e   :  { %v2258_v37 = vpop.f32.mrb[36].mxu0  ;;  %v2299_v47 = vpop.f32.mrb[36].mxu1 }
 0x64f   :  { %v2306_v49 = vadd.f32 %v2258_v37, %v4292_v48  ;;  %v2308_v51 = vadd.f32 %v2299_v47, %v4293_v50  ;;  %v2260_v52 = vpop.f32.mrb[37].mxu0  ;;  %v2301_v54 = vpop.f32.mrb[37].mxu1 }
 0x650   :  { %v2307_v56 = vadd.f32 %v2260_v52, %v4294_v55  ;;  %v2309_v58 = vadd.f32 %v2301_v54, %v4295_v57  ;;  %v2262_v59 = vpop.f32.mrb[38].mxu0  ;;  %v2303_v60 = vpop.f32.mrb[38].mxu1  ;;  %v4300_v55 = vld [vmem:[#allocation28_spill] sm:$0xff]  ;;  %v4301_v57 = vld [vmem:[#allocation29_spill] sm:$0xff] }
 0x651   :  { %v3212_v61 = vmul.f32 -1.442695, %v2306_v49  ;;  %v2263_v63 = vpop.f32.mrb[39].mxu0  ;;  %v2304_v1 = vpop.f32.mrb[39].mxu1 }
 0x652   :  { %v3213_v62 = vmul.f32 -1.442695, %v2307_v56  ;;  %v3214_v7 = vmul.f32 -1.442695, %v2309_v58  ;;  %v4303_v1 = vld [vmem:[#allocation31_spill] sm:$0xff] }
 0x653   :  { %3522 = vpow2.f32 %v3212_v61  ;;  %v4302_v61 = vld [vmem:[#allocation30_spill] sm:$0xff] }
 0x654   :  { %3524 = vpow2.f32 %v3213_v62 }
 0x655   :  { %3526 = vpow2.f32 %v3214_v7 }
 0x656   :  { %3528 = vtanh.f32 %v2308_v51 }
 0x65d   :  { %v3523_v2 = vpop.eup %3522 }
 0x65e   :  { %v3525_v4 = vpop.eup %3524  ;;  %v2313_v5 = vadd.f32 1.0, %v3523_v2 }
 0x65f   :  { %v2319_v32 = vadd.f32 1.0, %v3525_v4  ;;  %v3527_v44 = vpop.eup %3526 }
 0x660   :  { %3530 = vrcp.f32 %v2313_v5  ;;  %v3529_v38 = vpop.eup %3528  ;;  %v2326_v42 = vadd.f32 1.0, %v3527_v44 }
 0x661   :  { %3532 = vrcp.f32 %v2319_v32 }
 0x662   :  { %3534 = vrcp.f32 %v2326_v42 }
 0x66a   :  { %v3531_v39 = vpop.eup %3530 }
 0x66b   :  { %v3533_v40 = vpop.eup %3532  ;;  %v2330_v41 = vmul.f32 %v3531_v39, %v3529_v38 }
 0x66c   :  { %v2329_v43 = vmul.f32 %v3533_v40, %v4156_v3  ;;  %v3535_v46 = vpop.eup %3534 }
 0x66e   :  { %v4201_v45 = vadd.f32 %v2330_v41, %v2329_v43 }
 0x670   :  { %3536 = vtanh.f32 %v4201_v45 }
 0x67a   :  { %v3537_v37 = vpop.eup %3536 }
 0x67b   :  { %v2333_v47 = vmul.f32 %v3537_v37, %v3535_v46 }
 0x67d   :  { %v2334_v48 = vpack.c.bf16 %v2333_v47, %v2333_v47 }
 0x67f   :  { %3215 = vst [vmem:[%s4258_s4 + $0x14] sm:$0xf] %v2334_v48  ;;  %2567 = vmatmul.mubr.bf16.vlgmr.msra.gmra.mrb[40].mxu0 %v2334_v48  ;;  %2608 = vmatmul.mubr.bf16.vlgmr.msra.gmra.mrb[40].mxu1 %v2334_v48 }
 0x680   :  { %2845 = vmatpush1.bf16.msra.mxu0 %v4012_v8  ;;  %2886 = vmatpush1.bf16.msra.mxu1 %v4014_v12  ;;  %v4296_v12 = vld [vmem:[#allocation24_spill] sm:$0xff] }
 0x681   :  { %2846 = vmatprep.subr.bf16.mxu0 %v4020_v23  ;;  %2887 = vmatprep.subr.bf16.mxu1 %v4022_v31  ;;  %v4297_v31 = vld [vmem:[#allocation25_spill] sm:$0xff] }
 0x682   :  { %2876 = vmatprep.mubr.bf16.mxu0 %v4282_v22  ;;  %2917 = vmatprep.mubr.bf16.mxu1 %v4282_v22 }
 0x684   :  { %2847 = vmatpush1.bf16.msra.mxu0 %v4024_v15  ;;  %2888 = vmatpush1.bf16.msra.mxu1 %v4026_v14 }
 0x685   :  { %2848 = vmatprep.subr.bf16.mxu0 %v4032_v16  ;;  %2889 = vmatprep.subr.bf16.mxu1 %v4034_v18  ;;  %v4298_v18 = vld [vmem:[#allocation26_spill] sm:$0xff] }
 0x688   :  { %2849 = vmatpush1.bf16.msra.mxu0 %v4036_v17  ;;  %2890 = vmatpush1.bf16.msra.mxu1 %v4038_v19  ;;  %v4299_v19 = vld [vmem:[#allocation27_spill] sm:$0xff] }
 0x689   :  { %2850 = vmatprep.subr.bf16.mxu0 %v4044_v0  ;;  %2891 = vmatprep.subr.bf16.mxu1 %v4046_v33 }
 0x68c   :  { %2851 = vmatpush1.bf16.msra.mxu0 %v4048_v34  ;;  %2892 = vmatpush1.bf16.msra.mxu1 %v4050_v20 }
 0x68d   :  { %2852 = vmatprep.subr.bf16.mxu0 %v4058_v24  ;;  %2893 = vmatprep.subr.bf16.mxu1 %v4062_v28 }
 0x690   :  { %2853 = vmatpush1.bf16.msra.mxu0 %v4056_v21  ;;  %2894 = vmatpush1.bf16.msra.mxu1 %v4060_v26 }
 0x691   :  { %2854 = vmatprep.subr.bf16.mxu0 %v4064_v27  ;;  %2895 = vmatprep.subr.bf16.mxu1 %v4067_v29 }
 0x694   :  { %2855 = vmatpush1.bf16.msra.mxu0 %v4071_v9  ;;  %2896 = vmatpush1.bf16.msra.mxu1 %v4075_v53 }
 0x695   :  { %2856 = vmatprep.subr.bf16.mxu0 %v4077_v25  ;;  %2897 = vmatprep.subr.bf16.mxu1 %v4080_v11 }
 0x698   :  { %2857 = vmatpush1.bf16.msra.mxu0 %v4083_v35  ;;  %2898 = vmatpush1.bf16.msra.mxu1 %v4087_v10 }
 0x699   :  { %2858 = vmatprep.subr.bf16.mxu0 %v4089_v30  ;;  %2899 = vmatprep.subr.bf16.mxu1 %v4092_v13 }
 0x69c   :  { %2859 = vmatpush1.bf16.msra.mxu0 %v4095_v6  ;;  %2900 = vmatpush1.bf16.msra.mxu1 %v4099_v36 }
 0x752   :  { %v2568_v22 = vpop.f32.mrb[40].mxu0  ;;  %v2609_v8 = vpop.f32.mrb[40].mxu1 }
 0x753   :  { %v2616_v23 = vadd.f32 %v2568_v22, %v4296_v12  ;;  %v2618_v15 = vadd.f32 %v2609_v8, %v4297_v31  ;;  %v2570_v14 = vpop.f32.mrb[41].mxu0  ;;  %v2611_v16 = vpop.f32.mrb[41].mxu1 }
 0x754   :  { %v2617_v17 = vadd.f32 %v2570_v14, %v4298_v18  ;;  %v2619_v0 = vadd.f32 %v2611_v16, %v4299_v19  ;;  %v2572_v33 = vpop.f32.mrb[42].mxu0  ;;  %v2613_v34 = vpop.f32.mrb[42].mxu1 }
 0x755   :  { %v3248_v20 = vmul.f32 -1.442695, %v2616_v23  ;;  %v2573_v21 = vpop.f32.mrb[43].mxu0  ;;  %v2614_v24 = vpop.f32.mrb[43].mxu1 }
 0x756   :  { %v3249_v26 = vmul.f32 -1.442695, %v2617_v17  ;;  %v3250_v28 = vmul.f32 -1.442695, %v2619_v0 }
 0x757   :  { %3538 = vpow2.f32 %v3248_v20 }
 0x758   :  { %3540 = vpow2.f32 %v3249_v26 }
 0x759   :  { %3542 = vpow2.f32 %v3250_v28 }
 0x75a   :  { %3544 = vtanh.f32 %v2618_v15 }
 0x761   :  { %v3539_v27 = vpop.eup %3538 }
 0x762   :  { %v3541_v29 = vpop.eup %3540  ;;  %v2623_v9 = vadd.f32 1.0, %v3539_v27 }
 0x763   :  { %v2629_v53 = vadd.f32 1.0, %v3541_v29  ;;  %v3543_v25 = vpop.eup %3542 }
 0x764   :  { %3546 = vrcp.f32 %v2623_v9  ;;  %v3545_v11 = vpop.eup %3544  ;;  %v2636_v13 = vadd.f32 1.0, %v3543_v25 }
 0x765   :  { %3548 = vrcp.f32 %v2629_v53 }
 0x766   :  { %3550 = vrcp.f32 %v2636_v13 }
 0x76e   :  { %v3547_v35 = vpop.eup %3546 }
 0x76f   :  { %v3549_v10 = vpop.eup %3548  ;;  %v2640_v30 = vmul.f32 %v3547_v35, %v3545_v11 }
 0x770   :  { %v2639_v6 = vmul.f32 %v3549_v10, %v4201_v45  ;;  %v3551_v3 = vpop.eup %3550 }
 0x772   :  { %v2641_v36 = vadd.f32 %v2640_v30, %v2639_v6 }
 0x774   :  { %3552 = vtanh.f32 %v2641_v36 }
 0x77e   :  { %v3553_v49 = vpop.eup %3552 }
 0x77f   :  { %v2643_v50 = vmul.f32 %v3553_v49, %v3551_v3 }
 0x781   :  { %v2644_v51 = vpack.c.bf16 %v2643_v50, %v2643_v50 }
 0x783   :  { %3251 = vst [vmem:[%s4258_s4 + $0x18] sm:$0xf] %v2644_v51  ;;  %2877 = vmatmul.mubr.bf16.vlgmr.msra.gmra.mrb[44].mxu0 %v2644_v51  ;;  %2918 = vmatmul.mubr.bf16.vlgmr.msra.gmra.mrb[44].mxu1 %v2644_v51 }
 0x856   :  { %v2878_v52 = vpop.f32.mrb[44].mxu0  ;;  %v2919_v54 = vpop.f32.mrb[44].mxu1 }
 0x857   :  { %v2926_v56 = vadd.f32 %v2878_v52, %v4300_v55  ;;  %v2928_v58 = vadd.f32 %v2919_v54, %v4301_v57  ;;  %v2880_v59 = vpop.f32.mrb[45].mxu0  ;;  %v2921_v60 = vpop.f32.mrb[45].mxu1 }
 0x858   :  { %v2927_v63 = vadd.f32 %v2880_v59, %v4302_v61  ;;  %v2929_v62 = vadd.f32 %v2921_v60, %v4303_v1  ;;  %v2882_v7 = vpop.f32.mrb[46].mxu0  ;;  %v2923_v2 = vpop.f32.mrb[46].mxu1 }
 0x859   :  { %v3284_v4 = vmul.f32 -1.442695, %v2926_v56  ;;  %v2883_v5 = vpop.f32.mrb[47].mxu0  ;;  %v2924_v32 = vpop.f32.mrb[47].mxu1 }
 0x85a   :  { %v3285_v44 = vmul.f32 -1.442695, %v2927_v63  ;;  %v3286_v38 = vmul.f32 -1.442695, %v2929_v62 }
 0x85b   :  { %3554 = vpow2.f32 %v3284_v4 }
 0x85c   :  { %3556 = vpow2.f32 %v3285_v44 }
 0x85d   :  { %3558 = vpow2.f32 %v3286_v38 }
 0x85e   :  { %3560 = vtanh.f32 %v2928_v58 }
 0x865   :  { %v3555_v39 = vpop.eup %3554 }
 0x866   :  { %v3557_v40 = vpop.eup %3556  ;;  %v2933_v41 = vadd.f32 1.0, %v3555_v39 }
 0x867   :  { %v2939_v42 = vadd.f32 1.0, %v3557_v40  ;;  %v3559_v43 = vpop.eup %3558 }
 0x868   :  { %3562 = vrcp.f32 %v2933_v41  ;;  %v3561_v45 = vpop.eup %3560  ;;  %v2946_v48 = vadd.f32 1.0, %v3559_v43 }
 0x869   :  { %3564 = vrcp.f32 %v2939_v42 }
 0x86a   :  { %3566 = vrcp.f32 %v2946_v48 }
 0x872   :  { %v3563_v46 = vpop.eup %3562 }
 0x873   :  { %v3565_v37 = vpop.eup %3564  ;;  %v2950_v47 = vmul.f32 %v3563_v46, %v3561_v45 }
 0x874   :  { %v2949_v22 = vmul.f32 %v3565_v37, %v2641_v36  ;;  %v3567_v12 = vpop.eup %3566 }
 0x876   :  { %v2951_v8 = vadd.f32 %v2950_v47, %v2949_v22 }
 0x878   :  { %3568 = vtanh.f32 %v2951_v8 }
 0x882   :  { %v3569_v23 = vpop.eup %3568 }
 0x883   :  { %v2953_v31 = vmul.f32 %v3569_v23, %v3567_v12 }
 0x885   :  { %v2954_v15 = vpack.c.bf16 %v2953_v31, %v2953_v31 }
 0x887   :  { %3287 = vst [vmem:[%s4258_s4 + $0x1c] sm:$0xf] %v2954_v15 }
 0x888   :  { %2963 = vsyncpa [#allocation6], 1 }
 0x889   :  { %2964 = vsyncpa [#allocation8], 1 }

// kernel: _forward_impl.3
= control target key start
LH: loop header
LB: loop body
LE: loop exit
PB: predicated region body
PF: predicated region fallthrough
CT: control target
= control target key end

     0   :  { %v2989_v1 = vmov 0   ;;  %vm2103_vm0 = vmmov 0   ;;  %vm1692_vm1 = vcmask 15360   ;;  %s2982_s1 = inlined_call_operand.vmem [shape: bf16[128,512], index: 1, kind: input, shape index: {}]   ;;  %s2983_s0 = inlined_call_operand.vmem [shape: bf16[8,8,128], index: 0, kind: input, shape index: {}]   ;;  %s2984_s2 = inlined_call_operand.vmem [shape: bf16[128,512], index: 2, kind: input, shape index: {}]   ;;  %s2985_s3 = inlined_call_operand.vmem [shape: f32[1,512], index: 3, kind: input, shape index: {}]   ;;  %s2986_s4 = inlined_call_operand.vmem [shape: bf16[128,2], index: 4, kind: input, shape index: {}]   ;;  %s2987_s5 = inlined_call_operand.vmem [shape: f32[1,2], index: 5, kind: input, shape index: {}]   ;;  %s2988_s6 = inlined_call_operand.vmem [shape: f32[8,2], index: 6, kind: output, shape index: {}]  }
   0x1   :  { %v1832_v0 = vld [vmem:[%s2982_s1 + $0x4] ss:$16 sps:$4 sm:$0xff]   ;;  %308 = vmatprep.mubr.bf16.mxu0 %v2989_v1  ;;  %381 = vmatprep.mubr.bf16.mxu1 %v2989_v1  ;;  %v1834_v2 = vld [vmem:[%s2982_s1 + $0xc] ss:$16 sps:$4 sm:$0xff]   ;;  %v1836_v3 = vld [vmem:[%s2982_s1] ss:$16 sps:$4 sm:$0xff]  }
   0x2   :  { %276 = vmatprep.subr.bf16.mxu0 %v1832_v0  ;;  %v1837_v4 = vld [vmem:[%s2982_s1 + $0x8] ss:$16 sps:$4 sm:$0xff]   ;;  %349 = vmatprep.subr.bf16.mxu1 %v1834_v2  ;;  %v1838_v5 = vld [vmem:[%s2982_s1 + $0x24] ss:$16 sps:$4 sm:$0xff]   ;;  %v1840_v6 = vld [vmem:[%s2982_s1 + $0x2c] ss:$16 sps:$4 sm:$0xff]  }
   0x3   :  { %277 = vmatpush1.bf16.msra.mxu0 %v1836_v3  ;;  %350 = vmatpush1.bf16.msra.mxu1 %v1837_v4  ;;  %v1842_v7 = vld [vmem:[%s2982_s1 + $0x20] ss:$16 sps:$4 sm:$0xff]   ;;  %v1843_v8 = vld [vmem:[%s2982_s1 + $0x28] ss:$16 sps:$4 sm:$0xff]   ;;  %v1844_v9 = vld [vmem:[%s2982_s1 + $0x44] ss:$16 sps:$4 sm:$0xff]  }
   0x4   :  { %278 = vmatprep.subr.bf16.mxu0 %v1838_v5  ;;  %351 = vmatprep.subr.bf16.mxu1 %v1840_v6  ;;  %v1846_v10 = vld [vmem:[%s2982_s1 + $0x4c] ss:$16 sps:$4 sm:$0xff]   ;;  %v1848_v11 = vld [vmem:[%s2982_s1 + $0x40] ss:$16 sps:$4 sm:$0xff]   ;;  %v1849_v12 = vld [vmem:[%s2982_s1 + $0x48] ss:$16 sps:$4 sm:$0xff]  }
   0x5   :  { %v1850_v13 = vld [vmem:[%s2982_s1 + $0x64] ss:$16 sps:$4 sm:$0xff]   ;;  %v1852_v14 = vld [vmem:[%s2982_s1 + $0x6c] ss:$16 sps:$4 sm:$0xff]   ;;  %v1854_v15 = vld [vmem:[%s2982_s1 + $0x60] ss:$16 sps:$4 sm:$0xff]  }
   0x6   :  { %v1855_v16 = vld [vmem:[%s2982_s1 + $0x68] ss:$16 sps:$4 sm:$0xff]   ;;  %v1856_v17 = vld [vmem:[%s2982_s1 + $0x84] ss:$16 sps:$4 sm:$0xff]   ;;  %v1858_v18 = vld [vmem:[%s2982_s1 + $0x8c] ss:$16 sps:$4 sm:$0xff]  }
   0x7   :  { %279 = vmatpush1.bf16.msra.mxu0 %v1842_v7  ;;  %352 = vmatpush1.bf16.msra.mxu1 %v1843_v8  ;;  %v1860_v19 = vld [vmem:[%s2982_s1 + $0x80] ss:$16 sps:$4 sm:$0xff]   ;;  %v1861_v20 = vld [vmem:[%s2982_s1 + $0x88] ss:$16 sps:$4 sm:$0xff]   ;;  %v1862_v21 = vld [vmem:[%s2982_s1 + $0xa4] ss:$16 sps:$4 sm:$0xff]   ;;  %v72_v7 = vlaneseq }
   0x8   :  { %280 = vmatprep.subr.bf16.mxu0 %v1844_v9  ;;  %353 = vmatprep.subr.bf16.mxu1 %v1846_v10  ;;  %v1864_v22 = vld [vmem:[%s2982_s1 + $0xac] ss:$16 sps:$4 sm:$0xff]   ;;  %v1866_v23 = vld [vmem:[%s2982_s1 + $0xa0] ss:$16 sps:$4 sm:$0xff]   ;;  %v1867_v24 = vld [vmem:[%s2982_s1 + $0xa8] ss:$16 sps:$4 sm:$0xff]  }
   0x9   :  { %v1868_v25 = vld [vmem:[%s2982_s1 + $0xc4] ss:$16 sps:$4 sm:$0xff]   ;;  %v1870_v26 = vld [vmem:[%s2982_s1 + $0xcc] ss:$16 sps:$4 sm:$0xff]   ;;  %v1872_v27 = vld [vmem:[%s2982_s1 + $0xc0] ss:$16 sps:$4 sm:$0xff]  }
   0xa   :  { %v1873_v28 = vld [vmem:[%s2982_s1 + $0xc8] ss:$16 sps:$4 sm:$0xff]   ;;  %v1874_v29 = vld [vmem:[%s2982_s1 + $0xe4] ss:$16 sps:$4 sm:$0xff]   ;;  %v1876_v30 = vld [vmem:[%s2982_s1 + $0xec] ss:$16 sps:$4 sm:$0xff]  }
   0xb   :  { %281 = vmatpush1.bf16.msra.mxu0 %v1848_v11  ;;  %354 = vmatpush1.bf16.msra.mxu1 %v1849_v12  ;;  %v1878_v31 = vld [vmem:[%s2982_s1 + $0xe0] ss:$16 sps:$4 sm:$0xff]   ;;  %v1879_v32 = vld [vmem:[%s2982_s1 + $0xe8] ss:$16 sps:$4 sm:$0xff]   ;;  %v2240_v33 = vld [vmem:[%s2984_s2 + $0x4] ss:$16 sps:$4 sm:$0xff]  }
   0xc   :  { %282 = vmatprep.subr.bf16.mxu0 %v1850_v13  ;;  %355 = vmatprep.subr.bf16.mxu1 %v1852_v14  ;;  %v2245_v34 = vld [vmem:[%s2984_s2 + $0xc] ss:$16 sps:$4 sm:$0xff]   ;;  %v1880_v35 = vld [vmem:[%s2983_s0] sm:$0xff]   ;;  %v2258_v37 = vld [vmem:[%s2984_s2 + $0x8] ss:$16 sps:$4 sm:$0xff]   ;;  %v2101_v6 = vmov 0.0|0.0  }
   0xd   :  { %v2253_v36 = vld [vmem:[%s2984_s2] ss:$16 sps:$4 sm:$0xff]   ;;  %v2265_v38 = vld [vmem:[%s2984_s2 + $0x24] ss:$16 sps:$4 sm:$0xff]   ;;  %v2270_v39 = vld [vmem:[%s2984_s2 + $0x2c] ss:$16 sps:$4 sm:$0xff]  }
   0xe   :  { %v2275_v40 = vld [vmem:[%s2984_s2 + $0x20] ss:$16 sps:$4 sm:$0xff]   ;;  %v2282_v41 = vld [vmem:[%s2984_s2 + $0x28] ss:$16 sps:$4 sm:$0xff]   ;;  %v2289_v42 = vld [vmem:[%s2984_s2 + $0x44] ss:$16 sps:$4 sm:$0xff]  }
   0xf   :  { %283 = vmatpush1.bf16.msra.mxu0 %v1854_v15  ;;  %356 = vmatpush1.bf16.msra.mxu1 %v1855_v16  ;;  %v2294_v43 = vld [vmem:[%s2984_s2 + $0x4c] ss:$16 sps:$4 sm:$0xff]   ;;  %v2304_v45 = vld [vmem:[%s2984_s2 + $0x40] ss:$16 sps:$4 sm:$0xff]   ;;  %v2309_v46 = vld [vmem:[%s2984_s2 + $0x48] ss:$16 sps:$4 sm:$0xff]  }
  0x10   :  { %284 = vmatprep.subr.bf16.mxu0 %v1856_v17  ;;  %357 = vmatprep.subr.bf16.mxu1 %v1858_v18  ;;  %v1893_v44 = vld [vmem:[%s2983_s0 + $0x8] sm:$0xff]   ;;  %v2316_v47 = vld [vmem:[%s2984_s2 + $0x64] ss:$16 sps:$4 sm:$0xff]   ;;  %v2328_v49 = vld [vmem:[%s2984_s2 + $0x60] ss:$16 sps:$4 sm:$0xff]   ;;  %v73_v8 = vshrl.u32 %v72_v7, 7 }
  0x11   :  { %v2323_v48 = vld [vmem:[%s2984_s2 + $0x6c] ss:$16 sps:$4 sm:$0xff]   ;;  %v2333_v50 = vld [vmem:[%s2984_s2 + $0x68] ss:$16 sps:$4 sm:$0xff]   ;;  %v2340_v51 = vld [vmem:[%s2984_s2 + $0x84] ss:$16 sps:$4 sm:$0xff]  }
  0x12   :  { %v2347_v52 = vld [vmem:[%s2984_s2 + $0x8c] ss:$16 sps:$4 sm:$0xff]   ;;  %v1906_v53 = vld [vmem:[%s2983_s0 + $0x10] sm:$0xff]   ;;  %v2364_v55 = vld [vmem:[%s2984_s2 + $0x88] ss:$16 sps:$4 sm:$0xff]   ;;  %v82_v9 = vsub.s32 2, %v73_v8 }
  0x13   :  { %285 = vmatpush1.bf16.msra.mxu0 %v1860_v19  ;;  %358 = vmatpush1.bf16.msra.mxu1 %v1861_v20  ;;  %v2359_v54 = vld [vmem:[%s2984_s2 + $0x80] ss:$16 sps:$4 sm:$0xff]   ;;  %v2371_v56 = vld [vmem:[%s2984_s2 + $0xa4] ss:$16 sps:$4 sm:$0xff]   ;;  %v2376_v57 = vld [vmem:[%s2984_s2 + $0xac] ss:$16 sps:$4 sm:$0xff]  }
  0x14   :  { %286 = vmatprep.subr.bf16.mxu0 %v1862_v21  ;;  %359 = vmatprep.subr.bf16.mxu1 %v1864_v22  ;;  %v2383_v58 = vld [vmem:[%s2984_s2 + $0xa0] ss:$16 sps:$4 sm:$0xff]   ;;  %v2388_v59 = vld [vmem:[%s2984_s2 + $0xa8] ss:$16 sps:$4 sm:$0xff]   ;;  %v2395_v60 = vld [vmem:[%s2984_s2 + $0xc4] ss:$16 sps:$4 sm:$0xff]  }
  0x15   :  { %v2400_v61 = vld [vmem:[%s2984_s2 + $0xcc] ss:$16 sps:$4 sm:$0xff]   ;;  %v2412_v63 = vld [vmem:[%s2984_s2 + $0xc0] ss:$16 sps:$4 sm:$0xff]   ;;  %v2417_v0 = vld [vmem:[%s2984_s2 + $0xc8] ss:$16 sps:$4 sm:$0xff]  }
  0x16   :  { %v1919_v62 = vld [vmem:[%s2983_s0 + $0x18] sm:$0xff]   ;;  %v2424_v2 = vld [vmem:[%s2984_s2 + $0xe4] ss:$16 sps:$4 sm:$0xff]   ;;  %v2436_v4 = vld [vmem:[%s2984_s2 + $0xe0] ss:$16 sps:$4 sm:$0xff]   ;;  %v86_v10 = vsub.s32 3, %v73_v8 }
  0x17   :  { %287 = vmatpush1.bf16.msra.mxu0 %v1866_v23  ;;  %360 = vmatpush1.bf16.msra.mxu1 %v1867_v24  ;;  %v2429_v3 = vld [vmem:[%s2984_s2 + $0xec] ss:$16 sps:$4 sm:$0xff]   ;;  %v2441_v5 = vld [vmem:[%s2984_s2 + $0xe8] ss:$16 sps:$4 sm:$0xff]   ;;  %v74_v11 = vsub.s32 0, %v73_v8  ;;  %v78_v13 = vsub.s32 1, %v73_v8 }
  0x18   :  { %288 = vmatprep.subr.bf16.mxu0 %v1868_v25  ;;  %361 = vmatprep.subr.bf16.mxu1 %v1870_v26  ;;  %v70_v12 = vld [vmem:[%s2985_s3] sm:$0xf] }
  0x19   :  { %v2488_v14 = vrot.slane %v70_v12, %v82_v9  ;;  %v2494_v17 = vrot.slane %v70_v12, %v86_v10  ;;  %v75_v18 = vrot.slane %v70_v12, %v74_v11  ;;  %v79_v21 = vrot.slane %v70_v12, %v78_v13 }
  0x1b   :  { %289 = vmatpush1.bf16.msra.mxu0 %v1872_v27  ;;  %362 = vmatpush1.bf16.msra.mxu1 %v1873_v28 }
  0x1c   :  { %290 = vmatprep.subr.bf16.mxu0 %v1874_v29  ;;  %363 = vmatprep.subr.bf16.mxu1 %v1876_v30 }
  0x1f   :  { %291 = vmatpush1.bf16.msra.mxu0 %v1878_v31  ;;  %364 = vmatpush1.bf16.msra.mxu1 %v1879_v32 }
  0x20   :  { %653 = vmatprep.subr.bf16.mxu0 %v2240_v33  ;;  %694 = vmatprep.subr.bf16.mxu1 %v2245_v34 }
  0x22   :  { %309 = vmatmul.mubr.bf16.vlgmr.msra.gmra.mrb[0].mxu0 %v1880_v35  ;;  %382 = vmatmul.mubr.bf16.vlgmr.msra.gmra.mrb[0].mxu1 %v1880_v35 }
  0x23   :  { %654 = vmatpush1.bf16.msra.mxu0 %v2253_v36  ;;  %695 = vmatpush1.bf16.msra.mxu1 %v2258_v37 }
  0x24   :  { %655 = vmatprep.subr.bf16.mxu0 %v2265_v38  ;;  %696 = vmatprep.subr.bf16.mxu1 %v2270_v39 }
  0x25   :  { %318 = vmatprep.mubr.bf16.mxu0 %v2989_v1  ;;  %391 = vmatprep.mubr.bf16.mxu1 %v2989_v1 }
  0x27   :  { %656 = vmatpush1.bf16.msra.mxu0 %v2275_v40  ;;  %697 = vmatpush1.bf16.msra.mxu1 %v2282_v41 }
  0x28   :  { %657 = vmatprep.subr.bf16.mxu0 %v2289_v42  ;;  %698 = vmatprep.subr.bf16.mxu1 %v2294_v43 }
  0x2a   :  { %319 = vmatmul.mubr.bf16.gmra.mrb[4].mxu0 %v1893_v44  ;;  %392 = vmatmul.mubr.bf16.gmra.mrb[4].mxu1 %v1893_v44 }
  0x2b   :  { %658 = vmatpush1.bf16.msra.mxu0 %v2304_v45  ;;  %699 = vmatpush1.bf16.msra.mxu1 %v2309_v46 }
  0x2c   :  { %659 = vmatprep.subr.bf16.mxu0 %v2316_v47  ;;  %700 = vmatprep.subr.bf16.mxu1 %v2323_v48 }
  0x2d   :  { %328 = vmatprep.mubr.bf16.mxu0 %v2989_v1  ;;  %401 = vmatprep.mubr.bf16.mxu1 %v2989_v1 }
  0x2f   :  { %660 = vmatpush1.bf16.msra.mxu0 %v2328_v49  ;;  %701 = vmatpush1.bf16.msra.mxu1 %v2333_v50 }
  0x30   :  { %661 = vmatprep.subr.bf16.mxu0 %v2340_v51  ;;  %702 = vmatprep.subr.bf16.mxu1 %v2347_v52 }
  0x32   :  { %329 = vmatmul.mubr.bf16.gmra.mrb[8].mxu0 %v1906_v53  ;;  %402 = vmatmul.mubr.bf16.gmra.mrb[8].mxu1 %v1906_v53 }
  0x33   :  { %662 = vmatpush1.bf16.msra.mxu0 %v2359_v54  ;;  %703 = vmatpush1.bf16.msra.mxu1 %v2364_v55 }
  0x34   :  { %663 = vmatprep.subr.bf16.mxu0 %v2371_v56  ;;  %704 = vmatprep.subr.bf16.mxu1 %v2376_v57 }
  0x35   :  { %338 = vmatprep.mubr.bf16.mxu0 %v2989_v1  ;;  %411 = vmatprep.mubr.bf16.mxu1 %v2989_v1 }
  0x37   :  { %664 = vmatpush1.bf16.msra.mxu0 %v2383_v58  ;;  %705 = vmatpush1.bf16.msra.mxu1 %v2388_v59 }
  0x38   :  { %665 = vmatprep.subr.bf16.mxu0 %v2395_v60  ;;  %706 = vmatprep.subr.bf16.mxu1 %v2400_v61 }
  0x3a   :  { %339 = vmatmul.mubr.bf16.gmra.mrb[12].mxu0 %v1919_v62  ;;  %412 = vmatmul.mubr.bf16.gmra.mrb[12].mxu1 %v1919_v62 }
  0x3b   :  { %666 = vmatpush1.bf16.msra.mxu0 %v2412_v63  ;;  %707 = vmatpush1.bf16.msra.mxu1 %v2417_v0 }
  0x3c   :  { %667 = vmatprep.subr.bf16.mxu0 %v2424_v2  ;;  %708 = vmatprep.subr.bf16.mxu1 %v2429_v3 }
  0x3d   :  { %685 = vmatprep.mubr.bf16.mxu0 %v2989_v1  ;;  %726 = vmatprep.mubr.bf16.mxu1 %v2989_v1 }
  0x3f   :  { %668 = vmatpush1.bf16.msra.mxu0 %v2436_v4  ;;  %709 = vmatpush1.bf16.msra.mxu1 %v2441_v5 }
  0x40   :  { %769 = vmatprep.subr.bf16.mxu0 %v2240_v33  ;;  %810 = vmatprep.subr.bf16.mxu1 %v2245_v34 }
  0x42   :  { %686 = vmatmul.mubr.bf16.vlgmr.msra.gmra.mrb[16].mxu0 %v2101_v6  ;;  %727 = vmatmul.mubr.bf16.vlgmr.msra.gmra.mrb[16].mxu1 %v2101_v6 }
  0x43   :  { %770 = vmatpush1.bf16.msra.mxu0 %v2253_v36  ;;  %811 = vmatpush1.bf16.msra.mxu1 %v2258_v37 }
  0x44   :  { %771 = vmatprep.subr.bf16.mxu0 %v2265_v38  ;;  %812 = vmatprep.subr.bf16.mxu1 %v2270_v39 }
  0x45   :  { %801 = vmatprep.mubr.bf16.mxu0 %v2989_v1  ;;  %842 = vmatprep.mubr.bf16.mxu1 %v2989_v1 }
  0x47   :  { %772 = vmatpush1.bf16.msra.mxu0 %v2275_v40  ;;  %813 = vmatpush1.bf16.msra.mxu1 %v2282_v41 }
  0x48   :  { %773 = vmatprep.subr.bf16.mxu0 %v2289_v42  ;;  %814 = vmatprep.subr.bf16.mxu1 %v2294_v43 }
  0x4b   :  { %774 = vmatpush1.bf16.msra.mxu0 %v2304_v45  ;;  %815 = vmatpush1.bf16.msra.mxu1 %v2309_v46 }
  0x4c   :  { %775 = vmatprep.subr.bf16.mxu0 %v2316_v47  ;;  %816 = vmatprep.subr.bf16.mxu1 %v2323_v48 }
  0x4f   :  { %776 = vmatpush1.bf16.msra.mxu0 %v2328_v49  ;;  %817 = vmatpush1.bf16.msra.mxu1 %v2333_v50 }
  0x50   :  { %777 = vmatprep.subr.bf16.mxu0 %v2340_v51  ;;  %818 = vmatprep.subr.bf16.mxu1 %v2347_v52 }
  0x53   :  { %778 = vmatpush1.bf16.msra.mxu0 %v2359_v54  ;;  %819 = vmatpush1.bf16.msra.mxu1 %v2364_v55 }
  0x54   :  { %779 = vmatprep.subr.bf16.mxu0 %v2371_v56  ;;  %820 = vmatprep.subr.bf16.mxu1 %v2376_v57 }
  0x57   :  { %780 = vmatpush1.bf16.msra.mxu0 %v2383_v58  ;;  %821 = vmatpush1.bf16.msra.mxu1 %v2388_v59 }
  0x58   :  { %781 = vmatprep.subr.bf16.mxu0 %v2395_v60  ;;  %822 = vmatprep.subr.bf16.mxu1 %v2400_v61 }
  0x5b   :  { %782 = vmatpush1.bf16.msra.mxu0 %v2412_v63  ;;  %823 = vmatpush1.bf16.msra.mxu1 %v2417_v0 }
  0x5c   :  { %783 = vmatprep.subr.bf16.mxu0 %v2424_v2  ;;  %824 = vmatprep.subr.bf16.mxu1 %v2429_v3 }
  0x5f   :  { %784 = vmatpush1.bf16.msra.mxu0 %v2436_v4  ;;  %825 = vmatpush1.bf16.msra.mxu1 %v2441_v5 }
  0x60   :  { %885 = vmatprep.subr.bf16.mxu0 %v2240_v33  ;;  %926 = vmatprep.subr.bf16.mxu1 %v2245_v34 }
  0xf5   :  { %v2490_v15 = vpop.f32.mrb[0].mxu0  ;;  %v2492_v16 = vpop.f32.mrb[0].mxu1 }
  0xf6   :  { %v312_v19 = vpop.f32.mrb[1].mxu0  ;;  %v385_v20 = vpop.f32.mrb[1].mxu1 }
  0xf7   :  { %v314_v22 = vpop.f32.mrb[2].mxu0  ;;  %v387_v23 = vpop.f32.mrb[2].mxu1 }
  0xf8   :  { %v2496_v24 = vadd.f32 %v314_v22, %v75_v18  ;;  %v316_v25 = vpop.f32.mrb[3].mxu0  ;;  %v2499_v26 = vadd.f32 %v387_v23, %v2488_v14  ;;  %v389_v27 = vpop.f32.mrb[3].mxu1 }
  0xf9   :  { %v2501_v28 = vadd.f32 %v316_v25, %v79_v21  ;;  %v2504_v29 = vadd.f32 %v389_v27, %v2494_v17 }
  0xfd   :  { %v320_v30 = vpop.f32.mrb[4].mxu0  ;;  %v393_v31 = vpop.f32.mrb[4].mxu1 }
  0xfe   :  { %v2506_v32 = vadd.f32 %v320_v30, %v75_v18  ;;  %v322_v35 = vpop.f32.mrb[5].mxu0  ;;  %v2509_v44 = vadd.f32 %v393_v31, %v2488_v14  ;;  %v395_v53 = vpop.f32.mrb[5].mxu1 }
  0xff   :  { %v2511_v62 = vadd.f32 %v322_v35, %v79_v21  ;;  %v324_v6 = vpop.f32.mrb[6].mxu0  ;;  %v2514_v7 = vadd.f32 %v395_v53, %v2494_v17  ;;  %v397_v8 = vpop.f32.mrb[6].mxu1 }
 0x100   :  { %v2516_v9 = vadd.f32 %v324_v6, %v75_v18  ;;  %v326_v10 = vpop.f32.mrb[7].mxu0  ;;  %v2519_v11 = vadd.f32 %v397_v8, %v2488_v14  ;;  %v399_v12 = vpop.f32.mrb[7].mxu1 }
 0x101   :  { %2991 = vst [vmem:[#allocation5_spill] sm:$0xff] %v2514_v7  ;;  %v2521_v13 = vadd.f32 %v326_v10, %v79_v21  ;;  %v2524_v22 = vadd.f32 %v399_v12, %v2494_v17 }
 0x102   :  { %2992 = vst [vmem:[#allocation6_spill] sm:$0xff] %v2516_v9  ;;  %2993 = vst [vmem:[#allocation7_spill] sm:$0xff] %v2519_v11 }
 0x103   :  { %2994 = vst [vmem:[#allocation8_spill] sm:$0xff] %v2521_v13  ;;  %2995 = vst [vmem:[#allocation9_spill] sm:$0xff] %v2524_v22 }
 0x105   :  { %v330_v23 = vpop.f32.mrb[8].mxu0  ;;  %v403_v25 = vpop.f32.mrb[8].mxu1 }
 0x106   :  { %v2526_v27 = vadd.f32 %v330_v23, %v75_v18  ;;  %v332_v30 = vpop.f32.mrb[9].mxu0  ;;  %v2529_v31 = vadd.f32 %v403_v25, %v2488_v14  ;;  %v405_v35 = vpop.f32.mrb[9].mxu1 }
 0x107   :  { %v2531_v53 = vadd.f32 %v332_v30, %v79_v21  ;;  %v334_v6 = vpop.f32.mrb[10].mxu0  ;;  %v2534_v8 = vadd.f32 %v405_v35, %v2494_v17  ;;  %v407_v10 = vpop.f32.mrb[10].mxu1 }
 0x108   :  { %2996 = vst [vmem:[#allocation10_spill] sm:$0xff] %v2526_v27  ;;  %2997 = vst [vmem:[#allocation11_spill] sm:$0xff] %v2529_v31  ;;  %v2536_v1 = vadd.f32 %v334_v6, %v75_v18  ;;  %v336_v12 = vpop.f32.mrb[11].mxu0  ;;  %v2539_v22 = vadd.f32 %v407_v10, %v2488_v14  ;;  %v409_v23 = vpop.f32.mrb[11].mxu1 }
 0x109   :  { %2998 = vst [vmem:[#allocation12_spill] sm:$0xff] %v2531_v53  ;;  %2999 = vst [vmem:[#allocation13_spill] sm:$0xff] %v2534_v8  ;;  %v2541_v27 = vadd.f32 %v336_v12, %v79_v21  ;;  %v2544_v25 = vadd.f32 %v409_v23, %v2494_v17 }
 0x10a   :  { %3000 = vst [vmem:[#allocation14_spill] sm:$0xff] %v2536_v1  ;;  %3001 = vst [vmem:[#allocation15_spill] sm:$0xff] %v2539_v22 }
 0x10b   :  { %3002 = vst [vmem:[#allocation16_spill] sm:$0xff] %v2541_v27  ;;  %3003 = vst [vmem:[#allocation17_spill] sm:$0xff] %v2544_v25 }
 0x10d   :  { %v340_v31 = vpop.f32.mrb[12].mxu0  ;;  %v413_v30 = vpop.f32.mrb[12].mxu1 }
 0x10e   :  { %v2546_v53 = vadd.f32 %v340_v31, %v75_v18  ;;  %v342_v13 = vpop.f32.mrb[13].mxu0  ;;  %v2549_v35 = vadd.f32 %v413_v30, %v2488_v14  ;;  %v415_v6 = vpop.f32.mrb[13].mxu1 }
 0x10f   :  { %v2551_v1 = vadd.f32 %v342_v13, %v79_v21  ;;  %v344_v8 = vpop.f32.mrb[14].mxu0  ;;  %v2554_v10 = vadd.f32 %v415_v6, %v2494_v17  ;;  %v417_v12 = vpop.f32.mrb[14].mxu1  ;;  %v311_v13 = vadd.f32 %v2490_v15, %v75_v18  ;;  %v313_v6 = vadd.f32 %v312_v19, %v79_v21 }
 0x110   :  { %3004 = vst [vmem:[#allocation18_spill] sm:$0xff] %v2546_v53  ;;  %3005 = vst [vmem:[#allocation19_spill] sm:$0xff] %v2549_v35  ;;  %v2556_v27 = vadd.f32 %v344_v8, %v75_v18  ;;  %v346_v23 = vpop.f32.mrb[15].mxu0  ;;  %v2559_v25 = vadd.f32 %v417_v12, %v2488_v14  ;;  %v419_v31 = vpop.f32.mrb[15].mxu1 }
 0x111   :  { %3006 = vst [vmem:[#allocation20_spill] sm:$0xff] %v2551_v1  ;;  %3007 = vst [vmem:[#allocation21_spill] sm:$0xff] %v2554_v10  ;;  %v2561_v53 = vadd.f32 %v346_v23, %v79_v21  ;;  %v2564_v30 = vadd.f32 %v419_v31, %v2494_v17  ;;  %v384_v1 = vadd.f32 %v2492_v16, %v2488_v14 }
 0x112   :  { %3008 = vst [vmem:[#allocation22_spill] sm:$0xff] %v2556_v27  ;;  %3009 = vst [vmem:[#allocation23_spill] sm:$0xff] %v2559_v25  ;;  %v386_v10 = vadd.f32 %v385_v20, %v2494_v17 }
 0x113   :  { %3010 = vst [vmem:[#allocation24_spill] sm:$0xff] %v2561_v53  ;;  %3011 = vst [vmem:[#allocation25_spill] sm:$0xff] %v2564_v30 }
 0x115   :  { %v687_v8 = vpop.f32.mrb[16].mxu0  ;;  %v728_v27 = vpop.f32.mrb[16].mxu1 }
 0x116   :  { %v735_v35 = vadd.f32 %v687_v8, %v311_v13  ;;  %v737_v22 = vadd.f32 %v728_v27, %v384_v1  ;;  %v689_v12 = vpop.f32.mrb[17].mxu0  ;;  %v730_v25 = vpop.f32.mrb[17].mxu1 }
 0x117   :  { %v736_v11 = vadd.f32 %v689_v12, %v313_v6  ;;  %v738_v23 = vadd.f32 %v730_v25, %v386_v10  ;;  %v691_v53 = vpop.f32.mrb[18].mxu0  ;;  %v732_v9 = vpop.f32.mrb[18].mxu1 }
 0x118   :  { %v1766_v31 = vmul.f32 -1.442695, %v735_v35  ;;  %v692_v30 = vpop.f32.mrb[19].mxu0  ;;  %v733_v7 = vpop.f32.mrb[19].mxu1 }
 0x119   :  { %v1767_v15 = vmul.f32 -1.442695, %v736_v11  ;;  %v1768_v14 = vmul.f32 -1.442695, %v738_v23 }
 0x11a   :  { %1940 = vpow2.f32 %v1766_v31 }
 0x11b   :  { %1942 = vpow2.f32 %v1767_v15 }
 0x11c   :  { %1944 = vpow2.f32 %v1768_v14 }
 0x11d   :  { %1946 = vtanh.f32 %v737_v22  ;;  %v3012_v22 = vmov 0  }
 0x124   :  { %v1941_v16 = vpop.eup %1940 }
 0x125   :  { %v1943_v18 = vpop.eup %1942  ;;  %v742_v17 = vadd.f32 1.0, %v1941_v16 }
 0x126   :  { %v748_v19 = vadd.f32 1.0, %v1943_v18  ;;  %v1945_v1 = vpop.eup %1944 }
 0x127   :  { %1948 = vrcp.f32 %v742_v17  ;;  %v1947_v20 = vpop.eup %1946  ;;  %v755_v53 = vadd.f32 1.0, %v1945_v1 }
 0x128   :  { %1950 = vrcp.f32 %v748_v19 }
 0x129   :  { %1952 = vrcp.f32 %v755_v53 }
 0x131   :  { %v1949_v21 = vpop.eup %1948 }
 0x132   :  { %v1951_v27 = vpop.eup %1950  ;;  %v759_v9 = vmul.f32 %v1949_v21, %v1947_v20 }
 0x133   :  { %v758_v25 = vmul.f32 0.0, %v1951_v27  ;;  %v1953_v11 = vpop.eup %1952 }
 0x135   :  { %v2570_v7 = vadd.f32 %v759_v9, %v758_v25 }
 0x137   :  { %1954 = vtanh.f32 %v2570_v7 }
 0x141   :  { %v1955_v35 = vpop.eup %1954 }
 0x142   :  { %v762_v10 = vmul.f32 %v1955_v35, %v1953_v11 }
 0x144   :  { %v768_v30 = vpack.c.bf16 %v762_v10, %v762_v10 }
 0x146   :  { %802 = vmatmul.mubr.bf16.vlgmr.msra.gmra.mrb[20].mxu0 %v768_v30  ;;  %843 = vmatmul.mubr.bf16.vlgmr.msra.gmra.mrb[20].mxu1 %v768_v30 }
 0x147   :  { %886 = vmatpush1.bf16.msra.mxu0 %v2253_v36  ;;  %927 = vmatpush1.bf16.msra.mxu1 %v2258_v37 }
 0x148   :  { %887 = vmatprep.subr.bf16.mxu0 %v2265_v38  ;;  %928 = vmatprep.subr.bf16.mxu1 %v2270_v39 }
 0x149   :  { %917 = vmatprep.mubr.bf16.mxu0 %v3012_v22  ;;  %958 = vmatprep.mubr.bf16.mxu1 %v3012_v22 }
 0x14b   :  { %888 = vmatpush1.bf16.msra.mxu0 %v2275_v40  ;;  %929 = vmatpush1.bf16.msra.mxu1 %v2282_v41 }
 0x14c   :  { %889 = vmatprep.subr.bf16.mxu0 %v2289_v42  ;;  %930 = vmatprep.subr.bf16.mxu1 %v2294_v43 }
 0x14f   :  { %890 = vmatpush1.bf16.msra.mxu0 %v2304_v45  ;;  %931 = vmatpush1.bf16.msra.mxu1 %v2309_v46 }
 0x150   :  { %891 = vmatprep.subr.bf16.mxu0 %v2316_v47  ;;  %932 = vmatprep.subr.bf16.mxu1 %v2323_v48 }
 0x153   :  { %892 = vmatpush1.bf16.msra.mxu0 %v2328_v49  ;;  %933 = vmatpush1.bf16.msra.mxu1 %v2333_v50 }
 0x154   :  { %893 = vmatprep.subr.bf16.mxu0 %v2340_v51  ;;  %934 = vmatprep.subr.bf16.mxu1 %v2347_v52 }
 0x157   :  { %894 = vmatpush1.bf16.msra.mxu0 %v2359_v54  ;;  %935 = vmatpush1.bf16.msra.mxu1 %v2364_v55 }
 0x158   :  { %895 = vmatprep.subr.bf16.mxu0 %v2371_v56  ;;  %936 = vmatprep.subr.bf16.mxu1 %v2376_v57 }
 0x15b   :  { %896 = vmatpush1.bf16.msra.mxu0 %v2383_v58  ;;  %937 = vmatpush1.bf16.msra.mxu1 %v2388_v59 }
 0x15c   :  { %897 = vmatprep.subr.bf16.mxu0 %v2395_v60  ;;  %938 = vmatprep.subr.bf16.mxu1 %v2400_v61 }
 0x15f   :  { %898 = vmatpush1.bf16.msra.mxu0 %v2412_v63  ;;  %939 = vmatpush1.bf16.msra.mxu1 %v2417_v0 }
 0x160   :  { %899 = vmatprep.subr.bf16.mxu0 %v2424_v2  ;;  %940 = vmatprep.subr.bf16.mxu1 %v2429_v3 }
 0x163   :  { %900 = vmatpush1.bf16.msra.mxu0 %v2436_v4  ;;  %941 = vmatpush1.bf16.msra.mxu1 %v2441_v5 }
 0x164   :  { %1001 = vmatprep.subr.bf16.mxu0 %v2240_v33  ;;  %1042 = vmatprep.subr.bf16.mxu1 %v2245_v34 }
 0x219   :  { %v803_v13 = vpop.f32.mrb[20].mxu0  ;;  %v844_v6 = vpop.f32.mrb[20].mxu1 }
 0x21a   :  { %v851_v8 = vadd.f32 %v803_v13, %v2496_v24  ;;  %v853_v12 = vadd.f32 %v844_v6, %v2499_v26  ;;  %v805_v23 = vpop.f32.mrb[21].mxu0  ;;  %v846_v31 = vpop.f32.mrb[21].mxu1 }
 0x21b   :  { %v852_v15 = vadd.f32 %v805_v23, %v2501_v28  ;;  %v854_v14 = vadd.f32 %v846_v31, %v2504_v29  ;;  %v807_v16 = vpop.f32.mrb[22].mxu0  ;;  %v848_v18 = vpop.f32.mrb[22].mxu1 }
 0x21c   :  { %v1769_v17 = vmul.f32 -1.442695, %v851_v8  ;;  %v808_v19 = vpop.f32.mrb[23].mxu0  ;;  %v849_v1 = vpop.f32.mrb[23].mxu1 }
 0x21d   :  { %v1770_v20 = vmul.f32 -1.442695, %v852_v15  ;;  %v1771_v21 = vmul.f32 -1.442695, %v854_v14 }
 0x21e   :  { %1956 = vpow2.f32 %v1769_v17  ;;  %v3013_v17 = vld [vmem:[#allocation5_spill] sm:$0xff] }
 0x21f   :  { %1958 = vpow2.f32 %v1770_v20 }
 0x220   :  { %1960 = vpow2.f32 %v1771_v21 }
 0x221   :  { %1962 = vtanh.f32 %v853_v12 }
 0x228   :  { %v1957_v27 = vpop.eup %1956 }
 0x229   :  { %v1959_v9 = vpop.eup %1958  ;;  %v858_v24 = vadd.f32 1.0, %v1957_v27 }
 0x22a   :  { %v864_v26 = vadd.f32 1.0, %v1959_v9  ;;  %v1961_v28 = vpop.eup %1960 }
 0x22b   :  { %1964 = vrcp.f32 %v858_v24  ;;  %v1963_v53 = vpop.eup %1962  ;;  %v871_v35 = vadd.f32 1.0, %v1961_v28 }
 0x22c   :  { %1966 = vrcp.f32 %v864_v26 }
 0x22d   :  { %1968 = vrcp.f32 %v871_v35 }
 0x235   :  { %v1965_v29 = vpop.eup %1964 }
 0x236   :  { %v1967_v25 = vpop.eup %1966  ;;  %v875_v11 = vmul.f32 %v1965_v29, %v1963_v53 }
 0x237   :  { %v874_v10 = vmul.f32 %v1967_v25, %v2570_v7  ;;  %v1969_v13 = vpop.eup %1968 }
 0x239   :  { %v2612_v30 = vadd.f32 %v875_v11, %v874_v10 }
 0x23b   :  { %1970 = vtanh.f32 %v2612_v30 }
 0x245   :  { %v1971_v6 = vpop.eup %1970 }
 0x246   :  { %v878_v8 = vmul.f32 %v1971_v6, %v1969_v13 }
 0x248   :  { %v884_v12 = vpack.c.bf16 %v878_v8, %v878_v8 }
 0x24a   :  { %918 = vmatmul.mubr.bf16.vlgmr.msra.gmra.mrb[24].mxu0 %v884_v12  ;;  %959 = vmatmul.mubr.bf16.vlgmr.msra.gmra.mrb[24].mxu1 %v884_v12 }
 0x24b   :  { %1002 = vmatpush1.bf16.msra.mxu0 %v2253_v36  ;;  %1043 = vmatpush1.bf16.msra.mxu1 %v2258_v37 }
 0x24c   :  { %1003 = vmatprep.subr.bf16.mxu0 %v2265_v38  ;;  %1044 = vmatprep.subr.bf16.mxu1 %v2270_v39 }
 0x24d   :  { %1033 = vmatprep.mubr.bf16.mxu0 %v3012_v22  ;;  %1074 = vmatprep.mubr.bf16.mxu1 %v3012_v22 }
 0x24f   :  { %1004 = vmatpush1.bf16.msra.mxu0 %v2275_v40  ;;  %1045 = vmatpush1.bf16.msra.mxu1 %v2282_v41 }
 0x250   :  { %1005 = vmatprep.subr.bf16.mxu0 %v2289_v42  ;;  %1046 = vmatprep.subr.bf16.mxu1 %v2294_v43 }
 0x253   :  { %1006 = vmatpush1.bf16.msra.mxu0 %v2304_v45  ;;  %1047 = vmatpush1.bf16.msra.mxu1 %v2309_v46 }
 0x254   :  { %1007 = vmatprep.subr.bf16.mxu0 %v2316_v47  ;;  %1048 = vmatprep.subr.bf16.mxu1 %v2323_v48 }
 0x257   :  { %1008 = vmatpush1.bf16.msra.mxu0 %v2328_v49  ;;  %1049 = vmatpush1.bf16.msra.mxu1 %v2333_v50 }
 0x258   :  { %1009 = vmatprep.subr.bf16.mxu0 %v2340_v51  ;;  %1050 = vmatprep.subr.bf16.mxu1 %v2347_v52 }
 0x25b   :  { %1010 = vmatpush1.bf16.msra.mxu0 %v2359_v54  ;;  %1051 = vmatpush1.bf16.msra.mxu1 %v2364_v55 }
 0x25c   :  { %1011 = vmatprep.subr.bf16.mxu0 %v2371_v56  ;;  %1052 = vmatprep.subr.bf16.mxu1 %v2376_v57 }
 0x25f   :  { %1012 = vmatpush1.bf16.msra.mxu0 %v2383_v58  ;;  %1053 = vmatpush1.bf16.msra.mxu1 %v2388_v59 }
 0x260   :  { %1013 = vmatprep.subr.bf16.mxu0 %v2395_v60  ;;  %1054 = vmatprep.subr.bf16.mxu1 %v2400_v61 }
 0x263   :  { %1014 = vmatpush1.bf16.msra.mxu0 %v2412_v63  ;;  %1055 = vmatpush1.bf16.msra.mxu1 %v2417_v0 }
 0x264   :  { %1015 = vmatprep.subr.bf16.mxu0 %v2424_v2  ;;  %1056 = vmatprep.subr.bf16.mxu1 %v2429_v3 }
 0x267   :  { %1016 = vmatpush1.bf16.msra.mxu0 %v2436_v4  ;;  %1057 = vmatpush1.bf16.msra.mxu1 %v2441_v5 }
 0x268   :  { %1117 = vmatprep.subr.bf16.mxu0 %v2240_v33  ;;  %1158 = vmatprep.subr.bf16.mxu1 %v2245_v34 }
 0x31d   :  { %v919_v7 = vpop.f32.mrb[24].mxu0  ;;  %v960_v23 = vpop.f32.mrb[24].mxu1 }
 0x31e   :  { %v967_v31 = vadd.f32 %v919_v7, %v2506_v32  ;;  %v969_v15 = vadd.f32 %v960_v23, %v2509_v44  ;;  %v921_v14 = vpop.f32.mrb[25].mxu0  ;;  %v962_v16 = vpop.f32.mrb[25].mxu1 }
 0x31f   :  { %v968_v18 = vadd.f32 %v921_v14, %v2511_v62  ;;  %v970_v19 = vadd.f32 %v962_v16, %v3013_v17  ;;  %v923_v1 = vpop.f32.mrb[26].mxu0  ;;  %v964_v20 = vpop.f32.mrb[26].mxu1  ;;  %v3015_v16 = vld [vmem:[#allocation7_spill] sm:$0xff] }
 0x320   :  { %v1772_v21 = vmul.f32 -1.442695, %v967_v31  ;;  %v924_v27 = vpop.f32.mrb[27].mxu0  ;;  %v965_v9 = vpop.f32.mrb[27].mxu1  ;;  %v3016_v1 = vld [vmem:[#allocation8_spill] sm:$0xff] }
 0x321   :  { %v1773_v24 = vmul.f32 -1.442695, %v968_v18  ;;  %v1774_v26 = vmul.f32 -1.442695, %v970_v19 }
 0x322   :  { %1972 = vpow2.f32 %v1772_v21  ;;  %v3017_v21 = vld [vmem:[#allocation9_spill] sm:$0xff] }
 0x323   :  { %1974 = vpow2.f32 %v1773_v24 }
 0x324   :  { %1976 = vpow2.f32 %v1774_v26 }
 0x325   :  { %1978 = vtanh.f32 %v969_v15  ;;  %v3014_v15 = vld [vmem:[#allocation6_spill] sm:$0xff] }
 0x32c   :  { %v1973_v28 = vpop.eup %1972 }
 0x32d   :  { %v1975_v53 = vpop.eup %1974  ;;  %v974_v32 = vadd.f32 1.0, %v1973_v28 }
 0x32e   :  { %v980_v44 = vadd.f32 1.0, %v1975_v53  ;;  %v1977_v62 = vpop.eup %1976 }
 0x32f   :  { %1980 = vrcp.f32 %v974_v32  ;;  %v1979_v29 = vpop.eup %1978  ;;  %v987_v10 = vadd.f32 1.0, %v1977_v62 }
 0x330   :  { %1982 = vrcp.f32 %v980_v44 }
 0x331   :  { %1984 = vrcp.f32 %v987_v10 }
 0x339   :  { %v1981_v25 = vpop.eup %1980 }
 0x33a   :  { %v1983_v11 = vpop.eup %1982  ;;  %v991_v35 = vmul.f32 %v1981_v25, %v1979_v29 }
 0x33b   :  { %v990_v13 = vmul.f32 %v1983_v11, %v2612_v30  ;;  %v1985_v8 = vpop.eup %1984 }
 0x33d   :  { %v2654_v6 = vadd.f32 %v991_v35, %v990_v13 }
 0x33f   :  { %1986 = vtanh.f32 %v2654_v6 }
 0x349   :  { %v1987_v12 = vpop.eup %1986 }
 0x34a   :  { %v994_v7 = vmul.f32 %v1987_v12, %v1985_v8 }
 0x34c   :  { %v1000_v23 = vpack.c.bf16 %v994_v7, %v994_v7 }
 0x34e   :  { %1034 = vmatmul.mubr.bf16.vlgmr.msra.gmra.mrb[28].mxu0 %v1000_v23  ;;  %1075 = vmatmul.mubr.bf16.vlgmr.msra.gmra.mrb[28].mxu1 %v1000_v23 }
 0x34f   :  { %1118 = vmatpush1.bf16.msra.mxu0 %v2253_v36  ;;  %1159 = vmatpush1.bf16.msra.mxu1 %v2258_v37 }
 0x350   :  { %1119 = vmatprep.subr.bf16.mxu0 %v2265_v38  ;;  %1160 = vmatprep.subr.bf16.mxu1 %v2270_v39 }
 0x351   :  { %1149 = vmatprep.mubr.bf16.mxu0 %v3012_v22  ;;  %1190 = vmatprep.mubr.bf16.mxu1 %v3012_v22 }
 0x353   :  { %1120 = vmatpush1.bf16.msra.mxu0 %v2275_v40  ;;  %1161 = vmatpush1.bf16.msra.mxu1 %v2282_v41 }
 0x354   :  { %1121 = vmatprep.subr.bf16.mxu0 %v2289_v42  ;;  %1162 = vmatprep.subr.bf16.mxu1 %v2294_v43 }
 0x357   :  { %1122 = vmatpush1.bf16.msra.mxu0 %v2304_v45  ;;  %1163 = vmatpush1.bf16.msra.mxu1 %v2309_v46 }
 0x358   :  { %1123 = vmatprep.subr.bf16.mxu0 %v2316_v47  ;;  %1164 = vmatprep.subr.bf16.mxu1 %v2323_v48 }
 0x35b   :  { %1124 = vmatpush1.bf16.msra.mxu0 %v2328_v49  ;;  %1165 = vmatpush1.bf16.msra.mxu1 %v2333_v50 }
 0x35c   :  { %1125 = vmatprep.subr.bf16.mxu0 %v2340_v51  ;;  %1166 = vmatprep.subr.bf16.mxu1 %v2347_v52 }
 0x35f   :  { %1126 = vmatpush1.bf16.msra.mxu0 %v2359_v54  ;;  %1167 = vmatpush1.bf16.msra.mxu1 %v2364_v55 }
 0x360   :  { %1127 = vmatprep.subr.bf16.mxu0 %v2371_v56  ;;  %1168 = vmatprep.subr.bf16.mxu1 %v2376_v57 }
 0x363   :  { %1128 = vmatpush1.bf16.msra.mxu0 %v2383_v58  ;;  %1169 = vmatpush1.bf16.msra.mxu1 %v2388_v59 }
 0x364   :  { %1129 = vmatprep.subr.bf16.mxu0 %v2395_v60  ;;  %1170 = vmatprep.subr.bf16.mxu1 %v2400_v61 }
 0x367   :  { %1130 = vmatpush1.bf16.msra.mxu0 %v2412_v63  ;;  %1171 = vmatpush1.bf16.msra.mxu1 %v2417_v0 }
 0x368   :  { %1131 = vmatprep.subr.bf16.mxu0 %v2424_v2  ;;  %1172 = vmatprep.subr.bf16.mxu1 %v2429_v3 }
 0x36b   :  { %1132 = vmatpush1.bf16.msra.mxu0 %v2436_v4  ;;  %1173 = vmatpush1.bf16.msra.mxu1 %v2441_v5 }
 0x36c   :  { %1233 = vmatprep.subr.bf16.mxu0 %v2240_v33  ;;  %1274 = vmatprep.subr.bf16.mxu1 %v2245_v34 }
 0x421   :  { %v1035_v30 = vpop.f32.mrb[28].mxu0  ;;  %v1076_v31 = vpop.f32.mrb[28].mxu1 }
 0x422   :  { %v1083_v14 = vadd.f32 %v1035_v30, %v3014_v15  ;;  %v1085_v18 = vadd.f32 %v1076_v31, %v3015_v16  ;;  %v1037_v17 = vpop.f32.mrb[29].mxu0  ;;  %v1078_v19 = vpop.f32.mrb[29].mxu1 }
 0x423   :  { %v1084_v20 = vadd.f32 %v1037_v17, %v3016_v1  ;;  %v1086_v27 = vadd.f32 %v1078_v19, %v3017_v21  ;;  %v1039_v9 = vpop.f32.mrb[30].mxu0  ;;  %v1080_v24 = vpop.f32.mrb[30].mxu1 }
 0x424   :  { %v1775_v26 = vmul.f32 -1.442695, %v1083_v14  ;;  %v1040_v28 = vpop.f32.mrb[31].mxu0  ;;  %v1081_v53 = vpop.f32.mrb[31].mxu1 }
 0x425   :  { %v1776_v33 = vmul.f32 -1.442695, %v1084_v20  ;;  %v1777_v34 = vmul.f32 -1.442695, %v1086_v27 }
 0x426   :  { %1988 = vpow2.f32 %v1775_v26 }
 0x427   :  { %1990 = vpow2.f32 %v1776_v33 }
 0x428   :  { %1992 = vpow2.f32 %v1777_v34 }
 0x429   :  { %1994 = vtanh.f32 %v1085_v18 }
 0x430   :  { %v1989_v32 = vpop.eup %1988 }
 0x431   :  { %v1991_v44 = vpop.eup %1990  ;;  %v1090_v62 = vadd.f32 1.0, %v1989_v32 }
 0x432   :  { %v1096_v29 = vadd.f32 1.0, %v1991_v44  ;;  %v1993_v25 = vpop.eup %1992 }
 0x433   :  { %1996 = vrcp.f32 %v1090_v62  ;;  %v1995_v11 = vpop.eup %1994  ;;  %v1103_v8 = vadd.f32 1.0, %v1993_v25  ;;  %v2754_v62 = vld [vmem:[%s2984_s2] ss:$16 sps:$4 sm:$0xff]   ;;  %v2766_v25 = vld [vmem:[%s2984_s2 + $0x24] ss:$16 sps:$4 sm:$0xff]  }
 0x434   :  { %1998 = vrcp.f32 %v1096_v29  ;;  %v2760_v29 = vld [vmem:[%s2984_s2 + $0x8] ss:$16 sps:$4 sm:$0xff]  }
 0x435   :  { %2000 = vrcp.f32 %v1103_v8  ;;  %v2798_v8 = vld [vmem:[%s2984_s2 + $0x4c] ss:$16 sps:$4 sm:$0xff]  }
 0x43d   :  { %v1997_v35 = vpop.eup %1996 }
 0x43e   :  { %v1999_v10 = vpop.eup %1998  ;;  %v1107_v13 = vmul.f32 %v1997_v35, %v1995_v11  ;;  %v2772_v11 = vld [vmem:[%s2984_s2 + $0x2c] ss:$16 sps:$4 sm:$0xff]   ;;  %v2780_v35 = vld [vmem:[%s2984_s2 + $0x20] ss:$16 sps:$4 sm:$0xff]  }
 0x43f   :  { %v1106_v12 = vmul.f32 %v1999_v10, %v2654_v6  ;;  %v2001_v23 = vpop.eup %2000  ;;  %v2786_v10 = vld [vmem:[%s2984_s2 + $0x28] ss:$16 sps:$4 sm:$0xff]  }
 0x441   :  { %v2696_v7 = vadd.f32 %v1107_v13, %v1106_v12  ;;  %v2792_v13 = vld [vmem:[%s2984_s2 + $0x44] ss:$16 sps:$4 sm:$0xff]   ;;  %v2804_v12 = vld [vmem:[%s2984_s2 + $0x40] ss:$16 sps:$4 sm:$0xff]  }
 0x443   :  { %2002 = vtanh.f32 %v2696_v7 }
 0x44d   :  { %v2003_v30 = vpop.eup %2002 }
 0x44e   :  { %v1110_v31 = vmul.f32 %v2003_v30, %v2001_v23  ;;  %v2816_v23 = vld [vmem:[%s2984_s2 + $0x64] ss:$16 sps:$4 sm:$0xff]   ;;  %v2822_v30 = vld [vmem:[%s2984_s2 + $0x6c] ss:$16 sps:$4 sm:$0xff]  }
 0x450   :  { %v1116_v15 = vpack.c.bf16 %v1110_v31, %v1110_v31  ;;  %v2828_v31 = vld [vmem:[%s2984_s2 + $0x60] ss:$16 sps:$4 sm:$0xff]  }
 0x452   :  { %1150 = vmatmul.mubr.bf16.vlgmr.msra.gmra.mrb[32].mxu0 %v1116_v15  ;;  %1191 = vmatmul.mubr.bf16.vlgmr.msra.gmra.mrb[32].mxu1 %v1116_v15  ;;  %v2834_v15 = vld [vmem:[%s2984_s2 + $0x68] ss:$16 sps:$4 sm:$0xff]  }
 0x453   :  { %1234 = vmatpush1.bf16.msra.mxu0 %v2253_v36  ;;  %1275 = vmatpush1.bf16.msra.mxu1 %v2258_v37  ;;  %v2734_v36 = vld [vmem:[%s2984_s2 + $0x4] ss:$16 sps:$4 sm:$0xff]   ;;  %v2740_v37 = vld [vmem:[%s2984_s2 + $0xc] ss:$16 sps:$4 sm:$0xff]  }
 0x454   :  { %1235 = vmatprep.subr.bf16.mxu0 %v2265_v38  ;;  %1276 = vmatprep.subr.bf16.mxu1 %v2270_v39 }
 0x455   :  { %1265 = vmatprep.mubr.bf16.mxu0 %v3012_v22  ;;  %1306 = vmatprep.mubr.bf16.mxu1 %v3012_v22 }
 0x457   :  { %1236 = vmatpush1.bf16.msra.mxu0 %v2275_v40  ;;  %1277 = vmatpush1.bf16.msra.mxu1 %v2282_v41  ;;  %v3018_v40 = vld [vmem:[#allocation10_spill] sm:$0xff] }
 0x458   :  { %1237 = vmatprep.subr.bf16.mxu0 %v2289_v42  ;;  %1278 = vmatprep.subr.bf16.mxu1 %v2294_v43  ;;  %v3019_v42 = vld [vmem:[#allocation11_spill] sm:$0xff] }
 0x45b   :  { %1238 = vmatpush1.bf16.msra.mxu0 %v2304_v45  ;;  %1279 = vmatpush1.bf16.msra.mxu1 %v2309_v46 }
 0x45c   :  { %1239 = vmatprep.subr.bf16.mxu0 %v2316_v47  ;;  %1280 = vmatprep.subr.bf16.mxu1 %v2323_v48  ;;  %v3020_v47 = vld [vmem:[#allocation12_spill] sm:$0xff] }
 0x45f   :  { %1240 = vmatpush1.bf16.msra.mxu0 %v2328_v49  ;;  %1281 = vmatpush1.bf16.msra.mxu1 %v2333_v50  ;;  %v3021_v49 = vld [vmem:[#allocation13_spill] sm:$0xff] }
 0x460   :  { %1241 = vmatprep.subr.bf16.mxu0 %v2340_v51  ;;  %1282 = vmatprep.subr.bf16.mxu1 %v2347_v52 }
 0x463   :  { %1242 = vmatpush1.bf16.msra.mxu0 %v2359_v54  ;;  %1283 = vmatpush1.bf16.msra.mxu1 %v2364_v55 }
 0x464   :  { %1243 = vmatprep.subr.bf16.mxu0 %v2371_v56  ;;  %1284 = vmatprep.subr.bf16.mxu1 %v2376_v57 }
 0x467   :  { %1244 = vmatpush1.bf16.msra.mxu0 %v2383_v58  ;;  %1285 = vmatpush1.bf16.msra.mxu1 %v2388_v59 }
 0x468   :  { %1245 = vmatprep.subr.bf16.mxu0 %v2395_v60  ;;  %1286 = vmatprep.subr.bf16.mxu1 %v2400_v61 }
 0x46b   :  { %1246 = vmatpush1.bf16.msra.mxu0 %v2412_v63  ;;  %1287 = vmatpush1.bf16.msra.mxu1 %v2417_v0 }
 0x46c   :  { %1247 = vmatprep.subr.bf16.mxu0 %v2424_v2  ;;  %1288 = vmatprep.subr.bf16.mxu1 %v2429_v3 }
 0x46f   :  { %1248 = vmatpush1.bf16.msra.mxu0 %v2436_v4  ;;  %1289 = vmatpush1.bf16.msra.mxu1 %v2441_v5 }
 0x470   :  { %1349 = vmatprep.subr.bf16.mxu0 %v2734_v36  ;;  %1390 = vmatprep.subr.bf16.mxu1 %v2740_v37 }
 0x525   :  { %v1151_v38 = vpop.f32.mrb[32].mxu0  ;;  %v1192_v39 = vpop.f32.mrb[32].mxu1 }
 0x526   :  { %v1199_v41 = vadd.f32 %v1151_v38, %v3018_v40  ;;  %v1201_v43 = vadd.f32 %v1192_v39, %v3019_v42  ;;  %v1153_v45 = vpop.f32.mrb[33].mxu0  ;;  %v1194_v46 = vpop.f32.mrb[33].mxu1  ;;  %v2840_v38 = vld [vmem:[%s2984_s2 + $0x84] ss:$16 sps:$4 sm:$0xff]   ;;  %v2846_v39 = vld [vmem:[%s2984_s2 + $0x8c] ss:$16 sps:$4 sm:$0xff]  }
 0x527   :  { %v1200_v48 = vadd.f32 %v1153_v45, %v3020_v47  ;;  %v1202_v50 = vadd.f32 %v1194_v46, %v3021_v49  ;;  %v1155_v51 = vpop.f32.mrb[34].mxu0  ;;  %v1196_v52 = vpop.f32.mrb[34].mxu1  ;;  %v2852_v40 = vld [vmem:[%s2984_s2 + $0x80] ss:$16 sps:$4 sm:$0xff]   ;;  %v3024_v42 = vld [vmem:[#allocation16_spill] sm:$0xff] }
 0x528   :  { %v1778_v54 = vmul.f32 -1.442695, %v1199_v41  ;;  %v1156_v55 = vpop.f32.mrb[35].mxu0  ;;  %v1197_v6 = vpop.f32.mrb[35].mxu1  ;;  %v2858_v41 = vld [vmem:[%s2984_s2 + $0x88] ss:$16 sps:$4 sm:$0xff]  }
 0x529   :  { %v1779_v14 = vmul.f32 -1.442695, %v1200_v48  ;;  %v1780_v16 = vmul.f32 -1.442695, %v1202_v50 }
 0x52a   :  { %2004 = vpow2.f32 %v1778_v54 }
 0x52b   :  { %2006 = vpow2.f32 %v1779_v14 }
 0x52c   :  { %2008 = vpow2.f32 %v1780_v16 }
 0x52d   :  { %2010 = vtanh.f32 %v1201_v43  ;;  %v3025_v43 = vld [vmem:[#allocation17_spill] sm:$0xff] }
 0x534   :  { %v2005_v18 = vpop.eup %2004 }
 0x535   :  { %v2007_v17 = vpop.eup %2006  ;;  %v1206_v19 = vadd.f32 1.0, %v2005_v18 }
 0x536   :  { %v1212_v1 = vadd.f32 1.0, %v2007_v17  ;;  %v2009_v20 = vpop.eup %2008 }
 0x537   :  { %2012 = vrcp.f32 %v1206_v19  ;;  %v2011_v21 = vpop.eup %2010  ;;  %v1219_v26 = vadd.f32 1.0, %v2009_v20 }
 0x538   :  { %2014 = vrcp.f32 %v1212_v1 }
 0x539   :  { %2016 = vrcp.f32 %v1219_v26  ;;  %v2092_v26 = vld [vmem:[%s2984_s2 + $0xc4] ss:$16 sps:$4 sm:$0xff]  }
 0x541   :  { %v2013_v27 = vpop.eup %2012 }
 0x542   :  { %v2015_v9 = vpop.eup %2014  ;;  %v1223_v24 = vmul.f32 %v2013_v27, %v2011_v21  ;;  %v2089_v27 = vld [vmem:[%s2984_s2 + $0xac] ss:$16 sps:$4 sm:$0xff]  }
 0x543   :  { %v1222_v28 = vmul.f32 %v2015_v9, %v2696_v7  ;;  %v2017_v33 = vpop.eup %2016  ;;  %v2810_v7 = vld [vmem:[%s2984_s2 + $0x48] ss:$16 sps:$4 sm:$0xff]   ;;  %v2090_v9 = vld [vmem:[%s2984_s2 + $0xa0] ss:$16 sps:$4 sm:$0xff]  }
 0x545   :  { %v2748_v53 = vadd.f32 %v1223_v24, %v1222_v28  ;;  %v2091_v24 = vld [vmem:[%s2984_s2 + $0xa8] ss:$16 sps:$4 sm:$0xff]   ;;  %v2093_v28 = vld [vmem:[%s2984_s2 + $0xcc] ss:$16 sps:$4 sm:$0xff]  }
 0x547   :  { %2018 = vtanh.f32 %v2748_v53 }
 0x551   :  { %v2019_v34 = vpop.eup %2018 }
 0x552   :  { %v1226_v32 = vmul.f32 %v2019_v34, %v2017_v33  ;;  %v2095_v33 = vld [vmem:[%s2984_s2 + $0xc8] ss:$16 sps:$4 sm:$0xff]   ;;  %v2096_v34 = vld [vmem:[%s2984_s2 + $0xe4] ss:$16 sps:$4 sm:$0xff]  }
 0x554   :  { %v1232_v44 = vpack.c.bf16 %v1226_v32, %v1226_v32  ;;  %v2097_v32 = vld [vmem:[%s2984_s2 + $0xec] ss:$16 sps:$4 sm:$0xff]  }
 0x556   :  { %1266 = vmatmul.mubr.bf16.vlgmr.msra.gmra.mrb[36].mxu0 %v1232_v44  ;;  %1307 = vmatmul.mubr.bf16.vlgmr.msra.gmra.mrb[36].mxu1 %v1232_v44  ;;  %v2098_v44 = vld [vmem:[%s2984_s2 + $0xe0] ss:$16 sps:$4 sm:$0xff]  }
 0x557   :  { %1350 = vmatpush1.bf16.msra.mxu0 %v2754_v62  ;;  %1391 = vmatpush1.bf16.msra.mxu1 %v2760_v29 }
 0x558   :  { %1351 = vmatprep.subr.bf16.mxu0 %v2766_v25  ;;  %1392 = vmatprep.subr.bf16.mxu1 %v2772_v11 }
 0x559   :  { %1381 = vmatprep.mubr.bf16.mxu0 %v3012_v22  ;;  %1422 = vmatprep.mubr.bf16.mxu1 %v3012_v22 }
 0x55b   :  { %1352 = vmatpush1.bf16.msra.mxu0 %v2780_v35  ;;  %1393 = vmatpush1.bf16.msra.mxu1 %v2786_v10 }
 0x55c   :  { %1353 = vmatprep.subr.bf16.mxu0 %v2792_v13  ;;  %1394 = vmatprep.subr.bf16.mxu1 %v2798_v8 }
 0x55f   :  { %1354 = vmatpush1.bf16.msra.mxu0 %v2804_v12  ;;  %1395 = vmatpush1.bf16.msra.mxu1 %v2810_v7 }
 0x560   :  { %1355 = vmatprep.subr.bf16.mxu0 %v2816_v23  ;;  %1396 = vmatprep.subr.bf16.mxu1 %v2822_v30 }
 0x563   :  { %1356 = vmatpush1.bf16.msra.mxu0 %v2828_v31  ;;  %1397 = vmatpush1.bf16.msra.mxu1 %v2834_v15 }
 0x564   :  { %1357 = vmatprep.subr.bf16.mxu0 %v2840_v38  ;;  %1398 = vmatprep.subr.bf16.mxu1 %v2846_v39 }
 0x567   :  { %1358 = vmatpush1.bf16.msra.mxu0 %v2852_v40  ;;  %1399 = vmatpush1.bf16.msra.mxu1 %v2858_v41 }
 0x568   :  { %1359 = vmatprep.subr.bf16.mxu0 %v2371_v56  ;;  %1400 = vmatprep.subr.bf16.mxu1 %v2376_v57 }
 0x56b   :  { %1360 = vmatpush1.bf16.msra.mxu0 %v2383_v58  ;;  %1401 = vmatpush1.bf16.msra.mxu1 %v2388_v59  ;;  %v3022_v58 = vld [vmem:[#allocation14_spill] sm:$0xff] }
 0x56c   :  { %1361 = vmatprep.subr.bf16.mxu0 %v2395_v60  ;;  %1402 = vmatprep.subr.bf16.mxu1 %v2400_v61  ;;  %v3023_v60 = vld [vmem:[#allocation15_spill] sm:$0xff] }
 0x56f   :  { %1362 = vmatpush1.bf16.msra.mxu0 %v2412_v63  ;;  %1403 = vmatpush1.bf16.msra.mxu1 %v2417_v0 }
 0x570   :  { %1363 = vmatprep.subr.bf16.mxu0 %v2424_v2  ;;  %1404 = vmatprep.subr.bf16.mxu1 %v2429_v3 }
 0x573   :  { %1364 = vmatpush1.bf16.msra.mxu0 %v2436_v4  ;;  %1405 = vmatpush1.bf16.msra.mxu1 %v2441_v5 }
 0x574   :  { %1465 = vmatprep.subr.bf16.mxu0 %v2734_v36  ;;  %1506 = vmatprep.subr.bf16.mxu1 %v2740_v37 }
 0x629   :  { %v1267_v56 = vpop.f32.mrb[36].mxu0  ;;  %v1308_v57 = vpop.f32.mrb[36].mxu1 }
 0x62a   :  { %v1315_v59 = vadd.f32 %v1267_v56, %v3022_v58  ;;  %v1317_v61 = vadd.f32 %v1308_v57, %v3023_v60  ;;  %v1269_v63 = vpop.f32.mrb[37].mxu0  ;;  %v1310_v0 = vpop.f32.mrb[37].mxu1 }
 0x62b   :  { %v1316_v2 = vadd.f32 %v1269_v63, %v3024_v42  ;;  %v1318_v3 = vadd.f32 %v1310_v0, %v3025_v43  ;;  %v1271_v45 = vpop.f32.mrb[38].mxu0  ;;  %v1312_v4 = vpop.f32.mrb[38].mxu1 }
 0x62c   :  { %v1781_v46 = vmul.f32 -1.442695, %v1315_v59  ;;  %v1272_v5 = vpop.f32.mrb[39].mxu0  ;;  %v1313_v47 = vpop.f32.mrb[39].mxu1 }
 0x62d   :  { %v1782_v36 = vmul.f32 -1.442695, %v1316_v2  ;;  %v1783_v37 = vmul.f32 -1.442695, %v1318_v3 }
 0x62e   :  { %2020 = vpow2.f32 %v1781_v46 }
 0x62f   :  { %2022 = vpow2.f32 %v1782_v36 }
 0x630   :  { %2024 = vpow2.f32 %v1783_v37  ;;  %v1932_v37 = vld [vmem:[%s2986_s4] sm:$0xff]  }
 0x631   :  { %2026 = vtanh.f32 %v1317_v61 }
 0x638   :  { %v2021_v48 = vpop.eup %2020 }
 0x639   :  { %v2023_v49 = vpop.eup %2022  ;;  %v1322_v50 = vadd.f32 1.0, %v2021_v48  ;;  %v2102_v48 = vmov 0.0  }
 0x63a   :  { %v1328_v51 = vadd.f32 1.0, %v2023_v49  ;;  %v2025_v52 = vpop.eup %2024  ;;  %v1933_v49 = vld [vmem:[%s2986_s4 + $0x8] sm:$0xff]  }
 0x63b   :  { %2028 = vrcp.f32 %v1322_v50  ;;  %v2027_v54 = vpop.eup %2026  ;;  %v1335_v16 = vadd.f32 1.0, %v2025_v52  ;;  %v1934_v50 = vld [vmem:[%s2986_s4 + $0x10] sm:$0xff]   ;;  %v1936_v52 = vld [vmem:[%s2986_s4 + $0x20] sm:$0xff]  }
 0x63c   :  { %2030 = vrcp.f32 %v1328_v51  ;;  %v1935_v51 = vld [vmem:[%s2986_s4 + $0x18] sm:$0xff]  }
 0x63d   :  { %2032 = vrcp.f32 %v1335_v16 }
 0x645   :  { %v2029_v55 = vpop.eup %2028 }
 0x646   :  { %v2031_v6 = vpop.eup %2030  ;;  %v1339_v14 = vmul.f32 %v2029_v55, %v2027_v54  ;;  %v1937_v54 = vld [vmem:[%s2986_s4 + $0x28] sm:$0xff]   ;;  %v1938_v55 = vld [vmem:[%s2986_s4 + $0x30] sm:$0xff]  }
 0x647   :  { %v1338_v18 = vmul.f32 %v2031_v6, %v2748_v53  ;;  %v2033_v19 = vpop.eup %2032  ;;  %v2094_v53 = vld [vmem:[%s2984_s2 + $0xc0] ss:$16 sps:$4 sm:$0xff]   ;;  %v1939_v6 = vld [vmem:[%s2986_s4 + $0x38] sm:$0xff]  }
 0x649   :  { %v2880_v17 = vadd.f32 %v1339_v14, %v1338_v18  ;;  %v3030_v18 = vld [vmem:[#allocation22_spill] sm:$0xff] }
 0x64b   :  { %2034 = vtanh.f32 %v2880_v17 }
 0x655   :  { %v2035_v1 = vpop.eup %2034 }
 0x656   :  { %v1342_v20 = vmul.f32 %v2035_v1, %v2033_v19  ;;  %v3031_v19 = vld [vmem:[#allocation23_spill] sm:$0xff] }
 0x658   :  { %v1348_v21 = vpack.c.bf16 %v1342_v20, %v1342_v20 }
 0x65a   :  { %1382 = vmatmul.mubr.bf16.vlgmr.msra.gmra.mrb[40].mxu0 %v1348_v21  ;;  %1423 = vmatmul.mubr.bf16.vlgmr.msra.gmra.mrb[40].mxu1 %v1348_v21 }
 0x65b   :  { %1466 = vmatpush1.bf16.msra.mxu0 %v2754_v62  ;;  %1507 = vmatpush1.bf16.msra.mxu1 %v2760_v29  ;;  %v2099_v62 = vld [vmem:[%s2984_s2 + $0xe8] ss:$16 sps:$4 sm:$0xff]  }
 0x65c   :  { %1467 = vmatprep.subr.bf16.mxu0 %v2766_v25  ;;  %1508 = vmatprep.subr.bf16.mxu1 %v2772_v11  ;;  %v3026_v11 = vld [vmem:[#allocation18_spill] sm:$0xff] }
 0x65d   :  { %1497 = vmatprep.mubr.bf16.mxu0 %v3012_v22  ;;  %1538 = vmatprep.mubr.bf16.mxu1 %v3012_v22  ;;  %v2088_v22 = vld [vmem:[%s2984_s2 + $0xa4] ss:$16 sps:$4 sm:$0xff]  }
 0x65f   :  { %1468 = vmatpush1.bf16.msra.mxu0 %v2780_v35  ;;  %1509 = vmatpush1.bf16.msra.mxu1 %v2786_v10  ;;  %v3027_v10 = vld [vmem:[#allocation19_spill] sm:$0xff] }
 0x660   :  { %1469 = vmatprep.subr.bf16.mxu0 %v2792_v13  ;;  %1510 = vmatprep.subr.bf16.mxu1 %v2798_v8 }
 0x663   :  { %1470 = vmatpush1.bf16.msra.mxu0 %v2804_v12  ;;  %1511 = vmatpush1.bf16.msra.mxu1 %v2810_v7  ;;  %v3028_v7 = vld [vmem:[#allocation20_spill] sm:$0xff] }
 0x664   :  { %1471 = vmatprep.subr.bf16.mxu0 %v2816_v23  ;;  %1512 = vmatprep.subr.bf16.mxu1 %v2822_v30  ;;  %v3029_v30 = vld [vmem:[#allocation21_spill] sm:$0xff] }
 0x667   :  { %1472 = vmatpush1.bf16.msra.mxu0 %v2828_v31  ;;  %1513 = vmatpush1.bf16.msra.mxu1 %v2834_v15 }
 0x668   :  { %1473 = vmatprep.subr.bf16.mxu0 %v2840_v38  ;;  %1514 = vmatprep.subr.bf16.mxu1 %v2846_v39 }
 0x66b   :  { %1474 = vmatpush1.bf16.msra.mxu0 %v2852_v40  ;;  %1515 = vmatpush1.bf16.msra.mxu1 %v2858_v41 }
 0x66c   :  { %1475 = vmatprep.subr.bf16.mxu0 %v2088_v22  ;;  %1516 = vmatprep.subr.bf16.mxu1 %v2089_v27  ;;  %v3032_v22 = vld [vmem:[#allocation24_spill] sm:$0xff] }
 0x66f   :  { %1476 = vmatpush1.bf16.msra.mxu0 %v2090_v9  ;;  %1517 = vmatpush1.bf16.msra.mxu1 %v2091_v24  ;;  %v3033_v9 = vld [vmem:[#allocation25_spill] sm:$0xff] }
 0x670   :  { %1477 = vmatprep.subr.bf16.mxu0 %v2092_v26  ;;  %1518 = vmatprep.subr.bf16.mxu1 %v2093_v28 }
 0x673   :  { %1478 = vmatpush1.bf16.msra.mxu0 %v2094_v53  ;;  %1519 = vmatpush1.bf16.msra.mxu1 %v2095_v33 }
 0x674   :  { %1479 = vmatprep.subr.bf16.mxu0 %v2096_v34  ;;  %1520 = vmatprep.subr.bf16.mxu1 %v2097_v32 }
 0x677   :  { %1480 = vmatpush1.bf16.msra.mxu0 %v2098_v44  ;;  %1521 = vmatpush1.bf16.msra.mxu1 %v2099_v62 }
 0x678   :  { %1808 = vmatprep.subr.bf16.mxu0 %v2102_v48 }
 0x72d   :  { %v1383_v29 = vpop.f32.mrb[40].mxu0  ;;  %v1424_v25 = vpop.f32.mrb[40].mxu1 }
 0x72e   :  { %v1431_v35 = vadd.f32 %v1383_v29, %v3026_v11  ;;  %v1433_v13 = vadd.f32 %v1424_v25, %v3027_v10  ;;  %v1385_v8 = vpop.f32.mrb[41].mxu0  ;;  %v1426_v12 = vpop.f32.mrb[41].mxu1 }
 0x72f   :  { %v1432_v23 = vadd.f32 %v1385_v8, %v3028_v7  ;;  %v1434_v31 = vadd.f32 %v1426_v12, %v3029_v30  ;;  %v1387_v15 = vpop.f32.mrb[42].mxu0  ;;  %v1428_v38 = vpop.f32.mrb[42].mxu1 }
 0x730   :  { %v1784_v39 = vmul.f32 -1.442695, %v1431_v35  ;;  %v1388_v40 = vpop.f32.mrb[43].mxu0  ;;  %v1429_v41 = vpop.f32.mrb[43].mxu1 }
 0x731   :  { %v1785_v56 = vmul.f32 -1.442695, %v1432_v23  ;;  %v1786_v57 = vmul.f32 -1.442695, %v1434_v31  ;;  %v1790_v40 = vld [vmem:[%s2987_s5] ss:$0 sm:$0xff] }
 0x732   :  { %2036 = vpow2.f32 %v1784_v39 }
 0x733   :  { %2038 = vpow2.f32 %v1785_v56 }
 0x734   :  { %2040 = vpow2.f32 %v1786_v57 }
 0x735   :  { %2042 = vtanh.f32 %v1433_v13 }
 0x73c   :  { %v2037_v58 = vpop.eup %2036 }
 0x73d   :  { %v2039_v59 = vpop.eup %2038  ;;  %v1438_v60 = vadd.f32 1.0, %v2037_v58 }
 0x73e   :  { %v1444_v61 = vadd.f32 1.0, %v2039_v59  ;;  %v2041_v63 = vpop.eup %2040 }
 0x73f   :  { %2044 = vrcp.f32 %v1438_v60  ;;  %v2043_v0 = vpop.eup %2042  ;;  %v1451_v3 = vadd.f32 1.0, %v2041_v63 }
 0x740   :  { %2046 = vrcp.f32 %v1444_v61 }
 0x741   :  { %2048 = vrcp.f32 %v1451_v3 }
 0x749   :  { %v2045_v42 = vpop.eup %2044 }
 0x74a   :  { %v2047_v2 = vpop.eup %2046  ;;  %v1455_v43 = vmul.f32 %v2045_v42, %v2043_v0 }
 0x74b   :  { %v1454_v45 = vmul.f32 %v2047_v2, %v2880_v17  ;;  %v2049_v46 = vpop.eup %2048 }
 0x74d   :  { %v2944_v4 = vadd.f32 %v1455_v43, %v1454_v45 }
 0x74f   :  { %2050 = vtanh.f32 %v2944_v4 }
 0x759   :  { %v2051_v5 = vpop.eup %2050 }
 0x75a   :  { %v1458_v47 = vmul.f32 %v2051_v5, %v2049_v46 }
 0x75c   :  { %v1464_v36 = vpack.c.bf16 %v1458_v47, %v1458_v47 }
 0x75e   :  { %1498 = vmatmul.mubr.bf16.vlgmr.msra.gmra.mrb[44].mxu0 %v1464_v36  ;;  %1539 = vmatmul.mubr.bf16.vlgmr.msra.gmra.mrb[44].mxu1 %v1464_v36 }
 0x75f   :  { %1809 = vmatpush3.bf16.msra.mxu0 %v1932_v37  ;;  %1824 = vmatprep.mubr.msk.bf16.mxu0 %vm2103_vm0, %v2102_v48 }
 0x760   :  { %1810 = vmatprep.subr.bf16.mxu0 %v2102_v48 }
 0x763   :  { %1811 = vmatpush3.bf16.msra.mxu0 %v1933_v49 }
 0x764   :  { %1812 = vmatprep.subr.bf16.mxu0 %v2102_v48 }
 0x767   :  { %1813 = vmatpush3.bf16.msra.mxu0 %v1934_v50 }
 0x768   :  { %1814 = vmatprep.subr.bf16.mxu0 %v2102_v48 }
 0x76b   :  { %1815 = vmatpush3.bf16.msra.mxu0 %v1935_v51 }
 0x76c   :  { %1816 = vmatprep.subr.bf16.mxu0 %v2102_v48 }
 0x76f   :  { %1817 = vmatpush3.bf16.msra.mxu0 %v1936_v52 }
 0x770   :  { %1818 = vmatprep.subr.bf16.mxu0 %v2102_v48 }
 0x773   :  { %1819 = vmatpush3.bf16.msra.mxu0 %v1937_v54 }
 0x774   :  { %1820 = vmatprep.subr.bf16.mxu0 %v2102_v48 }
 0x777   :  { %1821 = vmatpush3.bf16.msra.mxu0 %v1938_v55 }
 0x778   :  { %1822 = vmatprep.subr.bf16.mxu0 %v2102_v48 }
 0x77b   :  { %1823 = vmatpush3.bf16.msra.mxu0 %v1939_v6 }
 0x831   :  { %v1499_v14 = vpop.f32.mrb[44].mxu0  ;;  %v1540_v16 = vpop.f32.mrb[44].mxu1 }
 0x832   :  { %v1547_v17 = vadd.f32 %v1499_v14, %v3030_v18  ;;  %v1549_v1 = vadd.f32 %v1540_v16, %v3031_v19  ;;  %v1501_v20 = vpop.f32.mrb[45].mxu0  ;;  %v1542_v21 = vpop.f32.mrb[45].mxu1 }
 0x833   :  { %v1548_v27 = vadd.f32 %v1501_v20, %v3032_v22  ;;  %v1550_v24 = vadd.f32 %v1542_v21, %v3033_v9  ;;  %v1503_v26 = vpop.f32.mrb[46].mxu0  ;;  %v1544_v28 = vpop.f32.mrb[46].mxu1 }
 0x834   :  { %v1787_v53 = vmul.f32 -1.442695, %v1547_v17  ;;  %v1504_v33 = vpop.f32.mrb[47].mxu0  ;;  %v1545_v34 = vpop.f32.mrb[47].mxu1 }
 0x835   :  { %v1788_v32 = vmul.f32 -1.442695, %v1548_v27  ;;  %v1789_v44 = vmul.f32 -1.442695, %v1550_v24 }
 0x836   :  { %2052 = vpow2.f32 %v1787_v53 }
 0x837   :  { %2054 = vpow2.f32 %v1788_v32 }
 0x838   :  { %2056 = vpow2.f32 %v1789_v44 }
 0x839   :  { %2058 = vtanh.f32 %v1549_v1 }
 0x840   :  { %v2053_v62 = vpop.eup %2052 }
 0x841   :  { %v2055_v29 = vpop.eup %2054  ;;  %v1554_v25 = vadd.f32 1.0, %v2053_v62 }
 0x842   :  { %v1560_v11 = vadd.f32 1.0, %v2055_v29  ;;  %v2057_v35 = vpop.eup %2056 }
 0x843   :  { %2060 = vrcp.f32 %v1554_v25  ;;  %v2059_v10 = vpop.eup %2058  ;;  %v1567_v7 = vadd.f32 1.0, %v2057_v35 }
 0x844   :  { %2062 = vrcp.f32 %v1560_v11 }
 0x845   :  { %2064 = vrcp.f32 %v1567_v7 }
 0x84d   :  { %v2061_v13 = vpop.eup %2060 }
 0x84e   :  { %v2063_v8 = vpop.eup %2062  ;;  %v1571_v12 = vmul.f32 %v2061_v13, %v2059_v10 }
 0x84f   :  { %v1570_v23 = vmul.f32 %v2063_v8, %v2944_v4  ;;  %v2065_v31 = vpop.eup %2064 }
 0x851   :  { %v1572_v30 = vadd.f32 %v1571_v12, %v1570_v23 }
 0x853   :  { %2066 = vtanh.f32 %v1572_v30 }
 0x85d   :  { %v2067_v15 = vpop.eup %2066 }
 0x85e   :  { %v1574_v38 = vmul.f32 %v2067_v15, %v2065_v31 }
 0x860   :  { %v1580_v39 = vpack.c.bf16 %v1574_v38, %v1574_v38 }
 0x862   :  { %1825 = vmatmul.mubr.bf16.vlgmr.msra.gmra.mrb[48].mxu0 %v1580_v39 }
 0x935   :  { %v1686_v41 = vpop.f32.mrb[48].mxu0 }
 0x936   :  { %v1687_v56 = vadd.f32 %v1790_v40, %v1686_v41  ;;  %v1826_v57 = vpop.f32.mrb[49].mxu0 }
 0x937   :  { %v1689_v58 = vpop.f32.mrb[50].mxu0 }
 0x938   :  { %1693 = vst.msk [vmem:[%s2988_s6] sm:$0xff] %vm1692_vm1, %v1687_v56  ;;  %v1827_v59 = vpop.f32.mrb[51].mxu0 }

// kernel: _forward_impl.2
= control target key start
LH: loop header
LB: loop body
LE: loop exit
PB: predicated region body
PF: predicated region fallthrough
CT: control target
= control target key end

     0   :  { %9 = vsyncpa [#allocation6], 0  ;;  %s4254_s0 = inlined_call_operand.vmem [shape: bf16[8,8,128], index: 0, kind: input, shape index: {}]   ;;  %s4255_s1 = inlined_call_operand.hbm [shape: bf16[128,512], index: 1, kind: input, shape index: {}]   ;;  %s4256_s2 = inlined_call_operand.hbm [shape: bf16[128,512], index: 2, kind: input, shape index: {}]   ;;  %s4257_s3 = inlined_call_operand.vmem [shape: f32[1,512], index: 3, kind: input, shape index: {}]   ;;  %s4258_s4 = inlined_call_operand.vmem [shape: bf16[8,8,128], index: 4, kind: output, shape index: {}]  }
   0x1   :  { %10 = vsyncpa [#allocation8], 0  ;;  %s3618_s15 = smov [#allocation5]   ;;  %s3570_s19 = scalar_lea.hbm %s4255_s1, 4096 }
   0x2   :  { %s18_s16 = sshll.u32 %s3618_s15, 4  ;;  %p3571_p0 = scmp.ne.s32.totalorder %s4255_s1, %s3570_s19  ;;  %s19_s16 = int_to_ptr.vmem [resolvable:$true] %s18_s16 }
   0x3   :  { %p3574_p1 = scmp.lt.u32.totalorder %s3570_s19, %s4255_s1 }
   0x5   :  { %p3576_p2 = pnand %p3574_p1, %p3571_p0 }
   0x7   :  { %3579 = shalt.err (!%p3576_p2)
}
   0x8   :  { %s3580_s24 = scalar_lea.vmem %s19_s16, 4096  ;;  %p3585_p4 = scmp.lt.s32.totalorder %s19_s16, %s19_s16 }
   0x9   :  { %p3581_p3 = scmp.ne.s32.totalorder %s19_s16, %s3580_s24  ;;  %p3586_p5 = scmp.lt.s32.totalorder %s3580_s24, %s3580_s24 }
   0xb   :  { %p3587_p6 = por %p3586_p5, %p3585_p4 }
   0xd   :  { %p3588_p7 = pnand %p3587_p6, %p3581_p3 }
   0xf   :  { %3591 = shalt.err (!%p3588_p7)
}
  0x10   :  { %s3619_s25 = smov 256   ;;  %s3620_s26 = smov 16  }
  0x11   :  { %24 = dma.hbm_to_vmem [thread:$0]  %s4255_s1, 4096, %s19_s16, [#allocation6], %s3619_s25, %s3619_s25, %s3620_s26  }
  0x12   :  { %s3621_s29 = smov [#allocation7]   ;;  %s3592_s7 = scalar_lea.hbm %s4256_s2, 4096 }
  0x13   :  { %s30_s30 = sshll.u32 %s3621_s29, 4  ;;  %p3593_p8 = scmp.ne.s32.totalorder %s4256_s2, %s3592_s7  ;;  %s31_s30 = int_to_ptr.vmem [resolvable:$true] %s30_s30 }
  0x14   :  { %p3596_p9 = scmp.lt.u32.totalorder %s3592_s7, %s4256_s2 }
  0x16   :  { %p3598_p10 = pnand %p3596_p9, %p3593_p8 }
  0x18   :  { %3601 = shalt.err (!%p3598_p10)
}
  0x19   :  { %s3602_s12 = scalar_lea.vmem %s31_s30, 4096  ;;  %p3607_p12 = scmp.lt.s32.totalorder %s31_s30, %s31_s30 }
  0x1a   :  { %p3603_p11 = scmp.ne.s32.totalorder %s31_s30, %s3602_s12  ;;  %p3608_p13 = scmp.lt.s32.totalorder %s3602_s12, %s3602_s12 }
  0x1c   :  { %p3609_p0 = por %p3608_p13, %p3607_p12 }
  0x1e   :  { %p3610_p1 = pnand %p3609_p0, %p3603_p11 }
  0x20   :  { %3613 = shalt.err (!%p3610_p1)
}
  0x21   :  { %36 = dma.hbm_to_vmem [thread:$0]  %s4256_s2, 4096, %s31_s30, [#allocation8], %s3619_s25, %s3619_s25, %s3620_s26  }
  0x22   :  { %3614 = dma.done.wait [#allocation6], 4096  }
  0x23   :  { %3615 = vsyncadd [#allocation6], 4294963200 }
  0x24   :  { %3616 = dma.done.wait [#allocation8], 4096  }
  0x25   :  { %3617 = vsyncadd [#allocation8], 4294963200  ;;  %v4259_v0 = vmov 0   ;;  %v3294_v1 = vld [vmem:[#allocation5 + $0x4] ss:$16 sps:$4 sm:$0xff]   ;;  %v3355_v44 = vld [vmem:[%s4254_s0 + $0x8] sm:$0xff]  }
  0x26   :  { %330 = vmatprep.mubr.bf16.mxu0 %v4259_v0  ;;  %403 = vmatprep.mubr.bf16.mxu1 %v4259_v0  ;;  %v3296_v2 = vld [vmem:[#allocation5 + $0xc] ss:$16 sps:$4 sm:$0xff]   ;;  %v3298_v3 = vld [vmem:[#allocation5] ss:$16 sps:$4 sm:$0xff]   ;;  %v3299_v4 = vld [vmem:[#allocation5 + $0x8] ss:$16 sps:$4 sm:$0xff]  }
  0x27   :  { %298 = vmatprep.subr.bf16.mxu0 %v3294_v1  ;;  %371 = vmatprep.subr.bf16.mxu1 %v3296_v2  ;;  %v3300_v5 = vld [vmem:[#allocation5 + $0x24] ss:$16 sps:$4 sm:$0xff]   ;;  %v3302_v6 = vld [vmem:[#allocation5 + $0x2c] ss:$16 sps:$4 sm:$0xff]   ;;  %v3304_v7 = vld [vmem:[#allocation5 + $0x20] ss:$16 sps:$4 sm:$0xff]  }
  0x28   :  { %299 = vmatpush1.bf16.msra.mxu0 %v3298_v3  ;;  %372 = vmatpush1.bf16.msra.mxu1 %v3299_v4  ;;  %v3305_v8 = vld [vmem:[#allocation5 + $0x28] ss:$16 sps:$4 sm:$0xff]   ;;  %v3306_v9 = vld [vmem:[#allocation5 + $0x44] ss:$16 sps:$4 sm:$0xff]   ;;  %v3308_v10 = vld [vmem:[#allocation5 + $0x4c] ss:$16 sps:$4 sm:$0xff]  }
  0x29   :  { %300 = vmatprep.subr.bf16.mxu0 %v3300_v5  ;;  %373 = vmatprep.subr.bf16.mxu1 %v3302_v6  ;;  %v3310_v11 = vld [vmem:[#allocation5 + $0x40] ss:$16 sps:$4 sm:$0xff]   ;;  %v3311_v12 = vld [vmem:[#allocation5 + $0x48] ss:$16 sps:$4 sm:$0xff]   ;;  %v3312_v13 = vld [vmem:[#allocation5 + $0x64] ss:$16 sps:$4 sm:$0xff]  }
  0x2a   :  { %v3314_v14 = vld [vmem:[#allocation5 + $0x6c] ss:$16 sps:$4 sm:$0xff]   ;;  %v3316_v15 = vld [vmem:[#allocation5 + $0x60] ss:$16 sps:$4 sm:$0xff]   ;;  %v3317_v16 = vld [vmem:[#allocation5 + $0x68] ss:$16 sps:$4 sm:$0xff]  }
  0x2b   :  { %v3318_v17 = vld [vmem:[#allocation5 + $0x84] ss:$16 sps:$4 sm:$0xff]   ;;  %v3320_v18 = vld [vmem:[#allocation5 + $0x8c] ss:$16 sps:$4 sm:$0xff]   ;;  %v3322_v19 = vld [vmem:[#allocation5 + $0x80] ss:$16 sps:$4 sm:$0xff]  }
  0x2c   :  { %301 = vmatpush1.bf16.msra.mxu0 %v3304_v7  ;;  %374 = vmatpush1.bf16.msra.mxu1 %v3305_v8  ;;  %v3323_v20 = vld [vmem:[#allocation5 + $0x88] ss:$16 sps:$4 sm:$0xff]   ;;  %v3324_v21 = vld [vmem:[#allocation5 + $0xa4] ss:$16 sps:$4 sm:$0xff]   ;;  %v3326_v22 = vld [vmem:[#allocation5 + $0xac] ss:$16 sps:$4 sm:$0xff]   ;;  %v94_v7 = vlaneseq }
  0x2d   :  { %302 = vmatprep.subr.bf16.mxu0 %v3306_v9  ;;  %375 = vmatprep.subr.bf16.mxu1 %v3308_v10  ;;  %v3328_v23 = vld [vmem:[#allocation5 + $0xa0] ss:$16 sps:$4 sm:$0xff]   ;;  %v3329_v24 = vld [vmem:[#allocation5 + $0xa8] ss:$16 sps:$4 sm:$0xff]   ;;  %v3330_v25 = vld [vmem:[#allocation5 + $0xc4] ss:$16 sps:$4 sm:$0xff]  }
  0x2e   :  { %v3332_v26 = vld [vmem:[#allocation5 + $0xcc] ss:$16 sps:$4 sm:$0xff]   ;;  %v3334_v27 = vld [vmem:[#allocation5 + $0xc0] ss:$16 sps:$4 sm:$0xff]   ;;  %v3335_v28 = vld [vmem:[#allocation5 + $0xc8] ss:$16 sps:$4 sm:$0xff]  }
  0x2f   :  { %v3336_v29 = vld [vmem:[#allocation5 + $0xe4] ss:$16 sps:$4 sm:$0xff]   ;;  %v3338_v30 = vld [vmem:[#allocation5 + $0xec] ss:$16 sps:$4 sm:$0xff]   ;;  %v3340_v31 = vld [vmem:[#allocation5 + $0xe0] ss:$16 sps:$4 sm:$0xff]  }
  0x30   :  { %303 = vmatpush1.bf16.msra.mxu0 %v3310_v11  ;;  %376 = vmatpush1.bf16.msra.mxu1 %v3311_v12  ;;  %v3341_v32 = vld [vmem:[#allocation5 + $0xe8] ss:$16 sps:$4 sm:$0xff]   ;;  %v3675_v33 = vld [vmem:[#allocation7 + $0x4] ss:$16 sps:$4 sm:$0xff]   ;;  %v3677_v34 = vld [vmem:[#allocation7 + $0xc] ss:$16 sps:$4 sm:$0xff]  }
  0x31   :  { %304 = vmatprep.subr.bf16.mxu0 %v3312_v13  ;;  %377 = vmatprep.subr.bf16.mxu1 %v3314_v14  ;;  %v3342_v35 = vld [vmem:[%s4254_s0] sm:$0xff]   ;;  %v3684_v37 = vld [vmem:[#allocation7 + $0x8] ss:$16 sps:$4 sm:$0xff]   ;;  %v3690_v39 = vld [vmem:[#allocation7 + $0x2c] ss:$16 sps:$4 sm:$0xff]   ;;  %v3623_v6 = vmov 0.0|0.0  }
  0x32   :  { %v3682_v36 = vld [vmem:[#allocation7] ss:$16 sps:$4 sm:$0xff]   ;;  %v3688_v38 = vld [vmem:[#allocation7 + $0x24] ss:$16 sps:$4 sm:$0xff]   ;;  %v3696_v41 = vld [vmem:[#allocation7 + $0x28] ss:$16 sps:$4 sm:$0xff]  }
  0x33   :  { %v3692_v40 = vld [vmem:[#allocation7 + $0x20] ss:$16 sps:$4 sm:$0xff]   ;;  %v3700_v42 = vld [vmem:[#allocation7 + $0x44] ss:$16 sps:$4 sm:$0xff]   ;;  %v3702_v43 = vld [vmem:[#allocation7 + $0x4c] ss:$16 sps:$4 sm:$0xff]  }
  0x34   :  { %305 = vmatpush1.bf16.msra.mxu0 %v3316_v15  ;;  %378 = vmatpush1.bf16.msra.mxu1 %v3317_v16  ;;  %v3709_v45 = vld [vmem:[#allocation7 + $0x40] ss:$16 sps:$4 sm:$0xff]   ;;  %v3711_v46 = vld [vmem:[#allocation7 + $0x48] ss:$16 sps:$4 sm:$0xff]   ;;  %v3715_v47 = vld [vmem:[#allocation7 + $0x64] ss:$16 sps:$4 sm:$0xff]  }
  0x35   :  { %306 = vmatprep.subr.bf16.mxu0 %v3318_v17  ;;  %379 = vmatprep.subr.bf16.mxu1 %v3320_v18  ;;  %v3719_v48 = vld [vmem:[#allocation7 + $0x6c] ss:$16 sps:$4 sm:$0xff]   ;;  %v3721_v49 = vld [vmem:[#allocation7 + $0x60] ss:$16 sps:$4 sm:$0xff]   ;;  %v3723_v50 = vld [vmem:[#allocation7 + $0x68] ss:$16 sps:$4 sm:$0xff]  }
  0x36   :  { %v3727_v51 = vld [vmem:[#allocation7 + $0x84] ss:$16 sps:$4 sm:$0xff]   ;;  %v3731_v52 = vld [vmem:[#allocation7 + $0x8c] ss:$16 sps:$4 sm:$0xff]   ;;  %v3738_v54 = vld [vmem:[#allocation7 + $0x80] ss:$16 sps:$4 sm:$0xff]  }
  0x37   :  { %v3368_v53 = vld [vmem:[%s4254_s0 + $0x10] sm:$0xff]   ;;  %v3740_v55 = vld [vmem:[#allocation7 + $0x88] ss:$16 sps:$4 sm:$0xff]   ;;  %v3744_v57 = vld [vmem:[#allocation7 + $0xac] ss:$16 sps:$4 sm:$0xff]   ;;  %v95_v8 = vshrl.u32 %v94_v7, 7 }
  0x38   :  { %307 = vmatpush1.bf16.msra.mxu0 %v3322_v19  ;;  %380 = vmatpush1.bf16.msra.mxu1 %v3323_v20  ;;  %v3742_v56 = vld [vmem:[#allocation7 + $0xa4] ss:$16 sps:$4 sm:$0xff]   ;;  %v3750_v58 = vld [vmem:[#allocation7 + $0xa0] ss:$16 sps:$4 sm:$0xff]   ;;  %v3752_v59 = vld [vmem:[#allocation7 + $0xa8] ss:$16 sps:$4 sm:$0xff]  }
  0x39   :  { %308 = vmatprep.subr.bf16.mxu0 %v3324_v21  ;;  %381 = vmatprep.subr.bf16.mxu1 %v3326_v22  ;;  %v3754_v60 = vld [vmem:[#allocation7 + $0xc4] ss:$16 sps:$4 sm:$0xff]   ;;  %v3756_v61 = vld [vmem:[#allocation7 + $0xcc] ss:$16 sps:$4 sm:$0xff]   ;;  %v3767_v63 = vld [vmem:[#allocation7 + $0xc0] ss:$16 sps:$4 sm:$0xff]  }
  0x3a   :  { %v3381_v62 = vld [vmem:[%s4254_s0 + $0x18] sm:$0xff]   ;;  %v3771_v2 = vld [vmem:[#allocation7 + $0xe4] ss:$16 sps:$4 sm:$0xff]   ;;  %v3781_v4 = vld [vmem:[#allocation7 + $0xe0] ss:$16 sps:$4 sm:$0xff]   ;;  %v104_v9 = vsub.s32 2, %v95_v8 }
  0x3b   :  { %v3769_v1 = vld [vmem:[#allocation7 + $0xc8] ss:$16 sps:$4 sm:$0xff]   ;;  %v3777_v3 = vld [vmem:[#allocation7 + $0xec] ss:$16 sps:$4 sm:$0xff]   ;;  %v108_v10 = vsub.s32 3, %v95_v8  ;;  %v96_v11 = vsub.s32 0, %v95_v8 }
  0x3c   :  { %309 = vmatpush1.bf16.msra.mxu0 %v3328_v23  ;;  %382 = vmatpush1.bf16.msra.mxu1 %v3329_v24  ;;  %v3783_v5 = vld [vmem:[#allocation7 + $0xe8] ss:$16 sps:$4 sm:$0xff]   ;;  %v92_v12 = vld [vmem:[%s4257_s3] sm:$0xf]  ;;  %v100_v13 = vsub.s32 1, %v95_v8 }
  0x3d   :  { %310 = vmatprep.subr.bf16.mxu0 %v3330_v25  ;;  %383 = vmatprep.subr.bf16.mxu1 %v3332_v26  ;;  %v3830_v14 = vrot.slane %v92_v12, %v104_v9  ;;  %v3836_v17 = vrot.slane %v92_v12, %v108_v10  ;;  %v97_v18 = vrot.slane %v92_v12, %v96_v11 }
  0x3e   :  { %v101_v21 = vrot.slane %v92_v12, %v100_v13 }
  0x40   :  { %311 = vmatpush1.bf16.msra.mxu0 %v3334_v27  ;;  %384 = vmatpush1.bf16.msra.mxu1 %v3335_v28 }
  0x41   :  { %312 = vmatprep.subr.bf16.mxu0 %v3336_v29  ;;  %385 = vmatprep.subr.bf16.mxu1 %v3338_v30 }
  0x44   :  { %313 = vmatpush1.bf16.msra.mxu0 %v3340_v31  ;;  %386 = vmatpush1.bf16.msra.mxu1 %v3341_v32 }
  0x45   :  { %675 = vmatprep.subr.bf16.mxu0 %v3675_v33  ;;  %716 = vmatprep.subr.bf16.mxu1 %v3677_v34 }
  0x47   :  { %331 = vmatmul.mubr.bf16.vlgmr.msra.gmra.mrb[0].mxu0 %v3342_v35  ;;  %404 = vmatmul.mubr.bf16.vlgmr.msra.gmra.mrb[0].mxu1 %v3342_v35 }
  0x48   :  { %676 = vmatpush1.bf16.msra.mxu0 %v3682_v36  ;;  %717 = vmatpush1.bf16.msra.mxu1 %v3684_v37 }
  0x49   :  { %677 = vmatprep.subr.bf16.mxu0 %v3688_v38  ;;  %718 = vmatprep.subr.bf16.mxu1 %v3690_v39 }
  0x4a   :  { %340 = vmatprep.mubr.bf16.mxu0 %v4259_v0  ;;  %413 = vmatprep.mubr.bf16.mxu1 %v4259_v0 }
  0x4c   :  { %678 = vmatpush1.bf16.msra.mxu0 %v3692_v40  ;;  %719 = vmatpush1.bf16.msra.mxu1 %v3696_v41 }
  0x4d   :  { %679 = vmatprep.subr.bf16.mxu0 %v3700_v42  ;;  %720 = vmatprep.subr.bf16.mxu1 %v3702_v43 }
  0x4f   :  { %341 = vmatmul.mubr.bf16.gmra.mrb[4].mxu0 %v3355_v44  ;;  %414 = vmatmul.mubr.bf16.gmra.mrb[4].mxu1 %v3355_v44 }
  0x50   :  { %680 = vmatpush1.bf16.msra.mxu0 %v3709_v45  ;;  %721 = vmatpush1.bf16.msra.mxu1 %v3711_v46 }
  0x51   :  { %681 = vmatprep.subr.bf16.mxu0 %v3715_v47  ;;  %722 = vmatprep.subr.bf16.mxu1 %v3719_v48 }
  0x52   :  { %350 = vmatprep.mubr.bf16.mxu0 %v4259_v0  ;;  %423 = vmatprep.mubr.bf16.mxu1 %v4259_v0 }
  0x54   :  { %682 = vmatpush1.bf16.msra.mxu0 %v3721_v49  ;;  %723 = vmatpush1.bf16.msra.mxu1 %v3723_v50 }
  0x55   :  { %683 = vmatprep.subr.bf16.mxu0 %v3727_v51  ;;  %724 = vmatprep.subr.bf16.mxu1 %v3731_v52 }
  0x57   :  { %351 = vmatmul.mubr.bf16.gmra.mrb[8].mxu0 %v3368_v53  ;;  %424 = vmatmul.mubr.bf16.gmra.mrb[8].mxu1 %v3368_v53 }
  0x58   :  { %684 = vmatpush1.bf16.msra.mxu0 %v3738_v54  ;;  %725 = vmatpush1.bf16.msra.mxu1 %v3740_v55 }
  0x59   :  { %685 = vmatprep.subr.bf16.mxu0 %v3742_v56  ;;  %726 = vmatprep.subr.bf16.mxu1 %v3744_v57 }
  0x5a   :  { %360 = vmatprep.mubr.bf16.mxu0 %v4259_v0  ;;  %433 = vmatprep.mubr.bf16.mxu1 %v4259_v0 }
  0x5c   :  { %686 = vmatpush1.bf16.msra.mxu0 %v3750_v58  ;;  %727 = vmatpush1.bf16.msra.mxu1 %v3752_v59 }
  0x5d   :  { %687 = vmatprep.subr.bf16.mxu0 %v3754_v60  ;;  %728 = vmatprep.subr.bf16.mxu1 %v3756_v61 }
  0x5f   :  { %361 = vmatmul.mubr.bf16.gmra.mrb[12].mxu0 %v3381_v62  ;;  %434 = vmatmul.mubr.bf16.gmra.mrb[12].mxu1 %v3381_v62 }
  0x60   :  { %688 = vmatpush1.bf16.msra.mxu0 %v3767_v63  ;;  %729 = vmatpush1.bf16.msra.mxu1 %v3769_v1 }
  0x61   :  { %689 = vmatprep.subr.bf16.mxu0 %v3771_v2  ;;  %730 = vmatprep.subr.bf16.mxu1 %v3777_v3 }
  0x62   :  { %707 = vmatprep.mubr.bf16.mxu0 %v4259_v0  ;;  %748 = vmatprep.mubr.bf16.mxu1 %v4259_v0 }
  0x64   :  { %690 = vmatpush1.bf16.msra.mxu0 %v3781_v4  ;;  %731 = vmatpush1.bf16.msra.mxu1 %v3783_v5 }
  0x65   :  { %984 = vmatprep.subr.bf16.mxu0 %v3675_v33  ;;  %1025 = vmatprep.subr.bf16.mxu1 %v3677_v34 }
  0x67   :  { %708 = vmatmul.mubr.bf16.vlgmr.msra.gmra.mrb[16].mxu0 %v3623_v6  ;;  %749 = vmatmul.mubr.bf16.vlgmr.msra.gmra.mrb[16].mxu1 %v3623_v6 }
  0x68   :  { %985 = vmatpush1.bf16.msra.mxu0 %v3682_v36  ;;  %1026 = vmatpush1.bf16.msra.mxu1 %v3684_v37 }
  0x69   :  { %986 = vmatprep.subr.bf16.mxu0 %v3688_v38  ;;  %1027 = vmatprep.subr.bf16.mxu1 %v3690_v39 }
  0x6a   :  { %1016 = vmatprep.mubr.bf16.mxu0 %v4259_v0  ;;  %1057 = vmatprep.mubr.bf16.mxu1 %v4259_v0 }
  0x6c   :  { %987 = vmatpush1.bf16.msra.mxu0 %v3692_v40  ;;  %1028 = vmatpush1.bf16.msra.mxu1 %v3696_v41 }
  0x6d   :  { %988 = vmatprep.subr.bf16.mxu0 %v3700_v42  ;;  %1029 = vmatprep.subr.bf16.mxu1 %v3702_v43 }
  0x70   :  { %989 = vmatpush1.bf16.msra.mxu0 %v3709_v45  ;;  %1030 = vmatpush1.bf16.msra.mxu1 %v3711_v46 }
  0x71   :  { %990 = vmatprep.subr.bf16.mxu0 %v3715_v47  ;;  %1031 = vmatprep.subr.bf16.mxu1 %v3719_v48 }
  0x74   :  { %991 = vmatpush1.bf16.msra.mxu0 %v3721_v49  ;;  %1032 = vmatpush1.bf16.msra.mxu1 %v3723_v50 }
  0x75   :  { %992 = vmatprep.subr.bf16.mxu0 %v3727_v51  ;;  %1033 = vmatprep.subr.bf16.mxu1 %v3731_v52 }
  0x78   :  { %993 = vmatpush1.bf16.msra.mxu0 %v3738_v54  ;;  %1034 = vmatpush1.bf16.msra.mxu1 %v3740_v55 }
  0x79   :  { %994 = vmatprep.subr.bf16.mxu0 %v3742_v56  ;;  %1035 = vmatprep.subr.bf16.mxu1 %v3744_v57 }
  0x7c   :  { %995 = vmatpush1.bf16.msra.mxu0 %v3750_v58  ;;  %1036 = vmatpush1.bf16.msra.mxu1 %v3752_v59 }
  0x7d   :  { %996 = vmatprep.subr.bf16.mxu0 %v3754_v60  ;;  %1037 = vmatprep.subr.bf16.mxu1 %v3756_v61 }
  0x80   :  { %997 = vmatpush1.bf16.msra.mxu0 %v3767_v63  ;;  %1038 = vmatpush1.bf16.msra.mxu1 %v3769_v1 }
  0x81   :  { %998 = vmatprep.subr.bf16.mxu0 %v3771_v2  ;;  %1039 = vmatprep.subr.bf16.mxu1 %v3777_v3 }
  0x84   :  { %999 = vmatpush1.bf16.msra.mxu0 %v3781_v4  ;;  %1040 = vmatpush1.bf16.msra.mxu1 %v3783_v5 }
  0x85   :  { %1294 = vmatprep.subr.bf16.mxu0 %v3675_v33  ;;  %1335 = vmatprep.subr.bf16.mxu1 %v3677_v34 }
 0x11a   :  { %v3832_v15 = vpop.f32.mrb[0].mxu0  ;;  %v3834_v16 = vpop.f32.mrb[0].mxu1 }
 0x11b   :  { %v334_v19 = vpop.f32.mrb[1].mxu0  ;;  %v407_v20 = vpop.f32.mrb[1].mxu1 }
 0x11c   :  { %v336_v22 = vpop.f32.mrb[2].mxu0  ;;  %v409_v23 = vpop.f32.mrb[2].mxu1 }
 0x11d   :  { %v3838_v24 = vadd.f32 %v336_v22, %v97_v18  ;;  %v338_v25 = vpop.f32.mrb[3].mxu0  ;;  %v3841_v26 = vadd.f32 %v409_v23, %v3830_v14  ;;  %v411_v27 = vpop.f32.mrb[3].mxu1 }
 0x11e   :  { %v3843_v28 = vadd.f32 %v338_v25, %v101_v21  ;;  %v3846_v29 = vadd.f32 %v411_v27, %v3836_v17 }
 0x122   :  { %v342_v30 = vpop.f32.mrb[4].mxu0  ;;  %v415_v31 = vpop.f32.mrb[4].mxu1 }
 0x123   :  { %v3848_v32 = vadd.f32 %v342_v30, %v97_v18  ;;  %v344_v35 = vpop.f32.mrb[5].mxu0  ;;  %v3851_v44 = vadd.f32 %v415_v31, %v3830_v14  ;;  %v417_v53 = vpop.f32.mrb[5].mxu1 }
 0x124   :  { %v3853_v62 = vadd.f32 %v344_v35, %v101_v21  ;;  %v346_v6 = vpop.f32.mrb[6].mxu0  ;;  %v3856_v7 = vadd.f32 %v417_v53, %v3836_v17  ;;  %v419_v8 = vpop.f32.mrb[6].mxu1 }
 0x125   :  { %v3858_v9 = vadd.f32 %v346_v6, %v97_v18  ;;  %v348_v10 = vpop.f32.mrb[7].mxu0  ;;  %v3861_v11 = vadd.f32 %v419_v8, %v3830_v14  ;;  %v421_v12 = vpop.f32.mrb[7].mxu1 }
 0x126   :  { %4261 = vst [vmem:[#allocation11_spill] sm:$0xff] %v3856_v7  ;;  %v3863_v13 = vadd.f32 %v348_v10, %v101_v21  ;;  %v3866_v22 = vadd.f32 %v421_v12, %v3836_v17 }
 0x127   :  { %4262 = vst [vmem:[#allocation12_spill] sm:$0xff] %v3858_v9  ;;  %4263 = vst [vmem:[#allocation13_spill] sm:$0xff] %v3861_v11 }
 0x128   :  { %4264 = vst [vmem:[#allocation14_spill] sm:$0xff] %v3863_v13  ;;  %4265 = vst [vmem:[#allocation15_spill] sm:$0xff] %v3866_v22 }
 0x12a   :  { %v352_v23 = vpop.f32.mrb[8].mxu0  ;;  %v425_v25 = vpop.f32.mrb[8].mxu1 }
 0x12b   :  { %v3868_v27 = vadd.f32 %v352_v23, %v97_v18  ;;  %v354_v30 = vpop.f32.mrb[9].mxu0  ;;  %v3871_v31 = vadd.f32 %v425_v25, %v3830_v14  ;;  %v427_v35 = vpop.f32.mrb[9].mxu1 }
 0x12c   :  { %v3873_v53 = vadd.f32 %v354_v30, %v101_v21  ;;  %v356_v6 = vpop.f32.mrb[10].mxu0  ;;  %v3876_v8 = vadd.f32 %v427_v35, %v3836_v17  ;;  %v429_v10 = vpop.f32.mrb[10].mxu1 }
 0x12d   :  { %4266 = vst [vmem:[#allocation16_spill] sm:$0xff] %v3868_v27  ;;  %4267 = vst [vmem:[#allocation17_spill] sm:$0xff] %v3871_v31  ;;  %v3878_v0 = vadd.f32 %v356_v6, %v97_v18  ;;  %v358_v12 = vpop.f32.mrb[11].mxu0  ;;  %v3881_v22 = vadd.f32 %v429_v10, %v3830_v14  ;;  %v431_v23 = vpop.f32.mrb[11].mxu1 }
 0x12e   :  { %4268 = vst [vmem:[#allocation18_spill] sm:$0xff] %v3873_v53  ;;  %4269 = vst [vmem:[#allocation19_spill] sm:$0xff] %v3876_v8  ;;  %v3883_v27 = vadd.f32 %v358_v12, %v101_v21  ;;  %v3886_v25 = vadd.f32 %v431_v23, %v3836_v17 }
 0x12f   :  { %4270 = vst [vmem:[#allocation20_spill] sm:$0xff] %v3878_v0  ;;  %4271 = vst [vmem:[#allocation21_spill] sm:$0xff] %v3881_v22 }
 0x130   :  { %4272 = vst [vmem:[#allocation22_spill] sm:$0xff] %v3883_v27  ;;  %4273 = vst [vmem:[#allocation23_spill] sm:$0xff] %v3886_v25 }
 0x132   :  { %v362_v31 = vpop.f32.mrb[12].mxu0  ;;  %v435_v30 = vpop.f32.mrb[12].mxu1 }
 0x133   :  { %v3888_v53 = vadd.f32 %v362_v31, %v97_v18  ;;  %v364_v13 = vpop.f32.mrb[13].mxu0  ;;  %v3891_v35 = vadd.f32 %v435_v30, %v3830_v14  ;;  %v437_v6 = vpop.f32.mrb[13].mxu1 }
 0x134   :  { %v3893_v0 = vadd.f32 %v364_v13, %v101_v21  ;;  %v366_v8 = vpop.f32.mrb[14].mxu0  ;;  %v3896_v10 = vadd.f32 %v437_v6, %v3836_v17  ;;  %v439_v12 = vpop.f32.mrb[14].mxu1  ;;  %v333_v13 = vadd.f32 %v3832_v15, %v97_v18  ;;  %v335_v6 = vadd.f32 %v334_v19, %v101_v21 }
 0x135   :  { %4274 = vst [vmem:[#allocation24_spill] sm:$0xff] %v3888_v53  ;;  %4275 = vst [vmem:[#allocation25_spill] sm:$0xff] %v3891_v35  ;;  %v3898_v27 = vadd.f32 %v366_v8, %v97_v18  ;;  %v368_v23 = vpop.f32.mrb[15].mxu0  ;;  %v3901_v25 = vadd.f32 %v439_v12, %v3830_v14  ;;  %v441_v31 = vpop.f32.mrb[15].mxu1 }
 0x136   :  { %4276 = vst [vmem:[#allocation26_spill] sm:$0xff] %v3893_v0  ;;  %4277 = vst [vmem:[#allocation27_spill] sm:$0xff] %v3896_v10  ;;  %v3903_v53 = vadd.f32 %v368_v23, %v101_v21  ;;  %v3906_v30 = vadd.f32 %v441_v31, %v3836_v17  ;;  %v406_v0 = vadd.f32 %v3834_v16, %v3830_v14 }
 0x137   :  { %4278 = vst [vmem:[#allocation28_spill] sm:$0xff] %v3898_v27  ;;  %4279 = vst [vmem:[#allocation29_spill] sm:$0xff] %v3901_v25  ;;  %v408_v10 = vadd.f32 %v407_v20, %v3836_v17 }
 0x138   :  { %4280 = vst [vmem:[#allocation30_spill] sm:$0xff] %v3903_v53  ;;  %4281 = vst [vmem:[#allocation31_spill] sm:$0xff] %v3906_v30 }
 0x13a   :  { %v709_v8 = vpop.f32.mrb[16].mxu0  ;;  %v750_v27 = vpop.f32.mrb[16].mxu1 }
 0x13b   :  { %v757_v35 = vadd.f32 %v709_v8, %v333_v13  ;;  %v759_v22 = vadd.f32 %v750_v27, %v406_v0  ;;  %v711_v12 = vpop.f32.mrb[17].mxu0  ;;  %v752_v25 = vpop.f32.mrb[17].mxu1 }
 0x13c   :  { %v758_v11 = vadd.f32 %v711_v12, %v335_v6  ;;  %v760_v23 = vadd.f32 %v752_v25, %v408_v10  ;;  %v713_v53 = vpop.f32.mrb[18].mxu0  ;;  %v754_v9 = vpop.f32.mrb[18].mxu1 }
 0x13d   :  { %v3033_v31 = vmul.f32 -1.442695, %v757_v35  ;;  %v714_v30 = vpop.f32.mrb[19].mxu0  ;;  %v755_v7 = vpop.f32.mrb[19].mxu1 }
 0x13e   :  { %v3034_v15 = vmul.f32 -1.442695, %v758_v11  ;;  %v3035_v14 = vmul.f32 -1.442695, %v760_v23 }
 0x13f   :  { %3442 = vpow2.f32 %v3033_v31 }
 0x140   :  { %3444 = vpow2.f32 %v3034_v15 }
 0x141   :  { %3446 = vpow2.f32 %v3035_v14 }
 0x142   :  { %3448 = vtanh.f32 %v759_v22  ;;  %v4282_v22 = vmov 0  }
 0x149   :  { %v3443_v16 = vpop.eup %3442 }
 0x14a   :  { %v3445_v18 = vpop.eup %3444  ;;  %v764_v17 = vadd.f32 1.0, %v3443_v16 }
 0x14b   :  { %v770_v19 = vadd.f32 1.0, %v3445_v18  ;;  %v3447_v0 = vpop.eup %3446 }
 0x14c   :  { %3450 = vrcp.f32 %v764_v17  ;;  %v3449_v20 = vpop.eup %3448  ;;  %v777_v53 = vadd.f32 1.0, %v3447_v0 }
 0x14d   :  { %3452 = vrcp.f32 %v770_v19 }
 0x14e   :  { %3454 = vrcp.f32 %v777_v53 }
 0x156   :  { %v3451_v21 = vpop.eup %3450 }
 0x157   :  { %v3453_v27 = vpop.eup %3452  ;;  %v781_v9 = vmul.f32 %v3451_v21, %v3449_v20 }
 0x158   :  { %v780_v25 = vmul.f32 0.0, %v3453_v27  ;;  %v3455_v11 = vpop.eup %3454 }
 0x15a   :  { %v3912_v7 = vadd.f32 %v781_v9, %v780_v25 }
 0x15c   :  { %3456 = vtanh.f32 %v3912_v7 }
 0x166   :  { %v3457_v35 = vpop.eup %3456 }
 0x167   :  { %v784_v10 = vmul.f32 %v3457_v35, %v3455_v11 }
 0x169   :  { %v785_v30 = vpack.c.bf16 %v784_v10, %v784_v10 }
 0x16b   :  { %786 = vst [vmem:[%s4258_s4] sm:$0xf] %v785_v30  ;;  %1017 = vmatmul.mubr.bf16.vlgmr.msra.gmra.mrb[20].mxu0 %v785_v30  ;;  %1058 = vmatmul.mubr.bf16.vlgmr.msra.gmra.mrb[20].mxu1 %v785_v30 }
 0x16c   :  { %1295 = vmatpush1.bf16.msra.mxu0 %v3682_v36  ;;  %1336 = vmatpush1.bf16.msra.mxu1 %v3684_v37 }
 0x16d   :  { %1296 = vmatprep.subr.bf16.mxu0 %v3688_v38  ;;  %1337 = vmatprep.subr.bf16.mxu1 %v3690_v39 }
 0x16e   :  { %1326 = vmatprep.mubr.bf16.mxu0 %v4282_v22  ;;  %1367 = vmatprep.mubr.bf16.mxu1 %v4282_v22 }
 0x170   :  { %1297 = vmatpush1.bf16.msra.mxu0 %v3692_v40  ;;  %1338 = vmatpush1.bf16.msra.mxu1 %v3696_v41 }
 0x171   :  { %1298 = vmatprep.subr.bf16.mxu0 %v3700_v42  ;;  %1339 = vmatprep.subr.bf16.mxu1 %v3702_v43 }
 0x174   :  { %1299 = vmatpush1.bf16.msra.mxu0 %v3709_v45  ;;  %1340 = vmatpush1.bf16.msra.mxu1 %v3711_v46 }
 0x175   :  { %1300 = vmatprep.subr.bf16.mxu0 %v3715_v47  ;;  %1341 = vmatprep.subr.bf16.mxu1 %v3719_v48 }
 0x178   :  { %1301 = vmatpush1.bf16.msra.mxu0 %v3721_v49  ;;  %1342 = vmatpush1.bf16.msra.mxu1 %v3723_v50 }
 0x179   :  { %1302 = vmatprep.subr.bf16.mxu0 %v3727_v51  ;;  %1343 = vmatprep.subr.bf16.mxu1 %v3731_v52 }
 0x17c   :  { %1303 = vmatpush1.bf16.msra.mxu0 %v3738_v54  ;;  %1344 = vmatpush1.bf16.msra.mxu1 %v3740_v55 }
 0x17d   :  { %1304 = vmatprep.subr.bf16.mxu0 %v3742_v56  ;;  %1345 = vmatprep.subr.bf16.mxu1 %v3744_v57 }
 0x180   :  { %1305 = vmatpush1.bf16.msra.mxu0 %v3750_v58  ;;  %1346 = vmatpush1.bf16.msra.mxu1 %v3752_v59 }
 0x181   :  { %1306 = vmatprep.subr.bf16.mxu0 %v3754_v60  ;;  %1347 = vmatprep.subr.bf16.mxu1 %v3756_v61 }
 0x184   :  { %1307 = vmatpush1.bf16.msra.mxu0 %v3767_v63  ;;  %1348 = vmatpush1.bf16.msra.mxu1 %v3769_v1 }
 0x185   :  { %1308 = vmatprep.subr.bf16.mxu0 %v3771_v2  ;;  %1349 = vmatprep.subr.bf16.mxu1 %v3777_v3 }
 0x188   :  { %1309 = vmatpush1.bf16.msra.mxu0 %v3781_v4  ;;  %1350 = vmatpush1.bf16.msra.mxu1 %v3783_v5 }
 0x189   :  { %1604 = vmatprep.subr.bf16.mxu0 %v3675_v33  ;;  %1645 = vmatprep.subr.bf16.mxu1 %v3677_v34 }
 0x23e   :  { %v1018_v13 = vpop.f32.mrb[20].mxu0  ;;  %v1059_v6 = vpop.f32.mrb[20].mxu1 }
 0x23f   :  { %v1066_v8 = vadd.f32 %v1018_v13, %v3838_v24  ;;  %v1068_v12 = vadd.f32 %v1059_v6, %v3841_v26  ;;  %v1020_v23 = vpop.f32.mrb[21].mxu0  ;;  %v1061_v31 = vpop.f32.mrb[21].mxu1 }
 0x240   :  { %v1067_v15 = vadd.f32 %v1020_v23, %v3843_v28  ;;  %v1069_v14 = vadd.f32 %v1061_v31, %v3846_v29  ;;  %v1022_v16 = vpop.f32.mrb[22].mxu0  ;;  %v1063_v18 = vpop.f32.mrb[22].mxu1  ;;  %v4020_v23 = vld [vmem:[#allocation7 + $0x24] ss:$16 sps:$4 sm:$0xff]   ;;  %v4022_v31 = vld [vmem:[#allocation7 + $0x2c] ss:$16 sps:$4 sm:$0xff]  }
 0x241   :  { %v3068_v17 = vmul.f32 -1.442695, %v1066_v8  ;;  %v1023_v19 = vpop.f32.mrb[23].mxu0  ;;  %v1064_v0 = vpop.f32.mrb[23].mxu1  ;;  %v4012_v8 = vld [vmem:[#allocation7] ss:$16 sps:$4 sm:$0xff]  }
 0x242   :  { %v3069_v33 = vmul.f32 -1.442695, %v1067_v15  ;;  %v3070_v34 = vmul.f32 -1.442695, %v1069_v14  ;;  %v4024_v15 = vld [vmem:[#allocation7 + $0x20] ss:$16 sps:$4 sm:$0xff]  }
 0x243   :  { %3458 = vpow2.f32 %v3068_v17  ;;  %v4026_v14 = vld [vmem:[#allocation7 + $0x28] ss:$16 sps:$4 sm:$0xff]   ;;  %v4032_v16 = vld [vmem:[#allocation7 + $0x44] ss:$16 sps:$4 sm:$0xff]   ;;  %v4034_v18 = vld [vmem:[#allocation7 + $0x4c] ss:$16 sps:$4 sm:$0xff]  }
 0x244   :  { %3460 = vpow2.f32 %v3069_v33  ;;  %v4036_v17 = vld [vmem:[#allocation7 + $0x40] ss:$16 sps:$4 sm:$0xff]   ;;  %v4038_v19 = vld [vmem:[#allocation7 + $0x48] ss:$16 sps:$4 sm:$0xff]   ;;  %v4044_v0 = vld [vmem:[#allocation7 + $0x64] ss:$16 sps:$4 sm:$0xff]  }
 0x245   :  { %3462 = vpow2.f32 %v3070_v34  ;;  %v4046_v33 = vld [vmem:[#allocation7 + $0x6c] ss:$16 sps:$4 sm:$0xff]   ;;  %v4048_v34 = vld [vmem:[#allocation7 + $0x60] ss:$16 sps:$4 sm:$0xff]  }
 0x246   :  { %3464 = vtanh.f32 %v1068_v12  ;;  %v4014_v12 = vld [vmem:[#allocation7 + $0x8] ss:$16 sps:$4 sm:$0xff]  }
 0x24d   :  { %v3459_v20 = vpop.eup %3458 }
 0x24e   :  { %v3461_v21 = vpop.eup %3460  ;;  %v1073_v24 = vadd.f32 1.0, %v3459_v20  ;;  %v4050_v20 = vld [vmem:[#allocation7 + $0x68] ss:$16 sps:$4 sm:$0xff]  }
 0x24f   :  { %v1079_v26 = vadd.f32 1.0, %v3461_v21  ;;  %v3463_v28 = vpop.eup %3462  ;;  %v4056_v21 = vld [vmem:[#allocation7 + $0x80] ss:$16 sps:$4 sm:$0xff]  }
 0x250   :  { %3466 = vrcp.f32 %v1073_v24  ;;  %v3465_v27 = vpop.eup %3464  ;;  %v1086_v25 = vadd.f32 1.0, %v3463_v28  ;;  %v4058_v24 = vld [vmem:[#allocation7 + $0x84] ss:$16 sps:$4 sm:$0xff]   ;;  %v4062_v28 = vld [vmem:[#allocation7 + $0x8c] ss:$16 sps:$4 sm:$0xff]  }
 0x251   :  { %3468 = vrcp.f32 %v1079_v26  ;;  %v4060_v26 = vld [vmem:[#allocation7 + $0x88] ss:$16 sps:$4 sm:$0xff]  }
 0x252   :  { %3470 = vrcp.f32 %v1086_v25  ;;  %v4077_v25 = vld [vmem:[#allocation7 + $0xc4] ss:$16 sps:$4 sm:$0xff]  }
 0x25a   :  { %v3467_v29 = vpop.eup %3466 }
 0x25b   :  { %v3469_v9 = vpop.eup %3468  ;;  %v1090_v53 = vmul.f32 %v3467_v29, %v3465_v27  ;;  %v4064_v27 = vld [vmem:[#allocation7 + $0xa4] ss:$16 sps:$4 sm:$0xff]   ;;  %v4067_v29 = vld [vmem:[#allocation7 + $0xac] ss:$16 sps:$4 sm:$0xff]  }
 0x25c   :  { %v1089_v11 = vmul.f32 %v3469_v9, %v3912_v7  ;;  %v3471_v10 = vpop.eup %3470  ;;  %v4010_v7 = vld [vmem:[#allocation7 + $0xc] ss:$16 sps:$4 sm:$0xff]   ;;  %v4071_v9 = vld [vmem:[#allocation7 + $0xa0] ss:$16 sps:$4 sm:$0xff]  }
 0x25e   :  { %v3957_v35 = vadd.f32 %v1090_v53, %v1089_v11  ;;  %v4075_v53 = vld [vmem:[#allocation7 + $0xa8] ss:$16 sps:$4 sm:$0xff]   ;;  %v4080_v11 = vld [vmem:[#allocation7 + $0xcc] ss:$16 sps:$4 sm:$0xff]  }
 0x260   :  { %3472 = vtanh.f32 %v3957_v35 }
 0x26a   :  { %v3473_v30 = vpop.eup %3472 }
 0x26b   :  { %v1093_v13 = vmul.f32 %v3473_v30, %v3471_v10  ;;  %v4087_v10 = vld [vmem:[#allocation7 + $0xc8] ss:$16 sps:$4 sm:$0xff]   ;;  %v4089_v30 = vld [vmem:[#allocation7 + $0xe4] ss:$16 sps:$4 sm:$0xff]  }
 0x26d   :  { %v1094_v6 = vpack.c.bf16 %v1093_v13, %v1093_v13  ;;  %v4092_v13 = vld [vmem:[#allocation7 + $0xec] ss:$16 sps:$4 sm:$0xff]  }
 0x26f   :  { %3071 = vst [vmem:[%s4258_s4 + $0x4] sm:$0xf] %v1094_v6  ;;  %1327 = vmatmul.mubr.bf16.vlgmr.msra.gmra.mrb[24].mxu0 %v1094_v6  ;;  %1368 = vmatmul.mubr.bf16.vlgmr.msra.gmra.mrb[24].mxu1 %v1094_v6  ;;  %v4095_v6 = vld [vmem:[#allocation7 + $0xe0] ss:$16 sps:$4 sm:$0xff]  }
 0x270   :  { %1605 = vmatpush1.bf16.msra.mxu0 %v3682_v36  ;;  %1646 = vmatpush1.bf16.msra.mxu1 %v3684_v37 }
 0x271   :  { %1606 = vmatprep.subr.bf16.mxu0 %v3688_v38  ;;  %1647 = vmatprep.subr.bf16.mxu1 %v3690_v39 }
 0x272   :  { %1636 = vmatprep.mubr.bf16.mxu0 %v4282_v22  ;;  %1677 = vmatprep.mubr.bf16.mxu1 %v4282_v22 }
 0x274   :  { %1607 = vmatpush1.bf16.msra.mxu0 %v3692_v40  ;;  %1648 = vmatpush1.bf16.msra.mxu1 %v3696_v41 }
 0x275   :  { %1608 = vmatprep.subr.bf16.mxu0 %v3700_v42  ;;  %1649 = vmatprep.subr.bf16.mxu1 %v3702_v43  ;;  %v4283_v43 = vld [vmem:[#allocation11_spill] sm:$0xff] }
 0x278   :  { %1609 = vmatpush1.bf16.msra.mxu0 %v3709_v45  ;;  %1650 = vmatpush1.bf16.msra.mxu1 %v3711_v46 }
 0x279   :  { %1610 = vmatprep.subr.bf16.mxu0 %v3715_v47  ;;  %1651 = vmatprep.subr.bf16.mxu1 %v3719_v48 }
 0x27c   :  { %1611 = vmatpush1.bf16.msra.mxu0 %v3721_v49  ;;  %1652 = vmatpush1.bf16.msra.mxu1 %v3723_v50 }
 0x27d   :  { %1612 = vmatprep.subr.bf16.mxu0 %v3727_v51  ;;  %1653 = vmatprep.subr.bf16.mxu1 %v3731_v52 }
 0x280   :  { %1613 = vmatpush1.bf16.msra.mxu0 %v3738_v54  ;;  %1654 = vmatpush1.bf16.msra.mxu1 %v3740_v55 }
 0x281   :  { %1614 = vmatprep.subr.bf16.mxu0 %v3742_v56  ;;  %1655 = vmatprep.subr.bf16.mxu1 %v3744_v57 }
 0x284   :  { %1615 = vmatpush1.bf16.msra.mxu0 %v3750_v58  ;;  %1656 = vmatpush1.bf16.msra.mxu1 %v3752_v59 }
 0x285   :  { %1616 = vmatprep.subr.bf16.mxu0 %v3754_v60  ;;  %1657 = vmatprep.subr.bf16.mxu1 %v3756_v61 }
 0x288   :  { %1617 = vmatpush1.bf16.msra.mxu0 %v3767_v63  ;;  %1658 = vmatpush1.bf16.msra.mxu1 %v3769_v1 }
 0x289   :  { %1618 = vmatprep.subr.bf16.mxu0 %v3771_v2  ;;  %1659 = vmatprep.subr.bf16.mxu1 %v3777_v3 }
 0x28c   :  { %1619 = vmatpush1.bf16.msra.mxu0 %v3781_v4  ;;  %1660 = vmatpush1.bf16.msra.mxu1 %v3783_v5 }
 0x28d   :  { %1955 = vmatprep.subr.bf16.mxu1 %v4010_v7 }
 0x342   :  { %v1328_v36 = vpop.f32.mrb[24].mxu0  ;;  %v1369_v37 = vpop.f32.mrb[24].mxu1 }
 0x343   :  { %v1376_v38 = vadd.f32 %v1328_v36, %v3848_v32  ;;  %v1378_v39 = vadd.f32 %v1369_v37, %v3851_v44  ;;  %v1330_v40 = vpop.f32.mrb[25].mxu0  ;;  %v1371_v41 = vpop.f32.mrb[25].mxu1  ;;  %v4099_v36 = vld [vmem:[#allocation7 + $0xe8] ss:$16 sps:$4 sm:$0xff]  }
 0x344   :  { %v1377_v42 = vadd.f32 %v1330_v40, %v3853_v62  ;;  %v1379_v45 = vadd.f32 %v1371_v41, %v4283_v43  ;;  %v1332_v46 = vpop.f32.mrb[26].mxu0  ;;  %v1373_v47 = vpop.f32.mrb[26].mxu1  ;;  %v4008_v62 = vld [vmem:[#allocation7 + $0x4] ss:$16 sps:$4 sm:$0xff]  }
 0x345   :  { %v3104_v48 = vmul.f32 -1.442695, %v1376_v38  ;;  %v1333_v49 = vpop.f32.mrb[27].mxu0  ;;  %v1374_v50 = vpop.f32.mrb[27].mxu1  ;;  %1914 = vmatprep.subr.bf16.mxu0 %v4008_v62  ;;  %v4285_v41 = vld [vmem:[#allocation13_spill] sm:$0xff]  ;;  %v4286_v46 = vld [vmem:[#allocation14_spill] sm:$0xff] }
 0x346   :  { %v3105_v51 = vmul.f32 -1.442695, %v1377_v42  ;;  %v3106_v52 = vmul.f32 -1.442695, %v1379_v45 }
 0x347   :  { %3474 = vpow2.f32 %v3104_v48  ;;  %v4287_v48 = vld [vmem:[#allocation15_spill] sm:$0xff] }
 0x348   :  { %3476 = vpow2.f32 %v3105_v51 }
 0x349   :  { %3478 = vpow2.f32 %v3106_v52 }
 0x34a   :  { %3480 = vtanh.f32 %v1378_v39  ;;  %v4284_v39 = vld [vmem:[#allocation12_spill] sm:$0xff] }
 0x351   :  { %v3475_v54 = vpop.eup %3474 }
 0x352   :  { %v3477_v55 = vpop.eup %3476  ;;  %v1383_v56 = vadd.f32 1.0, %v3475_v54 }
 0x353   :  { %v1389_v57 = vadd.f32 1.0, %v3477_v55  ;;  %v3479_v58 = vpop.eup %3478 }
 0x354   :  { %3482 = vrcp.f32 %v1383_v56  ;;  %v3481_v59 = vpop.eup %3480  ;;  %v1396_v1 = vadd.f32 1.0, %v3479_v58 }
 0x355   :  { %3484 = vrcp.f32 %v1389_v57 }
 0x356   :  { %3486 = vrcp.f32 %v1396_v1 }
 0x35e   :  { %v3483_v60 = vpop.eup %3482 }
 0x35f   :  { %v3485_v61 = vpop.eup %3484  ;;  %v1400_v63 = vmul.f32 %v3483_v60, %v3481_v59 }
 0x360   :  { %v1399_v2 = vmul.f32 %v3485_v61, %v3957_v35  ;;  %v3487_v4 = vpop.eup %3486  ;;  %v4083_v35 = vld [vmem:[#allocation7 + $0xc0] ss:$16 sps:$4 sm:$0xff]  }
 0x362   :  { %v4000_v3 = vadd.f32 %v1400_v63, %v1399_v2 }
 0x364   :  { %3488 = vtanh.f32 %v4000_v3 }
 0x36e   :  { %v3489_v5 = vpop.eup %3488 }
 0x36f   :  { %v1403_v32 = vmul.f32 %v3489_v5, %v3487_v4 }
 0x371   :  { %v1404_v44 = vpack.c.bf16 %v1403_v32, %v1403_v32 }
 0x373   :  { %3107 = vst [vmem:[%s4258_s4 + $0x8] sm:$0xf] %v1404_v44  ;;  %1637 = vmatmul.mubr.bf16.vlgmr.msra.gmra.mrb[28].mxu0 %v1404_v44  ;;  %1678 = vmatmul.mubr.bf16.vlgmr.msra.gmra.mrb[28].mxu1 %v1404_v44 }
 0x374   :  { %1946 = vmatprep.mubr.bf16.mxu0 %v4282_v22  ;;  %1987 = vmatprep.mubr.bf16.mxu1 %v4282_v22 }
 0x375   :  { %1915 = vmatpush1.bf16.msra.mxu0 %v4012_v8  ;;  %1956 = vmatpush1.bf16.msra.mxu1 %v4014_v12 }
 0x376   :  { %1916 = vmatprep.subr.bf16.mxu0 %v4020_v23  ;;  %1957 = vmatprep.subr.bf16.mxu1 %v4022_v31 }
 0x379   :  { %1917 = vmatpush1.bf16.msra.mxu0 %v4024_v15  ;;  %1958 = vmatpush1.bf16.msra.mxu1 %v4026_v14 }
 0x37a   :  { %1918 = vmatprep.subr.bf16.mxu0 %v4032_v16  ;;  %1959 = vmatprep.subr.bf16.mxu1 %v4034_v18 }
 0x37d   :  { %1919 = vmatpush1.bf16.msra.mxu0 %v4036_v17  ;;  %1960 = vmatpush1.bf16.msra.mxu1 %v4038_v19 }
 0x37e   :  { %1920 = vmatprep.subr.bf16.mxu0 %v4044_v0  ;;  %1961 = vmatprep.subr.bf16.mxu1 %v4046_v33 }
 0x381   :  { %1921 = vmatpush1.bf16.msra.mxu0 %v4048_v34  ;;  %1962 = vmatpush1.bf16.msra.mxu1 %v4050_v20 }
 0x382   :  { %1922 = vmatprep.subr.bf16.mxu0 %v4058_v24  ;;  %1963 = vmatprep.subr.bf16.mxu1 %v4062_v28 }
 0x385   :  { %1923 = vmatpush1.bf16.msra.mxu0 %v4056_v21  ;;  %1964 = vmatpush1.bf16.msra.mxu1 %v4060_v26 }
 0x386   :  { %1924 = vmatprep.subr.bf16.mxu0 %v4064_v27  ;;  %1965 = vmatprep.subr.bf16.mxu1 %v4067_v29 }
 0x389   :  { %1925 = vmatpush1.bf16.msra.mxu0 %v4071_v9  ;;  %1966 = vmatpush1.bf16.msra.mxu1 %v4075_v53 }
 0x38a   :  { %1926 = vmatprep.subr.bf16.mxu0 %v4077_v25  ;;  %1967 = vmatprep.subr.bf16.mxu1 %v4080_v11 }
 0x38d   :  { %1927 = vmatpush1.bf16.msra.mxu0 %v4083_v35  ;;  %1968 = vmatpush1.bf16.msra.mxu1 %v4087_v10 }
 0x38e   :  { %1928 = vmatprep.subr.bf16.mxu0 %v4089_v30  ;;  %1969 = vmatprep.subr.bf16.mxu1 %v4092_v13 }
 0x391   :  { %1929 = vmatpush1.bf16.msra.mxu0 %v4095_v6  ;;  %1970 = vmatpush1.bf16.msra.mxu1 %v4099_v36 }
 0x392   :  { %2224 = vmatprep.subr.bf16.mxu0 %v4008_v62  ;;  %2265 = vmatprep.subr.bf16.mxu1 %v4010_v7 }
 0x446   :  { %v1638_v37 = vpop.f32.mrb[28].mxu0  ;;  %v1679_v38 = vpop.f32.mrb[28].mxu1 }
 0x447   :  { %v1686_v40 = vadd.f32 %v1638_v37, %v4284_v39  ;;  %v1688_v42 = vadd.f32 %v1679_v38, %v4285_v41  ;;  %v1640_v43 = vpop.f32.mrb[29].mxu0  ;;  %v1681_v45 = vpop.f32.mrb[29].mxu1 }
 0x448   :  { %v1687_v47 = vadd.f32 %v1640_v43, %v4286_v46  ;;  %v1689_v49 = vadd.f32 %v1681_v45, %v4287_v48  ;;  %v1642_v50 = vpop.f32.mrb[30].mxu0  ;;  %v1683_v51 = vpop.f32.mrb[30].mxu1  ;;  %v4288_v43 = vld [vmem:[#allocation16_spill] sm:$0xff]  ;;  %v4289_v46 = vld [vmem:[#allocation17_spill] sm:$0xff] }
 0x449   :  { %v3140_v52 = vmul.f32 -1.442695, %v1686_v40  ;;  %v1643_v54 = vpop.f32.mrb[31].mxu0  ;;  %v1684_v55 = vpop.f32.mrb[31].mxu1  ;;  %v4290_v50 = vld [vmem:[#allocation18_spill] sm:$0xff] }
 0x44a   :  { %v3141_v56 = vmul.f32 -1.442695, %v1687_v47  ;;  %v3142_v57 = vmul.f32 -1.442695, %v1689_v49 }
 0x44b   :  { %3490 = vpow2.f32 %v3140_v52  ;;  %v4291_v52 = vld [vmem:[#allocation19_spill] sm:$0xff] }
 0x44c   :  { %3492 = vpow2.f32 %v3141_v56 }
 0x44d   :  { %3494 = vpow2.f32 %v3142_v57 }
 0x44e   :  { %3496 = vtanh.f32 %v1688_v42 }
 0x455   :  { %v3491_v58 = vpop.eup %3490 }
 0x456   :  { %v3493_v59 = vpop.eup %3492  ;;  %v1693_v60 = vadd.f32 1.0, %v3491_v58 }
 0x457   :  { %v1699_v61 = vadd.f32 1.0, %v3493_v59  ;;  %v3495_v63 = vpop.eup %3494 }
 0x458   :  { %3498 = vrcp.f32 %v1693_v60  ;;  %v3497_v1 = vpop.eup %3496  ;;  %v1706_v32 = vadd.f32 1.0, %v3495_v63 }
 0x459   :  { %3500 = vrcp.f32 %v1699_v61 }
 0x45a   :  { %3502 = vrcp.f32 %v1706_v32 }
 0x462   :  { %v3499_v2 = vpop.eup %3498 }
 0x463   :  { %v3501_v4 = vpop.eup %3500  ;;  %v1710_v5 = vmul.f32 %v3499_v2, %v3497_v1 }
 0x464   :  { %v1709_v44 = vmul.f32 %v3501_v4, %v4000_v3  ;;  %v3503_v38 = vpop.eup %3502 }
 0x466   :  { %v4111_v37 = vadd.f32 %v1710_v5, %v1709_v44 }
 0x468   :  { %3504 = vtanh.f32 %v4111_v37 }
 0x472   :  { %v3505_v39 = vpop.eup %3504 }
 0x473   :  { %v1713_v40 = vmul.f32 %v3505_v39, %v3503_v38 }
 0x475   :  { %v1714_v41 = vpack.c.bf16 %v1713_v40, %v1713_v40 }
 0x477   :  { %3143 = vst [vmem:[%s4258_s4 + $0xc] sm:$0xf] %v1714_v41  ;;  %1947 = vmatmul.mubr.bf16.vlgmr.msra.gmra.mrb[32].mxu0 %v1714_v41  ;;  %1988 = vmatmul.mubr.bf16.vlgmr.msra.gmra.mrb[32].mxu1 %v1714_v41 }
 0x478   :  { %2225 = vmatpush1.bf16.msra.mxu0 %v4012_v8  ;;  %2266 = vmatpush1.bf16.msra.mxu1 %v4014_v12 }
 0x479   :  { %2226 = vmatprep.subr.bf16.mxu0 %v4020_v23  ;;  %2267 = vmatprep.subr.bf16.mxu1 %v4022_v31 }
 0x47a   :  { %2256 = vmatprep.mubr.bf16.mxu0 %v4282_v22  ;;  %2297 = vmatprep.mubr.bf16.mxu1 %v4282_v22 }
 0x47c   :  { %2227 = vmatpush1.bf16.msra.mxu0 %v4024_v15  ;;  %2268 = vmatpush1.bf16.msra.mxu1 %v4026_v14 }
 0x47d   :  { %2228 = vmatprep.subr.bf16.mxu0 %v4032_v16  ;;  %2269 = vmatprep.subr.bf16.mxu1 %v4034_v18 }
 0x480   :  { %2229 = vmatpush1.bf16.msra.mxu0 %v4036_v17  ;;  %2270 = vmatpush1.bf16.msra.mxu1 %v4038_v19 }
 0x481   :  { %2230 = vmatprep.subr.bf16.mxu0 %v4044_v0  ;;  %2271 = vmatprep.subr.bf16.mxu1 %v4046_v33 }
 0x484   :  { %2231 = vmatpush1.bf16.msra.mxu0 %v4048_v34  ;;  %2272 = vmatpush1.bf16.msra.mxu1 %v4050_v20 }
 0x485   :  { %2232 = vmatprep.subr.bf16.mxu0 %v4058_v24  ;;  %2273 = vmatprep.subr.bf16.mxu1 %v4062_v28 }
 0x488   :  { %2233 = vmatpush1.bf16.msra.mxu0 %v4056_v21  ;;  %2274 = vmatpush1.bf16.msra.mxu1 %v4060_v26 }
 0x489   :  { %2234 = vmatprep.subr.bf16.mxu0 %v4064_v27  ;;  %2275 = vmatprep.subr.bf16.mxu1 %v4067_v29 }
 0x48c   :  { %2235 = vmatpush1.bf16.msra.mxu0 %v4071_v9  ;;  %2276 = vmatpush1.bf16.msra.mxu1 %v4075_v53 }
 0x48d   :  { %2236 = vmatprep.subr.bf16.mxu0 %v4077_v25  ;;  %2277 = vmatprep.subr.bf16.mxu1 %v4080_v11 }
 0x490   :  { %2237 = vmatpush1.bf16.msra.mxu0 %v4083_v35  ;;  %2278 = vmatpush1.bf16.msra.mxu1 %v4087_v10 }
 0x491   :  { %2238 = vmatprep.subr.bf16.mxu0 %v4089_v30  ;;  %2279 = vmatprep.subr.bf16.mxu1 %v4092_v13 }
 0x494   :  { %2239 = vmatpush1.bf16.msra.mxu0 %v4095_v6  ;;  %2280 = vmatpush1.bf16.msra.mxu1 %v4099_v36 }
 0x495   :  { %2534 = vmatprep.subr.bf16.mxu0 %v4008_v62  ;;  %2575 = vmatprep.subr.bf16.mxu1 %v4010_v7 }
 0x54a   :  { %v1948_v3 = vpop.f32.mrb[32].mxu0  ;;  %v1989_v42 = vpop.f32.mrb[32].mxu1 }
 0x54b   :  { %v1996_v45 = vadd.f32 %v1948_v3, %v4288_v43  ;;  %v1998_v47 = vadd.f32 %v1989_v42, %v4289_v46  ;;  %v1950_v48 = vpop.f32.mrb[33].mxu0  ;;  %v1991_v49 = vpop.f32.mrb[33].mxu1 }
 0x54c   :  { %v1997_v51 = vadd.f32 %v1950_v48, %v4290_v50  ;;  %v1999_v54 = vadd.f32 %v1991_v49, %v4291_v52  ;;  %v1952_v55 = vpop.f32.mrb[34].mxu0  ;;  %v1993_v56 = vpop.f32.mrb[34].mxu1  ;;  %v4292_v48 = vld [vmem:[#allocation20_spill] sm:$0xff]  ;;  %v4293_v50 = vld [vmem:[#allocation21_spill] sm:$0xff] }
 0x54d   :  { %v3176_v57 = vmul.f32 -1.442695, %v1996_v45  ;;  %v1953_v58 = vpop.f32.mrb[35].mxu0  ;;  %v1994_v59 = vpop.f32.mrb[35].mxu1  ;;  %v4294_v55 = vld [vmem:[#allocation22_spill] sm:$0xff] }
 0x54e   :  { %v3177_v60 = vmul.f32 -1.442695, %v1997_v51  ;;  %v3178_v61 = vmul.f32 -1.442695, %v1999_v54 }
 0x54f   :  { %3506 = vpow2.f32 %v3176_v57  ;;  %v4295_v57 = vld [vmem:[#allocation23_spill] sm:$0xff] }
 0x550   :  { %3508 = vpow2.f32 %v3177_v60 }
 0x551   :  { %3510 = vpow2.f32 %v3178_v61 }
 0x552   :  { %3512 = vtanh.f32 %v1998_v47 }
 0x559   :  { %v3507_v63 = vpop.eup %3506 }
 0x55a   :  { %v3509_v1 = vpop.eup %3508  ;;  %v2003_v2 = vadd.f32 1.0, %v3507_v63 }
 0x55b   :  { %v2009_v4 = vadd.f32 1.0, %v3509_v1  ;;  %v3511_v5 = vpop.eup %3510 }
 0x55c   :  { %3514 = vrcp.f32 %v2003_v2  ;;  %v3513_v32 = vpop.eup %3512  ;;  %v2016_v40 = vadd.f32 1.0, %v3511_v5 }
 0x55d   :  { %3516 = vrcp.f32 %v2009_v4 }
 0x55e   :  { %3518 = vrcp.f32 %v2016_v40 }
 0x566   :  { %v3515_v44 = vpop.eup %3514 }
 0x567   :  { %v3517_v38 = vpop.eup %3516  ;;  %v2020_v39 = vmul.f32 %v3515_v44, %v3513_v32 }
 0x568   :  { %v2019_v41 = vmul.f32 %v3517_v38, %v4111_v37  ;;  %v3519_v42 = vpop.eup %3518 }
 0x56a   :  { %v4156_v3 = vadd.f32 %v2020_v39, %v2019_v41 }
 0x56c   :  { %3520 = vtanh.f32 %v4156_v3 }
 0x576   :  { %v3521_v43 = vpop.eup %3520 }
 0x577   :  { %v2023_v45 = vmul.f32 %v3521_v43, %v3519_v42 }
 0x579   :  { %v2024_v46 = vpack.c.bf16 %v2023_v45, %v2023_v45 }
 0x57b   :  { %3179 = vst [vmem:[%s4258_s4 + $0x10] sm:$0xf] %v2024_v46  ;;  %2257 = vmatmul.mubr.bf16.vlgmr.msra.gmra.mrb[36].mxu0 %v2024_v46  ;;  %2298 = vmatmul.mubr.bf16.vlgmr.msra.gmra.mrb[36].mxu1 %v2024_v46 }
 0x57c   :  { %2535 = vmatpush1.bf16.msra.mxu0 %v4012_v8  ;;  %2576 = vmatpush1.bf16.msra.mxu1 %v4014_v12 }
 0x57d   :  { %2536 = vmatprep.subr.bf16.mxu0 %v4020_v23  ;;  %2577 = vmatprep.subr.bf16.mxu1 %v4022_v31 }
 0x57e   :  { %2566 = vmatprep.mubr.bf16.mxu0 %v4282_v22  ;;  %2607 = vmatprep.mubr.bf16.mxu1 %v4282_v22 }
 0x580   :  { %2537 = vmatpush1.bf16.msra.mxu0 %v4024_v15  ;;  %2578 = vmatpush1.bf16.msra.mxu1 %v4026_v14 }
 0x581   :  { %2538 = vmatprep.subr.bf16.mxu0 %v4032_v16  ;;  %2579 = vmatprep.subr.bf16.mxu1 %v4034_v18 }
 0x584   :  { %2539 = vmatpush1.bf16.msra.mxu0 %v4036_v17  ;;  %2580 = vmatpush1.bf16.msra.mxu1 %v4038_v19 }
 0x585   :  { %2540 = vmatprep.subr.bf16.mxu0 %v4044_v0  ;;  %2581 = vmatprep.subr.bf16.mxu1 %v4046_v33 }
 0x588   :  { %2541 = vmatpush1.bf16.msra.mxu0 %v4048_v34  ;;  %2582 = vmatpush1.bf16.msra.mxu1 %v4050_v20 }
 0x589   :  { %2542 = vmatprep.subr.bf16.mxu0 %v4058_v24  ;;  %2583 = vmatprep.subr.bf16.mxu1 %v4062_v28 }
 0x58c   :  { %2543 = vmatpush1.bf16.msra.mxu0 %v4056_v21  ;;  %2584 = vmatpush1.bf16.msra.mxu1 %v4060_v26 }
 0x58d   :  { %2544 = vmatprep.subr.bf16.mxu0 %v4064_v27  ;;  %2585 = vmatprep.subr.bf16.mxu1 %v4067_v29 }
 0x590   :  { %2545 = vmatpush1.bf16.msra.mxu0 %v4071_v9  ;;  %2586 = vmatpush1.bf16.msra.mxu1 %v4075_v53 }
 0x591   :  { %2546 = vmatprep.subr.bf16.mxu0 %v4077_v25  ;;  %2587 = vmatprep.subr.bf16.mxu1 %v4080_v11 }
 0x594   :  { %2547 = vmatpush1.bf16.msra.mxu0 %v4083_v35  ;;  %2588 = vmatpush1.bf16.msra.mxu1 %v4087_v10 }
 0x595   :  { %2548 = vmatprep.subr.bf16.mxu0 %v4089_v30  ;;  %2589 = vmatprep.subr.bf16.mxu1 %v4092_v13 }
 0x598   :  { %2549 = vmatpush1.bf16.msra.mxu0 %v4095_v6  ;;  %2590 = vmatpush1.bf16.msra.mxu1 %v4099_v36 }
 0x599   :  { %2844 = vmatprep.subr.bf16.mxu0 %v4008_v62  ;;  %2885 = vmatprep.subr.bf16.mxu1 %v4010_v7 }
 0x64e   :  { %v2258_v37 = vpop.f32.mrb[36].mxu0  ;;  %v2299_v47 = vpop.f32.mrb[36].mxu1 }
 0x64f   :  { %v2306_v49 = vadd.f32 %v2258_v37, %v4292_v48  ;;  %v2308_v51 = vadd.f32 %v2299_v47, %v4293_v50  ;;  %v2260_v52 = vpop.f32.mrb[37].mxu0  ;;  %v2301_v54 = vpop.f32.mrb[37].mxu1 }
 0x650   :  { %v2307_v56 = vadd.f32 %v2260_v52, %v4294_v55  ;;  %v2309_v58 = vadd.f32 %v2301_v54, %v4295_v57  ;;  %v2262_v59 = vpop.f32.mrb[38].mxu0  ;;  %v2303_v60 = vpop.f32.mrb[38].mxu1  ;;  %v4300_v55 = vld [vmem:[#allocation28_spill] sm:$0xff]  ;;  %v4301_v57 = vld [vmem:[#allocation29_spill] sm:$0xff] }
 0x651   :  { %v3212_v61 = vmul.f32 -1.442695, %v2306_v49  ;;  %v2263_v63 = vpop.f32.mrb[39].mxu0  ;;  %v2304_v1 = vpop.f32.mrb[39].mxu1 }
 0x652   :  { %v3213_v62 = vmul.f32 -1.442695, %v2307_v56  ;;  %v3214_v7 = vmul.f32 -1.442695, %v2309_v58  ;;  %v4303_v1 = vld [vmem:[#allocation31_spill] sm:$0xff] }
 0x653   :  { %3522 = vpow2.f32 %v3212_v61  ;;  %v4302_v61 = vld [vmem:[#allocation30_spill] sm:$0xff] }
 0x654   :  { %3524 = vpow2.f32 %v3213_v62 }
 0x655   :  { %3526 = vpow2.f32 %v3214_v7 }
 0x656   :  { %3528 = vtanh.f32 %v2308_v51 }
 0x65d   :  { %v3523_v2 = vpop.eup %3522 }
 0x65e   :  { %v3525_v4 = vpop.eup %3524  ;;  %v2313_v5 = vadd.f32 1.0, %v3523_v2 }
 0x65f   :  { %v2319_v32 = vadd.f32 1.0, %v3525_v4  ;;  %v3527_v44 = vpop.eup %3526 }
 0x660   :  { %3530 = vrcp.f32 %v2313_v5  ;;  %v3529_v38 = vpop.eup %3528  ;;  %v2326_v42 = vadd.f32 1.0, %v3527_v44 }
 0x661   :  { %3532 = vrcp.f32 %v2319_v32 }
 0x662   :  { %3534 = vrcp.f32 %v2326_v42 }
 0x66a   :  { %v3531_v39 = vpop.eup %3530 }
 0x66b   :  { %v3533_v40 = vpop.eup %3532  ;;  %v2330_v41 = vmul.f32 %v3531_v39, %v3529_v38 }
 0x66c   :  { %v2329_v43 = vmul.f32 %v3533_v40, %v4156_v3  ;;  %v3535_v46 = vpop.eup %3534 }
 0x66e   :  { %v4201_v45 = vadd.f32 %v2330_v41, %v2329_v43 }
 0x670   :  { %3536 = vtanh.f32 %v4201_v45 }
 0x67a   :  { %v3537_v37 = vpop.eup %3536 }
 0x67b   :  { %v2333_v47 = vmul.f32 %v3537_v37, %v3535_v46 }
 0x67d   :  { %v2334_v48 = vpack.c.bf16 %v2333_v47, %v2333_v47 }
 0x67f   :  { %3215 = vst [vmem:[%s4258_s4 + $0x14] sm:$0xf] %v2334_v48  ;;  %2567 = vmatmul.mubr.bf16.vlgmr.msra.gmra.mrb[40].mxu0 %v2334_v48  ;;  %2608 = vmatmul.mubr.bf16.vlgmr.msra.gmra.mrb[40].mxu1 %v2334_v48 }
 0x680   :  { %2845 = vmatpush1.bf16.msra.mxu0 %v4012_v8  ;;  %2886 = vmatpush1.bf16.msra.mxu1 %v4014_v12  ;;  %v4296_v12 = vld [vmem:[#allocation24_spill] sm:$0xff] }
 0x681   :  { %2846 = vmatprep.subr.bf16.mxu0 %v4020_v23  ;;  %2887 = vmatprep.subr.bf16.mxu1 %v4022_v31  ;;  %v4297_v31 = vld [vmem:[#allocation25_spill] sm:$0xff] }
 0x682   :  { %2876 = vmatprep.mubr.bf16.mxu0 %v4282_v22  ;;  %2917 = vmatprep.mubr.bf16.mxu1 %v4282_v22 }
 0x684   :  { %2847 = vmatpush1.bf16.msra.mxu0 %v4024_v15  ;;  %2888 = vmatpush1.bf16.msra.mxu1 %v4026_v14 }
 0x685   :  { %2848 = vmatprep.subr.bf16.mxu0 %v4032_v16  ;;  %2889 = vmatprep.subr.bf16.mxu1 %v4034_v18  ;;  %v4298_v18 = vld [vmem:[#allocation26_spill] sm:$0xff] }
 0x688   :  { %2849 = vmatpush1.bf16.msra.mxu0 %v4036_v17  ;;  %2890 = vmatpush1.bf16.msra.mxu1 %v4038_v19  ;;  %v4299_v19 = vld [vmem:[#allocation27_spill] sm:$0xff] }
 0x689   :  { %2850 = vmatprep.subr.bf16.mxu0 %v4044_v0  ;;  %2891 = vmatprep.subr.bf16.mxu1 %v4046_v33 }
 0x68c   :  { %2851 = vmatpush1.bf16.msra.mxu0 %v4048_v34  ;;  %2892 = vmatpush1.bf16.msra.mxu1 %v4050_v20 }
 0x68d   :  { %2852 = vmatprep.subr.bf16.mxu0 %v4058_v24  ;;  %2893 = vmatprep.subr.bf16.mxu1 %v4062_v28 }
 0x690   :  { %2853 = vmatpush1.bf16.msra.mxu0 %v4056_v21  ;;  %2894 = vmatpush1.bf16.msra.mxu1 %v4060_v26 }
 0x691   :  { %2854 = vmatprep.subr.bf16.mxu0 %v4064_v27  ;;  %2895 = vmatprep.subr.bf16.mxu1 %v4067_v29 }
 0x694   :  { %2855 = vmatpush1.bf16.msra.mxu0 %v4071_v9  ;;  %2896 = vmatpush1.bf16.msra.mxu1 %v4075_v53 }
 0x695   :  { %2856 = vmatprep.subr.bf16.mxu0 %v4077_v25  ;;  %2897 = vmatprep.subr.bf16.mxu1 %v4080_v11 }
 0x698   :  { %2857 = vmatpush1.bf16.msra.mxu0 %v4083_v35  ;;  %2898 = vmatpush1.bf16.msra.mxu1 %v4087_v10 }
 0x699   :  { %2858 = vmatprep.subr.bf16.mxu0 %v4089_v30  ;;  %2899 = vmatprep.subr.bf16.mxu1 %v4092_v13 }
 0x69c   :  { %2859 = vmatpush1.bf16.msra.mxu0 %v4095_v6  ;;  %2900 = vmatpush1.bf16.msra.mxu1 %v4099_v36 }
 0x752   :  { %v2568_v22 = vpop.f32.mrb[40].mxu0  ;;  %v2609_v8 = vpop.f32.mrb[40].mxu1 }
 0x753   :  { %v2616_v23 = vadd.f32 %v2568_v22, %v4296_v12  ;;  %v2618_v15 = vadd.f32 %v2609_v8, %v4297_v31  ;;  %v2570_v14 = vpop.f32.mrb[41].mxu0  ;;  %v2611_v16 = vpop.f32.mrb[41].mxu1 }
 0x754   :  { %v2617_v17 = vadd.f32 %v2570_v14, %v4298_v18  ;;  %v2619_v0 = vadd.f32 %v2611_v16, %v4299_v19  ;;  %v2572_v33 = vpop.f32.mrb[42].mxu0  ;;  %v2613_v34 = vpop.f32.mrb[42].mxu1 }
 0x755   :  { %v3248_v20 = vmul.f32 -1.442695, %v2616_v23  ;;  %v2573_v21 = vpop.f32.mrb[43].mxu0  ;;  %v2614_v24 = vpop.f32.mrb[43].mxu1 }
 0x756   :  { %v3249_v26 = vmul.f32 -1.442695, %v2617_v17  ;;  %v3250_v28 = vmul.f32 -1.442695, %v2619_v0 }
 0x757   :  { %3538 = vpow2.f32 %v3248_v20 }
 0x758   :  { %3540 = vpow2.f32 %v3249_v26 }
 0x759   :  { %3542 = vpow2.f32 %v3250_v28 }
 0x75a   :  { %3544 = vtanh.f32 %v2618_v15 }
 0x761   :  { %v3539_v27 = vpop.eup %3538 }
 0x762   :  { %v3541_v29 = vpop.eup %3540  ;;  %v2623_v9 = vadd.f32 1.0, %v3539_v27 }
 0x763   :  { %v2629_v53 = vadd.f32 1.0, %v3541_v29  ;;  %v3543_v25 = vpop.eup %3542 }
 0x764   :  { %3546 = vrcp.f32 %v2623_v9  ;;  %v3545_v11 = vpop.eup %3544  ;;  %v2636_v13 = vadd.f32 1.0, %v3543_v25 }
 0x765   :  { %3548 = vrcp.f32 %v2629_v53 }
 0x766   :  { %3550 = vrcp.f32 %v2636_v13 }
 0x76e   :  { %v3547_v35 = vpop.eup %3546 }
 0x76f   :  { %v3549_v10 = vpop.eup %3548  ;;  %v2640_v30 = vmul.f32 %v3547_v35, %v3545_v11 }
 0x770   :  { %v2639_v6 = vmul.f32 %v3549_v10, %v4201_v45  ;;  %v3551_v3 = vpop.eup %3550 }
 0x772   :  { %v2641_v36 = vadd.f32 %v2640_v30, %v2639_v6 }
 0x774   :  { %3552 = vtanh.f32 %v2641_v36 }
 0x77e   :  { %v3553_v49 = vpop.eup %3552 }
 0x77f   :  { %v2643_v50 = vmul.f32 %v3553_v49, %v3551_v3 }
 0x781   :  { %v2644_v51 = vpack.c.bf16 %v2643_v50, %v2643_v50 }
 0x783   :  { %3251 = vst [vmem:[%s4258_s4 + $0x18] sm:$0xf] %v2644_v51  ;;  %2877 = vmatmul.mubr.bf16.vlgmr.msra.gmra.mrb[44].mxu0 %v2644_v51  ;;  %2918 = vmatmul.mubr.bf16.vlgmr.msra.gmra.mrb[44].mxu1 %v2644_v51 }
 0x856   :  { %v2878_v52 = vpop.f32.mrb[44].mxu0  ;;  %v2919_v54 = vpop.f32.mrb[44].mxu1 }
 0x857   :  { %v2926_v56 = vadd.f32 %v2878_v52, %v4300_v55  ;;  %v2928_v58 = vadd.f32 %v2919_v54, %v4301_v57  ;;  %v2880_v59 = vpop.f32.mrb[45].mxu0  ;;  %v2921_v60 = vpop.f32.mrb[45].mxu1 }
 0x858   :  { %v2927_v63 = vadd.f32 %v2880_v59, %v4302_v61  ;;  %v2929_v62 = vadd.f32 %v2921_v60, %v4303_v1  ;;  %v2882_v7 = vpop.f32.mrb[46].mxu0  ;;  %v2923_v2 = vpop.f32.mrb[46].mxu1 }
 0x859   :  { %v3284_v4 = vmul.f32 -1.442695, %v2926_v56  ;;  %v2883_v5 = vpop.f32.mrb[47].mxu0  ;;  %v2924_v32 = vpop.f32.mrb[47].mxu1 }
 0x85a   :  { %v3285_v44 = vmul.f32 -1.442695, %v2927_v63  ;;  %v3286_v38 = vmul.f32 -1.442695, %v2929_v62 }
 0x85b   :  { %3554 = vpow2.f32 %v3284_v4 }
 0x85c   :  { %3556 = vpow2.f32 %v3285_v44 }
 0x85d   :  { %3558 = vpow2.f32 %v3286_v38 }
 0x85e   :  { %3560 = vtanh.f32 %v2928_v58 }
 0x865   :  { %v3555_v39 = vpop.eup %3554 }
 0x866   :  { %v3557_v40 = vpop.eup %3556  ;;  %v2933_v41 = vadd.f32 1.0, %v3555_v39 }
 0x867   :  { %v2939_v42 = vadd.f32 1.0, %v3557_v40  ;;  %v3559_v43 = vpop.eup %3558 }
 0x868   :  { %3562 = vrcp.f32 %v2933_v41  ;;  %v3561_v45 = vpop.eup %3560  ;;  %v2946_v48 = vadd.f32 1.0, %v3559_v43 }
 0x869   :  { %3564 = vrcp.f32 %v2939_v42 }
 0x86a   :  { %3566 = vrcp.f32 %v2946_v48 }
 0x872   :  { %v3563_v46 = vpop.eup %3562 }
 0x873   :  { %v3565_v37 = vpop.eup %3564  ;;  %v2950_v47 = vmul.f32 %v3563_v46, %v3561_v45 }
 0x874   :  { %v2949_v22 = vmul.f32 %v3565_v37, %v2641_v36  ;;  %v3567_v12 = vpop.eup %3566 }
 0x876   :  { %v2951_v8 = vadd.f32 %v2950_v47, %v2949_v22 }
 0x878   :  { %3568 = vtanh.f32 %v2951_v8 }
 0x882   :  { %v3569_v23 = vpop.eup %3568 }
 0x883   :  { %v2953_v31 = vmul.f32 %v3569_v23, %v3567_v12 }
 0x885   :  { %v2954_v15 = vpack.c.bf16 %v2953_v31, %v2953_v31 }
 0x887   :  { %3287 = vst [vmem:[%s4258_s4 + $0x1c] sm:$0xf] %v2954_v15 }
 0x888   :  { %2963 = vsyncpa [#allocation6], 1 }
 0x889   :  { %2964 = vsyncpa [#allocation8], 1 }

</bundles_post_ra>
